<compile_context>
chip_gen: v7x
topology: tpu7x:2x2x1
jax: 0.10.0
libtpu: 0.0.40
codegen_flags: <defaults>
</compile_context>

<pallas_src>
import numpy as np
import jax
import jax.numpy as jnp
from jax.experimental import pallas as pl
from jax.experimental.pallas import tpu as pltpu

# ----------------------------- model config ---------------------------------
N_FEATURES = 40          # n_features, divisible by heads=5
SEQ_LEN    = 8           # seq_len
N_LAYERS   = 2           # n_layers
FWD_EXP    = 64          # forward_expansion
HEADS      = 5
HEAD_DIM   = N_FEATURES // HEADS
POS_DIM    = 44          # nn.Embedding(seq_len, 44)
Y_DIM      = 14          # opp_expansion: Linear(14, n_features)
OUT_DIM    = 14          # fc_out: Linear(2*n_features, 14)
IN_DIM     = 2 * POS_DIM + Y_DIM   # packed kernel input: [pos | x | y] = 102
EPS        = 1e-5        # nn.LayerNorm default eps
B_CHUNK    = 8           # batch elements per grid step -> M = 64 (see header)


# --------------------------- in-kernel helpers -------------------------------
def _erf(x):
    # Abramowitz & Stegun 7.1.26; max abs error 1.5e-7.
    a1, a2, a3, a4, a5 = 0.254829592, -0.284496736, 1.421413741, -1.453152027, 1.061405429
    p = 0.3275911
    sgn = jnp.where(x >= 0.0, 1.0, -1.0)
    ax = jnp.abs(x)
    t = 1.0 / (1.0 + p * ax)
    poly = ((((a5 * t + a4) * t + a3) * t + a2) * t + a1) * t
    return sgn * (1.0 - poly * jnp.exp(-ax * ax))


def _gelu_exact(x):
    return 0.5 * x * (1.0 + _erf(x * (1.0 / np.sqrt(2.0))))


def _layernorm(x, w, b):
    mu = jnp.mean(x, axis=-1, keepdims=True)
    d = x - mu
    var = jnp.mean(d * d, axis=-1, keepdims=True)
    return d * jax.lax.rsqrt(var + EPS) * w + b


# ------------------------------- the kernel ----------------------------------
def encoder_kernel(xy_ref, mask_ref, w_in_ref, w_qkv_ref, w_o_ref, ln_ref,
                   w_f1_ref, w_f2_ref, w_head_ref, o_ref):
    f32 = jnp.float32
    F, HD = N_FEATURES, HEAD_DIM

    # ---- fused input projection: [pos|x|y] @ blockdiag(w_exp, w_opp) ----
    xy0 = jnp.dot(xy_ref[...], w_in_ref[...], preferred_element_type=f32)   # (M, 2F)
    x = xy0[:, :F]                         # expansion(concat(pos, x))
    yp = xy0[:, F:2 * F]                   # opp_expansion(y)

    neg_mask = mask_ref[...]               # (M, M) block-diagonal additive mask
    lnp = ln_ref[...]                      # (L, 4, F)

    for l in range(N_LAYERS):              # static unrolled layer loop
        # -------- attention sub-layer (pre-LN residual block) --------
        res = x
        h = _layernorm(x, lnp[l, 0], lnp[l, 1])
        # 1/sqrt(HD) is folded into the Q columns of w_qkv (host side).
        qkv = jnp.dot(h, w_qkv_ref[l], preferred_element_type=f32)          # (M, 3F)

        # one head at a time: largest live temp is a single (M, M) tile
        pv = []
        for hh in range(HEADS):
            q = qkv[:, hh * HD:(hh + 1) * HD]                               # (M, HD)
            k = qkv[:, F + hh * HD:F + (hh + 1) * HD]                       # (M, HD)
            v = qkv[:, 2 * F + hh * HD:2 * F + (hh + 1) * HD]               # (M, HD)
            s = jax.lax.dot_general(q, k, (((1,), (1,)), ((), ())),
                                    preferred_element_type=f32) + neg_mask  # (M, M)
            m = jnp.max(s, axis=-1, keepdims=True)
            e = jnp.exp(s - m)
            p = e * pl.reciprocal(jnp.sum(e, axis=-1, keepdims=True), approx=True)
            pv.append(jnp.dot(p, v, preferred_element_type=f32))            # (M, HD)

        # concat heads on the lane axis -> single (M, F) @ (F, F) output proj
        att = jnp.dot(jnp.concatenate(pv, axis=-1), w_o_ref[l],
                      preferred_element_type=f32)                           # (M, F)
        x = res + att                      # dropout(p=0.1) -> identity (eval)

        # -------- feed-forward sub-layer --------
        res = x
        h = _layernorm(x, lnp[l, 2], lnp[l, 3])
        h = jnp.dot(h, w_f1_ref[l], preferred_element_type=f32)             # (M, E)
        h = _gelu_exact(h)
        h = jnp.dot(h, w_f2_ref[l], preferred_element_type=f32)             # (M, F)
        x = res + h                        # dropout -> identity (eval)

    # ---- output head: LayerNorm(concat(x, yp)) @ w_out, without the concat ----
    wh = w_head_ref[...]                   # (2F+1, OUT): gamma*w_out rows + (beta@w_out) row
    inv2f = 1.0 / (2 * F)
    mu = (jnp.sum(x, axis=-1, keepdims=True)
          + jnp.sum(yp, axis=-1, keepdims=True)) * inv2f
    xd = x - mu
    yd = yp - mu
    var = (jnp.sum(xd * xd, axis=-1, keepdims=True)
           + jnp.sum(yd * yd, axis=-1, keepdims=True)) * inv2f
    inv = jax.lax.rsqrt(var + EPS)         # EPS before rsqrt keeps zero-padded rows finite
    out = (jnp.dot(xd * inv, wh[:F, :], preferred_element_type=f32)
           + jnp.dot(yd * inv, wh[F:2 * F, :], preferred_element_type=f32)
           + wh[2 * F, :])
    o_ref[...] = out


# ------------------------------ host wrapper ----------------------------------
def encoder_forward(params, x, y, *, b_chunk=B_CHUNK):
    B, S, _ = x.shape
    F = N_FEATURES

    # glue (host/XLA side): positional lookup + input packing + weight packing
    pos = jnp.broadcast_to(params["pos_emb"][None], (B, S, POS_DIM))
    xy = jnp.concatenate([pos, x, y], axis=-1)                    # (B, S, 102)

    bc = max(1, min(b_chunk, B))
    n_chunks = -(-B // bc)
    B_pad = n_chunks * bc
    if B_pad != B:
        xy = jnp.pad(xy, ((0, B_pad - B), (0, 0), (0, 0)))
    M = bc * S
    xy = xy.reshape(n_chunks, M, IN_DIM)

    # block-diagonal additive mask, built once on the host (16 KiB at M=64)
    seq_id = np.arange(M) // S
    neg_mask = jnp.asarray(
        np.where(seq_id[:, None] == seq_id[None, :], 0.0, -1e30), dtype=jnp.float32)

    # fused input projection weight: blockdiag(w_exp, w_opp)  (102, 80)
    w_in = jnp.zeros((IN_DIM, 2 * F), jnp.float32)
    w_in = w_in.at[:2 * POS_DIM, :F].set(params["w_exp"])
    w_in = w_in.at[2 * POS_DIM:, F:].set(params["w_opp"])
    # fused QKV weight (L, F, 3F) with 1/sqrt(head_dim) folded into the Q columns
    scale = 1.0 / np.sqrt(HEAD_DIM)
    w_qkv = jnp.concatenate([params["wq"] * scale, params["wk"], params["wv"]], axis=-1)
    # packed LayerNorm params  (L, 4, F)
    ln_p = jnp.stack([params["ln1_w"], params["ln1_b"],
                      params["ln2_w"], params["ln2_b"]], axis=1)
    # output head: gamma folded into w_out, beta folded into an additive bias row
    w_head = jnp.concatenate(
        [params["lno_w"][:, None] * params["w_out"],
         (params["lno_b"] @ params["w_out"])[None, :]], axis=0)   # (2F+1, 14)

    weights = [neg_mask, w_in, w_qkv, params["wo"], ln_p,
               params["w1"], params["w2"], w_head]

    def full_spec(arr):
        nd = arr.ndim
        return pl.BlockSpec(arr.shape, lambda i, _nd=nd: (0,) * _nd)

    out = pl.pallas_call(
        encoder_kernel,
        out_shape=jax.ShapeDtypeStruct((n_chunks, M, OUT_DIM), jnp.float32),
        grid=(n_chunks,),
        in_specs=[pl.BlockSpec((None, M, IN_DIM), lambda i: (i, 0, 0))]
                 + [full_spec(w) for w in weights],
        out_specs=pl.BlockSpec((None, M, OUT_DIM), lambda i: (i, 0, 0)),
        compiler_params=pltpu.CompilerParams(dimension_semantics=("parallel",)),
    )(xy, *weights)

    return out.reshape(B_pad, S, OUT_DIM)[:B]


# --------------------------- pure-JAX reference --------------------------------
def encoder_ref(params, x, y):
    B, S, _ = x.shape
    pos = jnp.broadcast_to(params["pos_emb"][None], (B, S, POS_DIM))
    xc = jnp.concatenate([pos, x], axis=-1)
    xcur = xc @ params["w_exp"]
    yp = y @ params["w_opp"]

    def ln(v, w, b):
        mu = v.mean(-1, keepdims=True)
        var = ((v - mu) ** 2).mean(-1, keepdims=True)
        return (v - mu) / jnp.sqrt(var + EPS) * w + b

    for l in range(N_LAYERS):
        res = xcur
        t = ln(xcur, params["ln1_w"][l], params["ln1_b"][l])
        q = (t @ params["wq"][l]).reshape(B, S, HEADS, HEAD_DIM)
        k = (t @ params["wk"][l]).reshape(B, S, HEADS, HEAD_DIM)
        v = (t @ params["wv"][l]).reshape(B, S, HEADS, HEAD_DIM)
        s = jnp.einsum("bqhd,bkhd->bhqk", q, k) / np.sqrt(HEAD_DIM)
        p = jax.nn.softmax(s, axis=-1)
        o = jnp.einsum("bhqk,bkhd->bqhd", p, v).reshape(B, S, N_FEATURES)
        xcur = res + o @ params["wo"][l]

        res = xcur
        t = ln(xcur, params["ln2_w"][l], params["ln2_b"][l])
        t = t @ params["w1"][l]
        t = 0.5 * t * (1.0 + jax.scipy.special.erf(t / np.sqrt(2.0)))
        xcur = res + t @ params["w2"][l]

    z = jnp.concatenate([xcur, yp], axis=-1)
    z = ln(z, params["lno_w"], params["lno_b"])
    return z @ params["w_out"]


# ------------------------------- parameters -----------------------------------
def init_params(key):
    F, E, L = N_FEATURES, FWD_EXP, N_LAYERS
    ks = jax.random.split(key, 10)
    s = 0.02
    return {
        # nn.Embedding(seq_len, 44) ~ N(0, 1)
        "pos_emb": jax.random.normal(ks[0], (SEQ_LEN, POS_DIM), jnp.float32),
        # Linear weights stored as (in, out), applied as x @ W
        "w_exp": jax.random.normal(ks[1], (2 * POS_DIM, F), jnp.float32) * s,
        "w_opp": jax.random.normal(ks[2], (Y_DIM, F), jnp.float32) * s,
        "wq":    jax.random.normal(ks[3], (L, F, F), jnp.float32) * s,
        "wk":    jax.random.normal(ks[4], (L, F, F), jnp.float32) * s,
        "wv":    jax.random.normal(ks[5], (L, F, F), jnp.float32) * s,
        "wo":    jax.random.normal(ks[6], (L, F, F), jnp.float32) * s,
        "w1":    jax.random.normal(ks[7], (L, F, E), jnp.float32) * s,
        "w2":    jax.random.normal(ks[8], (L, E, F), jnp.float32) * s,
        "w_out": jax.random.normal(ks[9], (2 * F, OUT_DIM), jnp.float32) * s,
        # LayerNorm params: PyTorch default init (ones / zeros)
        "ln1_w": jnp.ones((L, F), jnp.float32),
        "ln1_b": jnp.zeros((L, F), jnp.float32),
        "ln2_w": jnp.ones((L, F), jnp.float32),
        "ln2_b": jnp.zeros((L, F), jnp.float32),
        "lno_w": jnp.ones((2 * F,), jnp.float32),
        "lno_b": jnp.zeros((2 * F,), jnp.float32),
    }


# ----------------------------------- main --------------------------------------
if __name__ == "__main__":
    key = jax.random.PRNGKey(0)
    kp, kx, ky = jax.random.split(key, 3)
    params = init_params(kp)

    # B=32 with B_CHUNK=8 -> M=64 per step and a 4-step parallel grid
    # (even split across v7x's two TensorCores; halved masked-softmax work
    #  per token vs the old M=128 chunks on v5e/v6e).
    B = 32
    x = jax.random.normal(kx, (B, SEQ_LEN, POS_DIM), jnp.float32)   # (32, 8, 44)
    y = jax.random.normal(ky, (B, SEQ_LEN, Y_DIM), jnp.float32)     # (32, 8, 14)

    out = jax.block_until_ready(jax.jit(encoder_forward)(params, x, y))
    ref = jax.block_until_ready(encoder_ref(params, x, y))
    np.testing.assert_allclose(np.asarray(out), np.asarray(ref), rtol=1e-4, atol=1e-4)

    print("KERNEL_OK")
</pallas_src>

<mosaic_0001>
module attributes {stable_mosaic.version = 11 : i64} {
  func.func @encoder_kernel(%arg0: i32, %arg1: memref<1x64x102xf32, #tpu.memory_space<vmem>>, %arg2: memref<64x64xf32, #tpu.memory_space<vmem>>, %arg3: memref<102x80xf32, #tpu.memory_space<vmem>>, %arg4: memref<2x40x120xf32, #tpu.memory_space<vmem>>, %arg5: memref<2x40x40xf32, #tpu.memory_space<vmem>>, %arg6: memref<2x4x40xf32, #tpu.memory_space<vmem>>, %arg7: memref<2x40x64xf32, #tpu.memory_space<vmem>>, %arg8: memref<2x64x40xf32, #tpu.memory_space<vmem>>, %arg9: memref<81x14xf32, #tpu.memory_space<vmem>>, %arg10: memref<1x64x14xf32, #tpu.memory_space<vmem>>) attributes {dimension_semantics = [#tpu.dimension_semantics<parallel>], iteration_bounds = array<i64: 4>, scalar_prefetch = 0 : i64, scratch_operands = 0 : i64, tpu.core_type = #tpu.core_type<tc>, window_params = [{transform_indices = @transform_0, window_bounds = array<i64: 1, 64, 102>}, {pipeline_mode = #tpu.pipeline_mode<synchronous>, transform_indices = @transform_1, window_bounds = array<i64: 64, 64>}, {pipeline_mode = #tpu.pipeline_mode<synchronous>, transform_indices = @transform_2, window_bounds = array<i64: 102, 80>}, {pipeline_mode = #tpu.pipeline_mode<synchronous>, transform_indices = @transform_3, window_bounds = array<i64: 2, 40, 120>}, {pipeline_mode = #tpu.pipeline_mode<synchronous>, transform_indices = @transform_4, window_bounds = array<i64: 2, 40, 40>}, {pipeline_mode = #tpu.pipeline_mode<synchronous>, transform_indices = @transform_5, window_bounds = array<i64: 2, 4, 40>}, {pipeline_mode = #tpu.pipeline_mode<synchronous>, transform_indices = @transform_6, window_bounds = array<i64: 2, 40, 64>}, {pipeline_mode = #tpu.pipeline_mode<synchronous>, transform_indices = @transform_7, window_bounds = array<i64: 2, 64, 40>}, {pipeline_mode = #tpu.pipeline_mode<synchronous>, transform_indices = @transform_8, window_bounds = array<i64: 81, 14>}, {transform_indices = @transform_9, window_bounds = array<i64: 1, 64, 14>}]} {
    %c0 = arith.constant 0 : index
    %c0_0 = arith.constant 0 : index
    %c0_1 = arith.constant 0 : index
    %0 = vector.load %arg1[%c0, %c0_0, %c0_1] : memref<1x64x102xf32, #tpu.memory_space<vmem>>, vector<1x64x102xf32>
    %1 = vector.shape_cast %0 : vector<1x64x102xf32> to vector<64x102xf32>
    %c0_2 = arith.constant 0 : index
    %c0_3 = arith.constant 0 : index
    %2 = vector.load %arg3[%c0_2, %c0_3] : memref<102x80xf32, #tpu.memory_space<vmem>>, vector<102x80xf32>
    %cst = arith.constant dense<0.000000e+00> : vector<64x80xf32>
    %3 = tpu.matmul %1, %2, %cst {dimension_numbers = #tpu.dot_dimension_numbers<[1], [0], [0], [1], [0, 0, 1, 1], [], []>} : vector<64x102xf32>, vector<102x80xf32>, vector<64x80xf32> -> vector<64x80xf32>
    %4 = vector.extract_strided_slice %3 {offsets = [0, 0], sizes = [64, 40], strides = [1, 1]} : vector<64x80xf32> to vector<64x40xf32>
    %5 = vector.extract_strided_slice %3 {offsets = [0, 40], sizes = [64, 40], strides = [1, 1]} : vector<64x80xf32> to vector<64x40xf32>
    %c0_4 = arith.constant 0 : index
    %c0_5 = arith.constant 0 : index
    %6 = vector.load %arg2[%c0_4, %c0_5] : memref<64x64xf32, #tpu.memory_space<vmem>>, vector<64x64xf32>
    %c0_6 = arith.constant 0 : index
    %c0_7 = arith.constant 0 : index
    %c0_8 = arith.constant 0 : index
    %7 = vector.load %arg6[%c0_6, %c0_7, %c0_8] : memref<2x4x40xf32, #tpu.memory_space<vmem>>, vector<2x4x40xf32>
    %8 = vector.extract_strided_slice %7 {offsets = [0, 0, 0], sizes = [1, 1, 40], strides = [1, 1, 1]} : vector<2x4x40xf32> to vector<1x1x40xf32>
    %9 = vector.shape_cast %8 : vector<1x1x40xf32> to vector<40xf32>
    %10 = vector.extract_strided_slice %7 {offsets = [0, 1, 0], sizes = [1, 1, 40], strides = [1, 1, 1]} : vector<2x4x40xf32> to vector<1x1x40xf32>
    %11 = vector.shape_cast %10 : vector<1x1x40xf32> to vector<40xf32>
    %cst_9 = arith.constant dense<0.000000e+00> : vector<64xf32>
    %12 = vector.multi_reduction <add>, %4, %cst_9 [1] : vector<64x40xf32> to vector<64xf32>
    %13 = vector.shape_cast %12 : vector<64xf32> to vector<64x1xf32>
    %cst_10 = arith.constant 4.000000e+01 : f32
    %14 = vector.broadcast %cst_10 : f32 to vector<64x1xf32>
    %15 = arith.divf %13, %14 : vector<64x1xf32>
    %16 = vector.broadcast %15 : vector<64x1xf32> to vector<64x40xf32>
    %17 = arith.subf %4, %16 : vector<64x40xf32>
    %18 = arith.mulf %17, %17 : vector<64x40xf32>
    %cst_11 = arith.constant dense<0.000000e+00> : vector<64xf32>
    %19 = vector.multi_reduction <add>, %18, %cst_11 [1] : vector<64x40xf32> to vector<64xf32>
    %20 = vector.shape_cast %19 : vector<64xf32> to vector<64x1xf32>
    %cst_12 = arith.constant 4.000000e+01 : f32
    %21 = vector.broadcast %cst_12 : f32 to vector<64x1xf32>
    %22 = arith.divf %20, %21 : vector<64x1xf32>
    %cst_13 = arith.constant 9.99999974E-6 : f32
    %23 = vector.broadcast %cst_13 : f32 to vector<64x1xf32>
    %24 = arith.addf %22, %23 : vector<64x1xf32>
    %25 = math.rsqrt %24 : vector<64x1xf32>
    %26 = vector.broadcast %25 : vector<64x1xf32> to vector<64x40xf32>
    %27 = arith.mulf %17, %26 : vector<64x40xf32>
    %28 = vector.shape_cast %9 : vector<40xf32> to vector<1x40xf32>
    %29 = vector.broadcast %28 : vector<1x40xf32> to vector<64x40xf32>
    %30 = arith.mulf %27, %29 : vector<64x40xf32>
    %31 = vector.shape_cast %11 : vector<40xf32> to vector<1x40xf32>
    %32 = vector.broadcast %31 : vector<1x40xf32> to vector<64x40xf32>
    %33 = arith.addf %30, %32 : vector<64x40xf32>
    %c0_14 = arith.constant 0 : index
    %c0_15 = arith.constant 0 : index
    %c0_16 = arith.constant 0 : index
    %34 = vector.load %arg4[%c0_14, %c0_15, %c0_16] : memref<2x40x120xf32, #tpu.memory_space<vmem>>, vector<1x40x120xf32>
    %35 = vector.shape_cast %34 : vector<1x40x120xf32> to vector<40x120xf32>
    %cst_17 = arith.constant dense<0.000000e+00> : vector<64x120xf32>
    %36 = tpu.matmul %33, %35, %cst_17 {dimension_numbers = #tpu.dot_dimension_numbers<[1], [0], [0], [1], [0, 0, 1, 1], [], []>} : vector<64x40xf32>, vector<40x120xf32>, vector<64x120xf32> -> vector<64x120xf32>
    %37 = vector.extract_strided_slice %36 {offsets = [0, 0], sizes = [64, 8], strides = [1, 1]} : vector<64x120xf32> to vector<64x8xf32>
    %38 = vector.extract_strided_slice %36 {offsets = [0, 40], sizes = [64, 8], strides = [1, 1]} : vector<64x120xf32> to vector<64x8xf32>
    %39 = vector.extract_strided_slice %36 {offsets = [0, 80], sizes = [64, 8], strides = [1, 1]} : vector<64x120xf32> to vector<64x8xf32>
    %cst_18 = arith.constant dense<0.000000e+00> : vector<64x64xf32>
    %40 = tpu.matmul %37, %38, %cst_18 {dimension_numbers = #tpu.dot_dimension_numbers<[1], [1], [0], [0], [0, 0, 1, 0], [], []>} : vector<64x8xf32>, vector<64x8xf32>, vector<64x64xf32> -> vector<64x64xf32>
    %41 = arith.addf %40, %6 : vector<64x64xf32>
    %cst_19 = arith.constant dense<0xFF800000> : vector<64xf32>
    %42 = vector.multi_reduction <maximumf>, %41, %cst_19 [1] : vector<64x64xf32> to vector<64xf32>
    %43 = vector.shape_cast %42 : vector<64xf32> to vector<64x1xf32>
    %44 = vector.broadcast %43 : vector<64x1xf32> to vector<64x64xf32>
    %45 = arith.subf %41, %44 : vector<64x64xf32>
    %46 = math.exp %45 : vector<64x64xf32>
    %cst_20 = arith.constant dense<0.000000e+00> : vector<64xf32>
    %47 = vector.multi_reduction <add>, %46, %cst_20 [1] : vector<64x64xf32> to vector<64xf32>
    %48 = vector.shape_cast %47 : vector<64xf32> to vector<64x1xf32>
    %49 = tpu.reciprocal %48 {approx = true} : vector<64x1xf32> -> vector<64x1xf32>
    %50 = vector.broadcast %49 : vector<64x1xf32> to vector<64x64xf32>
    %51 = arith.mulf %46, %50 : vector<64x64xf32>
    %cst_21 = arith.constant dense<0.000000e+00> : vector<64x8xf32>
    %52 = tpu.matmul %51, %39, %cst_21 {dimension_numbers = #tpu.dot_dimension_numbers<[1], [0], [0], [1], [0, 0, 1, 1], [], []>} : vector<64x64xf32>, vector<64x8xf32>, vector<64x8xf32> -> vector<64x8xf32>
    %53 = vector.extract_strided_slice %36 {offsets = [0, 8], sizes = [64, 8], strides = [1, 1]} : vector<64x120xf32> to vector<64x8xf32>
    %54 = vector.extract_strided_slice %36 {offsets = [0, 48], sizes = [64, 8], strides = [1, 1]} : vector<64x120xf32> to vector<64x8xf32>
    %55 = vector.extract_strided_slice %36 {offsets = [0, 88], sizes = [64, 8], strides = [1, 1]} : vector<64x120xf32> to vector<64x8xf32>
    %cst_22 = arith.constant dense<0.000000e+00> : vector<64x64xf32>
    %56 = tpu.matmul %53, %54, %cst_22 {dimension_numbers = #tpu.dot_dimension_numbers<[1], [1], [0], [0], [0, 0, 1, 0], [], []>} : vector<64x8xf32>, vector<64x8xf32>, vector<64x64xf32> -> vector<64x64xf32>
    %57 = arith.addf %56, %6 : vector<64x64xf32>
    %cst_23 = arith.constant dense<0xFF800000> : vector<64xf32>
    %58 = vector.multi_reduction <maximumf>, %57, %cst_23 [1] : vector<64x64xf32> to vector<64xf32>
    %59 = vector.shape_cast %58 : vector<64xf32> to vector<64x1xf32>
    %60 = vector.broadcast %59 : vector<64x1xf32> to vector<64x64xf32>
    %61 = arith.subf %57, %60 : vector<64x64xf32>
    %62 = math.exp %61 : vector<64x64xf32>
    %cst_24 = arith.constant dense<0.000000e+00> : vector<64xf32>
    %63 = vector.multi_reduction <add>, %62, %cst_24 [1] : vector<64x64xf32> to vector<64xf32>
    %64 = vector.shape_cast %63 : vector<64xf32> to vector<64x1xf32>
    %65 = tpu.reciprocal %64 {approx = true} : vector<64x1xf32> -> vector<64x1xf32>
    %66 = vector.broadcast %65 : vector<64x1xf32> to vector<64x64xf32>
    %67 = arith.mulf %62, %66 : vector<64x64xf32>
    %cst_25 = arith.constant dense<0.000000e+00> : vector<64x8xf32>
    %68 = tpu.matmul %67, %55, %cst_25 {dimension_numbers = #tpu.dot_dimension_numbers<[1], [0], [0], [1], [0, 0, 1, 1], [], []>} : vector<64x64xf32>, vector<64x8xf32>, vector<64x8xf32> -> vector<64x8xf32>
    %69 = vector.extract_strided_slice %36 {offsets = [0, 16], sizes = [64, 8], strides = [1, 1]} : vector<64x120xf32> to vector<64x8xf32>
    %70 = vector.extract_strided_slice %36 {offsets = [0, 56], sizes = [64, 8], strides = [1, 1]} : vector<64x120xf32> to vector<64x8xf32>
    %71 = vector.extract_strided_slice %36 {offsets = [0, 96], sizes = [64, 8], strides = [1, 1]} : vector<64x120xf32> to vector<64x8xf32>
    %cst_26 = arith.constant dense<0.000000e+00> : vector<64x64xf32>
    %72 = tpu.matmul %69, %70, %cst_26 {dimension_numbers = #tpu.dot_dimension_numbers<[1], [1], [0], [0], [0, 0, 1, 0], [], []>} : vector<64x8xf32>, vector<64x8xf32>, vector<64x64xf32> -> vector<64x64xf32>
    %73 = arith.addf %72, %6 : vector<64x64xf32>
    %cst_27 = arith.constant dense<0xFF800000> : vector<64xf32>
    %74 = vector.multi_reduction <maximumf>, %73, %cst_27 [1] : vector<64x64xf32> to vector<64xf32>
    %75 = vector.shape_cast %74 : vector<64xf32> to vector<64x1xf32>
    %76 = vector.broadcast %75 : vector<64x1xf32> to vector<64x64xf32>
    %77 = arith.subf %73, %76 : vector<64x64xf32>
    %78 = math.exp %77 : vector<64x64xf32>
    %cst_28 = arith.constant dense<0.000000e+00> : vector<64xf32>
    %79 = vector.multi_reduction <add>, %78, %cst_28 [1] : vector<64x64xf32> to vector<64xf32>
    %80 = vector.shape_cast %79 : vector<64xf32> to vector<64x1xf32>
    %81 = tpu.reciprocal %80 {approx = true} : vector<64x1xf32> -> vector<64x1xf32>
    %82 = vector.broadcast %81 : vector<64x1xf32> to vector<64x64xf32>
    %83 = arith.mulf %78, %82 : vector<64x64xf32>
    %cst_29 = arith.constant dense<0.000000e+00> : vector<64x8xf32>
    %84 = tpu.matmul %83, %71, %cst_29 {dimension_numbers = #tpu.dot_dimension_numbers<[1], [0], [0], [1], [0, 0, 1, 1], [], []>} : vector<64x64xf32>, vector<64x8xf32>, vector<64x8xf32> -> vector<64x8xf32>
    %85 = vector.extract_strided_slice %36 {offsets = [0, 24], sizes = [64, 8], strides = [1, 1]} : vector<64x120xf32> to vector<64x8xf32>
    %86 = vector.extract_strided_slice %36 {offsets = [0, 64], sizes = [64, 8], strides = [1, 1]} : vector<64x120xf32> to vector<64x8xf32>
    %87 = vector.extract_strided_slice %36 {offsets = [0, 104], sizes = [64, 8], strides = [1, 1]} : vector<64x120xf32> to vector<64x8xf32>
    %cst_30 = arith.constant dense<0.000000e+00> : vector<64x64xf32>
    %88 = tpu.matmul %85, %86, %cst_30 {dimension_numbers = #tpu.dot_dimension_numbers<[1], [1], [0], [0], [0, 0, 1, 0], [], []>} : vector<64x8xf32>, vector<64x8xf32>, vector<64x64xf32> -> vector<64x64xf32>
    %89 = arith.addf %88, %6 : vector<64x64xf32>
    %cst_31 = arith.constant dense<0xFF800000> : vector<64xf32>
    %90 = vector.multi_reduction <maximumf>, %89, %cst_31 [1] : vector<64x64xf32> to vector<64xf32>
    %91 = vector.shape_cast %90 : vector<64xf32> to vector<64x1xf32>
    %92 = vector.broadcast %91 : vector<64x1xf32> to vector<64x64xf32>
    %93 = arith.subf %89, %92 : vector<64x64xf32>
    %94 = math.exp %93 : vector<64x64xf32>
    %cst_32 = arith.constant dense<0.000000e+00> : vector<64xf32>
    %95 = vector.multi_reduction <add>, %94, %cst_32 [1] : vector<64x64xf32> to vector<64xf32>
    %96 = vector.shape_cast %95 : vector<64xf32> to vector<64x1xf32>
    %97 = tpu.reciprocal %96 {approx = true} : vector<64x1xf32> -> vector<64x1xf32>
    %98 = vector.broadcast %97 : vector<64x1xf32> to vector<64x64xf32>
    %99 = arith.mulf %94, %98 : vector<64x64xf32>
    %cst_33 = arith.constant dense<0.000000e+00> : vector<64x8xf32>
    %100 = tpu.matmul %99, %87, %cst_33 {dimension_numbers = #tpu.dot_dimension_numbers<[1], [0], [0], [1], [0, 0, 1, 1], [], []>} : vector<64x64xf32>, vector<64x8xf32>, vector<64x8xf32> -> vector<64x8xf32>
    %101 = vector.extract_strided_slice %36 {offsets = [0, 32], sizes = [64, 8], strides = [1, 1]} : vector<64x120xf32> to vector<64x8xf32>
    %102 = vector.extract_strided_slice %36 {offsets = [0, 72], sizes = [64, 8], strides = [1, 1]} : vector<64x120xf32> to vector<64x8xf32>
    %103 = vector.extract_strided_slice %36 {offsets = [0, 112], sizes = [64, 8], strides = [1, 1]} : vector<64x120xf32> to vector<64x8xf32>
    %cst_34 = arith.constant dense<0.000000e+00> : vector<64x64xf32>
    %104 = tpu.matmul %101, %102, %cst_34 {dimension_numbers = #tpu.dot_dimension_numbers<[1], [1], [0], [0], [0, 0, 1, 0], [], []>} : vector<64x8xf32>, vector<64x8xf32>, vector<64x64xf32> -> vector<64x64xf32>
    %105 = arith.addf %104, %6 : vector<64x64xf32>
    %cst_35 = arith.constant dense<0xFF800000> : vector<64xf32>
    %106 = vector.multi_reduction <maximumf>, %105, %cst_35 [1] : vector<64x64xf32> to vector<64xf32>
    %107 = vector.shape_cast %106 : vector<64xf32> to vector<64x1xf32>
    %108 = vector.broadcast %107 : vector<64x1xf32> to vector<64x64xf32>
    %109 = arith.subf %105, %108 : vector<64x64xf32>
    %110 = math.exp %109 : vector<64x64xf32>
    %cst_36 = arith.constant dense<0.000000e+00> : vector<64xf32>
    %111 = vector.multi_reduction <add>, %110, %cst_36 [1] : vector<64x64xf32> to vector<64xf32>
    %112 = vector.shape_cast %111 : vector<64xf32> to vector<64x1xf32>
    %113 = tpu.reciprocal %112 {approx = true} : vector<64x1xf32> -> vector<64x1xf32>
    %114 = vector.broadcast %113 : vector<64x1xf32> to vector<64x64xf32>
    %115 = arith.mulf %110, %114 : vector<64x64xf32>
    %cst_37 = arith.constant dense<0.000000e+00> : vector<64x8xf32>
    %116 = tpu.matmul %115, %103, %cst_37 {dimension_numbers = #tpu.dot_dimension_numbers<[1], [0], [0], [1], [0, 0, 1, 1], [], []>} : vector<64x64xf32>, vector<64x8xf32>, vector<64x8xf32> -> vector<64x8xf32>
    %117 = tpu.concatenate %52, %68, %84, %100, %116 in 1 : vector<64x8xf32>, vector<64x8xf32>, vector<64x8xf32>, vector<64x8xf32>, vector<64x8xf32> -> vector<64x40xf32>
    %c0_38 = arith.constant 0 : index
    %c0_39 = arith.constant 0 : index
    %c0_40 = arith.constant 0 : index
    %118 = vector.load %arg5[%c0_38, %c0_39, %c0_40] : memref<2x40x40xf32, #tpu.memory_space<vmem>>, vector<1x40x40xf32>
    %119 = vector.shape_cast %118 : vector<1x40x40xf32> to vector<40x40xf32>
    %cst_41 = arith.constant dense<0.000000e+00> : vector<64x40xf32>
    %120 = tpu.matmul %117, %119, %cst_41 {dimension_numbers = #tpu.dot_dimension_numbers<[1], [0], [0], [1], [0, 0, 1, 1], [], []>} : vector<64x40xf32>, vector<40x40xf32>, vector<64x40xf32> -> vector<64x40xf32>
    %121 = arith.addf %4, %120 : vector<64x40xf32>
    %122 = vector.extract_strided_slice %7 {offsets = [0, 2, 0], sizes = [1, 1, 40], strides = [1, 1, 1]} : vector<2x4x40xf32> to vector<1x1x40xf32>
    %123 = vector.shape_cast %122 : vector<1x1x40xf32> to vector<40xf32>
    %124 = vector.extract_strided_slice %7 {offsets = [0, 3, 0], sizes = [1, 1, 40], strides = [1, 1, 1]} : vector<2x4x40xf32> to vector<1x1x40xf32>
    %125 = vector.shape_cast %124 : vector<1x1x40xf32> to vector<40xf32>
    %cst_42 = arith.constant dense<0.000000e+00> : vector<64xf32>
    %126 = vector.multi_reduction <add>, %121, %cst_42 [1] : vector<64x40xf32> to vector<64xf32>
    %127 = vector.shape_cast %126 : vector<64xf32> to vector<64x1xf32>
    %cst_43 = arith.constant 4.000000e+01 : f32
    %128 = vector.broadcast %cst_43 : f32 to vector<64x1xf32>
    %129 = arith.divf %127, %128 : vector<64x1xf32>
    %130 = vector.broadcast %129 : vector<64x1xf32> to vector<64x40xf32>
    %131 = arith.subf %121, %130 : vector<64x40xf32>
    %132 = arith.mulf %131, %131 : vector<64x40xf32>
    %cst_44 = arith.constant dense<0.000000e+00> : vector<64xf32>
    %133 = vector.multi_reduction <add>, %132, %cst_44 [1] : vector<64x40xf32> to vector<64xf32>
    %134 = vector.shape_cast %133 : vector<64xf32> to vector<64x1xf32>
    %cst_45 = arith.constant 4.000000e+01 : f32
    %135 = vector.broadcast %cst_45 : f32 to vector<64x1xf32>
    %136 = arith.divf %134, %135 : vector<64x1xf32>
    %cst_46 = arith.constant 9.99999974E-6 : f32
    %137 = vector.broadcast %cst_46 : f32 to vector<64x1xf32>
    %138 = arith.addf %136, %137 : vector<64x1xf32>
    %139 = math.rsqrt %138 : vector<64x1xf32>
    %140 = vector.broadcast %139 : vector<64x1xf32> to vector<64x40xf32>
    %141 = arith.mulf %131, %140 : vector<64x40xf32>
    %142 = vector.shape_cast %123 : vector<40xf32> to vector<1x40xf32>
    %143 = vector.broadcast %142 : vector<1x40xf32> to vector<64x40xf32>
    %144 = arith.mulf %141, %143 : vector<64x40xf32>
    %145 = vector.shape_cast %125 : vector<40xf32> to vector<1x40xf32>
    %146 = vector.broadcast %145 : vector<1x40xf32> to vector<64x40xf32>
    %147 = arith.addf %144, %146 : vector<64x40xf32>
    %c0_47 = arith.constant 0 : index
    %c0_48 = arith.constant 0 : index
    %c0_49 = arith.constant 0 : index
    %148 = vector.load %arg7[%c0_47, %c0_48, %c0_49] : memref<2x40x64xf32, #tpu.memory_space<vmem>>, vector<1x40x64xf32>
    %149 = vector.shape_cast %148 : vector<1x40x64xf32> to vector<40x64xf32>
    %cst_50 = arith.constant dense<0.000000e+00> : vector<64x64xf32>
    %150 = tpu.matmul %147, %149, %cst_50 {dimension_numbers = #tpu.dot_dimension_numbers<[1], [0], [0], [1], [0, 0, 1, 1], [], []>} : vector<64x40xf32>, vector<40x64xf32>, vector<64x64xf32> -> vector<64x64xf32>
    %cst_51 = arith.constant 5.000000e-01 : f32
    %151 = vector.broadcast %cst_51 : f32 to vector<64x64xf32>
    %152 = arith.mulf %151, %150 : vector<64x64xf32>
    %cst_52 = arith.constant 0.707106769 : f32
    %153 = vector.broadcast %cst_52 : f32 to vector<64x64xf32>
    %154 = arith.mulf %150, %153 : vector<64x64xf32>
    %cst_53 = arith.constant 0.000000e+00 : f32
    %155 = vector.broadcast %cst_53 : f32 to vector<64x64xf32>
    %156 = arith.cmpf oge, %154, %155 : vector<64x64xf32>
    %cst_54 = arith.constant 1.000000e+00 : f32
    %cst_55 = arith.constant -1.000000e+00 : f32
    %157 = vector.broadcast %cst_54 : f32 to vector<64x64xf32>
    %158 = vector.broadcast %cst_55 : f32 to vector<64x64xf32>
    %159 = arith.select %156, %157, %158 : vector<64x64xi1>, vector<64x64xf32>
    %160 = math.absf %154 : vector<64x64xf32>
    %cst_56 = arith.constant 0.327591091 : f32
    %161 = vector.broadcast %cst_56 : f32 to vector<64x64xf32>
    %162 = arith.mulf %161, %160 : vector<64x64xf32>
    %cst_57 = arith.constant 1.000000e+00 : f32
    %163 = vector.broadcast %cst_57 : f32 to vector<64x64xf32>
    %164 = arith.addf %163, %162 : vector<64x64xf32>
    %cst_58 = arith.constant 1.000000e+00 : f32
    %165 = vector.broadcast %cst_58 : f32 to vector<64x64xf32>
    %166 = arith.divf %165, %164 : vector<64x64xf32>
    %cst_59 = arith.constant 1.06140542 : f32
    %167 = vector.broadcast %cst_59 : f32 to vector<64x64xf32>
    %168 = arith.mulf %167, %166 : vector<64x64xf32>
    %cst_60 = arith.constant -1.45315206 : f32
    %169 = vector.broadcast %cst_60 : f32 to vector<64x64xf32>
    %170 = arith.addf %168, %169 : vector<64x64xf32>
    %171 = arith.mulf %170, %166 : vector<64x64xf32>
    %cst_61 = arith.constant 1.42141378 : f32
    %172 = vector.broadcast %cst_61 : f32 to vector<64x64xf32>
    %173 = arith.addf %171, %172 : vector<64x64xf32>
    %174 = arith.mulf %173, %166 : vector<64x64xf32>
    %cst_62 = arith.constant -0.284496725 : f32
    %175 = vector.broadcast %cst_62 : f32 to vector<64x64xf32>
    %176 = arith.addf %174, %175 : vector<64x64xf32>
    %177 = arith.mulf %176, %166 : vector<64x64xf32>
    %cst_63 = arith.constant 0.254829586 : f32
    %178 = vector.broadcast %cst_63 : f32 to vector<64x64xf32>
    %179 = arith.addf %177, %178 : vector<64x64xf32>
    %180 = arith.mulf %179, %166 : vector<64x64xf32>
    %cst_64 = arith.constant 0.000000e+00 : f32
    %181 = vector.broadcast %cst_64 : f32 to vector<64x64xf32>
    %182 = arith.subf %181, %160 : vector<64x64xf32>
    %183 = arith.mulf %182, %160 : vector<64x64xf32>
    %184 = math.exp %183 : vector<64x64xf32>
    %185 = arith.mulf %180, %184 : vector<64x64xf32>
    %cst_65 = arith.constant 1.000000e+00 : f32
    %186 = vector.broadcast %cst_65 : f32 to vector<64x64xf32>
    %187 = arith.subf %186, %185 : vector<64x64xf32>
    %188 = arith.mulf %159, %187 : vector<64x64xf32>
    %cst_66 = arith.constant 1.000000e+00 : f32
    %189 = vector.broadcast %cst_66 : f32 to vector<64x64xf32>
    %190 = arith.addf %189, %188 : vector<64x64xf32>
    %191 = arith.mulf %152, %190 : vector<64x64xf32>
    %c0_67 = arith.constant 0 : index
    %c0_68 = arith.constant 0 : index
    %c0_69 = arith.constant 0 : index
    %192 = vector.load %arg8[%c0_67, %c0_68, %c0_69] : memref<2x64x40xf32, #tpu.memory_space<vmem>>, vector<1x64x40xf32>
    %193 = vector.shape_cast %192 : vector<1x64x40xf32> to vector<64x40xf32>
    %cst_70 = arith.constant dense<0.000000e+00> : vector<64x40xf32>
    %194 = tpu.matmul %191, %193, %cst_70 {dimension_numbers = #tpu.dot_dimension_numbers<[1], [0], [0], [1], [0, 0, 1, 1], [], []>} : vector<64x64xf32>, vector<64x40xf32>, vector<64x40xf32> -> vector<64x40xf32>
    %195 = arith.addf %121, %194 : vector<64x40xf32>
    %196 = vector.extract_strided_slice %7 {offsets = [1, 0, 0], sizes = [1, 1, 40], strides = [1, 1, 1]} : vector<2x4x40xf32> to vector<1x1x40xf32>
    %197 = vector.shape_cast %196 : vector<1x1x40xf32> to vector<40xf32>
    %198 = vector.extract_strided_slice %7 {offsets = [1, 1, 0], sizes = [1, 1, 40], strides = [1, 1, 1]} : vector<2x4x40xf32> to vector<1x1x40xf32>
    %199 = vector.shape_cast %198 : vector<1x1x40xf32> to vector<40xf32>
    %cst_71 = arith.constant dense<0.000000e+00> : vector<64xf32>
    %200 = vector.multi_reduction <add>, %195, %cst_71 [1] : vector<64x40xf32> to vector<64xf32>
    %201 = vector.shape_cast %200 : vector<64xf32> to vector<64x1xf32>
    %cst_72 = arith.constant 4.000000e+01 : f32
    %202 = vector.broadcast %cst_72 : f32 to vector<64x1xf32>
    %203 = arith.divf %201, %202 : vector<64x1xf32>
    %204 = vector.broadcast %203 : vector<64x1xf32> to vector<64x40xf32>
    %205 = arith.subf %195, %204 : vector<64x40xf32>
    %206 = arith.mulf %205, %205 : vector<64x40xf32>
    %cst_73 = arith.constant dense<0.000000e+00> : vector<64xf32>
    %207 = vector.multi_reduction <add>, %206, %cst_73 [1] : vector<64x40xf32> to vector<64xf32>
    %208 = vector.shape_cast %207 : vector<64xf32> to vector<64x1xf32>
    %cst_74 = arith.constant 4.000000e+01 : f32
    %209 = vector.broadcast %cst_74 : f32 to vector<64x1xf32>
    %210 = arith.divf %208, %209 : vector<64x1xf32>
    %cst_75 = arith.constant 9.99999974E-6 : f32
    %211 = vector.broadcast %cst_75 : f32 to vector<64x1xf32>
    %212 = arith.addf %210, %211 : vector<64x1xf32>
    %213 = math.rsqrt %212 : vector<64x1xf32>
    %214 = vector.broadcast %213 : vector<64x1xf32> to vector<64x40xf32>
    %215 = arith.mulf %205, %214 : vector<64x40xf32>
    %216 = vector.shape_cast %197 : vector<40xf32> to vector<1x40xf32>
    %217 = vector.broadcast %216 : vector<1x40xf32> to vector<64x40xf32>
    %218 = arith.mulf %215, %217 : vector<64x40xf32>
    %219 = vector.shape_cast %199 : vector<40xf32> to vector<1x40xf32>
    %220 = vector.broadcast %219 : vector<1x40xf32> to vector<64x40xf32>
    %221 = arith.addf %218, %220 : vector<64x40xf32>
    %c1 = arith.constant 1 : index
    %c0_76 = arith.constant 0 : index
    %c0_77 = arith.constant 0 : index
    %222 = vector.load %arg4[%c1, %c0_76, %c0_77] : memref<2x40x120xf32, #tpu.memory_space<vmem>>, vector<1x40x120xf32>
    %223 = vector.shape_cast %222 : vector<1x40x120xf32> to vector<40x120xf32>
    %cst_78 = arith.constant dense<0.000000e+00> : vector<64x120xf32>
    %224 = tpu.matmul %221, %223, %cst_78 {dimension_numbers = #tpu.dot_dimension_numbers<[1], [0], [0], [1], [0, 0, 1, 1], [], []>} : vector<64x40xf32>, vector<40x120xf32>, vector<64x120xf32> -> vector<64x120xf32>
    %225 = vector.extract_strided_slice %224 {offsets = [0, 0], sizes = [64, 8], strides = [1, 1]} : vector<64x120xf32> to vector<64x8xf32>
    %226 = vector.extract_strided_slice %224 {offsets = [0, 40], sizes = [64, 8], strides = [1, 1]} : vector<64x120xf32> to vector<64x8xf32>
    %227 = vector.extract_strided_slice %224 {offsets = [0, 80], sizes = [64, 8], strides = [1, 1]} : vector<64x120xf32> to vector<64x8xf32>
    %cst_79 = arith.constant dense<0.000000e+00> : vector<64x64xf32>
    %228 = tpu.matmul %225, %226, %cst_79 {dimension_numbers = #tpu.dot_dimension_numbers<[1], [1], [0], [0], [0, 0, 1, 0], [], []>} : vector<64x8xf32>, vector<64x8xf32>, vector<64x64xf32> -> vector<64x64xf32>
    %229 = arith.addf %228, %6 : vector<64x64xf32>
    %cst_80 = arith.constant dense<0xFF800000> : vector<64xf32>
    %230 = vector.multi_reduction <maximumf>, %229, %cst_80 [1] : vector<64x64xf32> to vector<64xf32>
    %231 = vector.shape_cast %230 : vector<64xf32> to vector<64x1xf32>
    %232 = vector.broadcast %231 : vector<64x1xf32> to vector<64x64xf32>
    %233 = arith.subf %229, %232 : vector<64x64xf32>
    %234 = math.exp %233 : vector<64x64xf32>
    %cst_81 = arith.constant dense<0.000000e+00> : vector<64xf32>
    %235 = vector.multi_reduction <add>, %234, %cst_81 [1] : vector<64x64xf32> to vector<64xf32>
    %236 = vector.shape_cast %235 : vector<64xf32> to vector<64x1xf32>
    %237 = tpu.reciprocal %236 {approx = true} : vector<64x1xf32> -> vector<64x1xf32>
    %238 = vector.broadcast %237 : vector<64x1xf32> to vector<64x64xf32>
    %239 = arith.mulf %234, %238 : vector<64x64xf32>
    %cst_82 = arith.constant dense<0.000000e+00> : vector<64x8xf32>
    %240 = tpu.matmul %239, %227, %cst_82 {dimension_numbers = #tpu.dot_dimension_numbers<[1], [0], [0], [1], [0, 0, 1, 1], [], []>} : vector<64x64xf32>, vector<64x8xf32>, vector<64x8xf32> -> vector<64x8xf32>
    %241 = vector.extract_strided_slice %224 {offsets = [0, 8], sizes = [64, 8], strides = [1, 1]} : vector<64x120xf32> to vector<64x8xf32>
    %242 = vector.extract_strided_slice %224 {offsets = [0, 48], sizes = [64, 8], strides = [1, 1]} : vector<64x120xf32> to vector<64x8xf32>
    %243 = vector.extract_strided_slice %224 {offsets = [0, 88], sizes = [64, 8], strides = [1, 1]} : vector<64x120xf32> to vector<64x8xf32>
    %cst_83 = arith.constant dense<0.000000e+00> : vector<64x64xf32>
    %244 = tpu.matmul %241, %242, %cst_83 {dimension_numbers = #tpu.dot_dimension_numbers<[1], [1], [0], [0], [0, 0, 1, 0], [], []>} : vector<64x8xf32>, vector<64x8xf32>, vector<64x64xf32> -> vector<64x64xf32>
    %245 = arith.addf %244, %6 : vector<64x64xf32>
    %cst_84 = arith.constant dense<0xFF800000> : vector<64xf32>
    %246 = vector.multi_reduction <maximumf>, %245, %cst_84 [1] : vector<64x64xf32> to vector<64xf32>
    %247 = vector.shape_cast %246 : vector<64xf32> to vector<64x1xf32>
    %248 = vector.broadcast %247 : vector<64x1xf32> to vector<64x64xf32>
    %249 = arith.subf %245, %248 : vector<64x64xf32>
    %250 = math.exp %249 : vector<64x64xf32>
    %cst_85 = arith.constant dense<0.000000e+00> : vector<64xf32>
    %251 = vector.multi_reduction <add>, %250, %cst_85 [1] : vector<64x64xf32> to vector<64xf32>
    %252 = vector.shape_cast %251 : vector<64xf32> to vector<64x1xf32>
    %253 = tpu.reciprocal %252 {approx = true} : vector<64x1xf32> -> vector<64x1xf32>
    %254 = vector.broadcast %253 : vector<64x1xf32> to vector<64x64xf32>
    %255 = arith.mulf %250, %254 : vector<64x64xf32>
    %cst_86 = arith.constant dense<0.000000e+00> : vector<64x8xf32>
    %256 = tpu.matmul %255, %243, %cst_86 {dimension_numbers = #tpu.dot_dimension_numbers<[1], [0], [0], [1], [0, 0, 1, 1], [], []>} : vector<64x64xf32>, vector<64x8xf32>, vector<64x8xf32> -> vector<64x8xf32>
    %257 = vector.extract_strided_slice %224 {offsets = [0, 16], sizes = [64, 8], strides = [1, 1]} : vector<64x120xf32> to vector<64x8xf32>
    %258 = vector.extract_strided_slice %224 {offsets = [0, 56], sizes = [64, 8], strides = [1, 1]} : vector<64x120xf32> to vector<64x8xf32>
    %259 = vector.extract_strided_slice %224 {offsets = [0, 96], sizes = [64, 8], strides = [1, 1]} : vector<64x120xf32> to vector<64x8xf32>
    %cst_87 = arith.constant dense<0.000000e+00> : vector<64x64xf32>
    %260 = tpu.matmul %257, %258, %cst_87 {dimension_numbers = #tpu.dot_dimension_numbers<[1], [1], [0], [0], [0, 0, 1, 0], [], []>} : vector<64x8xf32>, vector<64x8xf32>, vector<64x64xf32> -> vector<64x64xf32>
    %261 = arith.addf %260, %6 : vector<64x64xf32>
    %cst_88 = arith.constant dense<0xFF800000> : vector<64xf32>
    %262 = vector.multi_reduction <maximumf>, %261, %cst_88 [1] : vector<64x64xf32> to vector<64xf32>
    %263 = vector.shape_cast %262 : vector<64xf32> to vector<64x1xf32>
    %264 = vector.broadcast %263 : vector<64x1xf32> to vector<64x64xf32>
    %265 = arith.subf %261, %264 : vector<64x64xf32>
    %266 = math.exp %265 : vector<64x64xf32>
    %cst_89 = arith.constant dense<0.000000e+00> : vector<64xf32>
    %267 = vector.multi_reduction <add>, %266, %cst_89 [1] : vector<64x64xf32> to vector<64xf32>
    %268 = vector.shape_cast %267 : vector<64xf32> to vector<64x1xf32>
    %269 = tpu.reciprocal %268 {approx = true} : vector<64x1xf32> -> vector<64x1xf32>
    %270 = vector.broadcast %269 : vector<64x1xf32> to vector<64x64xf32>
    %271 = arith.mulf %266, %270 : vector<64x64xf32>
    %cst_90 = arith.constant dense<0.000000e+00> : vector<64x8xf32>
    %272 = tpu.matmul %271, %259, %cst_90 {dimension_numbers = #tpu.dot_dimension_numbers<[1], [0], [0], [1], [0, 0, 1, 1], [], []>} : vector<64x64xf32>, vector<64x8xf32>, vector<64x8xf32> -> vector<64x8xf32>
    %273 = vector.extract_strided_slice %224 {offsets = [0, 24], sizes = [64, 8], strides = [1, 1]} : vector<64x120xf32> to vector<64x8xf32>
    %274 = vector.extract_strided_slice %224 {offsets = [0, 64], sizes = [64, 8], strides = [1, 1]} : vector<64x120xf32> to vector<64x8xf32>
    %275 = vector.extract_strided_slice %224 {offsets = [0, 104], sizes = [64, 8], strides = [1, 1]} : vector<64x120xf32> to vector<64x8xf32>
    %cst_91 = arith.constant dense<0.000000e+00> : vector<64x64xf32>
    %276 = tpu.matmul %273, %274, %cst_91 {dimension_numbers = #tpu.dot_dimension_numbers<[1], [1], [0], [0], [0, 0, 1, 0], [], []>} : vector<64x8xf32>, vector<64x8xf32>, vector<64x64xf32> -> vector<64x64xf32>
    %277 = arith.addf %276, %6 : vector<64x64xf32>
    %cst_92 = arith.constant dense<0xFF800000> : vector<64xf32>
    %278 = vector.multi_reduction <maximumf>, %277, %cst_92 [1] : vector<64x64xf32> to vector<64xf32>
    %279 = vector.shape_cast %278 : vector<64xf32> to vector<64x1xf32>
    %280 = vector.broadcast %279 : vector<64x1xf32> to vector<64x64xf32>
    %281 = arith.subf %277, %280 : vector<64x64xf32>
    %282 = math.exp %281 : vector<64x64xf32>
    %cst_93 = arith.constant dense<0.000000e+00> : vector<64xf32>
    %283 = vector.multi_reduction <add>, %282, %cst_93 [1] : vector<64x64xf32> to vector<64xf32>
    %284 = vector.shape_cast %283 : vector<64xf32> to vector<64x1xf32>
    %285 = tpu.reciprocal %284 {approx = true} : vector<64x1xf32> -> vector<64x1xf32>
    %286 = vector.broadcast %285 : vector<64x1xf32> to vector<64x64xf32>
    %287 = arith.mulf %282, %286 : vector<64x64xf32>
    %cst_94 = arith.constant dense<0.000000e+00> : vector<64x8xf32>
    %288 = tpu.matmul %287, %275, %cst_94 {dimension_numbers = #tpu.dot_dimension_numbers<[1], [0], [0], [1], [0, 0, 1, 1], [], []>} : vector<64x64xf32>, vector<64x8xf32>, vector<64x8xf32> -> vector<64x8xf32>
    %289 = vector.extract_strided_slice %224 {offsets = [0, 32], sizes = [64, 8], strides = [1, 1]} : vector<64x120xf32> to vector<64x8xf32>
    %290 = vector.extract_strided_slice %224 {offsets = [0, 72], sizes = [64, 8], strides = [1, 1]} : vector<64x120xf32> to vector<64x8xf32>
    %291 = vector.extract_strided_slice %224 {offsets = [0, 112], sizes = [64, 8], strides = [1, 1]} : vector<64x120xf32> to vector<64x8xf32>
    %cst_95 = arith.constant dense<0.000000e+00> : vector<64x64xf32>
    %292 = tpu.matmul %289, %290, %cst_95 {dimension_numbers = #tpu.dot_dimension_numbers<[1], [1], [0], [0], [0, 0, 1, 0], [], []>} : vector<64x8xf32>, vector<64x8xf32>, vector<64x64xf32> -> vector<64x64xf32>
    %293 = arith.addf %292, %6 : vector<64x64xf32>
    %cst_96 = arith.constant dense<0xFF800000> : vector<64xf32>
    %294 = vector.multi_reduction <maximumf>, %293, %cst_96 [1] : vector<64x64xf32> to vector<64xf32>
    %295 = vector.shape_cast %294 : vector<64xf32> to vector<64x1xf32>
    %296 = vector.broadcast %295 : vector<64x1xf32> to vector<64x64xf32>
    %297 = arith.subf %293, %296 : vector<64x64xf32>
    %298 = math.exp %297 : vector<64x64xf32>
    %cst_97 = arith.constant dense<0.000000e+00> : vector<64xf32>
    %299 = vector.multi_reduction <add>, %298, %cst_97 [1] : vector<64x64xf32> to vector<64xf32>
    %300 = vector.shape_cast %299 : vector<64xf32> to vector<64x1xf32>
    %301 = tpu.reciprocal %300 {approx = true} : vector<64x1xf32> -> vector<64x1xf32>
    %302 = vector.broadcast %301 : vector<64x1xf32> to vector<64x64xf32>
    %303 = arith.mulf %298, %302 : vector<64x64xf32>
    %cst_98 = arith.constant dense<0.000000e+00> : vector<64x8xf32>
    %304 = tpu.matmul %303, %291, %cst_98 {dimension_numbers = #tpu.dot_dimension_numbers<[1], [0], [0], [1], [0, 0, 1, 1], [], []>} : vector<64x64xf32>, vector<64x8xf32>, vector<64x8xf32> -> vector<64x8xf32>
    %305 = tpu.concatenate %240, %256, %272, %288, %304 in 1 : vector<64x8xf32>, vector<64x8xf32>, vector<64x8xf32>, vector<64x8xf32>, vector<64x8xf32> -> vector<64x40xf32>
    %c1_99 = arith.constant 1 : index
    %c0_100 = arith.constant 0 : index
    %c0_101 = arith.constant 0 : index
    %306 = vector.load %arg5[%c1_99, %c0_100, %c0_101] : memref<2x40x40xf32, #tpu.memory_space<vmem>>, vector<1x40x40xf32>
    %307 = vector.shape_cast %306 : vector<1x40x40xf32> to vector<40x40xf32>
    %cst_102 = arith.constant dense<0.000000e+00> : vector<64x40xf32>
    %308 = tpu.matmul %305, %307, %cst_102 {dimension_numbers = #tpu.dot_dimension_numbers<[1], [0], [0], [1], [0, 0, 1, 1], [], []>} : vector<64x40xf32>, vector<40x40xf32>, vector<64x40xf32> -> vector<64x40xf32>
    %309 = arith.addf %195, %308 : vector<64x40xf32>
    %310 = vector.extract_strided_slice %7 {offsets = [1, 2, 0], sizes = [1, 1, 40], strides = [1, 1, 1]} : vector<2x4x40xf32> to vector<1x1x40xf32>
    %311 = vector.shape_cast %310 : vector<1x1x40xf32> to vector<40xf32>
    %312 = vector.extract_strided_slice %7 {offsets = [1, 3, 0], sizes = [1, 1, 40], strides = [1, 1, 1]} : vector<2x4x40xf32> to vector<1x1x40xf32>
    %313 = vector.shape_cast %312 : vector<1x1x40xf32> to vector<40xf32>
    %cst_103 = arith.constant dense<0.000000e+00> : vector<64xf32>
    %314 = vector.multi_reduction <add>, %309, %cst_103 [1] : vector<64x40xf32> to vector<64xf32>
    %315 = vector.shape_cast %314 : vector<64xf32> to vector<64x1xf32>
    %cst_104 = arith.constant 4.000000e+01 : f32
    %316 = vector.broadcast %cst_104 : f32 to vector<64x1xf32>
    %317 = arith.divf %315, %316 : vector<64x1xf32>
    %318 = vector.broadcast %317 : vector<64x1xf32> to vector<64x40xf32>
    %319 = arith.subf %309, %318 : vector<64x40xf32>
    %320 = arith.mulf %319, %319 : vector<64x40xf32>
    %cst_105 = arith.constant dense<0.000000e+00> : vector<64xf32>
    %321 = vector.multi_reduction <add>, %320, %cst_105 [1] : vector<64x40xf32> to vector<64xf32>
    %322 = vector.shape_cast %321 : vector<64xf32> to vector<64x1xf32>
    %cst_106 = arith.constant 4.000000e+01 : f32
    %323 = vector.broadcast %cst_106 : f32 to vector<64x1xf32>
    %324 = arith.divf %322, %323 : vector<64x1xf32>
    %cst_107 = arith.constant 9.99999974E-6 : f32
    %325 = vector.broadcast %cst_107 : f32 to vector<64x1xf32>
    %326 = arith.addf %324, %325 : vector<64x1xf32>
    %327 = math.rsqrt %326 : vector<64x1xf32>
    %328 = vector.broadcast %327 : vector<64x1xf32> to vector<64x40xf32>
    %329 = arith.mulf %319, %328 : vector<64x40xf32>
    %330 = vector.shape_cast %311 : vector<40xf32> to vector<1x40xf32>
    %331 = vector.broadcast %330 : vector<1x40xf32> to vector<64x40xf32>
    %332 = arith.mulf %329, %331 : vector<64x40xf32>
    %333 = vector.shape_cast %313 : vector<40xf32> to vector<1x40xf32>
    %334 = vector.broadcast %333 : vector<1x40xf32> to vector<64x40xf32>
    %335 = arith.addf %332, %334 : vector<64x40xf32>
    %c1_108 = arith.constant 1 : index
    %c0_109 = arith.constant 0 : index
    %c0_110 = arith.constant 0 : index
    %336 = vector.load %arg7[%c1_108, %c0_109, %c0_110] : memref<2x40x64xf32, #tpu.memory_space<vmem>>, vector<1x40x64xf32>
    %337 = vector.shape_cast %336 : vector<1x40x64xf32> to vector<40x64xf32>
    %cst_111 = arith.constant dense<0.000000e+00> : vector<64x64xf32>
    %338 = tpu.matmul %335, %337, %cst_111 {dimension_numbers = #tpu.dot_dimension_numbers<[1], [0], [0], [1], [0, 0, 1, 1], [], []>} : vector<64x40xf32>, vector<40x64xf32>, vector<64x64xf32> -> vector<64x64xf32>
    %cst_112 = arith.constant 5.000000e-01 : f32
    %339 = vector.broadcast %cst_112 : f32 to vector<64x64xf32>
    %340 = arith.mulf %339, %338 : vector<64x64xf32>
    %cst_113 = arith.constant 0.707106769 : f32
    %341 = vector.broadcast %cst_113 : f32 to vector<64x64xf32>
    %342 = arith.mulf %338, %341 : vector<64x64xf32>
    %cst_114 = arith.constant 0.000000e+00 : f32
    %343 = vector.broadcast %cst_114 : f32 to vector<64x64xf32>
    %344 = arith.cmpf oge, %342, %343 : vector<64x64xf32>
    %cst_115 = arith.constant 1.000000e+00 : f32
    %cst_116 = arith.constant -1.000000e+00 : f32
    %345 = vector.broadcast %cst_115 : f32 to vector<64x64xf32>
    %346 = vector.broadcast %cst_116 : f32 to vector<64x64xf32>
    %347 = arith.select %344, %345, %346 : vector<64x64xi1>, vector<64x64xf32>
    %348 = math.absf %342 : vector<64x64xf32>
    %cst_117 = arith.constant 0.327591091 : f32
    %349 = vector.broadcast %cst_117 : f32 to vector<64x64xf32>
    %350 = arith.mulf %349, %348 : vector<64x64xf32>
    %cst_118 = arith.constant 1.000000e+00 : f32
    %351 = vector.broadcast %cst_118 : f32 to vector<64x64xf32>
    %352 = arith.addf %351, %350 : vector<64x64xf32>
    %cst_119 = arith.constant 1.000000e+00 : f32
    %353 = vector.broadcast %cst_119 : f32 to vector<64x64xf32>
    %354 = arith.divf %353, %352 : vector<64x64xf32>
    %cst_120 = arith.constant 1.06140542 : f32
    %355 = vector.broadcast %cst_120 : f32 to vector<64x64xf32>
    %356 = arith.mulf %355, %354 : vector<64x64xf32>
    %cst_121 = arith.constant -1.45315206 : f32
    %357 = vector.broadcast %cst_121 : f32 to vector<64x64xf32>
    %358 = arith.addf %356, %357 : vector<64x64xf32>
    %359 = arith.mulf %358, %354 : vector<64x64xf32>
    %cst_122 = arith.constant 1.42141378 : f32
    %360 = vector.broadcast %cst_122 : f32 to vector<64x64xf32>
    %361 = arith.addf %359, %360 : vector<64x64xf32>
    %362 = arith.mulf %361, %354 : vector<64x64xf32>
    %cst_123 = arith.constant -0.284496725 : f32
    %363 = vector.broadcast %cst_123 : f32 to vector<64x64xf32>
    %364 = arith.addf %362, %363 : vector<64x64xf32>
    %365 = arith.mulf %364, %354 : vector<64x64xf32>
    %cst_124 = arith.constant 0.254829586 : f32
    %366 = vector.broadcast %cst_124 : f32 to vector<64x64xf32>
    %367 = arith.addf %365, %366 : vector<64x64xf32>
    %368 = arith.mulf %367, %354 : vector<64x64xf32>
    %cst_125 = arith.constant 0.000000e+00 : f32
    %369 = vector.broadcast %cst_125 : f32 to vector<64x64xf32>
    %370 = arith.subf %369, %348 : vector<64x64xf32>
    %371 = arith.mulf %370, %348 : vector<64x64xf32>
    %372 = math.exp %371 : vector<64x64xf32>
    %373 = arith.mulf %368, %372 : vector<64x64xf32>
    %cst_126 = arith.constant 1.000000e+00 : f32
    %374 = vector.broadcast %cst_126 : f32 to vector<64x64xf32>
    %375 = arith.subf %374, %373 : vector<64x64xf32>
    %376 = arith.mulf %347, %375 : vector<64x64xf32>
    %cst_127 = arith.constant 1.000000e+00 : f32
    %377 = vector.broadcast %cst_127 : f32 to vector<64x64xf32>
    %378 = arith.addf %377, %376 : vector<64x64xf32>
    %379 = arith.mulf %340, %378 : vector<64x64xf32>
    %c1_128 = arith.constant 1 : index
    %c0_129 = arith.constant 0 : index
    %c0_130 = arith.constant 0 : index
    %380 = vector.load %arg8[%c1_128, %c0_129, %c0_130] : memref<2x64x40xf32, #tpu.memory_space<vmem>>, vector<1x64x40xf32>
    %381 = vector.shape_cast %380 : vector<1x64x40xf32> to vector<64x40xf32>
    %cst_131 = arith.constant dense<0.000000e+00> : vector<64x40xf32>
    %382 = tpu.matmul %379, %381, %cst_131 {dimension_numbers = #tpu.dot_dimension_numbers<[1], [0], [0], [1], [0, 0, 1, 1], [], []>} : vector<64x64xf32>, vector<64x40xf32>, vector<64x40xf32> -> vector<64x40xf32>
    %383 = arith.addf %309, %382 : vector<64x40xf32>
    %c0_132 = arith.constant 0 : index
    %c0_133 = arith.constant 0 : index
    %384 = vector.load %arg9[%c0_132, %c0_133] : memref<81x14xf32, #tpu.memory_space<vmem>>, vector<81x14xf32>
    %cst_134 = arith.constant dense<0.000000e+00> : vector<64xf32>
    %385 = vector.multi_reduction <add>, %383, %cst_134 [1] : vector<64x40xf32> to vector<64xf32>
    %386 = vector.shape_cast %385 : vector<64xf32> to vector<64x1xf32>
    %cst_135 = arith.constant dense<0.000000e+00> : vector<64xf32>
    %387 = vector.multi_reduction <add>, %5, %cst_135 [1] : vector<64x40xf32> to vector<64xf32>
    %388 = vector.shape_cast %387 : vector<64xf32> to vector<64x1xf32>
    %389 = arith.addf %386, %388 : vector<64x1xf32>
    %cst_136 = arith.constant 1.250000e-02 : f32
    %390 = vector.broadcast %cst_136 : f32 to vector<64x1xf32>
    %391 = arith.mulf %389, %390 : vector<64x1xf32>
    %392 = vector.broadcast %391 : vector<64x1xf32> to vector<64x40xf32>
    %393 = arith.subf %383, %392 : vector<64x40xf32>
    %394 = vector.broadcast %391 : vector<64x1xf32> to vector<64x40xf32>
    %395 = arith.subf %5, %394 : vector<64x40xf32>
    %396 = arith.mulf %393, %393 : vector<64x40xf32>
    %cst_137 = arith.constant dense<0.000000e+00> : vector<64xf32>
    %397 = vector.multi_reduction <add>, %396, %cst_137 [1] : vector<64x40xf32> to vector<64xf32>
    %398 = vector.shape_cast %397 : vector<64xf32> to vector<64x1xf32>
    %399 = arith.mulf %395, %395 : vector<64x40xf32>
    %cst_138 = arith.constant dense<0.000000e+00> : vector<64xf32>
    %400 = vector.multi_reduction <add>, %399, %cst_138 [1] : vector<64x40xf32> to vector<64xf32>
    %401 = vector.shape_cast %400 : vector<64xf32> to vector<64x1xf32>
    %402 = arith.addf %398, %401 : vector<64x1xf32>
    %cst_139 = arith.constant 1.250000e-02 : f32
    %403 = vector.broadcast %cst_139 : f32 to vector<64x1xf32>
    %404 = arith.mulf %402, %403 : vector<64x1xf32>
    %cst_140 = arith.constant 9.99999974E-6 : f32
    %405 = vector.broadcast %cst_140 : f32 to vector<64x1xf32>
    %406 = arith.addf %404, %405 : vector<64x1xf32>
    %407 = math.rsqrt %406 : vector<64x1xf32>
    %408 = vector.broadcast %407 : vector<64x1xf32> to vector<64x40xf32>
    %409 = arith.mulf %393, %408 : vector<64x40xf32>
    %410 = vector.extract_strided_slice %384 {offsets = [0, 0], sizes = [40, 14], strides = [1, 1]} : vector<81x14xf32> to vector<40x14xf32>
    %cst_141 = arith.constant dense<0.000000e+00> : vector<64x14xf32>
    %411 = tpu.matmul %409, %410, %cst_141 {dimension_numbers = #tpu.dot_dimension_numbers<[1], [0], [0], [1], [0, 0, 1, 1], [], []>} : vector<64x40xf32>, vector<40x14xf32>, vector<64x14xf32> -> vector<64x14xf32>
    %412 = vector.broadcast %407 : vector<64x1xf32> to vector<64x40xf32>
    %413 = arith.mulf %395, %412 : vector<64x40xf32>
    %414 = vector.extract_strided_slice %384 {offsets = [40, 0], sizes = [40, 14], strides = [1, 1]} : vector<81x14xf32> to vector<40x14xf32>
    %cst_142 = arith.constant dense<0.000000e+00> : vector<64x14xf32>
    %415 = tpu.matmul %413, %414, %cst_142 {dimension_numbers = #tpu.dot_dimension_numbers<[1], [0], [0], [1], [0, 0, 1, 1], [], []>} : vector<64x40xf32>, vector<40x14xf32>, vector<64x14xf32> -> vector<64x14xf32>
    %416 = arith.addf %411, %415 : vector<64x14xf32>
    %417 = vector.extract_strided_slice %384 {offsets = [80, 0], sizes = [1, 14], strides = [1, 1]} : vector<81x14xf32> to vector<1x14xf32>
    %418 = vector.shape_cast %417 : vector<1x14xf32> to vector<14xf32>
    %419 = vector.shape_cast %418 : vector<14xf32> to vector<1x14xf32>
    %420 = vector.broadcast %419 : vector<1x14xf32> to vector<64x14xf32>
    %421 = arith.addf %416, %420 : vector<64x14xf32>
    %c0_143 = arith.constant 0 : index
    %c0_144 = arith.constant 0 : index
    %c0_145 = arith.constant 0 : index
    %422 = vector.load %arg10[%c0_143, %c0_144, %c0_145] : memref<1x64x14xf32, #tpu.memory_space<vmem>>, vector<1x64x14xf32>
    %423 = vector.shape_cast %422 : vector<1x64x14xf32> to vector<64x14xf32>
    %424 = vector.shape_cast %421 : vector<64x14xf32> to vector<1x64x14xf32>
    tpu.vector_store %arg10[%c0_143, %c0_144, %c0_145], %424 {strides = array<i32>} : memref<1x64x14xf32, #tpu.memory_space<vmem>>, vector<1x64x14xf32>,
    return
  }
  func.func @transform_0(%arg0: i32) -> (i32, i32, i32) {
    %c0_i32 = arith.constant 0 : i32
    %c0_i32_0 = arith.constant 0 : i32
    %c0_i32_1 = arith.constant 0 : i32
    return %arg0, %c0_i32, %c0_i32_0 : i32, i32, i32
  }
  func.func @transform_1(%arg0: i32) -> (i32, i32) {
    %c0_i32 = arith.constant 0 : i32
    %c0_i32_0 = arith.constant 0 : i32
    %c0_i32_1 = arith.constant 0 : i32
    return %c0_i32, %c0_i32_0 : i32, i32
  }
  func.func @transform_2(%arg0: i32) -> (i32, i32) {
    %c0_i32 = arith.constant 0 : i32
    %c0_i32_0 = arith.constant 0 : i32
    %c0_i32_1 = arith.constant 0 : i32
    return %c0_i32, %c0_i32_0 : i32, i32
  }
  func.func @transform_3(%arg0: i32) -> (i32, i32, i32) {
    %c0_i32 = arith.constant 0 : i32
    %c0_i32_0 = arith.constant 0 : i32
    %c0_i32_1 = arith.constant 0 : i32
    %c0_i32_2 = arith.constant 0 : i32
    return %c0_i32, %c0_i32_0, %c0_i32_1 : i32, i32, i32
  }
  func.func @transform_4(%arg0: i32) -> (i32, i32, i32) {
    %c0_i32 = arith.constant 0 : i32
    %c0_i32_0 = arith.constant 0 : i32
    %c0_i32_1 = arith.constant 0 : i32
    %c0_i32_2 = arith.constant 0 : i32
    return %c0_i32, %c0_i32_0, %c0_i32_1 : i32, i32, i32
  }
  func.func @transform_5(%arg0: i32) -> (i32, i32, i32) {
    %c0_i32 = arith.constant 0 : i32
    %c0_i32_0 = arith.constant 0 : i32
    %c0_i32_1 = arith.constant 0 : i32
    %c0_i32_2 = arith.constant 0 : i32
    return %c0_i32, %c0_i32_0, %c0_i32_1 : i32, i32, i32
  }
  func.func @transform_6(%arg0: i32) -> (i32, i32, i32) {
    %c0_i32 = arith.constant 0 : i32
    %c0_i32_0 = arith.constant 0 : i32
    %c0_i32_1 = arith.constant 0 : i32
    %c0_i32_2 = arith.constant 0 : i32
    return %c0_i32, %c0_i32_0, %c0_i32_1 : i32, i32, i32
  }
  func.func @transform_7(%arg0: i32) -> (i32, i32, i32) {
    %c0_i32 = arith.constant 0 : i32
    %c0_i32_0 = arith.constant 0 : i32
    %c0_i32_1 = arith.constant 0 : i32
    %c0_i32_2 = arith.constant 0 : i32
    return %c0_i32, %c0_i32_0, %c0_i32_1 : i32, i32, i32
  }
  func.func @transform_8(%arg0: i32) -> (i32, i32) {
    %c0_i32 = arith.constant 0 : i32
    %c0_i32_0 = arith.constant 0 : i32
    %c0_i32_1 = arith.constant 0 : i32
    return %c0_i32, %c0_i32_0 : i32, i32
  }
  func.func @transform_9(%arg0: i32) -> (i32, i32, i32) {
    %c0_i32 = arith.constant 0 : i32
    %c0_i32_0 = arith.constant 0 : i32
    %c0_i32_1 = arith.constant 0 : i32
    return %arg0, %c0_i32, %c0_i32_0 : i32, i32, i32
  }
}

</mosaic_0001>

<bundles_post_ra>
// kernel: encoder_forward.1
= control target key start
LH: loop header
LB: loop body
LE: loop exit
PB: predicated region body
PF: predicated region fallthrough
CT: control target
= control target key end

     0   :  { %s10773_s30 = smov 0   ;;  %s13835_s0 = inlined_call_operand.vmem [shape: f32[4,64,102], index: 0, kind: input, shape index: {}]   ;;  %s13836_s1 = inlined_call_operand.vmem [shape: f32[64,64], index: 1, kind: input, shape index: {}]   ;;  %s13837_s2 = inlined_call_operand.vmem [shape: f32[102,80], index: 2, kind: input, shape index: {}]   ;;  %s13838_s3 = inlined_call_operand.vmem [shape: f32[2,40,120], index: 3, kind: input, shape index: {}]   ;;  %s13839_s4 = inlined_call_operand.vmem [shape: f32[2,40,40], index: 4, kind: input, shape index: {}]   ;;  %s13840_s5 = inlined_call_operand.vmem [shape: f32[2,4,40], index: 5, kind: input, shape index: {}]   ;;  %s13841_s6 = inlined_call_operand.vmem [shape: f32[2,40,64], index: 6, kind: input, shape index: {}]   ;;  %s13842_s7 = inlined_call_operand.vmem [shape: f32[2,64,40], index: 7, kind: input, shape index: {}]   ;;  %s13843_s8 = inlined_call_operand.vmem [shape: f32[81,14], index: 8, kind: input, shape index: {}]   ;;  %s13844_s9 = inlined_call_operand.vmem [shape: f32[4,64,14], index: 9, kind: output, shape index: {}]  }
   0x1 LB: > { %s7584_s10 = sadd.s32 4294967295, %s10705_s30   ;;  %p7588_p0 = scmp.ge.s32.totalorder %s10705_s30, 1  ;;  %s10705_s30 = sphi %s10773_s30, %s19_s30  }
   0x2   : > { %p287_p1 = scmp.lt.s32.totalorder %s10705_s30, 5 }
   0x4   : > { %p288_p2 = pnand %p7588_p0, %p287_p1 }
   0x6   : > { %291 = sbr.rel (%p288_p2) target bundleno = 10424 (0x28b8), region = 56 }
   0xd   : > { %v341_v0 = vld [vmem:[%s13837_s2] sm:$0xff]  ;;  %v342_v1 = vld [vmem:[%s13837_s2 + $0x8] sm:$0xff]  ;;  %v343_v2 = vld [vmem:[%s13837_s2 + $0x10] sm:$0xff]  ;;  %p323_p3 = scmp.lt.s32.totalorder %s7584_s10, 3  ;;  %vm354_vm0 = vcmask 834560   ;;  %vm379_vm1 = vcmask 1045504  }
   0xe   : > { %v9257_v3 = vpack.c.bf16 %v342_v1, %v341_v0  ;;  %v344_v4 = vld [vmem:[%s13837_s2 + $0x18] sm:$0xff]  ;;  %v345_v6 = vld [vmem:[%s13837_s2 + $0x20] sm:$0xff]  ;;  %v346_v7 = vld [vmem:[%s13837_s2 + $0x28] sm:$0xff]  ;;  %vm498_vm2 = vcmask 326656   ;;  %vm786_vm3 = vcmask 64512   ;;  %s10707_s16 = smov 88  }
   0xf   : > { %v9261_v5 = vpack.c.bf16 %v344_v4, %v343_v2  ;;  %s13967_s10 = smov (!%p323_p3, %s7584_s10), 3  ;;  %v9265_v8 = vpack.c.bf16 %v346_v7, %v345_v6  ;;  %v347_v9 = vld [vmem:[%s13837_s2 + $0x30] sm:$0xff]  ;;  %v348_v10 = vld [vmem:[%s13837_s2 + $0x38] sm:$0xff]  ;;  %v349_v13 = vld [vmem:[%s13837_s2 + $0x40] sm:$0xff]  ;;  %s10708_s17 = smov 80   ;;  %vm924_vm5 = vcmask 523264  }
  0x10   : > { %9258 = vmatprep.subr.bf16.mxu0 %v9257_v3  ;;  %s13865_s23 = sshll.u32 %s13967_s10, 6  ;;  %v9269_v12 = vpack.c.bf16 %v348_v10, %v347_v9  ;;  %v350_v14 = vld [vmem:[%s13837_s2 + $0x48] sm:$0xff]  ;;  %v351_v16 = vld [vmem:[%s13837_s2 + $0x50] sm:$0xff]  ;;  %v352_v17 = vld [vmem:[%s13837_s2 + $0x58] sm:$0xff]  ;;  %s10709_s18 = smov 120   ;;  %vm2942_vm6 = vcmask 130048  }
  0x11   : > { %9260 = vmatpush3.bf16.msra.mxu0 %v9257_v3  ;;  %s10807_s26 = scalar_lea.vmem %s13835_s0, %s13865_s23  ;;  %v9273_v15 = vpack.c.bf16 %v350_v14, %v349_v13  ;;  %v9277_v18 = vpack.c.bf16 %v352_v17, %v351_v16  ;;  %v353_v19 = vld [vmem:[%s13837_s2 + $0x60] sm:$0x3f]  ;;  %s10710_s19 = smov 48   ;;  %vm11042_vm4 = vmpackc.low %vm786_vm3, %vm786_vm3  ;;  %vm2951_vm7 = vcmask 195584   ;;  %vm2960_vm8 = vcmask 261120  }
  0x12   : > { %9262 = vmatprep.subr.bf16.mxu0 %v9261_v5  ;;  %v333_v11 = vld [vmem:[%s10807_s26] sm:$0xff]  ;;  %v334_v20 = vld [vmem:[%s10807_s26 + $0x8] sm:$0xff]  ;;  %v335_v21 = vld [vmem:[%s10807_s26 + $0x10] sm:$0xff]  ;;  %s10711_s22 = smov 40   ;;  %s10712_s24 = smov 72  }
  0x13   : > { %8453 = vmatprep.mubr.msk.f32.mxu0 %vm354_vm0, %v333_v11  ;;  %v336_v22 = vld [vmem:[%s10807_s26 + $0x18] sm:$0xff]  ;;  %v337_v23 = vld [vmem:[%s10807_s26 + $0x20] sm:$0xff]  ;;  %v338_v24 = vld [vmem:[%s10807_s26 + $0x28] sm:$0xff]  ;;  %s10713_s25 = smov 112   ;;  %s13872_s27 = smov 64  }
  0x14   : > { %v339_v25 = vld [vmem:[%s10807_s26 + $0x30] sm:$0xff]  ;;  %v340_v26 = vld [vmem:[%s10807_s26 + $0x38] sm:$0xff]  ;;  %s10714_s26 = smov 32   ;;  %s13870_s28 = smov 104  }
  0x15   : > { %9264 = vmatpush3.bf16.msra.mxu0 %v9261_v5  ;;  %s10717_s29 = smov 24   ;;  %s13868_s11 = smov 56  }
  0x16   : > { %9266 = vmatprep.subr.bf16.mxu0 %v9265_v8  ;;  %s13866_s12 = smov 96   ;;  %s10720_s13 = smov 16  }
  0x17   : > { %s10721_s14 = smov 8  }
  0x19   : > { %9268 = vmatpush3.bf16.msra.mxu0 %v9265_v8 }
  0x1a   : > { %9270 = vmatprep.subr.bf16.mxu0 %v9269_v12 }
  0x1d   : > { %9272 = vmatpush3.bf16.msra.mxu0 %v9269_v12 }
  0x1e   : > { %9274 = vmatprep.subr.bf16.mxu0 %v9273_v15 }
  0x21   : > { %9276 = vmatpush3.bf16.msra.mxu0 %v9273_v15 }
  0x22   : > { %9278 = vmatprep.subr.bf16.mxu0 %v9277_v18 }
  0x25   : > { %9280 = vmatpush3.bf16.msra.mxu0 %v9277_v18 }
  0x26   : > { %8451 = vmatprep.subr.msk.mxu0 %vm379_vm1, %v353_v19 }
  0x29   : > { %8452 = vmatpush3.msk.msra.mxu0 %vm379_vm1, %v353_v19  ;;  %v628_v19 = vld [vmem:[%s13838_s3] sm:$0xff] }
  0x2a   : > { %8454 = vmatmul.mubr.msk.f32.vlgmr.msra.gmra.mrb[0].mxu0 %vm354_vm0, %v334_v20  ;;  %v629_v20 = vld [vmem:[%s13838_s3 + $0x8] sm:$0xff] }
  0x2b   : > { %8456 = vmatprep.mubr.msk.f32.mxu0 %vm354_vm0, %v335_v21  ;;  %v9281_v21 = vpack.c.bf16 %v629_v20, %v628_v19 }
  0x2d   : > { %9282 = vmatprep.subr.bf16.mxu1 %v9281_v21 }
  0x2e   : > { %8457 = vmatmul.mubr.msk.f32.gmra.mrb[2].mxu0 %vm354_vm0, %v336_v22  ;;  %9284 = vmatpush3.bf16.msra.mxu1 %v9281_v21  ;;  %v630_v22 = vld [vmem:[%s13838_s3 + $0x10] sm:$0xff] }
  0x2f   : > { %8459 = vmatprep.mubr.msk.f32.mxu0 %vm354_vm0, %v337_v23  ;;  %v631_v23 = vld [vmem:[%s13838_s3 + $0x18] sm:$0xff] }
  0x32   : > { %8460 = vmatmul.mubr.msk.f32.gmra.mrb[4].mxu0 %vm354_vm0, %v338_v24  ;;  %v9285_v24 = vpack.c.bf16 %v631_v23, %v630_v22 }
  0x33   : > { %8462 = vmatprep.mubr.msk.f32.mxu0 %vm354_vm0, %v339_v25  ;;  %v632_v25 = vld [vmem:[%s13838_s3 + $0x20] sm:$0xff] }
  0x34   : > { %9286 = vmatprep.subr.bf16.mxu1 %v9285_v24 }
  0x35   : > { %9288 = vmatpush3.bf16.msra.mxu1 %v9285_v24 }
  0x36   : > { %8463 = vmatmul.mubr.msk.f32.gmra.mrb[6].mxu0 %vm354_vm0, %v340_v26  ;;  %8473 = vmatprep.subr.mxu1 %v632_v25 }
  0x39   : > { %8474 = vmatpush3.msra.mxu1 %v632_v25 }
  0xfd   : > { %v10846_v27 = vpop.f32.mrb[0].mxu0 }
  0xfe   : > { %13887 = vst [vmem:[#allocation2_spill] sm:$0xff] %v10846_v27  ;;  %v10848_v28 = vpop.f32.mrb[1].mxu0  ;;  %v502_v32 = vsel %vm498_vm2, %v10846_v27, 0.0 }
  0xff   : > { %13888 = vst [vmem:[#allocation3_spill] sm:$0xff] %v10848_v28  ;;  %v499_v29 = vsel %vm498_vm2, %v10848_v28, 0.0 }
 0x100   : > { %500 = vadd.xlane.f32.xlu0 %v499_v29 }
 0x101   : > { %v10852_v30 = vpop.f32.mrb[2].mxu0 }
 0x102   : > { %13889 = vst [vmem:[#allocation4_spill] sm:$0xff] %v10852_v30  ;;  %v10854_v31 = vpop.f32.mrb[3].mxu0  ;;  %v508_v36 = vsel %vm498_vm2, %v10852_v30, 0.0 }
 0x103   : > { %13890 = vst [vmem:[#allocation5_spill] sm:$0xff] %v10854_v31  ;;  %v505_v33 = vsel %vm498_vm2, %v10854_v31, 0.0 }
 0x104   : > { %503 = vadd.xlane.f32.xlu0 %v502_v32  ;;  %506 = vadd.xlane.f32.xlu1 %v505_v33  ;;  %v604_v32 = vlaneseq }
 0x105   : > { %v10860_v34 = vpop.f32.mrb[4].mxu0 }
 0x106   : > { %13891 = vst [vmem:[#allocation6_spill] sm:$0xff] %v10860_v34  ;;  %v10862_v35 = vpop.f32.mrb[5].mxu0  ;;  %v514_v40 = vsel %vm498_vm2, %v10860_v34, 0.0 }
 0x107   : > { %13892 = vst [vmem:[#allocation7_spill] sm:$0xff] %v10862_v35  ;;  %v511_v37 = vsel %vm498_vm2, %v10862_v35, 0.0 }
 0x108   : > { %509 = vadd.xlane.f32.xlu1 %v508_v36  ;;  %512 = vadd.xlane.f32.xlu0 %v511_v37 }
 0x109   : > { %v10868_v38 = vpop.f32.mrb[6].mxu0 }
 0x10a   : > { %13893 = vst [vmem:[#allocation8_spill] sm:$0xff] %v10868_v38  ;;  %v10870_v39 = vpop.f32.mrb[7].mxu0  ;;  %v520_v42 = vsel %vm498_vm2, %v10868_v38, 0.0 }
 0x10b   : > { %13894 = vst [vmem:[#allocation9_spill] sm:$0xff] %v10870_v39  ;;  %v517_v41 = vsel %vm498_vm2, %v10870_v39, 0.0 }
 0x10c   : > { %515 = vadd.xlane.f32.xlu1 %v514_v40  ;;  %518 = vadd.xlane.f32.xlu0 %v517_v41 }
 0x110   : > { %521 = vadd.xlane.f32.xlu1 %v520_v42  ;;  %v10941_v42 = vshrl.u32 %v604_v32, 7 }
 0x112   : > { %13895 = vst [vmem:[#allocation10_spill] sm:$0xff] %v10941_v42 }
 0x18d   : > { %v501_v43 = vpop.xlane.xlu0 %500 }
 0x18e   : > { %v524_v44 = vmul.f32 0.025, %v501_v43 }
 0x190   : > { %v10879_v45 = vsub.f32 %v10848_v28, %v524_v44 }
 0x191   : > { %v504_v46 = vpop.xlane.xlu0 %503  ;;  %v507_v47 = vpop.xlane.xlu1 %506 }
 0x192   : > { %v525_v48 = vmul.f32 0.025, %v504_v46  ;;  %v526_v49 = vmul.f32 0.025, %v507_v47  ;;  %v540_v50 = vmul.f32 %v10879_v45, %v10879_v45 }
 0x194   : > { %v10884_v51 = vsub.f32 %v10846_v27, %v525_v48  ;;  %v10887_v52 = vsub.f32 %v10854_v31, %v526_v49  ;;  %v548_v53 = vsel %vm498_vm2, %v540_v50, 0.0  ;;  %v13846_v50 = vsub.s32 0, %v10941_v42 }
 0x195   : > { %v510_v54 = vpop.xlane.xlu1 %509  ;;  %v513_v55 = vpop.xlane.xlu0 %512  ;;  %549 = vadd.xlane.f32.xlu0 %v548_v53 }
 0x196   : > { %v527_v56 = vmul.f32 0.025, %v510_v54  ;;  %v528_v57 = vmul.f32 0.025, %v513_v55  ;;  %v541_v58 = vmul.f32 %v10884_v51, %v10884_v51  ;;  %v542_v59 = vmul.f32 %v10887_v52, %v10887_v52  ;;  %v496_v55 = vld [vmem:[%s13840_s5] sm:$0xf] }
 0x198   : > { %v10895_v60 = vsub.f32 %v10852_v30, %v527_v56  ;;  %v10898_v61 = vsub.f32 %v10862_v35, %v528_v57  ;;  %v551_v62 = vsel %vm498_vm2, %v541_v58, 0.0  ;;  %v554_v63 = vsel %vm498_vm2, %v542_v59, 0.0 }
 0x199   : > { %v516_v0 = vpop.xlane.xlu1 %515  ;;  %552 = vadd.xlane.f32.xlu1 %v551_v62  ;;  %555 = vadd.xlane.f32.xlu0 %v554_v63  ;;  %v519_v1 = vpop.xlane.xlu0 %518  ;;  %v13845_v58 = vsub.s32 1, %v10941_v42  ;;  %v607_v63 = vrot.slane %v496_v55, %v13846_v50 }
 0x19a   : > { %v529_v2 = vmul.f32 0.025, %v516_v0  ;;  %v530_v3 = vmul.f32 0.025, %v519_v1  ;;  %v543_v4 = vmul.f32 %v10895_v60, %v10895_v60  ;;  %v544_v5 = vmul.f32 %v10898_v61, %v10898_v61 }
 0x19c   : > { %v10907_v6 = vsub.f32 %v10860_v34, %v529_v2  ;;  %v10910_v7 = vsub.f32 %v10870_v39, %v530_v3  ;;  %v557_v8 = vsel %vm498_vm2, %v543_v4, 0.0  ;;  %v560_v9 = vsel %vm498_vm2, %v544_v5, 0.0 }
 0x19d   : > { %558 = vadd.xlane.f32.xlu1 %v557_v8  ;;  %v522_v10 = vpop.xlane.xlu1 %521  ;;  %561 = vadd.xlane.f32.xlu0 %v560_v9  ;;  %v619_v5 = vrot.slane %v496_v55, %v13845_v58 }
 0x19e   : > { %v531_v11 = vmul.f32 0.025, %v522_v10  ;;  %v545_v12 = vmul.f32 %v10907_v6, %v10907_v6  ;;  %v546_v13 = vmul.f32 %v10910_v7, %v10910_v7 }
 0x1a0   : > { %v10919_v14 = vsub.f32 %v10868_v38, %v531_v11  ;;  %v563_v15 = vsel %vm498_vm2, %v545_v12, 0.0  ;;  %v566_v16 = vsel %vm498_vm2, %v546_v13, 0.0 }
 0x1a1   : > { %564 = vadd.xlane.f32.xlu1 %v563_v15  ;;  %567 = vadd.xlane.f32.xlu0 %v566_v16 }
 0x1a2   : > { %v547_v17 = vmul.f32 %v10919_v14, %v10919_v14 }
 0x1a4   : > { %v569_v18 = vsel %vm498_vm2, %v547_v17, 0.0 }
 0x1a5   : > { %570 = vadd.xlane.f32.xlu1 %v569_v18 }
 0x222   : > { %v550_v26 = vpop.xlane.xlu0 %549 }
 0x223   : > { %v572_v29 = vmul.f32 0.025, %v550_v26 }
 0x225   : > { %v580_v33 = vadd.f32 1e-05, %v572_v29 }
 0x226   : > { %v553_v36 = vpop.xlane.xlu1 %552  ;;  %v556_v37 = vpop.xlane.xlu0 %555 }
 0x227   : > { %10209 = vrsqrt.f32 %v580_v33  ;;  %v573_v40 = vmul.f32 0.025, %v553_v36  ;;  %v574_v41 = vmul.f32 0.025, %v556_v37 }
 0x229   : > { %v581_v43 = vadd.f32 1e-05, %v573_v40  ;;  %v582_v44 = vadd.f32 1e-05, %v574_v41 }
 0x22a   : > { %v559_v46 = vpop.xlane.xlu1 %558  ;;  %v562_v47 = vpop.xlane.xlu0 %561 }
 0x22b   : > { %10211 = vrsqrt.f32 %v581_v43  ;;  %v575_v48 = vmul.f32 0.025, %v559_v46  ;;  %v576_v49 = vmul.f32 0.025, %v562_v47 }
 0x22c   : > { %10213 = vrsqrt.f32 %v582_v44 }
 0x22d   : > { %v583_v53 = vadd.f32 1e-05, %v575_v48  ;;  %v584_v54 = vadd.f32 1e-05, %v576_v49 }
 0x22e   : > { %v565_v56 = vpop.xlane.xlu1 %564  ;;  %v568_v57 = vpop.xlane.xlu0 %567 }
 0x22f   : > { %10215 = vrsqrt.f32 %v583_v53  ;;  %v577_v59 = vmul.f32 0.025, %v565_v56  ;;  %v578_v62 = vmul.f32 0.025, %v568_v57 }
 0x230   : > { %10217 = vrsqrt.f32 %v584_v54 }
 0x231   : > { %v10210_v0 = vpop.eup %10209  ;;  %v585_v1 = vadd.f32 1e-05, %v577_v59  ;;  %v586_v2 = vadd.f32 1e-05, %v578_v62 }
 0x232   : > { %v571_v3 = vpop.xlane.xlu1 %570  ;;  %v596_v4 = vmul.f32 %v10210_v0, %v10879_v45 }
 0x233   : > { %10219 = vrsqrt.f32 %v585_v1  ;;  %v579_v8 = vmul.f32 0.025, %v571_v3 }
 0x234   : > { %10221 = vrsqrt.f32 %v586_v2  ;;  %v608_v9 = vmul.f32 %v607_v63, %v596_v4 }
 0x235   : > { %v10212_v10 = vpop.eup %10211  ;;  %v587_v11 = vadd.f32 1e-05, %v579_v8 }
 0x236   : > { %v10214_v12 = vpop.eup %10213  ;;  %v620_v13 = vadd.f32 %v619_v5, %v608_v9  ;;  %v597_v15 = vmul.f32 %v10212_v10, %v10884_v51 }
 0x237   : > { %10223 = vrsqrt.f32 %v587_v11  ;;  %v598_v16 = vmul.f32 %v10214_v12, %v10887_v52 }
 0x238   : > { %8475 = vmatprep.mubr.msk.f32.mxu1 %vm498_vm2, %v620_v13  ;;  %v609_v17 = vmul.f32 %v607_v63, %v597_v15 }
 0x239   : > { %v10216_v45 = vpop.eup %10215  ;;  %v610_v18 = vmul.f32 %v607_v63, %v598_v16 }
 0x23a   : > { %v10218_v19 = vpop.eup %10217  ;;  %v621_v20 = vadd.f32 %v619_v5, %v609_v17  ;;  %v599_v21 = vmul.f32 %v10216_v45, %v10895_v60 }
 0x23b   : > { %v622_v22 = vadd.f32 %v619_v5, %v610_v18  ;;  %v600_v23 = vmul.f32 %v10218_v19, %v10898_v61 }
 0x23c   : > { %8476 = vmatmul.mubr.msk.f32.vlgmr.msra.gmra.mrb[0].mxu1 %vm498_vm2, %v621_v20  ;;  %v611_v24 = vmul.f32 %v607_v63, %v599_v21 }
 0x23d   : > { %v10220_v25 = vpop.eup %10219  ;;  %8478 = vmatprep.mubr.msk.f32.mxu1 %vm498_vm2, %v622_v22  ;;  %v612_v51 = vmul.f32 %v607_v63, %v600_v23 }
 0x23e   : > { %v10222_v52 = vpop.eup %10221  ;;  %v623_v26 = vadd.f32 %v619_v5, %v611_v24  ;;  %v601_v29 = vmul.f32 %v10220_v25, %v10907_v6 }
 0x23f   : > { %v624_v32 = vadd.f32 %v619_v5, %v612_v51  ;;  %v602_v33 = vmul.f32 %v10222_v52, %v10910_v7 }
 0x240   : > { %8479 = vmatmul.mubr.msk.f32.gmra.mrb[2].mxu1 %vm498_vm2, %v623_v26  ;;  %v613_v60 = vmul.f32 %v607_v63, %v601_v29 }
 0x241   : > { %v10224_v36 = vpop.eup %10223  ;;  %8481 = vmatprep.mubr.msk.f32.mxu1 %vm498_vm2, %v624_v32  ;;  %v614_v61 = vmul.f32 %v607_v63, %v602_v33 }
 0x242   : > { %v625_v37 = vadd.f32 %v619_v5, %v613_v60  ;;  %v603_v40 = vmul.f32 %v10224_v36, %v10919_v14 }
 0x243   : > { %v626_v41 = vadd.f32 %v619_v5, %v614_v61 }
 0x244   : > { %8482 = vmatmul.mubr.msk.f32.gmra.mrb[4].mxu1 %vm498_vm2, %v625_v37  ;;  %v615_v43 = vmul.f32 %v607_v63, %v603_v40 }
 0x245   : > { %8484 = vmatprep.mubr.msk.f32.mxu1 %vm498_vm2, %v626_v41 }
 0x246   : > { %v627_v6 = vadd.f32 %v619_v5, %v615_v43 }
 0x248   : > { %8485 = vmatmul.mubr.msk.f32.gmra.mrb[6].mxu1 %vm498_vm2, %v627_v6 }
 0x30f   : > { %v10968_v7 = vpop.f32.mrb[0].mxu1 }
 0x310   : > { %v10970_v44 = vpop.f32.mrb[1].mxu1 }
 0x311   : > { %8503 = vmatprep.mubr.msk.f32.mxu1 %vm786_vm3, %v10970_v44  ;;  %v10976_v14 = vpack.i.bf16 %v10968_v7, %v10970_v44 }
 0x313   : > { %9810 = vrot.lane.b32.xlu0 %v10976_v14, %s10707_s16  ;;  %v10980_v46 = vpop.f32.mrb[2].mxu1 }
 0x314   : > { %v10982_v47 = vpop.f32.mrb[3].mxu1 }
 0x315   : > { %v10986_v48 = vpack.i.bf16 %v10980_v46, %v10982_v47 }
 0x317   : > { %9815 = vrot.lane.b32.xlu1 %v10986_v48, %s10707_s16  ;;  %v10990_v49 = vpop.f32.mrb[4].mxu1 }
 0x318   : > { %v10992_v53 = vpop.f32.mrb[5].mxu1 }
 0x319   : > { %v10996_v54 = vpack.i.bf16 %v10990_v49, %v10992_v53 }
 0x31b   : > { %9820 = vrot.lane.b32.xlu1 %v10996_v54, %s10707_s16  ;;  %v11000_v55 = vpop.f32.mrb[6].mxu1 }
 0x31c   : > { %v11002_v56 = vpop.f32.mrb[7].mxu1 }
 0x31d   : > { %v11006_v57 = vpack.i.bf16 %v11000_v55, %v11002_v56 }
 0x31f   : > { %9825 = vrot.lane.b32.xlu1 %v10976_v14, %s10708_s17  ;;  %9830 = vrot.lane.b32.xlu0 %v11006_v57, %s10707_s16 }
 0x323   : > { %9835 = vrot.lane.b32.xlu1 %v10986_v48, %s10708_s17  ;;  %9840 = vrot.lane.b32.xlu0 %v10996_v54, %s10708_s17 }
 0x327   : > { %9845 = vrot.lane.b32.xlu1 %v11006_v57, %s10708_s17  ;;  %1166 = vrot.lane.b32.xlu0 %v10970_v44, %s10709_s18 }
 0x32b   : > { %1168 = vrot.lane.b32.xlu1 %v10968_v7, %s10709_s18  ;;  %1170 = vrot.lane.b32.xlu0 %v10982_v47, %s10709_s18 }
 0x32f   : > { %1172 = vrot.lane.b32.xlu1 %v10980_v46, %s10709_s18  ;;  %1174 = vrot.lane.b32.xlu0 %v10992_v53, %s10709_s18 }
 0x333   : > { %1176 = vrot.lane.b32.xlu1 %v10990_v49, %s10709_s18  ;;  %1178 = vrot.lane.b32.xlu0 %v11002_v56, %s10709_s18 }
 0x337   : > { %1180 = vrot.lane.b32.xlu1 %v11000_v55, %s10709_s18  ;;  %9855 = vrot.lane.b32.xlu0 %v10986_v48, %s10710_s19 }
 0x33b   : > { %9850 = vrot.lane.b32.xlu1 %v10976_v14, %s10710_s19 }
 0x33f   : > { %9860 = vrot.lane.b32.xlu1 %v10996_v54, %s10710_s19 }
 0x385   : > { %v9811_v59 = vpop.permute.xlu0 %9810 }
 0x386   : > { %v9813_v62 = vunpack.i.h.bf16 %v9811_v59  ;;  %v9812_v63 = vunpack.i.l.bf16 %v9811_v59 }
 0x388   : > { %v9289_v1 = vpack.c.bf16 %v9813_v62, %v9812_v63 }
 0x389   : > { %v9816_v2 = vpop.permute.xlu1 %9815 }
 0x38a   : > { %v9818_v3 = vunpack.i.h.bf16 %v9816_v2  ;;  %v9817_v4 = vunpack.i.l.bf16 %v9816_v2  ;;  %9291 = vmatprep.subr.msk.bf16.mxu1 %vm11042_vm4, %v9289_v1 }
 0x38b   : > { %9294 = vmatpush3.bf16.xpose.msk.msra.mxu1 %vm11042_vm4, %v9289_v1 }
 0x38c   : > { %v9295_v5 = vpack.c.bf16 %v9818_v3, %v9817_v4 }
 0x38d   : > { %v9821_v8 = vpop.permute.xlu1 %9820 }
 0x38e   : > { %v9823_v9 = vunpack.i.h.bf16 %v9821_v8  ;;  %v9822_v10 = vunpack.i.l.bf16 %v9821_v8  ;;  %9297 = vmatprep.subr.msk.bf16.mxu1 %vm11042_vm4, %v9295_v5 }
 0x390   : > { %v9301_v13 = vpack.c.bf16 %v9823_v9, %v9822_v10 }
 0x391   : > { %v9826_v11 = vpop.permute.xlu1 %9825  ;;  %v9831_v12 = vpop.permute.xlu0 %9830 }
 0x392   : > { %v9828_v15 = vunpack.i.h.bf16 %v9826_v11  ;;  %v9827_v16 = vunpack.i.l.bf16 %v9826_v11  ;;  %v9833_v19 = vunpack.i.h.bf16 %v9831_v12  ;;  %v9832_v20 = vunpack.i.l.bf16 %v9831_v12  ;;  %v11103_v12 = vld [vmem:[%s13836_s1 + $0x8] sm:$0xff] }
 0x393   : > { %9300 = vmatpush3.bf16.xpose.msk.msra.mxu1 %vm11042_vm4, %v9295_v5 }
 0x394   : > { %v9329_v17 = vpack.c.bf16 %v9828_v15, %v9827_v16  ;;  %9303 = vmatprep.subr.msk.bf16.mxu1 %vm11042_vm4, %v9301_v13  ;;  %v9307_v51 = vpack.c.bf16 %v9833_v19, %v9832_v20 }
 0x395   : > { %v9836_v45 = vpop.permute.xlu1 %9835  ;;  %v9841_v18 = vpop.permute.xlu0 %9840 }
 0x396   : > { %v9838_v21 = vunpack.i.h.bf16 %v9836_v45  ;;  %v9837_v22 = vunpack.i.l.bf16 %v9836_v45  ;;  %9331 = vmatprep.subr.msk.bf16.mxu0 %vm11042_vm4, %v9329_v17  ;;  %v9843_v52 = vunpack.i.h.bf16 %v9841_v18  ;;  %v9842_v26 = vunpack.i.l.bf16 %v9841_v18 }
 0x397   : > { %9334 = vmatpush3.bf16.xpose.msk.msra.mxu0 %vm11042_vm4, %v9329_v17 }
 0x398   : > { %v9335_v23 = vpack.c.bf16 %v9838_v21, %v9837_v22  ;;  %v9341_v33 = vpack.c.bf16 %v9843_v52, %v9842_v26 }
 0x399   : > { %v9846_v24 = vpop.permute.xlu1 %9845  ;;  %v1167_v25 = vpop.permute.xlu0 %1166 }
 0x39a   : > { %9337 = vmatprep.subr.msk.bf16.mxu0 %vm11042_vm4, %v9335_v23  ;;  %8559 = vmatprep.mubr.msk.f32.mxu0 %vm786_vm3, %v1167_v25  ;;  %v9848_v61 = vunpack.i.h.bf16 %v9846_v24  ;;  %v9847_v37 = vunpack.i.l.bf16 %v9846_v24 }
 0x39b   : > { %9306 = vmatpush3.bf16.xpose.msk.msra.mxu1 %vm11042_vm4, %v9301_v13  ;;  %v11108_v13 = vld [vmem:[%s13836_s1] sm:$0xff] }
 0x39c   : > { %9309 = vmatprep.subr.msk.bf16.mxu1 %vm11042_vm4, %v9307_v51  ;;  %v9347_v43 = vpack.c.bf16 %v9848_v61, %v9847_v37 }
 0x39d   : > { %v1169_v29 = vpop.permute.xlu1 %1168  ;;  %v1171_v32 = vpop.permute.xlu0 %1170 }
 0x39f   : > { %9340 = vmatpush3.bf16.xpose.msk.msra.mxu0 %vm11042_vm4, %v9335_v23 }
 0x3a0   : > { %9343 = vmatprep.subr.msk.bf16.mxu0 %vm11042_vm4, %v9341_v33 }
 0x3a1   : > { %v1173_v60 = vpop.permute.xlu1 %1172  ;;  %v1175_v36 = vpop.permute.xlu0 %1174 }
 0x3a3   : > { %9312 = vmatpush3.bf16.xpose.msk.msra.mxu1 %vm11042_vm4, %v9307_v51  ;;  %v11123_v51 = vld [vmem:[%s13836_s1 + $0x18] sm:$0xff] }
 0x3a5   : > { %v1177_v40 = vpop.permute.xlu1 %1176  ;;  %v1179_v41 = vpop.permute.xlu0 %1178 }
 0x3a7   : > { %9346 = vmatpush3.bf16.xpose.msk.msra.mxu0 %vm11042_vm4, %v9341_v33 }
 0x3a8   : > { %9349 = vmatprep.subr.msk.bf16.mxu0 %vm11042_vm4, %v9347_v43 }
 0x3a9   : > { %v1181_v6 = vpop.permute.xlu1 %1180  ;;  %v9856_v59 = vpop.permute.xlu0 %9855 }
 0x3aa   : > { %8504 = vmatmul.mubr.msk.f32.vlgmr.msra.gmra.mrb[8].mxu1 %vm786_vm3, %v10968_v7  ;;  %v9858_v63 = vunpack.i.h.bf16 %v9856_v59  ;;  %v9857_v1 = vunpack.i.l.bf16 %v9856_v59 }
 0x3ab   : > { %8506 = vmatprep.mubr.msk.f32.mxu1 %vm786_vm3, %v10982_v47 }
 0x3ac   : > { %v9317_v10 = vpack.c.bf16 %v9858_v63, %v9857_v1 }
 0x3ad   : > { %v9851_v62 = vpop.permute.xlu1 %9850 }
 0x3ae   : > { %v9853_v2 = vunpack.i.h.bf16 %v9851_v62  ;;  %v9852_v3 = vunpack.i.l.bf16 %v9851_v62  ;;  %8507 = vmatmul.mubr.msk.f32.gmra.mrb[10].mxu1 %vm786_vm3, %v10980_v46 }
 0x3af   : > { %8509 = vmatprep.mubr.msk.f32.mxu1 %vm786_vm3, %v10992_v53  ;;  %9352 = vmatpush3.bf16.xpose.msk.msra.mxu0 %vm11042_vm4, %v9347_v43 }
 0x3b0   : > { %v9313_v4 = vpack.c.bf16 %v9853_v2, %v9852_v3 }
 0x3b1   : > { %v9861_v5 = vpop.permute.xlu1 %9860 }
 0x3b2   : > { %v9863_v8 = vunpack.i.h.bf16 %v9861_v5  ;;  %v9862_v9 = vunpack.i.l.bf16 %v9861_v5  ;;  %8510 = vmatmul.mubr.msk.f32.gmra.mrb[12].mxu1 %vm786_vm3, %v10990_v49  ;;  %9314 = vmatprep.subr.bf16.mxu1 %v9313_v4  ;;  %v11169_v5 = vld [vmem:[%s13836_s1 + $0x38] sm:$0xff] }
 0x3b3   : > { %8512 = vmatprep.mubr.msk.f32.mxu1 %vm786_vm3, %v11002_v56  ;;  %9316 = vmatpush3.bf16.msra.mxu1 %v9313_v4 }
 0x3b4   : > { %9318 = vmatprep.subr.bf16.mxu1 %v9317_v10  ;;  %v9321_v11 = vpack.c.bf16 %v9863_v8, %v9862_v9 }
 0x3b6   : > { %8513 = vmatmul.mubr.msk.f32.gmra.mrb[14].mxu1 %vm786_vm3, %v11000_v55  ;;  %8560 = vmatmul.mubr.msk.f32.vlgmr.msra.gmra.mrb[8].mxu0 %vm786_vm3, %v1169_v29 }
 0x3b7   : > { %9320 = vmatpush3.bf16.msra.mxu1 %v9317_v10  ;;  %8562 = vmatprep.mubr.msk.f32.mxu0 %vm786_vm3, %v1171_v32 }
 0x3b8   : > { %9322 = vmatprep.subr.bf16.mxu1 %v9321_v11 }
 0x3ba   : > { %8563 = vmatmul.mubr.msk.f32.gmra.mrb[10].mxu0 %vm786_vm3, %v1173_v60 }
 0x3bb   : > { %9324 = vmatpush3.bf16.msra.mxu1 %v9321_v11  ;;  %8565 = vmatprep.mubr.msk.f32.mxu0 %vm786_vm3, %v1175_v36  ;;  %v11139_v36 = vld [vmem:[%s13836_s1 + $0x28] sm:$0xff]  ;;  %v11179_v11 = vld [vmem:[%s13836_s1 + $0x20] sm:$0xff] }
 0x3be   : > { %8566 = vmatmul.mubr.msk.f32.gmra.mrb[12].mxu0 %vm786_vm3, %v1177_v40  ;;  %v11146_v40 = vld [vmem:[%s13836_s1 + $0x10] sm:$0xff] }
 0x3bf   : > { %8568 = vmatprep.mubr.msk.f32.mxu0 %vm786_vm3, %v1179_v41 }
 0x3c2   : > { %8569 = vmatmul.mubr.msk.f32.gmra.mrb[14].mxu0 %vm786_vm3, %v1181_v6 }
 0x47d   : > { %v8505_v15 = vpop.f32.mrb[8].mxu1 }
 0x47e   : > { %v11111_v16 = vadd.f32 %v8505_v15, %v11103_v12  ;;  %v885_v17 = vpop.f32.mrb[9].mxu1 }
 0x47f   : > { %v11114_v45 = vadd.f32 %v885_v17, %v11108_v13 }
 0x480   : > { %v928_v18 = vsel %vm924_vm5, %v11111_v16, -inf }
 0x481   : > { %929 = vmax.xlane.f32.xlu1 %v928_v18  ;;  %v8508_v19 = vpop.f32.mrb[10].mxu1  ;;  %v925_v20 = vsel %vm924_vm5, %v11114_v45, -inf }
 0x482   : > { %v895_v21 = vpop.f32.mrb[11].mxu1  ;;  %926 = vmax.xlane.f32.xlu0 %v925_v20  ;;  %v11134_v60 = vadd.f32 %v8508_v19, %v11123_v51 }
 0x483   : > { %v11157_v62 = vadd.f32 %v895_v21, %v11146_v40 }
 0x484   : > { %v934_v1 = vsel %vm924_vm5, %v11134_v60, -inf }
 0x485   : > { %v8511_v22 = vpop.f32.mrb[12].mxu1  ;;  %v931_v10 = vsel %vm924_vm5, %v11157_v62, -inf }
 0x486   : > { %v905_v23 = vpop.f32.mrb[13].mxu1  ;;  %v11152_v6 = vadd.f32 %v8511_v22, %v11139_v36 }
 0x487   : > { %v11187_v19 = vadd.f32 %v905_v23, %v11179_v11  ;;  %v11204_v23 = vld [vmem:[%s13836_s1 + $0x30] sm:$0xff] }
 0x488   : > { %v940_v4 = vsel %vm924_vm5, %v11152_v6, -inf }
 0x489   : > { %v8514_v24 = vpop.f32.mrb[14].mxu1  ;;  %v8561_v25 = vpop.f32.mrb[8].mxu0 }
 0x48a   : > { %v11126_v52 = vadd.f32 %v8561_v25, %v11103_v12  ;;  %v915_v26 = vpop.f32.mrb[15].mxu1  ;;  %v1296_v29 = vpop.f32.mrb[9].mxu0  ;;  %v11182_v17 = vadd.f32 %v8514_v24, %v11169_v5  ;;  %v937_v25 = vsel %vm924_vm5, %v11187_v19, -inf }
 0x48b   : > { %v11129_v32 = vadd.f32 %v1296_v29, %v11108_v13 }
 0x48c   : > { %v1338_v33 = vsel %vm924_vm5, %v11126_v52, -inf  ;;  %v946_v22 = vsel %vm924_vm5, %v11182_v17, -inf }
 0x48d   : > { %v8564_v61 = vpop.f32.mrb[10].mxu0  ;;  %1339 = vmax.xlane.f32.xlu1 %v1338_v33  ;;  %v1335_v37 = vsel %vm924_vm5, %v11129_v32, -inf  ;;  %v11209_v33 = vadd.f32 %v915_v26, %v11204_v23 }
 0x48e   : > { %v11149_v41 = vadd.f32 %v8564_v61, %v11123_v51  ;;  %v1306_v43 = vpop.f32.mrb[11].mxu0  ;;  %1336 = vmax.xlane.f32.xlu0 %v1335_v37 }
 0x48f   : > { %v11172_v8 = vadd.f32 %v1306_v43, %v11146_v40  ;;  %v943_v37 = vsel %vm924_vm5, %v11209_v33, -inf }
 0x490   : > { %v1344_v59 = vsel %vm924_vm5, %v11149_v41, -inf }
 0x491   : > { %v8567_v63 = vpop.f32.mrb[12].mxu0  ;;  %1345 = vmax.xlane.f32.xlu1 %v1344_v59  ;;  %v1341_v20 = vsel %vm924_vm5, %v11172_v8, -inf }
 0x492   : > { %v1316_v2 = vpop.f32.mrb[13].mxu0  ;;  %935 = vmax.xlane.f32.xlu0 %v934_v1  ;;  %v11162_v3 = vadd.f32 %v8567_v63, %v11139_v36 }
 0x493   : > { %v11197_v24 = vadd.f32 %v1316_v2, %v11179_v11 }
 0x494   : > { %v1350_v18 = vsel %vm924_vm5, %v11162_v3, -inf }
 0x495   : > { %v8570_v9 = vpop.f32.mrb[14].mxu0  ;;  %941 = vmax.xlane.f32.xlu1 %v940_v4  ;;  %v1347_v61 = vsel %vm924_vm5, %v11197_v24, -inf }
 0x496   : > { %v1326_v15 = vpop.f32.mrb[15].mxu0  ;;  %932 = vmax.xlane.f32.xlu0 %v931_v10  ;;  %v11192_v21 = vadd.f32 %v8570_v9, %v11169_v5 }
 0x497   : > { %v11224_v26 = vadd.f32 %v1326_v15, %v11204_v23 }
 0x498   : > { %v1356_v29 = vsel %vm924_vm5, %v11192_v21, -inf }
 0x499   : > { %1351 = vmax.xlane.f32.xlu1 %v1350_v18  ;;  %v1353_v43 = vsel %vm924_vm5, %v11224_v26, -inf }
 0x49a   : > { %1342 = vmax.xlane.f32.xlu0 %v1341_v20 }
 0x49d   : > { %947 = vmax.xlane.f32.xlu1 %v946_v22 }
 0x49e   : > { %938 = vmax.xlane.f32.xlu0 %v937_v25 }
 0x4a1   : > { %1357 = vmax.xlane.f32.xlu1 %v1356_v29 }
 0x4a2   : > { %1348 = vmax.xlane.f32.xlu0 %v1347_v61 }
 0x4a6   : > { %944 = vmax.xlane.f32.xlu0 %v943_v37 }
 0x4b2   : > { %9870 = vrot.lane.b32.xlu1 %v10976_v14, %s10711_s22 }
 0x4b6   : > { %9880 = vrot.lane.b32.xlu1 %v10996_v54, %s10711_s22 }
 0x4ba   : > { %9885 = vrot.lane.b32.xlu1 %v11006_v57, %s10711_s22 }
 0x4bc   : > { %9865 = vrot.lane.b32.xlu0 %v11006_v57, %s10710_s19 }
 0x4db   : > { %1354 = vmax.xlane.f32.xlu0 %v1353_v43 }
 0x4f1   : > { %9875 = vrot.lane.b32.xlu0 %v10986_v48, %s10711_s22 }
 0x50e   : > { %v930_v59 = vpop.xlane.xlu1 %929 }
 0x50f   : > { %v950_v63 = vsub.f32 %v11111_v16, %v930_v59  ;;  %v927_v2 = vpop.xlane.xlu0 %926 }
 0x510   : > { %v949_v4 = vsub.f32 %v11114_v45, %v927_v2 }
 0x511   : > { %v959_v1 = vmul.f32 1.442695, %v950_v63 }
 0x512   : > { %v957_v22 = vmul.f32 1.442695, %v949_v4 }
 0x513   : > { %10225 = vpow2.f32 %v959_v1 }
 0x51a   : > { %v1340_v9 = vpop.xlane.xlu1 %1339 }
 0x51b   : > { %v1360_v10 = vsub.f32 %v11126_v52, %v1340_v9  ;;  %v1337_v15 = vpop.xlane.xlu0 %1336 }
 0x51c   : > { %v1359_v18 = vsub.f32 %v11129_v32, %v1337_v15 }
 0x51d   : > { %v11234_v20 = vpop.eup %10225  ;;  %v1369_v25 = vmul.f32 1.442695, %v1360_v10 }
 0x51e   : > { %v1367_v29 = vmul.f32 1.442695, %v1359_v18  ;;  %v1346_v61 = vpop.xlane.xlu1 %1345  ;;  %v976_v16 = vsel %vm924_vm5, %v11234_v20, 0.0 }
 0x51f   : > { %10227 = vpow2.f32 %v1369_v25  ;;  %977 = vadd.xlane.f32.xlu1 %v976_v16  ;;  %v936_v37 = vpop.xlane.xlu0 %935  ;;  %v1362_v52 = vsub.f32 %v11149_v41, %v1346_v61 }
 0x520   : > { %10229 = vpow2.f32 %v1367_v29  ;;  %v952_v45 = vsub.f32 %v11134_v60, %v936_v37 }
 0x521   : > { %10231 = vpow2.f32 %v957_v22  ;;  %v1373_v63 = vmul.f32 1.442695, %v1362_v52 }
 0x522   : > { %v963_v43 = vmul.f32 1.442695, %v952_v45  ;;  %v942_v32 = vpop.xlane.xlu1 %941 }
 0x523   : > { %v933_v59 = vpop.xlane.xlu0 %932  ;;  %v954_v2 = vsub.f32 %v11152_v6, %v942_v32 }
 0x524   : > { %10233 = vpow2.f32 %v963_v43  ;;  %v951_v1 = vsub.f32 %v11157_v62, %v933_v59 }
 0x525   : > { %10235 = vpow2.f32 %v1373_v63  ;;  %v967_v41 = vmul.f32 1.442695, %v954_v2 }
 0x526   : > { %v1352_v4 = vpop.xlane.xlu1 %1351  ;;  %v961_v60 = vmul.f32 1.442695, %v951_v1 }
 0x527   : > { %v1343_v9 = vpop.xlane.xlu0 %1342  ;;  %v1364_v22 = vsub.f32 %v11162_v3, %v1352_v4 }
 0x528   : > { %v1361_v10 = vsub.f32 %v11172_v8, %v1343_v9 }
 0x529   : > { %v11243_v15 = vpop.eup %10227  ;;  %v1377_v3 = vmul.f32 1.442695, %v1364_v22 }
 0x52a   : > { %v11245_v18 = vpop.eup %10229  ;;  %v1371_v25 = vmul.f32 1.442695, %v1361_v10  ;;  %v948_v29 = vpop.xlane.xlu1 %947  ;;  %v1386_v62 = vsel %vm924_vm5, %v11243_v15, 0.0 }
 0x52b   : > { %v11250_v61 = vpop.eup %10231  ;;  %1387 = vadd.xlane.f32.xlu0 %v1386_v62  ;;  %v939_v6 = vpop.xlane.xlu0 %938  ;;  %v1383_v8 = vsel %vm924_vm5, %v11245_v18, 0.0  ;;  %v956_v37 = vsub.f32 %v11182_v17, %v948_v29 }
 0x52c   : > { %10237 = vpow2.f32 %v1371_v25  ;;  %v953_v16 = vsub.f32 %v11187_v19, %v939_v6  ;;  %1384 = vadd.xlane.f32.xlu1 %v1383_v8  ;;  %v973_v52 = vsel %vm924_vm5, %v11250_v61, 0.0 }
 0x52d   : > { %10239 = vpow2.f32 %v961_v60  ;;  %v971_v1 = vmul.f32 1.442695, %v956_v37 }
 0x52e   : > { %10241 = vpow2.f32 %v967_v41  ;;  %v965_v45 = vmul.f32 1.442695, %v953_v16  ;;  %v11258_v43 = vpop.eup %10233  ;;  %v1358_v32 = vpop.xlane.xlu1 %1357 }
 0x52f   : > { %974 = vadd.xlane.f32.xlu0 %v973_v52  ;;  %v1349_v59 = vpop.xlane.xlu0 %1348  ;;  %v1366_v19 = vsub.f32 %v11192_v21, %v1358_v32  ;;  %v982_v17 = vsel %vm924_vm5, %v11258_v43, 0.0  ;;  %v11264_v4 = vpop.eup %10235 }
 0x530   : > { %v1363_v63 = vsub.f32 %v11197_v24, %v1349_v59  ;;  %10243 = vpow2.f32 %v965_v45  ;;  %v1392_v21 = vsel %vm924_vm5, %v11264_v4, 0.0 }
 0x531   : > { %10245 = vpow2.f32 %v1377_v3  ;;  %v1381_v24 = vmul.f32 1.442695, %v1366_v19 }
 0x532   : > { %v1375_v2 = vmul.f32 1.442695, %v1363_v63  ;;  %10247 = vpow2.f32 %v971_v1  ;;  %v9871_v60 = vpop.permute.xlu1 %9870 }
 0x533   : > { %983 = vadd.xlane.f32.xlu0 %v982_v17  ;;  %v945_v9 = vpop.xlane.xlu0 %944  ;;  %v9872_v8 = vunpack.i.l.bf16 %v9871_v60 }
 0x534   : > { %v955_v10 = vsub.f32 %v11209_v33, %v945_v9  ;;  %10249 = vpow2.f32 %v1375_v2  ;;  %v9873_v33 = vunpack.i.h.bf16 %v9871_v60 }
 0x536   : > { %v11267_v41 = vpop.eup %10237  ;;  %v969_v22 = vmul.f32 1.442695, %v955_v10  ;;  %v11285_v63 = vpack.c.bf16 %v9873_v33, %v9872_v8 }
 0x537   : > { %v11271_v25 = vpop.eup %10239  ;;  %1393 = vadd.xlane.f32.xlu0 %v1392_v21  ;;  %v9866_v29 = vpop.permute.xlu0 %9865  ;;  %v1389_v62 = vsel %vm924_vm5, %v11267_v41, 0.0 }
 0x538   : > { %v11275_v6 = vpop.eup %10241  ;;  %v9868_v16 = vunpack.i.h.bf16 %v9866_v29  ;;  %v9867_v37 = vunpack.i.l.bf16 %v9866_v29  ;;  %1390 = vadd.xlane.f32.xlu1 %v1389_v62  ;;  %10251 = vpow2.f32 %v969_v22  ;;  %v979_v3 = vsel %vm924_vm5, %v11271_v25, 0.0 }
 0x539   : > { %10253 = vpow2.f32 %v1381_v24  ;;  %v988_v32 = vsel %vm924_vm5, %v11275_v6, 0.0 }
 0x53a   : > { %v9325_v45 = vpack.c.bf16 %v9868_v16, %v9867_v37  ;;  %v11279_v52 = vpop.eup %10243 }
 0x53b   : > { %980 = vadd.xlane.f32.xlu0 %v979_v3  ;;  %v11283_v59 = vpop.eup %10245  ;;  %v985_v1 = vsel %vm924_vm5, %v11279_v52, 0.0 }
 0x53c   : > { %989 = vadd.xlane.f32.xlu1 %v988_v32  ;;  %9326 = vmatprep.subr.bf16.mxu1 %v9325_v45  ;;  %v11290_v19 = vpop.eup %10247  ;;  %v1398_v2 = vsel %vm924_vm5, %v11283_v59, 0.0 }
 0x53d   : > { %9328 = vmatpush3.bf16.msra.mxu1 %v9325_v45  ;;  %v994_v9 = vsel %vm924_vm5, %v11290_v19, 0.0 }
 0x53e   : > { %9354 = vmatprep.subr.bf16.mxu1 %v11285_v63  ;;  %v11294_v17 = vpop.eup %10249 }
 0x53f   : > { %986 = vadd.xlane.f32.xlu0 %v985_v1  ;;  %v1395_v60 = vsel %vm924_vm5, %v11294_v17, 0.0 }
 0x540   : > { %1399 = vadd.xlane.f32.xlu1 %v1398_v2 }
 0x542   : > { %v11298_v10 = vpop.eup %10251 }
 0x543   : > { %995 = vadd.xlane.f32.xlu0 %v994_v9  ;;  %v11302_v24 = vpop.eup %10253  ;;  %v991_v22 = vsel %vm924_vm5, %v11298_v10, 0.0 }
 0x544   : > { %1396 = vadd.xlane.f32.xlu1 %v1395_v60  ;;  %v1404_v21 = vsel %vm924_vm5, %v11302_v24, 0.0 }
 0x547   : > { %992 = vadd.xlane.f32.xlu0 %v991_v22 }
 0x548   : > { %1405 = vadd.xlane.f32.xlu1 %v1404_v21 }
 0x559   : > { %9895 = vrot.lane.b32.xlu1 %v10986_v48, %s10712_s24 }
 0x55d   : > { %9905 = vrot.lane.b32.xlu1 %v11006_v57, %s10712_s24  ;;  %9890 = vrot.lane.b32.xlu0 %v10976_v14, %s10712_s24 }
 0x561   : > { %9900 = vrot.lane.b32.xlu0 %v10996_v54, %s10712_s24 }
 0x565   : > { %1576 = vrot.lane.b32.xlu0 %v10970_v44, %s10713_s25 }
 0x568   : > { %v1355_v29 = vpop.xlane.xlu0 %1354 }
 0x569   : > { %1580 = vrot.lane.b32.xlu0 %v10982_v47, %s10713_s25  ;;  %v1365_v62 = vsub.f32 %v11224_v26, %v1355_v29  ;;  %v9881_v26 = vpop.permute.xlu1 %9880 }
 0x56b   : > { %v1379_v33 = vmul.f32 1.442695, %v1365_v62 }
 0x56c   : > { %v9876_v37 = vpop.permute.xlu0 %9875 }
 0x56d   : > { %1584 = vrot.lane.b32.xlu0 %v10992_v53, %s10713_s25  ;;  %10255 = vpow2.f32 %v1379_v33  ;;  %v9886_v3 = vpop.permute.xlu1 %9885  ;;  %v9878_v62 = vunpack.i.h.bf16 %v9876_v37  ;;  %v9877_v33 = vunpack.i.l.bf16 %v9876_v37 }
 0x56f   : > { %v9357_v39 = vpack.c.bf16 %v9878_v62, %v9877_v33 }
 0x571   : > { %1588 = vrot.lane.b32.xlu0 %v11002_v56, %s10713_s25 }
 0x577   : > { %v11325_v8 = vpop.eup %10255 }
 0x578   : > { %v1401_v16 = vsel %vm924_vm5, %v11325_v8, 0.0 }
 0x581   : > { %1402 = vadd.xlane.f32.xlu1 %v1401_v16 }
 0x592   : > { %1578 = vrot.lane.b32.xlu1 %v10968_v7, %s10713_s25 }
 0x596   : > { %1582 = vrot.lane.b32.xlu1 %v10980_v46, %s10713_s25 }
 0x59a   : > { %1586 = vrot.lane.b32.xlu1 %v10990_v49, %s10713_s25 }
 0x59e   : > { %1590 = vrot.lane.b32.xlu1 %v11000_v55, %s10713_s25 }
 0x5ac   : > { %v978_v32 = vpop.xlane.xlu1 %977 }
 0x5ad   : > { %10257 = vrcp.f32 %v978_v32  ;;  %v9883_v32 = vunpack.i.h.bf16 %v9881_v26 }
 0x5b7   : > { %v10258_v21 = vpop.eup %10257 }
 0x5b8   : > { %v1388_v45 = vpop.xlane.xlu0 %1387  ;;  %v1006_v50 = vmul.f32 %v10258_v21, %v11234_v20 }
 0x5b9   : > { %v1385_v9 = vpop.xlane.xlu1 %1384 }
 0x5bc   : > { %v975_v1 = vpop.xlane.xlu0 %974 }
 0x5bd   : > { %10259 = vrcp.f32 %v975_v1  ;;  %v9882_v1 = vunpack.i.l.bf16 %v9881_v26 }
 0x5c0   : > { %v984_v2 = vpop.xlane.xlu0 %983 }
 0x5c1   : > { %10261 = vrcp.f32 %v984_v2  ;;  %v9888_v2 = vunpack.i.h.bf16 %v9886_v3 }
 0x5c4   : > { %v1394_v60 = vpop.xlane.xlu0 %1393 }
 0x5c5   : > { %v1391_v22 = vpop.xlane.xlu1 %1390 }
 0x5c7   : > { %v10260_v29 = vpop.eup %10259 }
 0x5c8   : > { %v981_v16 = vpop.xlane.xlu0 %980  ;;  %v1005_v58 = vmul.f32 %v10260_v29, %v11250_v61  ;;  %v9887_v61 = vunpack.i.l.bf16 %v9886_v3  ;;  %v9361_v29 = vpack.c.bf16 %v9883_v32, %v9882_v1 }
 0x5c9   : > { %10263 = vrcp.f32 %v981_v16  ;;  %v990_v42 = vpop.xlane.xlu1 %989 }
 0x5ca   : > { %8531 = vmatprep.mubr.msk.f32.mxu1 %vm924_vm5, %v1005_v58  ;;  %10265 = vrcp.f32 %v990_v42  ;;  %v9365_v26 = vpack.c.bf16 %v9888_v2, %v9887_v61 }
 0x5cb   : > { %8532 = vmatmul.mubr.msk.f32.vlgmr.msra.gmra.mrb[16].mxu1 %vm924_vm5, %v1006_v50  ;;  %v10262_v21 = vpop.eup %10261 }
 0x5cc   : > { %9356 = vmatpush3.bf16.msra.mxu1 %v11285_v63  ;;  %v987_v38 = vpop.xlane.xlu0 %986 }
 0x5cd   : > { %10267 = vrcp.f32 %v987_v38  ;;  %9358 = vmatprep.subr.bf16.mxu1 %v9357_v39  ;;  %v1400_v37 = vpop.xlane.xlu1 %1399  ;;  %v1008_v38 = vmul.f32 %v10262_v21, %v11258_v43 }
 0x5ce   : > { %10269 = vrcp.f32 %v1385_v9 }
 0x5d0   : > { %9360 = vmatpush3.bf16.msra.mxu1 %v9357_v39  ;;  %v996_v20 = vpop.xlane.xlu0 %995 }
 0x5d1   : > { %9362 = vmatprep.subr.bf16.mxu1 %v9361_v29  ;;  %10271 = vrcp.f32 %v996_v20  ;;  %v1397_v50 = vpop.xlane.xlu1 %1396 }
 0x5d3   : > { %v10264_v58 = vpop.eup %10263 }
 0x5d4   : > { %9364 = vmatpush3.bf16.msra.mxu1 %v9361_v29  ;;  %v993_v42 = vpop.xlane.xlu0 %992  ;;  %v1007_v63 = vmul.f32 %v10264_v58, %v11271_v25  ;;  %v10266_v62 = vpop.eup %10265 }
 0x5d5   : > { %10273 = vrcp.f32 %v993_v42  ;;  %9366 = vmatprep.subr.bf16.mxu1 %v9365_v26  ;;  %v1010_v25 = vmul.f32 %v10266_v62, %v11275_v6  ;;  %v1406_v32 = vpop.xlane.xlu1 %1405 }
 0x5d6   : > { %8534 = vmatprep.mubr.msk.f32.mxu1 %vm924_vm5, %v1007_v63  ;;  %10275 = vrcp.f32 %v1388_v45 }
 0x5d7   : > { %v10268_v39 = vpop.eup %10267  ;;  %8535 = vmatmul.mubr.msk.f32.gmra.mrb[18].mxu1 %vm924_vm5, %v1008_v38  ;;  %10277 = vrcp.f32 %v1391_v22 }
 0x5d8   : > { %9368 = vmatpush3.bf16.msra.mxu1 %v9365_v26  ;;  %v9891_v3 = vpop.permute.xlu0 %9890  ;;  %v1009_v9 = vmul.f32 %v10268_v39, %v11279_v52  ;;  %10279 = vrcp.f32 %v1394_v60  ;;  %v10270_v1 = vpop.eup %10269 }
 0x5d9   : > { %v9893_v33 = vunpack.i.h.bf16 %v9891_v3  ;;  %v9892_v16 = vunpack.i.l.bf16 %v9891_v3  ;;  %10281 = vrcp.f32 %v1397_v50  ;;  %v9896_v52 = vpop.permute.xlu1 %9895  ;;  %v1415_v29 = vmul.f32 %v10270_v1, %v11245_v18 }
 0x5da   : > { %8537 = vmatprep.mubr.msk.f32.mxu1 %vm924_vm5, %v1009_v9  ;;  %10283 = vrcp.f32 %v1400_v37  ;;  %v9898_v60 = vunpack.i.h.bf16 %v9896_v52  ;;  %v9897_v21 = vunpack.i.l.bf16 %v9896_v52 }
 0x5db   : > { %v9369_v43 = vpack.c.bf16 %v9893_v33, %v9892_v16  ;;  %8538 = vmatmul.mubr.msk.f32.gmra.mrb[20].mxu1 %vm924_vm5, %v1010_v25  ;;  %v10272_v45 = vpop.eup %10271  ;;  %10285 = vrcp.f32 %v1406_v32 }
 0x5dc   : > { %v1012_v6 = vmul.f32 %v10272_v45, %v11290_v19  ;;  %v9375_v50 = vpack.c.bf16 %v9898_v60, %v9897_v21  ;;  %v9901_v19 = vpop.permute.xlu0 %9900 }
 0x5dd   : > { %9371 = vmatprep.subr.msk.bf16.mxu1 %vm11042_vm4, %v9369_v43  ;;  %v9903_v63 = vunpack.i.h.bf16 %v9901_v19  ;;  %v9906_v39 = vpop.permute.xlu1 %9905 }
 0x5df   : > { %v10274_v2 = vpop.eup %10273 }
 0x5e0   : > { %v1011_v22 = vmul.f32 %v10274_v2, %v11298_v10  ;;  %v10276_v61 = vpop.eup %10275  ;;  %v1577_v9 = vpop.permute.xlu0 %1576 }
 0x5e1   : > { %v10278_v20 = vpop.eup %10277  ;;  %v1416_v58 = vmul.f32 %v10276_v61, %v11243_v15 }
 0x5e2   : > { %8540 = vmatprep.mubr.msk.f32.mxu1 %vm924_vm5, %v1011_v22  ;;  %v10280_v37 = vpop.eup %10279  ;;  %v1417_v26 = vmul.f32 %v10278_v20, %v11267_v41  ;;  %v9902_v41 = vunpack.i.l.bf16 %v9901_v19 }
 0x5e3   : > { %8541 = vmatmul.mubr.msk.f32.gmra.mrb[22].mxu1 %vm924_vm5, %v1012_v6  ;;  %v10282_v10 = vpop.eup %10281  ;;  %v1418_v18 = vmul.f32 %v10280_v37, %v11264_v4  ;;  %v9908_v4 = vunpack.i.h.bf16 %v9906_v39 }
 0x5e4   : > { %8587 = vmatprep.mubr.msk.f32.mxu1 %vm924_vm5, %v1415_v29  ;;  %v10284_v42 = vpop.eup %10283  ;;  %v1419_v15 = vmul.f32 %v10282_v10, %v11294_v17  ;;  %v9381_v62 = vpack.c.bf16 %v9903_v63, %v9902_v41  ;;  %v9907_v17 = vunpack.i.l.bf16 %v9906_v39  ;;  %v1581_v45 = vpop.permute.xlu0 %1580 }
 0x5e5   : > { %v1420_v38 = vmul.f32 %v10284_v42, %v11283_v59  ;;  %v10286_v33 = vpop.eup %10285 }
 0x5e6   : > { %v9387_v3 = vpack.c.bf16 %v9908_v4, %v9907_v17  ;;  %v1422_v1 = vmul.f32 %v10286_v33, %v11302_v24 }
 0x5e7   : > { %8588 = vmatmul.mubr.msk.f32.vlgmr.msra.gmra.mrb[24].mxu1 %vm924_vm5, %v1416_v58 }
 0x5e8   : > { %9374 = vmatpush3.bf16.xpose.msk.msra.mxu1 %vm11042_vm4, %v9369_v43  ;;  %8590 = vmatprep.mubr.msk.f32.mxu1 %vm924_vm5, %v1417_v26  ;;  %v1585_v32 = vpop.permute.xlu0 %1584 }
 0x5e9   : > { %9377 = vmatprep.subr.msk.bf16.mxu1 %vm11042_vm4, %v9375_v50 }
 0x5eb   : > { %8591 = vmatmul.mubr.msk.f32.gmra.mrb[26].mxu1 %vm924_vm5, %v1418_v18 }
 0x5ec   : > { %8593 = vmatprep.mubr.msk.f32.mxu1 %vm924_vm5, %v1419_v15 }
 0x5ef   : > { %8594 = vmatmul.mubr.msk.f32.gmra.mrb[28].mxu1 %vm924_vm5, %v1420_v38 }
 0x5f0   : > { %9380 = vmatpush3.bf16.xpose.msk.msra.mxu1 %vm11042_vm4, %v9375_v50 }
 0x5f1   : > { %9383 = vmatprep.subr.msk.bf16.mxu1 %vm11042_vm4, %v9381_v62 }
 0x5f8   : > { %9386 = vmatpush3.bf16.xpose.msk.msra.mxu1 %vm11042_vm4, %v9381_v62 }
 0x5f9   : > { %9389 = vmatprep.subr.msk.bf16.mxu1 %vm11042_vm4, %v9387_v3 }
 0x600   : > { %9392 = vmatpush3.bf16.xpose.msk.msra.mxu1 %vm11042_vm4, %v9387_v3 }
 0x60e   : > { %v1403_v59 = vpop.xlane.xlu1 %1402 }
 0x60f   : > { %10287 = vrcp.f32 %v1403_v59 }
 0x612   : > { %v1579_v25 = vpop.permute.xlu1 %1578 }
 0x616   : > { %v1583_v2 = vpop.permute.xlu1 %1582 }
 0x619   : > { %v10288_v16 = vpop.eup %10287 }
 0x61a   : > { %v1421_v43 = vmul.f32 %v10288_v16, %v11325_v8  ;;  %v1587_v52 = vpop.permute.xlu1 %1586  ;;  %v1589_v8 = vpop.permute.xlu0 %1588 }
 0x61c   : > { %8596 = vmatprep.mubr.msk.f32.mxu1 %vm924_vm5, %v1421_v43 }
 0x61d   : > { %8597 = vmatmul.mubr.msk.f32.gmra.mrb[30].mxu1 %vm924_vm5, %v1422_v1 }
 0x61e   : > { %8615 = vmatprep.mubr.msk.f32.mxu1 %vm786_vm3, %v1577_v9  ;;  %v1591_v24 = vpop.permute.xlu1 %1590 }
 0x621   : > { %8616 = vmatmul.mubr.msk.f32.vlgmr.msra.gmra.mrb[32].mxu1 %vm786_vm3, %v1579_v25 }
 0x622   : > { %8618 = vmatprep.mubr.msk.f32.mxu1 %vm786_vm3, %v1581_v45 }
 0x625   : > { %8619 = vmatmul.mubr.msk.f32.gmra.mrb[34].mxu1 %vm786_vm3, %v1583_v2 }
 0x626   : > { %8621 = vmatprep.mubr.msk.f32.mxu1 %vm786_vm3, %v1585_v32 }
 0x629   : > { %8622 = vmatmul.mubr.msk.f32.gmra.mrb[36].mxu1 %vm786_vm3, %v1587_v52 }
 0x62a   : > { %8624 = vmatprep.mubr.msk.f32.mxu1 %vm786_vm3, %v1589_v8 }
 0x62d   : > { %8625 = vmatmul.mubr.msk.f32.gmra.mrb[38].mxu1 %vm786_vm3, %v1591_v24 }
 0x69e   : > { %v11394_v22 = vpop.f32.mrb[16].mxu1 }
 0x69f   : > { %v11396_v6 = vpop.f32.mrb[17].mxu1 }
 0x6aa   : > { %v11398_v61 = vpop.f32.mrb[18].mxu1 }
 0x6ab   : > { %13898 = vst [vmem:[#allocation11_spill] sm:$0xff] %v11398_v61  ;;  %v11400_v29 = vpop.f32.mrb[19].mxu1 }
 0x6ac   : > { %13899 = vst [vmem:[#allocation12_spill] sm:$0xff] %v11400_v29 }
 0x6ae   : > { %v11402_v20 = vpop.f32.mrb[20].mxu1 }
 0x6af   : > { %13900 = vst [vmem:[#allocation13_spill] sm:$0xff] %v11402_v20  ;;  %v11404_v60 = vpop.f32.mrb[21].mxu1 }
 0x6b0   : > { %13901 = vst [vmem:[#allocation14_spill] sm:$0xff] %v11404_v60 }
 0x6b6   : > { %v11406_v21 = vpop.f32.mrb[22].mxu1 }
 0x6b7   : > { %13902 = vst [vmem:[#allocation15_spill] sm:$0xff] %v11406_v21  ;;  %v11408_v58 = vpop.f32.mrb[23].mxu1 }
 0x6b8   : > { %13903 = vst [vmem:[#allocation16_spill] sm:$0xff] %v11408_v58 }
 0x6ba   : > { %v11410_v37 = vpop.f32.mrb[24].mxu1 }
 0x6bb   : > { %v11412_v26 = vpop.f32.mrb[25].mxu1 }
 0x6be   : > { %v11414_v10 = vpop.f32.mrb[26].mxu1 }
 0x6bf   : > { %v11416_v50 = vpop.f32.mrb[27].mxu1 }
 0x6c2   : > { %v11418_v19 = vpop.f32.mrb[28].mxu1 }
 0x6c3   : > { %v11420_v18 = vpop.f32.mrb[29].mxu1 }
 0x6f0   : > { %v11422_v42 = vpop.f32.mrb[30].mxu1 }
 0x6f1   : > { %v11424_v15 = vpop.f32.mrb[31].mxu1 }
 0x6f4   : > { %v8617_v63 = vpop.f32.mrb[32].mxu1 }
 0x6f5   : > { %v1712_v41 = vadd.f32 %v8617_v63, %v11103_v12  ;;  %v1706_v38 = vpop.f32.mrb[33].mxu1 }
 0x6f6   : > { %v1707_v62 = vadd.f32 %v1706_v38, %v11108_v13 }
 0x6f7   : > { %v1748_v39 = vsel %vm924_vm5, %v1712_v41, -inf }
 0x6f8   : > { %1749 = vmax.xlane.f32.xlu1 %v1748_v39  ;;  %v8620_v4 = vpop.f32.mrb[34].mxu1  ;;  %v1745_v17 = vsel %vm924_vm5, %v1707_v62, -inf }
 0x6f9   : > { %v1722_v3 = vadd.f32 %v8620_v4, %v11123_v51  ;;  %v1716_v59 = vpop.f32.mrb[35].mxu1  ;;  %1746 = vmax.xlane.f32.xlu0 %v1745_v17 }
 0x6fa   : > { %v1717_v33 = vadd.f32 %v1716_v59, %v11146_v40 }
 0x6fb   : > { %v1754_v9 = vsel %vm924_vm5, %v1722_v3, -inf }
 0x6fc   : > { %v8623_v16 = vpop.f32.mrb[36].mxu1  ;;  %v1751_v45 = vsel %vm924_vm5, %v1717_v33, -inf }
 0x6fd   : > { %v1732_v12 = vadd.f32 %v8623_v16, %v11139_v36  ;;  %v1726_v25 = vpop.f32.mrb[37].mxu1  ;;  %1755 = vmax.xlane.f32.xlu0 %v1754_v9 }
 0x6fe   : > { %v1727_v43 = vadd.f32 %v1726_v25, %v11179_v11 }
 0x6ff   : > { %v1760_v13 = vsel %vm924_vm5, %v1732_v12, -inf }
 0x700   : > { %1761 = vmax.xlane.f32.xlu1 %v1760_v13  ;;  %v8626_v1 = vpop.f32.mrb[38].mxu1  ;;  %v1757_v32 = vsel %vm924_vm5, %v1727_v43, -inf }
 0x701   : > { %v11438_v51 = vadd.f32 %v8626_v1, %v11169_v5  ;;  %v1736_v2 = vpop.f32.mrb[39].mxu1  ;;  %1752 = vmax.xlane.f32.xlu0 %v1751_v45 }
 0x702   : > { %v11443_v36 = vadd.f32 %v1736_v2, %v11204_v23 }
 0x703   : > { %v1766_v40 = vsel %vm924_vm5, %v11438_v51, -inf }
 0x704   : > { %1767 = vmax.xlane.f32.xlu1 %v1766_v40  ;;  %v1763_v11 = vsel %vm924_vm5, %v11443_v36, -inf }
 0x705   : > { %1758 = vmax.xlane.f32.xlu0 %v1757_v32 }
 0x709   : > { %1764 = vmax.xlane.f32.xlu0 %v1763_v11 }
 0x715   : > { %9915 = vrot.lane.b32.xlu1 %v10986_v48, %s10714_s26 }
 0x719   : > { %9920 = vrot.lane.b32.xlu1 %v10996_v54, %s10714_s26 }
 0x71d   : > { %9925 = vrot.lane.b32.xlu1 %v11006_v57, %s10714_s26 }
 0x71f   : > { %9910 = vrot.lane.b32.xlu0 %v10976_v14, %s10714_s26 }
 0x721   : > { %9935 = vrot.lane.b32.xlu1 %v10986_v48, %s13872_s27 }
 0x723   : > { %9930 = vrot.lane.b32.xlu0 %v10976_v14, %s13872_s27 }
 0x785   : > { %v1750_v5 = vpop.xlane.xlu1 %1749 }
 0x786   : > { %v1770_v23 = vsub.f32 %v1712_v41, %v1750_v5  ;;  %v1747_v52 = vpop.xlane.xlu0 %1746 }
 0x787   : > { %v1769_v8 = vsub.f32 %v1707_v62, %v1747_v52 }
 0x788   : > { %v1779_v24 = vmul.f32 1.442695, %v1770_v23 }
 0x789   : > { %v1777_v63 = vmul.f32 1.442695, %v1769_v8 }
 0x78a   : > { %10289 = vpow2.f32 %v1779_v24  ;;  %v1756_v38 = vpop.xlane.xlu0 %1755 }
 0x78b   : > { %10291 = vpow2.f32 %v1777_v63  ;;  %v1772_v39 = vsub.f32 %v1722_v3, %v1756_v38 }
 0x78d   : > { %v1783_v4 = vmul.f32 1.442695, %v1772_v39  ;;  %v1762_v17 = vpop.xlane.xlu1 %1761 }
 0x78e   : > { %v1774_v59 = vsub.f32 %v1732_v12, %v1762_v17  ;;  %v1753_v9 = vpop.xlane.xlu0 %1752 }
 0x78f   : > { %10293 = vpow2.f32 %v1783_v4  ;;  %v1771_v16 = vsub.f32 %v1717_v33, %v1753_v9 }
 0x790   : > { %v1787_v25 = vmul.f32 1.442695, %v1774_v59 }
 0x791   : > { %v1781_v13 = vmul.f32 1.442695, %v1771_v16  ;;  %v1768_v1 = vpop.xlane.xlu1 %1767 }
 0x792   : > { %v1759_v45 = vpop.xlane.xlu0 %1758 }
 0x793   : > { %10295 = vpow2.f32 %v1781_v13  ;;  %v1773_v41 = vsub.f32 %v1727_v43, %v1759_v45 }
 0x794   : > { %v11460_v2 = vpop.eup %10289  ;;  %10297 = vpow2.f32 %v1787_v25 }
 0x795   : > { %v11462_v62 = vpop.eup %10291  ;;  %v1785_v40 = vmul.f32 1.442695, %v1773_v41  ;;  %v9916_v32 = vpop.permute.xlu1 %9915  ;;  %v1796_v3 = vsel %vm924_vm5, %v11460_v2, 0.0 }
 0x796   : > { %1797 = vadd.xlane.f32.xlu1 %v1796_v3  ;;  %v1765_v12 = vpop.xlane.xlu0 %1764  ;;  %v1793_v33 = vsel %vm924_vm5, %v11462_v62, 0.0  ;;  %v9918_v52 = vunpack.i.h.bf16 %v9916_v32  ;;  %v9917_v8 = vunpack.i.l.bf16 %v9916_v32 }
 0x797   : > { %1794 = vadd.xlane.f32.xlu0 %v1793_v33  ;;  %10299 = vpow2.f32 %v1785_v40 }
 0x798   : > { %v9397_v16 = vpack.c.bf16 %v9918_v52, %v9917_v8  ;;  %v1776_v8 = vsub.f32 %v11438_v51, %v1768_v1 }
 0x799   : > { %v11468_v11 = vpop.eup %10293  ;;  %v9921_v43 = vpop.permute.xlu1 %9920 }
 0x79a   : > { %v9911_v5 = vpop.permute.xlu0 %9910  ;;  %v1802_v23 = vsel %vm924_vm5, %v11468_v11, 0.0  ;;  %v9923_v59 = vunpack.i.h.bf16 %v9921_v43  ;;  %v9922_v9 = vunpack.i.l.bf16 %v9921_v43 }
 0x79b   : > { %v9913_v24 = vunpack.i.h.bf16 %v9911_v5  ;;  %v9912_v63 = vunpack.i.l.bf16 %v9911_v5  ;;  %1803 = vadd.xlane.f32.xlu1 %v1802_v23 }
 0x79c   : > { %v9401_v32 = vpack.c.bf16 %v9923_v59, %v9922_v9 }
 0x79d   : > { %v11472_v38 = vpop.eup %10295  ;;  %v9393_v39 = vpack.c.bf16 %v9913_v24, %v9912_v63  ;;  %v9926_v25 = vpop.permute.xlu1 %9925  ;;  %v1791_v24 = vmul.f32 1.442695, %v1776_v8  ;;  %v1775_v63 = vsub.f32 %v11443_v36, %v1765_v12 }
 0x79e   : > { %v1799_v4 = vsel %vm924_vm5, %v11472_v38, 0.0  ;;  %v11476_v17 = vpop.eup %10297  ;;  %v9928_v41 = vunpack.i.h.bf16 %v9926_v25  ;;  %v9927_v40 = vunpack.i.l.bf16 %v9926_v25  ;;  %v9931_v3 = vpop.permute.xlu0 %9930 }
 0x79f   : > { %1800 = vadd.xlane.f32.xlu0 %v1799_v4  ;;  %9394 = vmatprep.subr.bf16.mxu0 %v9393_v39  ;;  %v1808_v13 = vsel %vm924_vm5, %v11476_v17, 0.0  ;;  %v9933_v43 = vunpack.i.h.bf16 %v9931_v3  ;;  %v9932_v5 = vunpack.i.l.bf16 %v9931_v3  ;;  %10301 = vpow2.f32 %v1791_v24 }
 0x7a0   : > { %9396 = vmatpush3.bf16.msra.mxu0 %v9393_v39  ;;  %v9405_v23 = vpack.c.bf16 %v9928_v41, %v9927_v40  ;;  %v1789_v39 = vmul.f32 1.442695, %v1775_v63 }
 0x7a1   : > { %9398 = vmatprep.subr.bf16.mxu0 %v9397_v16  ;;  %v11480_v45 = vpop.eup %10299  ;;  %v9409_v52 = vpack.c.bf16 %v9933_v43, %v9932_v5  ;;  %v9936_v4 = vpop.permute.xlu1 %9935 }
 0x7a2   : > { %v1805_v33 = vsel %vm924_vm5, %v11480_v45, 0.0  ;;  %10303 = vpow2.f32 %v1789_v39  ;;  %v9938_v40 = vunpack.i.h.bf16 %v9936_v4 }
 0x7a3   : > { %1809 = vadd.xlane.f32.xlu0 %v1808_v13 }
 0x7a4   : > { %9400 = vmatpush3.bf16.msra.mxu0 %v9397_v16 }
 0x7a5   : > { %9402 = vmatprep.subr.bf16.mxu0 %v9401_v32 }
 0x7a7   : > { %1806 = vadd.xlane.f32.xlu0 %v1805_v33 }
 0x7a8   : > { %9404 = vmatpush3.bf16.msra.mxu0 %v9401_v32  ;;  %v9937_v32 = vunpack.i.l.bf16 %v9936_v4 }
 0x7a9   : > { %9406 = vmatprep.subr.bf16.mxu0 %v9405_v23  ;;  %v11498_v51 = vpop.eup %10301 }
 0x7aa   : > { %v1814_v36 = vsel %vm924_vm5, %v11498_v51, 0.0  ;;  %v9415_v5 = vpack.c.bf16 %v9938_v40, %v9937_v32 }
 0x7ac   : > { %9945 = vrot.lane.b32.xlu1 %v11006_v57, %s13872_s27  ;;  %9408 = vmatpush3.bf16.msra.mxu0 %v9405_v23  ;;  %v11504_v1 = vpop.eup %10303 }
 0x7ad   : > { %9411 = vmatprep.subr.msk.bf16.mxu0 %vm11042_vm4, %v9409_v52  ;;  %v1811_v12 = vsel %vm924_vm5, %v11504_v1, 0.0 }
 0x7bd   : > { %9940 = vrot.lane.b32.xlu0 %v10996_v54, %s13872_s27 }
 0x7c1   : > { %1986 = vrot.lane.b32.xlu0 %v10970_v44, %s13870_s28 }
 0x7c5   : > { %1990 = vrot.lane.b32.xlu0 %v10982_v47, %s13870_s28 }
 0x7c9   : > { %1994 = vrot.lane.b32.xlu0 %v10992_v53, %s13870_s28 }
 0x7cd   : > { %1998 = vrot.lane.b32.xlu0 %v11002_v56, %s13870_s28 }
 0x7d0   : > { %1815 = vadd.xlane.f32.xlu1 %v1814_v36 }
 0x7d4   : > { %1812 = vadd.xlane.f32.xlu1 %v1811_v12 }
 0x7e5   : > { %1988 = vrot.lane.b32.xlu1 %v10968_v7, %s13870_s28 }
 0x7e9   : > { %1992 = vrot.lane.b32.xlu1 %v10980_v46, %s13870_s28 }
 0x7ed   : > { %1996 = vrot.lane.b32.xlu1 %v10990_v49, %s13870_s28 }
 0x7f1   : > { %2000 = vrot.lane.b32.xlu1 %v11000_v55, %s13870_s28  ;;  %s13965_s28 = sshll.u32 %s13967_s10, 6 }
 0x7f2   : > { %s332_s21 = scalar_lea.vmem %s13844_s9, %s13965_s28 }
 0x823   : > { %v1798_v59 = vpop.xlane.xlu1 %1797 }
 0x824   : > { %10305 = vrcp.f32 %v1798_v59  ;;  %v1795_v9 = vpop.xlane.xlu0 %1794 }
 0x825   : > { %10307 = vrcp.f32 %v1795_v9 }
 0x828   : > { %v1804_v16 = vpop.xlane.xlu1 %1803 }
 0x829   : > { %10309 = vrcp.f32 %v1804_v16 }
 0x82c   : > { %v1801_v25 = vpop.xlane.xlu0 %1800 }
 0x82d   : > { %10311 = vrcp.f32 %v1801_v25 }
 0x82e   : > { %v10306_v13 = vpop.eup %10305 }
 0x82f   : > { %v10308_v41 = vpop.eup %10307  ;;  %v1826_v43 = vmul.f32 %v10306_v13, %v11460_v2 }
 0x830   : > { %v1810_v3 = vpop.xlane.xlu0 %1809  ;;  %v1825_v33 = vmul.f32 %v10308_v41, %v11462_v62 }
 0x831   : > { %10313 = vrcp.f32 %v1810_v3 }
 0x832   : > { %8643 = vmatprep.mubr.msk.f32.mxu0 %vm924_vm5, %v1825_v33 }
 0x833   : > { %8644 = vmatmul.mubr.msk.f32.vlgmr.msra.gmra.mrb[16].mxu0 %vm924_vm5, %v1826_v43  ;;  %v10310_v8 = vpop.eup %10309 }
 0x834   : > { %9414 = vmatpush3.bf16.xpose.msk.msra.mxu0 %vm11042_vm4, %v9409_v52  ;;  %v1807_v23 = vpop.xlane.xlu0 %1806  ;;  %v1828_v36 = vmul.f32 %v10310_v8, %v11468_v11  ;;  %v9946_v52 = vpop.permute.xlu1 %9945 }
 0x835   : > { %10315 = vrcp.f32 %v1807_v23  ;;  %9417 = vmatprep.subr.msk.bf16.mxu0 %vm11042_vm4, %v9415_v5  ;;  %v9948_v9 = vunpack.i.h.bf16 %v9946_v52 }
 0x837   : > { %v10312_v24 = vpop.eup %10311 }
 0x838   : > { %v9941_v63 = vpop.permute.xlu0 %9940  ;;  %v1827_v62 = vmul.f32 %v10312_v24, %v11472_v38  ;;  %v9947_v38 = vunpack.i.l.bf16 %v9946_v52 }
 0x839   : > { %v9943_v2 = vunpack.i.h.bf16 %v9941_v63  ;;  %v9942_v39 = vunpack.i.l.bf16 %v9941_v63 }
 0x83a   : > { %8646 = vmatprep.mubr.msk.f32.mxu0 %vm924_vm5, %v1827_v62  ;;  %v9427_v25 = vpack.c.bf16 %v9948_v9, %v9947_v38 }
 0x83b   : > { %v9421_v12 = vpack.c.bf16 %v9943_v2, %v9942_v39  ;;  %8647 = vmatmul.mubr.msk.f32.gmra.mrb[18].mxu0 %vm924_vm5, %v1828_v36  ;;  %v10314_v4 = vpop.eup %10313 }
 0x83c   : > { %9420 = vmatpush3.bf16.xpose.msk.msra.mxu0 %vm11042_vm4, %v9415_v5  ;;  %v1830_v11 = vmul.f32 %v10314_v4, %v11476_v17 }
 0x83d   : > { %9423 = vmatprep.subr.msk.bf16.mxu0 %vm11042_vm4, %v9421_v12 }
 0x83f   : > { %v10316_v59 = vpop.eup %10315 }
 0x840   : > { %v1829_v16 = vmul.f32 %v10316_v59, %v11480_v45  ;;  %v1987_v45 = vpop.permute.xlu0 %1986  ;;  %v11573_v59 = vld [vmem:[%s13836_s1 + $0x8] sm:$0xff] }
 0x842   : > { %8649 = vmatprep.mubr.msk.f32.mxu0 %vm924_vm5, %v1829_v16  ;;  %v11579_v16 = vld [vmem:[%s13836_s1] sm:$0xff] }
 0x843   : > { %8650 = vmatmul.mubr.msk.f32.gmra.mrb[20].mxu0 %vm924_vm5, %v1830_v11 }
 0x844   : > { %9426 = vmatpush3.bf16.xpose.msk.msra.mxu0 %vm11042_vm4, %v9421_v12  ;;  %v1991_v43 = vpop.permute.xlu0 %1990 }
 0x845   : > { %9429 = vmatprep.subr.msk.bf16.mxu0 %vm11042_vm4, %v9427_v25 }
 0x848   : > { %v1995_v23 = vpop.permute.xlu0 %1994 }
 0x84c   : > { %9432 = vmatpush3.bf16.xpose.msk.msra.mxu0 %vm11042_vm4, %v9427_v25 }
 0x85d   : > { %v1816_v13 = vpop.xlane.xlu1 %1815 }
 0x85e   : > { %10317 = vrcp.f32 %v1816_v13 }
 0x861   : > { %v1813_v41 = vpop.xlane.xlu1 %1812 }
 0x862   : > { %10319 = vrcp.f32 %v1813_v41 }
 0x865   : > { %v1989_v32 = vpop.permute.xlu1 %1988 }
 0x868   : > { %v10318_v17 = vpop.eup %10317 }
 0x869   : > { %v1832_v33 = vmul.f32 %v10318_v17, %v11498_v51  ;;  %v1993_v5 = vpop.permute.xlu1 %1992 }
 0x86c   : > { %v10320_v40 = vpop.eup %10319 }
 0x86d   : > { %v1831_v3 = vmul.f32 %v10320_v40, %v11504_v1  ;;  %v1997_v8 = vpop.permute.xlu1 %1996  ;;  %v1999_v1 = vpop.permute.xlu0 %1998 }
 0x86f   : > { %8652 = vmatprep.mubr.msk.f32.mxu0 %vm924_vm5, %v1831_v3  ;;  %v11594_v3 = vld [vmem:[%s13836_s1 + $0x10] sm:$0xff] }
 0x870   : > { %8653 = vmatmul.mubr.msk.f32.gmra.mrb[22].mxu0 %vm924_vm5, %v1832_v33 }
 0x871   : > { %8671 = vmatprep.mubr.msk.f32.mxu0 %vm786_vm3, %v1987_v45  ;;  %v2001_v51 = vpop.permute.xlu1 %2000  ;;  %v11587_v45 = vld [vmem:[%s13836_s1 + $0x18] sm:$0xff] }
 0x874   : > { %8672 = vmatmul.mubr.msk.f32.vlgmr.msra.gmra.mrb[24].mxu0 %vm786_vm3, %v1989_v32 }
 0x875   : > { %8674 = vmatprep.mubr.msk.f32.mxu0 %vm786_vm3, %v1991_v43 }
 0x878   : > { %8675 = vmatmul.mubr.msk.f32.gmra.mrb[26].mxu0 %vm786_vm3, %v1993_v5  ;;  %v11600_v5 = vld [vmem:[%s13836_s1 + $0x28] sm:$0xff] }
 0x879   : > { %8677 = vmatprep.mubr.msk.f32.mxu0 %vm786_vm3, %v1995_v23 }
 0x87c   : > { %8678 = vmatmul.mubr.msk.f32.gmra.mrb[28].mxu0 %vm786_vm3, %v1997_v8 }
 0x87d   : > { %8680 = vmatprep.mubr.msk.f32.mxu0 %vm786_vm3, %v1999_v1 }
 0x880   : > { %8681 = vmatmul.mubr.msk.f32.gmra.mrb[30].mxu0 %vm786_vm3, %v2001_v51  ;;  %v11607_v51 = vld [vmem:[%s13836_s1 + $0x20] sm:$0xff] }
 0x906   : > { %v11554_v24 = vpop.f32.mrb[16].mxu0 }
 0x907   : > { %v11556_v63 = vpop.f32.mrb[17].mxu0 }
 0x90e   : > { %v11558_v62 = vpop.f32.mrb[18].mxu0 }
 0x90f   : > { %v11560_v2 = vpop.f32.mrb[19].mxu0 }
 0x916   : > { %v11562_v39 = vpop.f32.mrb[20].mxu0 }
 0x917   : > { %v11564_v36 = vpop.f32.mrb[21].mxu0 }
 0x943   : > { %v11566_v12 = vpop.f32.mrb[22].mxu0 }
 0x944   : > { %v11568_v52 = vpop.f32.mrb[23].mxu0 }
 0x947   : > { %v8673_v4 = vpop.f32.mrb[24].mxu0 }
 0x948   : > { %v2122_v9 = vadd.f32 %v11573_v59, %v8673_v4  ;;  %v2116_v38 = vpop.f32.mrb[25].mxu0 }
 0x949   : > { %v2117_v11 = vadd.f32 %v11579_v16, %v2116_v38 }
 0x94a   : > { %v2158_v25 = vsel %vm924_vm5, %v2122_v9, -inf }
 0x94b   : > { %2159 = vmax.xlane.f32.xlu1 %v2158_v25  ;;  %v8676_v13 = vpop.f32.mrb[26].mxu0  ;;  %v2155_v41 = vsel %vm924_vm5, %v2117_v11, -inf }
 0x94c   : > { %v2132_v17 = vadd.f32 %v11587_v45, %v8676_v13  ;;  %v2126_v40 = vpop.f32.mrb[27].mxu0  ;;  %2156 = vmax.xlane.f32.xlu0 %v2155_v41  ;;  %v11614_v13 = vld [vmem:[%s13836_s1 + $0x38] sm:$0xff] }
 0x94d   : > { %v2127_v33 = vadd.f32 %v11594_v3, %v2126_v40 }
 0x94e   : > { %v2164_v32 = vsel %vm924_vm5, %v2132_v17, -inf }
 0x94f   : > { %v8679_v43 = vpop.f32.mrb[28].mxu0  ;;  %v2161_v25 = vsel %vm924_vm5, %v2127_v33, -inf }
 0x950   : > { %v2142_v23 = vadd.f32 %v11600_v5, %v8679_v43  ;;  %v2136_v8 = vpop.f32.mrb[29].mxu0  ;;  %2165 = vmax.xlane.f32.xlu0 %v2164_v32  ;;  %v11624_v43 = vld [vmem:[%s13836_s1 + $0x30] sm:$0xff] }
 0x951   : > { %v2137_v4 = vadd.f32 %v11607_v51, %v2136_v8 }
 0x952   : > { %v2170_v1 = vsel %vm924_vm5, %v2142_v23, -inf }
 0x953   : > { %2171 = vmax.xlane.f32.xlu1 %v2170_v1  ;;  %v8682_v38 = vpop.f32.mrb[30].mxu0  ;;  %v2167_v1 = vsel %vm924_vm5, %v2137_v4, -inf }
 0x954   : > { %v11617_v41 = vadd.f32 %v11614_v13, %v8682_v38  ;;  %v2146_v40 = vpop.f32.mrb[31].mxu0  ;;  %2162 = vmax.xlane.f32.xlu0 %v2161_v25 }
 0x955   : > { %v11627_v8 = vadd.f32 %v11624_v43, %v2146_v40 }
 0x956   : > { %v2176_v32 = vsel %vm924_vm5, %v11617_v41, -inf }
 0x957   : > { %2177 = vmax.xlane.f32.xlu1 %v2176_v32  ;;  %v2173_v38 = vsel %vm924_vm5, %v11627_v8, -inf }
 0x958   : > { %2168 = vmax.xlane.f32.xlu0 %v2167_v1 }
 0x95c   : > { %2174 = vmax.xlane.f32.xlu0 %v2173_v38 }
 0x968   : > { %9955 = vrot.lane.b32.xlu1 %v10986_v48, %s10717_s29 }
 0x96c   : > { %9960 = vrot.lane.b32.xlu1 %v10996_v54, %s10717_s29 }
 0x970   : > { %9965 = vrot.lane.b32.xlu1 %v11006_v57, %s10717_s29 }
 0x972   : > { %9950 = vrot.lane.b32.xlu0 %v10976_v14, %s10717_s29 }
 0x974   : > { %9975 = vrot.lane.b32.xlu1 %v10986_v48, %s13868_s11 }
 0x976   : > { %9970 = vrot.lane.b32.xlu0 %v10976_v14, %s13868_s11 }
 0x9d8   : > { %v2160_v25 = vpop.xlane.xlu1 %2159 }
 0x9d9   : > { %v2180_v40 = vsub.f32 %v2122_v9, %v2160_v25  ;;  %v2157_v32 = vpop.xlane.xlu0 %2156 }
 0x9da   : > { %v2179_v1 = vsub.f32 %v2117_v11, %v2157_v32 }
 0x9db   : > { %v2189_v38 = vmul.f32 1.442695, %v2180_v40 }
 0x9dc   : > { %v2187_v35 = vmul.f32 1.442695, %v2179_v1 }
 0x9dd   : > { %10321 = vpow2.f32 %v2189_v38  ;;  %v2166_v34 = vpop.xlane.xlu0 %2165 }
 0x9de   : > { %10323 = vpow2.f32 %v2187_v35  ;;  %v2182_v31 = vsub.f32 %v2132_v17, %v2166_v34 }
 0x9e0   : > { %v2193_v30 = vmul.f32 1.442695, %v2182_v31  ;;  %v2172_v28 = vpop.xlane.xlu1 %2171 }
 0x9e1   : > { %v2184_v27 = vsub.f32 %v2142_v23, %v2172_v28  ;;  %v2163_v21 = vpop.xlane.xlu0 %2162 }
 0x9e2   : > { %10325 = vpow2.f32 %v2193_v30  ;;  %v2181_v58 = vsub.f32 %v2127_v33, %v2163_v21 }
 0x9e3   : > { %v2197_v20 = vmul.f32 1.442695, %v2184_v27 }
 0x9e4   : > { %v2191_v60 = vmul.f32 1.442695, %v2181_v58  ;;  %v2178_v61 = vpop.xlane.xlu1 %2177 }
 0x9e5   : > { %v2169_v29 = vpop.xlane.xlu0 %2168 }
 0x9e6   : > { %10327 = vpow2.f32 %v2191_v60  ;;  %v2183_v9 = vsub.f32 %v2137_v4, %v2169_v29 }
 0x9e7   : > { %v11644_v25 = vpop.eup %10321  ;;  %10329 = vpow2.f32 %v2197_v20 }
 0x9e8   : > { %v11646_v11 = vpop.eup %10323  ;;  %v2195_v40 = vmul.f32 1.442695, %v2183_v9  ;;  %v9956_v35 = vpop.permute.xlu1 %9955  ;;  %v2206_v31 = vsel %vm924_vm5, %v11644_v25, 0.0 }
 0x9e9   : > { %2207 = vadd.xlane.f32.xlu1 %v2206_v31  ;;  %v2175_v28 = vpop.xlane.xlu0 %2174  ;;  %v2203_v27 = vsel %vm924_vm5, %v11646_v11, 0.0  ;;  %v9958_v20 = vunpack.i.h.bf16 %v9956_v35  ;;  %v9957_v21 = vunpack.i.l.bf16 %v9956_v35 }
 0x9ea   : > { %2204 = vadd.xlane.f32.xlu0 %v2203_v27  ;;  %10331 = vpow2.f32 %v2195_v40 }
 0x9eb   : > { %v9437_v9 = vpack.c.bf16 %v9958_v20, %v9957_v21 }
 0x9ec   : > { %v11652_v30 = vpop.eup %10325  ;;  %v9961_v34 = vpop.permute.xlu1 %9960 }
 0x9ed   : > { %v9951_v29 = vpop.permute.xlu0 %9950  ;;  %v2212_v60 = vsel %vm924_vm5, %v11652_v30, 0.0  ;;  %v9963_v1 = vunpack.i.h.bf16 %v9961_v34  ;;  %v9962_v38 = vunpack.i.l.bf16 %v9961_v34 }
 0x9ee   : > { %v9953_v58 = vunpack.i.h.bf16 %v9951_v29  ;;  %v9952_v17 = vunpack.i.l.bf16 %v9951_v29  ;;  %2213 = vadd.xlane.f32.xlu1 %v2212_v60 }
 0x9ef   : > { %v9441_v60 = vpack.c.bf16 %v9963_v1, %v9962_v38  ;;  %v2185_v38 = vsub.f32 %v11627_v8, %v2175_v28 }
 0x9f0   : > { %v11656_v33 = vpop.eup %10327  ;;  %v9433_v23 = vpack.c.bf16 %v9953_v58, %v9952_v17  ;;  %v9966_v40 = vpop.permute.xlu1 %9965 }
 0x9f1   : > { %v2209_v4 = vsel %vm924_vm5, %v11656_v33, 0.0  ;;  %v11660_v32 = vpop.eup %10329  ;;  %v9968_v27 = vunpack.i.h.bf16 %v9966_v40  ;;  %v9967_v29 = vunpack.i.l.bf16 %v9966_v40  ;;  %v9971_v58 = vpop.permute.xlu0 %9970 }
 0x9f2   : > { %2210 = vadd.xlane.f32.xlu0 %v2209_v4  ;;  %9434 = vmatprep.subr.bf16.mxu1 %v9433_v23  ;;  %v2218_v35 = vsel %vm924_vm5, %v11660_v32, 0.0  ;;  %v9973_v17 = vunpack.i.h.bf16 %v9971_v58  ;;  %v9972_v20 = vunpack.i.l.bf16 %v9971_v58  ;;  %v2186_v4 = vsub.f32 %v11617_v41, %v2178_v61 }
 0x9f3   : > { %9436 = vmatpush3.bf16.msra.mxu1 %v9433_v23  ;;  %v9445_v21 = vpack.c.bf16 %v9968_v27, %v9967_v29 }
 0x9f4   : > { %9438 = vmatprep.subr.bf16.mxu1 %v9437_v9  ;;  %v11664_v31 = vpop.eup %10331  ;;  %v9449_v23 = vpack.c.bf16 %v9973_v17, %v9972_v20  ;;  %v2201_v1 = vmul.f32 1.442695, %v2186_v4 }
 0x9f5   : > { %v2215_v34 = vsel %vm924_vm5, %v11664_v31, 0.0 }
 0x9f6   : > { %2219 = vadd.xlane.f32.xlu0 %v2218_v35  ;;  %10333 = vpow2.f32 %v2201_v1 }
 0x9f7   : > { %9440 = vmatpush3.bf16.msra.mxu1 %v9437_v9  ;;  %v2199_v9 = vmul.f32 1.442695, %v2185_v38 }
 0x9f8   : > { %9442 = vmatprep.subr.bf16.mxu1 %v9441_v60 }
 0x9f9   : > { %10335 = vpow2.f32 %v2199_v9 }
 0x9fa   : > { %2216 = vadd.xlane.f32.xlu0 %v2215_v34 }
 0x9fb   : > { %9444 = vmatpush3.bf16.msra.mxu1 %v9441_v60 }
 0x9fc   : > { %9446 = vmatprep.subr.bf16.mxu1 %v9445_v21 }
 0x9ff   : > { %9985 = vrot.lane.b32.xlu1 %v11006_v57, %s13868_s11  ;;  %9448 = vmatpush3.bf16.msra.mxu1 %v9445_v21 }
 0xa00   : > { %9451 = vmatprep.subr.msk.bf16.mxu1 %vm11042_vm4, %v9449_v23  ;;  %v11682_v61 = vpop.eup %10333 }
 0xa01   : > { %v2224_v41 = vsel %vm924_vm5, %v11682_v61, 0.0 }
 0xa03   : > { %v11688_v8 = vpop.eup %10335 }
 0xa10   : > { %9980 = vrot.lane.b32.xlu0 %v10996_v54, %s13868_s11 }
 0xa14   : > { %2396 = vrot.lane.b32.xlu0 %v10970_v44, %s13866_s12  ;;  %v2221_v44 = vsel %vm924_vm5, %v11688_v8, 0.0 }
 0xa18   : > { %2400 = vrot.lane.b32.xlu0 %v10982_v47, %s13866_s12  ;;  %v9976_v47 = vpop.permute.xlu1 %9975 }
 0xa19   : > { %v9978_v27 = vunpack.i.h.bf16 %v9976_v47  ;;  %v9977_v29 = vunpack.i.l.bf16 %v9976_v47 }
 0xa1c   : > { %2404 = vrot.lane.b32.xlu0 %v10992_v53, %s13866_s12 }
 0xa20   : > { %2408 = vrot.lane.b32.xlu0 %v11002_v56, %s13866_s12 }
 0xa23   : > { %2225 = vadd.xlane.f32.xlu1 %v2224_v41 }
 0xa27   : > { %2222 = vadd.xlane.f32.xlu1 %v2221_v44 }
 0xa38   : > { %2398 = vrot.lane.b32.xlu1 %v10968_v7, %s13866_s12 }
 0xa3c   : > { %2402 = vrot.lane.b32.xlu1 %v10980_v46, %s13866_s12 }
 0xa40   : > { %2406 = vrot.lane.b32.xlu1 %v10990_v49, %s13866_s12 }
 0xa44   : > { %2410 = vrot.lane.b32.xlu1 %v11000_v55, %s13866_s12  ;;  %v9455_v55 = vpack.c.bf16 %v9978_v27, %v9977_v29 }
 0xa76   : > { %v2208_v53 = vpop.xlane.xlu1 %2207 }
 0xa77   : > { %10337 = vrcp.f32 %v2208_v53  ;;  %v2205_v56 = vpop.xlane.xlu0 %2204 }
 0xa78   : > { %10339 = vrcp.f32 %v2205_v56 }
 0xa7b   : > { %v2214_v28 = vpop.xlane.xlu1 %2213 }
 0xa7c   : > { %10341 = vrcp.f32 %v2214_v28 }
 0xa7f   : > { %v2211_v40 = vpop.xlane.xlu0 %2210 }
 0xa80   : > { %10343 = vrcp.f32 %v2211_v40 }
 0xa81   : > { %v10338_v35 = vpop.eup %10337 }
 0xa82   : > { %v10340_v7 = vpop.eup %10339  ;;  %v2236_v49 = vmul.f32 %v10338_v35, %v11644_v25 }
 0xa83   : > { %v2220_v46 = vpop.xlane.xlu0 %2219  ;;  %v2235_v60 = vmul.f32 %v10340_v7, %v11646_v11 }
 0xa84   : > { %10345 = vrcp.f32 %v2220_v46 }
 0xa85   : > { %8699 = vmatprep.mubr.msk.f32.mxu1 %vm924_vm5, %v2235_v60 }
 0xa86   : > { %8700 = vmatmul.mubr.msk.f32.vlgmr.msra.gmra.mrb[40].mxu1 %vm924_vm5, %v2236_v49  ;;  %v10342_v34 = vpop.eup %10341 }
 0xa87   : > { %9454 = vmatpush3.bf16.xpose.msk.msra.mxu1 %vm11042_vm4, %v9449_v23  ;;  %v2217_v58 = vpop.xlane.xlu0 %2216  ;;  %v2238_v4 = vmul.f32 %v10342_v34, %v11652_v30  ;;  %v9986_v23 = vpop.permute.xlu1 %9985 }
 0xa88   : > { %10347 = vrcp.f32 %v2217_v58  ;;  %9457 = vmatprep.subr.msk.bf16.mxu1 %vm11042_vm4, %v9455_v55  ;;  %v9988_v41 = vunpack.i.h.bf16 %v9986_v23 }
 0xa8a   : > { %v10344_v17 = vpop.eup %10343 }
 0xa8b   : > { %v9981_v20 = vpop.permute.xlu0 %9980  ;;  %v2237_v11 = vmul.f32 %v10344_v17, %v11656_v33  ;;  %v9987_v33 = vunpack.i.l.bf16 %v9986_v23 }
 0xa8c   : > { %v9983_v25 = vunpack.i.h.bf16 %v9981_v20  ;;  %v9982_v21 = vunpack.i.l.bf16 %v9981_v20 }
 0xa8d   : > { %8702 = vmatprep.mubr.msk.f32.mxu1 %vm924_vm5, %v2237_v11  ;;  %v9467_v47 = vpack.c.bf16 %v9988_v41, %v9987_v33 }
 0xa8e   : > { %v9461_v1 = vpack.c.bf16 %v9983_v25, %v9982_v21  ;;  %8703 = vmatmul.mubr.msk.f32.gmra.mrb[42].mxu1 %vm924_vm5, %v2238_v4  ;;  %v10346_v38 = vpop.eup %10345 }
 0xa8f   : > { %9460 = vmatpush3.bf16.xpose.msk.msra.mxu1 %vm11042_vm4, %v9455_v55  ;;  %v2240_v30 = vmul.f32 %v10346_v38, %v11660_v32 }
 0xa90   : > { %9463 = vmatprep.subr.msk.bf16.mxu1 %vm11042_vm4, %v9461_v1 }
 0xa92   : > { %v10348_v9 = vpop.eup %10347 }
 0xa93   : > { %v2239_v44 = vmul.f32 %v10348_v9, %v11664_v31  ;;  %v2397_v31 = vpop.permute.xlu0 %2396 }
 0xa95   : > { %8705 = vmatprep.mubr.msk.f32.mxu1 %vm924_vm5, %v2239_v44 }
 0xa96   : > { %8706 = vmatmul.mubr.msk.f32.gmra.mrb[44].mxu1 %vm924_vm5, %v2240_v30 }
 0xa97   : > { %9466 = vmatpush3.bf16.xpose.msk.msra.mxu1 %vm11042_vm4, %v9461_v1  ;;  %v2401_v27 = vpop.permute.xlu0 %2400 }
 0xa98   : > { %9469 = vmatprep.subr.msk.bf16.mxu1 %vm11042_vm4, %v9467_v47 }
 0xa9b   : > { %v2405_v46 = vpop.permute.xlu0 %2404 }
 0xa9f   : > { %9472 = vmatpush3.bf16.xpose.msk.msra.mxu1 %vm11042_vm4, %v9467_v47 }
 0xab0   : > { %v2226_v53 = vpop.xlane.xlu1 %2225 }
 0xab1   : > { %10349 = vrcp.f32 %v2226_v53 }
 0xab4   : > { %v2223_v56 = vpop.xlane.xlu1 %2222 }
 0xab5   : > { %10351 = vrcp.f32 %v2223_v56 }
 0xab8   : > { %v2399_v40 = vpop.permute.xlu1 %2398 }
 0xabb   : > { %v10350_v32 = vpop.eup %10349 }
 0xabc   : > { %v2242_v7 = vmul.f32 %v10350_v32, %v11682_v61  ;;  %v2403_v29 = vpop.permute.xlu1 %2402 }
 0xabf   : > { %v10352_v28 = vpop.eup %10351 }
 0xac0   : > { %v2241_v35 = vmul.f32 %v10352_v28, %v11688_v8  ;;  %v2407_v60 = vpop.permute.xlu1 %2406  ;;  %v2409_v8 = vpop.permute.xlu0 %2408 }
 0xac2   : > { %8708 = vmatprep.mubr.msk.f32.mxu1 %vm924_vm5, %v2241_v35 }
 0xac3   : > { %8709 = vmatmul.mubr.msk.f32.gmra.mrb[46].mxu1 %vm924_vm5, %v2242_v7 }
 0xac4   : > { %8727 = vmatprep.mubr.msk.f32.mxu1 %vm786_vm3, %v2397_v31  ;;  %v2411_v61 = vpop.permute.xlu1 %2410 }
 0xac7   : > { %8728 = vmatmul.mubr.msk.f32.vlgmr.msra.gmra.mrb[48].mxu1 %vm786_vm3, %v2399_v40 }
 0xac8   : > { %8730 = vmatprep.mubr.msk.f32.mxu1 %vm786_vm3, %v2401_v27 }
 0xacb   : > { %8731 = vmatmul.mubr.msk.f32.gmra.mrb[50].mxu1 %vm786_vm3, %v2403_v29 }
 0xacc   : > { %8733 = vmatprep.mubr.msk.f32.mxu1 %vm786_vm3, %v2405_v46 }
 0xacf   : > { %8734 = vmatmul.mubr.msk.f32.gmra.mrb[52].mxu1 %vm786_vm3, %v2407_v60 }
 0xad0   : > { %8736 = vmatprep.mubr.msk.f32.mxu1 %vm786_vm3, %v2409_v8 }
 0xad3   : > { %8737 = vmatmul.mubr.msk.f32.gmra.mrb[54].mxu1 %vm786_vm3, %v2411_v61 }
 0xb59   : > { %v11738_v49 = vpop.f32.mrb[40].mxu1 }
 0xb5a   : > { %v11740_v55 = vpop.f32.mrb[41].mxu1 }
 0xb61   : > { %v11742_v58 = vpop.f32.mrb[42].mxu1 }
 0xb62   : > { %v11744_v34 = vpop.f32.mrb[43].mxu1 }
 0xb69   : > { %v11746_v17 = vpop.f32.mrb[44].mxu1 }
 0xb6a   : > { %v11748_v20 = vpop.f32.mrb[45].mxu1 }
 0xb96   : > { %v11750_v11 = vpop.f32.mrb[46].mxu1 }
 0xb97   : > { %v11752_v25 = vpop.f32.mrb[47].mxu1 }
 0xb9a   : > { %v8729_v21 = vpop.f32.mrb[48].mxu1 }
 0xb9b   : > { %v2532_v4 = vadd.f32 %v11573_v59, %v8729_v21  ;;  %v2526_v1 = vpop.f32.mrb[49].mxu1 }
 0xb9c   : > { %v2527_v23 = vadd.f32 %v11579_v16, %v2526_v1 }
 0xb9d   : > { %v2568_v38 = vsel %vm924_vm5, %v2532_v4, -inf }
 0xb9e   : > { %2569 = vmax.xlane.f32.xlu1 %v2568_v38  ;;  %v8732_v9 = vpop.f32.mrb[50].mxu1  ;;  %v2565_v41 = vsel %vm924_vm5, %v2527_v23, -inf }
 0xb9f   : > { %v2542_v33 = vadd.f32 %v11587_v45, %v8732_v9  ;;  %v2536_v44 = vpop.f32.mrb[51].mxu1  ;;  %2566 = vmax.xlane.f32.xlu0 %v2565_v41 }
 0xba0   : > { %v2537_v47 = vadd.f32 %v11594_v3, %v2536_v44 }
 0xba1   : > { %v2574_v30 = vsel %vm924_vm5, %v2542_v33, -inf }
 0xba2   : > { %v8735_v53 = vpop.f32.mrb[52].mxu1  ;;  %v2571_v28 = vsel %vm924_vm5, %v2537_v47, -inf }
 0xba3   : > { %v2552_v59 = vadd.f32 %v11600_v5, %v8735_v53  ;;  %v2546_v56 = vpop.f32.mrb[53].mxu1  ;;  %2575 = vmax.xlane.f32.xlu0 %v2574_v30 }
 0xba4   : > { %v2547_v31 = vadd.f32 %v11607_v51, %v2546_v56 }
 0xba5   : > { %v2580_v16 = vsel %vm924_vm5, %v2552_v59, -inf }
 0xba6   : > { %2581 = vmax.xlane.f32.xlu1 %v2580_v16  ;;  %v8738_v32 = vpop.f32.mrb[54].mxu1  ;;  %v2577_v35 = vsel %vm924_vm5, %v2547_v31, -inf }
 0xba7   : > { %v11766_v45 = vadd.f32 %v11614_v13, %v8738_v32  ;;  %v2556_v40 = vpop.f32.mrb[55].mxu1  ;;  %2572 = vmax.xlane.f32.xlu0 %v2571_v28 }
 0xba8   : > { %v11771_v5 = vadd.f32 %v11624_v43, %v2556_v40 }
 0xba9   : > { %v2586_v3 = vsel %vm924_vm5, %v11766_v45, -inf }
 0xbaa   : > { %2587 = vmax.xlane.f32.xlu1 %v2586_v3  ;;  %v2583_v51 = vsel %vm924_vm5, %v11771_v5, -inf }
 0xbab   : > { %2578 = vmax.xlane.f32.xlu0 %v2577_v35 }
 0xbaf   : > { %2584 = vmax.xlane.f32.xlu0 %v2583_v51 }
 0xbbb   : > { %9995 = vrot.lane.b32.xlu1 %v10986_v48, %s10720_s13 }
 0xbc5   : > { %9990 = vrot.lane.b32.xlu0 %v10976_v14, %s10720_s13 }
 0xc2b   : > { %v2570_v13 = vpop.xlane.xlu1 %2569 }
 0xc2c   : > { %v2590_v7 = vsub.f32 %v2532_v4, %v2570_v13  ;;  %v2567_v27 = vpop.xlane.xlu0 %2566 }
 0xc2d   : > { %v2589_v43 = vsub.f32 %v2527_v23, %v2567_v27 }
 0xc2e   : > { %v2599_v29 = vmul.f32 1.442695, %v2590_v7 }
 0xc2f   : > { %v2597_v46 = vmul.f32 1.442695, %v2589_v43 }
 0xc30   : > { %10353 = vpow2.f32 %v2599_v29  ;;  %v2576_v60 = vpop.xlane.xlu0 %2575 }
 0xc31   : > { %10355 = vpow2.f32 %v2597_v46  ;;  %v2592_v8 = vsub.f32 %v2542_v33, %v2576_v60 }
 0xc33   : > { %v2603_v61 = vmul.f32 1.442695, %v2592_v8  ;;  %v2582_v21 = vpop.xlane.xlu1 %2581 }
 0xc34   : > { %v2594_v1 = vsub.f32 %v2552_v59, %v2582_v21  ;;  %v2573_v38 = vpop.xlane.xlu0 %2572 }
 0xc35   : > { %10357 = vpow2.f32 %v2603_v61  ;;  %v2591_v9 = vsub.f32 %v2537_v47, %v2573_v38 }
 0xc36   : > { %v2607_v48 = vmul.f32 1.442695, %v2594_v1 }
 0xc37   : > { %v2601_v41 = vmul.f32 1.442695, %v2591_v9  ;;  %v2588_v44 = vpop.xlane.xlu1 %2587 }
 0xc38   : > { %v2579_v14 = vpop.xlane.xlu0 %2578  ;;  %v2596_v8 = vsub.f32 %v11766_v45, %v2588_v44 }
 0xc39   : > { %10359 = vpow2.f32 %v2601_v41  ;;  %v2593_v4 = vsub.f32 %v2547_v31, %v2579_v14 }
 0xc3a   : > { %v11780_v30 = vpop.eup %10353  ;;  %10361 = vpow2.f32 %v2607_v48  ;;  %v2611_v21 = vmul.f32 1.442695, %v2596_v8 }
 0xc3b   : > { %v11782_v23 = vpop.eup %10355  ;;  %v2605_v53 = vmul.f32 1.442695, %v2593_v4  ;;  %v2616_v33 = vsel %vm924_vm5, %v11780_v30, 0.0  ;;  %v9996_v56 = vpop.permute.xlu1 %9995 }
 0xc3c   : > { %2617 = vadd.xlane.f32.xlu1 %v2616_v33  ;;  %v2585_v59 = vpop.xlane.xlu0 %2584  ;;  %v2613_v47 = vsel %vm924_vm5, %v11782_v23, 0.0  ;;  %v9998_v28 = vunpack.i.h.bf16 %v9996_v56  ;;  %v9997_v40 = vunpack.i.l.bf16 %v9996_v56 }
 0xc3d   : > { %10363 = vpow2.f32 %v2605_v53  ;;  %2614 = vadd.xlane.f32.xlu0 %v2613_v47  ;;  %v2595_v61 = vsub.f32 %v11771_v5, %v2585_v59 }
 0xc3e   : > { %v9477_v43 = vpack.c.bf16 %v9998_v28, %v9997_v40  ;;  %10365 = vpow2.f32 %v2611_v21  ;;  %v2972_v40 = vld [vmem:[%s13839_s4 + $0x18] sm:$0xff] }
 0xc3f   : > { %v11788_v16 = vpop.eup %10357  ;;  %v2609_v1 = vmul.f32 1.442695, %v2595_v61 }
 0xc40   : > { %v9991_v31 = vpop.permute.xlu0 %9990  ;;  %v2622_v32 = vsel %vm924_vm5, %v11788_v16, 0.0 }
 0xc41   : > { %v9993_v3 = vunpack.i.h.bf16 %v9991_v31  ;;  %v9992_v35 = vunpack.i.l.bf16 %v9991_v31  ;;  %2623 = vadd.xlane.f32.xlu1 %v2622_v32  ;;  %10367 = vpow2.f32 %v2609_v1  ;;  %v2970_v31 = vld [vmem:[%s13839_s4 + $0x8] sm:$0xff]  ;;  %v2971_v32 = vld [vmem:[%s13839_s4 + $0x10] sm:$0xff] }
 0xc43   : > { %v11792_v51 = vpop.eup %10359  ;;  %v9473_v13 = vpack.c.bf16 %v9993_v3, %v9992_v35  ;;  %v9493_v3 = vpack.c.bf16 %v2972_v40, %v2971_v32  ;;  %v2973_v35 = vld [vmem:[%s13839_s4 + $0x20] sm:$0xff] }
 0xc44   : > { %v2619_v7 = vsel %vm924_vm5, %v11792_v51, 0.0  ;;  %v11796_v27 = vpop.eup %10361 }
 0xc45   : > { %2620 = vadd.xlane.f32.xlu0 %v2619_v7  ;;  %9474 = vmatprep.subr.bf16.mxu0 %v9473_v13  ;;  %v2628_v46 = vsel %vm924_vm5, %v11796_v27, 0.0 }
 0xc46   : > { %9476 = vmatpush3.bf16.msra.mxu0 %v9473_v13 }
 0xc47   : > { %v11798_v29 = vpop.eup %10363  ;;  %9478 = vmatprep.subr.bf16.mxu0 %v9477_v43 }
 0xc48   : > { %v2625_v60 = vsel %vm924_vm5, %v11798_v29, 0.0  ;;  %v11810_v38 = vpop.eup %10365 }
 0xc49   : > { %2629 = vadd.xlane.f32.xlu0 %v2628_v46  ;;  %2626 = vadd.xlane.f32.xlu1 %v2625_v60  ;;  %v2634_v48 = vsel %vm924_vm5, %v11810_v38, 0.0 }
 0xc4a   : > { %9480 = vmatpush3.bf16.msra.mxu0 %v9477_v43 }
 0xc4b   : > { %v11812_v9 = vpop.eup %10367 }
 0xc5a   : > { %10005 = vrot.lane.b32.xlu1 %v11006_v57, %s10720_s13  ;;  %v2631_v57 = vsel %vm924_vm5, %v11812_v9, 0.0 }
 0xc5f   : > { %10000 = vrot.lane.b32.xlu0 %v10996_v54, %s10720_s13 }
 0xc7e   : > { %2635 = vadd.xlane.f32.xlu0 %v2634_v48  ;;  %2632 = vadd.xlane.f32.xlu1 %v2631_v57 }
 0xc8f   : > { %2816 = vrot.lane.b32.xlu1 %v11410_v37, %s10721_s14 }
 0xc93   : > { %2846 = vrot.lane.b32.xlu1 %v11556_v63, %s10720_s13 }
 0xc94   : > { %2814 = vrot.lane.b32.xlu0 %v11412_v26, %s10721_s14 }
 0xc97   : > { %2848 = vrot.lane.b32.xlu1 %v11554_v24, %s10720_s13 }
 0xc98   : > { %2878 = vrot.lane.b32.xlu0 %v11740_v55, %s10717_s29 }
 0xc9b   : > { %2880 = vrot.lane.b32.xlu1 %v11738_v49, %s10717_s29 }
 0xc9c   : > { %2818 = vrot.lane.b32.xlu0 %v11416_v50, %s10721_s14 }
 0xc9f   : > { %2820 = vrot.lane.b32.xlu1 %v11414_v10, %s10721_s14 }
 0xca0   : > { %2850 = vrot.lane.b32.xlu0 %v11560_v2, %s10720_s13 }
 0xca3   : > { %2852 = vrot.lane.b32.xlu1 %v11558_v62, %s10720_s13 }
 0xca4   : > { %2882 = vrot.lane.b32.xlu0 %v11744_v34, %s10717_s29 }
 0xca7   : > { %2884 = vrot.lane.b32.xlu1 %v11742_v58, %s10717_s29 }
 0xca8   : > { %2822 = vrot.lane.b32.xlu0 %v11420_v18, %s10721_s14 }
 0xcab   : > { %2824 = vrot.lane.b32.xlu1 %v11418_v19, %s10721_s14 }
 0xcac   : > { %2854 = vrot.lane.b32.xlu0 %v11564_v36, %s10720_s13 }
 0xcaf   : > { %2856 = vrot.lane.b32.xlu1 %v11562_v39, %s10720_s13 }
 0xcb0   : > { %2886 = vrot.lane.b32.xlu0 %v11748_v20, %s10717_s29 }
 0xcb3   : > { %2888 = vrot.lane.b32.xlu1 %v11746_v17, %s10717_s29 }
 0xcc9   : > { %v2618_v37 = vpop.xlane.xlu1 %2617 }
 0xcca   : > { %v2615_v54 = vpop.xlane.xlu0 %2614 }
 0xccb   : > { %10369 = vrcp.f32 %v2615_v54 }
 0xccc   : > { %10371 = vrcp.f32 %v2618_v37 }
 0xcce   : > { %v2624_v26 = vpop.xlane.xlu1 %2623 }
 0xcd2   : > { %v2621_v10 = vpop.xlane.xlu0 %2620 }
 0xcd3   : > { %10373 = vrcp.f32 %v2621_v10 }
 0xcd4   : > { %10375 = vrcp.f32 %v2624_v26 }
 0xcd5   : > { %v10370_v50 = vpop.eup %10369 }
 0xcd6   : > { %v2627_v18 = vpop.xlane.xlu1 %2626  ;;  %v2630_v19 = vpop.xlane.xlu0 %2629  ;;  %v2645_v24 = vmul.f32 %v10370_v50, %v11782_v23 }
 0xcd7   : > { %10377 = vrcp.f32 %v2627_v18  ;;  %v10372_v34 = vpop.eup %10371 }
 0xcd8   : > { %8755 = vmatprep.mubr.msk.f32.mxu0 %vm924_vm5, %v2645_v24  ;;  %10379 = vrcp.f32 %v2630_v19  ;;  %v2646_v20 = vmul.f32 %v10372_v34, %v11780_v30 }
 0xcda   : > { %v10006_v63 = vpop.permute.xlu1 %10005  ;;  %v10001_v62 = vpop.permute.xlu0 %10000 }
 0xcdb   : > { %v10008_v2 = vunpack.i.h.bf16 %v10006_v63  ;;  %v10007_v39 = vunpack.i.l.bf16 %v10006_v63  ;;  %v10003_v36 = vunpack.i.h.bf16 %v10001_v62  ;;  %v10002_v49 = vunpack.i.l.bf16 %v10001_v62 }
 0xcdd   : > { %v9481_v55 = vpack.c.bf16 %v10003_v36, %v10002_v49  ;;  %v9485_v58 = vpack.c.bf16 %v10008_v2, %v10007_v39  ;;  %v10374_v17 = vpop.eup %10373 }
 0xcde   : > { %v10376_v45 = vpop.eup %10375  ;;  %v2647_v5 = vmul.f32 %v10374_v17, %v11792_v51  ;;  %v13905_v17 = vld [vmem:[#allocation11_spill] sm:$0xff] }
 0xcdf   : > { %9482 = vmatprep.subr.bf16.mxu0 %v9481_v55  ;;  %v2648_v44 = vmul.f32 %v10376_v45, %v11788_v16  ;;  %v2969_v16 = vld [vmem:[%s13839_s4] sm:$0xff] }
 0xce0   : > { %9484 = vmatpush3.bf16.msra.mxu0 %v9481_v55  ;;  %v9489_v28 = vpack.c.bf16 %v2970_v31, %v2969_v16 }
 0xce1   : > { %9486 = vmatprep.subr.bf16.mxu0 %v9485_v58  ;;  %v10378_v41 = vpop.eup %10377 }
 0xce2   : > { %v10380_v14 = vpop.eup %10379  ;;  %v2649_v4 = vmul.f32 %v10378_v41, %v11798_v29 }
 0xce3   : > { %v2650_v23 = vmul.f32 %v10380_v14, %v11796_v27 }
 0xce4   : > { %9488 = vmatpush3.bf16.msra.mxu0 %v9485_v58  ;;  %v13904_v58 = vld [vmem:[#allocation12_spill] sm:$0xff] }
 0xce5   : > { %9490 = vmatprep.subr.bf16.mxu0 %v9489_v28 }
 0xce7   : > { %8756 = vmatmul.mubr.msk.f32.vlgmr.msra.gmra.mrb[32].mxu0 %vm924_vm5, %v2646_v20 }
 0xce8   : > { %8758 = vmatprep.mubr.msk.f32.mxu0 %vm924_vm5, %v2647_v5  ;;  %9492 = vmatpush3.bf16.msra.mxu0 %v9489_v28 }
 0xce9   : > { %9494 = vmatprep.subr.bf16.mxu0 %v9493_v3 }
 0xceb   : > { %8759 = vmatmul.mubr.msk.f32.gmra.mrb[34].mxu0 %vm924_vm5, %v2648_v44 }
 0xcec   : > { %8761 = vmatprep.mubr.msk.f32.mxu0 %vm924_vm5, %v2649_v4  ;;  %9496 = vmatpush3.bf16.msra.mxu0 %v9493_v3 }
 0xced   : > { %8775 = vmatprep.subr.mxu0 %v2973_v35 }
 0xcef   : > { %8762 = vmatmul.mubr.msk.f32.gmra.mrb[36].mxu0 %vm924_vm5, %v2650_v23 }
 0xcf0   : > { %8776 = vmatpush3.msra.mxu0 %v2973_v35 }
 0xd0b   : > { %v2633_v30 = vpop.xlane.xlu1 %2632  ;;  %v2636_v53 = vpop.xlane.xlu0 %2635 }
 0xd0c   : > { %10381 = vrcp.f32 %v2633_v30 }
 0xd0d   : > { %10383 = vrcp.f32 %v2636_v53 }
 0xd16   : > { %v10382_v33 = vpop.eup %10381 }
 0xd17   : > { %v10384_v59 = vpop.eup %10383  ;;  %v2651_v47 = vmul.f32 %v10382_v33, %v11812_v9  ;;  %v13906_v33 = vld [vmem:[#allocation14_spill] sm:$0xff] }
 0xd18   : > { %v2652_v56 = vmul.f32 %v10384_v59, %v11810_v38 }
 0xd19   : > { %8764 = vmatprep.mubr.msk.f32.mxu0 %vm924_vm5, %v2651_v47 }
 0xd1a   : > { %8765 = vmatmul.mubr.msk.f32.gmra.mrb[38].mxu0 %vm924_vm5, %v2652_v56  ;;  %v13907_v56 = vld [vmem:[#allocation13_spill] sm:$0xff] }
 0xdba   : > { %v8757_v51 = vpop.f32.mrb[32].mxu0 }
 0xdbb   : > { %2912 = vrot.lane.b32.xlu1 %v8757_v51, %s10714_s26  ;;  %v2767_v13 = vpop.f32.mrb[33].mxu0 }
 0xdbc   : > { %2910 = vrot.lane.b32.xlu0 %v2767_v13, %s10714_s26 }
 0xdbe   : > { %v8760_v7 = vpop.f32.mrb[34].mxu0 }
 0xdbf   : > { %2828 = vrot.lane.b32.xlu1 %v11422_v42, %s10721_s14  ;;  %v2777_v27 = vpop.f32.mrb[35].mxu0 }
 0xdc0   : > { %2826 = vrot.lane.b32.xlu0 %v11424_v15, %s10721_s14 }
 0xdc2   : > { %v8763_v43 = vpop.f32.mrb[36].mxu0 }
 0xdc3   : > { %2916 = vrot.lane.b32.xlu1 %v8760_v7, %s10714_s26  ;;  %v2787_v29 = vpop.f32.mrb[37].mxu0 }
 0xdc4   : > { %2914 = vrot.lane.b32.xlu0 %v2777_v27, %s10714_s26  ;;  %v13908_v27 = vld [vmem:[#allocation16_spill] sm:$0xff] }
 0xdc7   : > { %2860 = vrot.lane.b32.xlu1 %v11566_v12, %s10720_s13  ;;  %v2817_v12 = vpop.permute.xlu1 %2816 }
 0xdc8   : > { %2858 = vrot.lane.b32.xlu0 %v11568_v52, %s10720_s13  ;;  %v2815_v52 = vpop.permute.xlu0 %2814  ;;  %v2935_v19 = vsel %vm786_vm3, %v11394_v22, %v2817_v12 }
 0xdc9   : > { %v2934_v10 = vsel %vm786_vm3, %v11396_v6, %v2815_v52 }
 0xdcb   : > { %2920 = vrot.lane.b32.xlu1 %v8763_v43, %s10714_s26  ;;  %v2847_v46 = vpop.permute.xlu1 %2846 }
 0xdcc   : > { %2918 = vrot.lane.b32.xlu0 %v2787_v29, %s10714_s26  ;;  %v2879_v61 = vpop.permute.xlu0 %2878  ;;  %v2943_v18 = vsel %vm2942_vm6, %v2934_v10, %v2847_v46  ;;  %v13909_v29 = vld [vmem:[#allocation15_spill] sm:$0xff] }
 0xdcd   : > { %v2952_v63 = vsel %vm2951_vm7, %v2943_v18, %v2879_v61  ;;  %v13913_v18 = vld [vmem:[#allocation5_spill] sm:$0xff] }
 0xdcf   : > { %2892 = vrot.lane.b32.xlu1 %v11750_v11, %s10717_s29  ;;  %v2849_v60 = vpop.permute.xlu1 %2848 }
 0xdd0   : > { %2890 = vrot.lane.b32.xlu0 %v11752_v25, %s10717_s29  ;;  %v2819_v1 = vpop.permute.xlu0 %2818  ;;  %v2944_v62 = vsel %vm2942_vm6, %v2935_v19, %v2849_v60 }
 0xdd1   : > { %v2936_v22 = vsel %vm786_vm3, %v13904_v58, %v2819_v1 }
 0xdd3   : > { %v2881_v8 = vpop.permute.xlu1 %2880 }
 0xdd4   : > { %v2851_v9 = vpop.permute.xlu0 %2850  ;;  %v2953_v39 = vsel %vm2951_vm7, %v2944_v62, %v2881_v8 }
 0xdd5   : > { %v2945_v34 = vsel %vm2942_vm6, %v2936_v22, %v2851_v9 }
 0xdd7   : > { %v2821_v21 = vpop.permute.xlu1 %2820 }
 0xdd8   : > { %v2883_v48 = vpop.permute.xlu0 %2882  ;;  %v2937_v20 = vsel %vm786_vm3, %v13905_v17, %v2821_v21 }
 0xdd9   : > { %v2954_v5 = vsel %vm2951_vm7, %v2945_v34, %v2883_v48  ;;  %v13911_v48 = vld [vmem:[#allocation3_spill] sm:$0xff]  ;;  %v13916_v34 = vld [vmem:[#allocation8_spill] sm:$0xff] }
 0xddb   : > { %v2853_v38 = vpop.permute.xlu1 %2852 }
 0xddc   : > { %v2823_v25 = vpop.permute.xlu0 %2822  ;;  %v2946_v41 = vsel %vm2942_vm6, %v2937_v20, %v2853_v38  ;;  %v13910_v38 = vld [vmem:[#allocation2_spill] sm:$0xff] }
 0xddd   : > { %v2938_v59 = vsel %vm786_vm3, %v13906_v33, %v2823_v25 }
 0xddf   : > { %v2885_v11 = vpop.permute.xlu1 %2884 }
 0xde0   : > { %v2855_v37 = vpop.permute.xlu0 %2854  ;;  %v2955_v14 = vsel %vm2951_vm7, %v2946_v41, %v2885_v11 }
 0xde1   : > { %v2947_v47 = vsel %vm2942_vm6, %v2938_v59, %v2855_v37 }
 0xde3   : > { %v2825_v57 = vpop.permute.xlu1 %2824 }
 0xde4   : > { %v2887_v50 = vpop.permute.xlu0 %2886  ;;  %v2939_v16 = vsel %vm786_vm3, %v13907_v56, %v2825_v57 }
 0xde5   : > { %v2956_v32 = vsel %vm2951_vm7, %v2947_v47, %v2887_v50 }
 0xde7   : > { %v2857_v54 = vpop.permute.xlu1 %2856 }
 0xde8   : > { %v2948_v28 = vsel %vm2942_vm6, %v2939_v16, %v2857_v54 }
 0xdeb   : > { %v2889_v26 = vpop.permute.xlu1 %2888 }
 0xdec   : > { %v2957_v3 = vsel %vm2951_vm7, %v2948_v28, %v2889_v26  ;;  %v13912_v26 = vld [vmem:[#allocation4_spill] sm:$0xff] }
 0xded   : > { %v8766_v42 = vpop.f32.mrb[38].mxu0 }
 0xdee   : > { %2924 = vrot.lane.b32.xlu1 %v8766_v42, %s10714_s26  ;;  %v2797_v15 = vpop.f32.mrb[39].mxu0 }
 0xdef   : > { %2922 = vrot.lane.b32.xlu0 %v2797_v15, %s10714_s26 }
 0xe2d   : > { %v2913_v24 = vpop.permute.xlu1 %2912 }
 0xe2e   : > { %v2911_v2 = vpop.permute.xlu0 %2910  ;;  %v2962_v6 = vsel %vm2960_vm8, %v2953_v39, %v2913_v24 }
 0xe2f   : > { %v2961_v36 = vsel %vm2960_vm8, %v2952_v63, %v2911_v2  ;;  %v13914_v2 = vld [vmem:[#allocation6_spill] sm:$0xff] }
 0xe30   : > { %8777 = vmatprep.mubr.msk.f32.mxu0 %vm498_vm2, %v2961_v36 }
 0xe31   : > { %v2829_v49 = vpop.permute.xlu1 %2828  ;;  %8778 = vmatmul.mubr.msk.f32.vlgmr.msra.gmra.mrb[40].mxu0 %vm498_vm2, %v2962_v6  ;;  %v13915_v6 = vld [vmem:[#allocation7_spill] sm:$0xff] }
 0xe32   : > { %v2827_v55 = vpop.permute.xlu0 %2826  ;;  %v2941_v42 = vsel %vm786_vm3, %v13909_v29, %v2829_v49 }
 0xe33   : > { %v2940_v43 = vsel %vm786_vm3, %v13908_v27, %v2827_v55 }
 0xe35   : > { %v2917_v45 = vpop.permute.xlu1 %2916 }
 0xe36   : > { %v2915_v44 = vpop.permute.xlu0 %2914  ;;  %v2964_v23 = vsel %vm2960_vm8, %v2955_v14, %v2917_v45  ;;  %v13917_v45 = vld [vmem:[#allocation9_spill] sm:$0xff] }
 0xe37   : > { %v2963_v4 = vsel %vm2960_vm8, %v2954_v5, %v2915_v44 }
 0xe38   : > { %8780 = vmatprep.mubr.msk.f32.mxu0 %vm498_vm2, %v2963_v4 }
 0xe39   : > { %v2861_v30 = vpop.permute.xlu1 %2860  ;;  %8781 = vmatmul.mubr.msk.f32.gmra.mrb[42].mxu0 %vm498_vm2, %v2964_v23 }
 0xe3a   : > { %v2859_v53 = vpop.permute.xlu0 %2858  ;;  %v2950_v46 = vsel %vm2942_vm6, %v2941_v42, %v2861_v30 }
 0xe3b   : > { %v2949_v15 = vsel %vm2942_vm6, %v2940_v43, %v2859_v53 }
 0xe3d   : > { %v2921_v31 = vpop.permute.xlu1 %2920 }
 0xe3e   : > { %v2919_v40 = vpop.permute.xlu0 %2918  ;;  %v2966_v51 = vsel %vm2960_vm8, %v2957_v3, %v2921_v31 }
 0xe3f   : > { %v2965_v35 = vsel %vm2960_vm8, %v2956_v32, %v2919_v40 }
 0xe40   : > { %8783 = vmatprep.mubr.msk.f32.mxu0 %vm498_vm2, %v2965_v35 }
 0xe41   : > { %8784 = vmatmul.mubr.msk.f32.gmra.mrb[44].mxu0 %vm498_vm2, %v2966_v51  ;;  %v2893_v13 = vpop.permute.xlu1 %2892 }
 0xe42   : > { %v2891_v7 = vpop.permute.xlu0 %2890  ;;  %v2959_v8 = vsel %vm2951_vm7, %v2950_v46, %v2893_v13 }
 0xe43   : > { %v2958_v60 = vsel %vm2951_vm7, %v2949_v15, %v2891_v7 }
 0xe60   : > { %v2925_v12 = vpop.permute.xlu1 %2924 }
 0xe61   : > { %v2923_v52 = vpop.permute.xlu0 %2922  ;;  %v2968_v21 = vsel %vm2960_vm8, %v2959_v8, %v2925_v12 }
 0xe62   : > { %v2967_v61 = vsel %vm2960_vm8, %v2958_v60, %v2923_v52 }
 0xe63   : > { %8786 = vmatprep.mubr.msk.f32.mxu0 %vm498_vm2, %v2967_v61 }
 0xe64   : > { %8787 = vmatmul.mubr.msk.f32.gmra.mrb[46].mxu0 %vm498_vm2, %v2968_v21  ;;  %v3239_v21 = vld [vmem:[%s13841_s6] sm:$0xff] }
 0xf04   : > { %v8779_v1 = vpop.f32.mrb[40].mxu0 }
 0xf05   : > { %v11954_v9 = vadd.f32 %v8779_v1, %v13910_v38  ;;  %v3064_v11 = vpop.f32.mrb[41].mxu0  ;;  %v3240_v1 = vld [vmem:[%s13841_s6 + $0x8] sm:$0xff]  ;;  %v12931_v38 = vld [vmem:[%s13836_s1 + $0x38] sm:$0xff] }
 0xf06   : > { %v11957_v57 = vadd.f32 %v3064_v11, %v13911_v48  ;;  %v9497_v11 = vpack.c.bf16 %v3240_v1, %v3239_v21 }
 0xf07   : > { %v3114_v25 = vsel %vm498_vm2, %v11954_v9, 0.0 }
 0xf08   : > { %3115 = vadd.xlane.f32.xlu1 %v3114_v25  ;;  %v3111_v54 = vsel %vm498_vm2, %v11957_v57, 0.0  ;;  %9498 = vmatprep.subr.bf16.mxu1 %v9497_v11  ;;  %v3241_v25 = vld [vmem:[%s13841_s6 + $0x10] sm:$0xff] }
 0xf09   : > { %3112 = vadd.xlane.f32.xlu0 %v3111_v54  ;;  %9500 = vmatpush3.bf16.msra.mxu1 %v9497_v11  ;;  %v3242_v54 = vld [vmem:[%s13841_s6 + $0x18] sm:$0xff] }
 0xf0c   : > { %v8782_v37 = vpop.f32.mrb[42].mxu0 }
 0xf0d   : > { %v11964_v10 = vadd.f32 %v8782_v37, %v13912_v26  ;;  %v3074_v50 = vpop.f32.mrb[43].mxu0  ;;  %v9501_v37 = vpack.c.bf16 %v3242_v54, %v3241_v25 }
 0xf0e   : > { %v11967_v19 = vadd.f32 %v3074_v50, %v13913_v18  ;;  %v3243_v50 = vld [vmem:[%s13841_s6 + $0x20] sm:$0xff] }
 0xf0f   : > { %v3120_v62 = vsel %vm498_vm2, %v11964_v10, 0.0  ;;  %9502 = vmatprep.subr.bf16.mxu1 %v9501_v37 }
 0xf10   : > { %v3117_v24 = vsel %vm498_vm2, %v11967_v19, 0.0  ;;  %9504 = vmatpush3.bf16.msra.mxu1 %v9501_v37 }
 0xf11   : > { %3118 = vadd.xlane.f32.xlu0 %v3117_v24  ;;  %8797 = vmatprep.subr.mxu1 %v3243_v50 }
 0xf14   : > { %v8785_v63 = vpop.f32.mrb[44].mxu0  ;;  %8798 = vmatpush3.msra.mxu1 %v3243_v50 }
 0xf15   : > { %v11974_v39 = vadd.f32 %v8785_v63, %v13914_v2  ;;  %3121 = vadd.xlane.f32.xlu0 %v3120_v62  ;;  %v3084_v36 = vpop.f32.mrb[45].mxu0 }
 0xf16   : > { %v11977_v49 = vadd.f32 %v3084_v36, %v13915_v6 }
 0xf17   : > { %v3126_v55 = vsel %vm498_vm2, %v11974_v39, 0.0 }
 0xf18   : > { %3127 = vadd.xlane.f32.xlu1 %v3126_v55  ;;  %v3123_v58 = vsel %vm498_vm2, %v11977_v49, 0.0 }
 0xf19   : > { %3124 = vadd.xlane.f32.xlu0 %v3123_v58 }
 0xf37   : > { %v8788_v22 = vpop.f32.mrb[46].mxu0 }
 0xf38   : > { %v11984_v17 = vadd.f32 %v8788_v22, %v13916_v34  ;;  %v3094_v20 = vpop.f32.mrb[47].mxu0 }
 0xf39   : > { %v11987_v5 = vadd.f32 %v3094_v20, %v13917_v45 }
 0xf3a   : > { %v3132_v41 = vsel %vm498_vm2, %v11984_v17, 0.0 }
 0xf3b   : > { %3133 = vadd.xlane.f32.xlu1 %v3132_v41  ;;  %v3129_v44 = vsel %vm498_vm2, %v11987_v5, 0.0 }
 0xf3c   : > { %3130 = vadd.xlane.f32.xlu0 %v3129_v44 }
 0xf95   : > { %v3116_v14 = vpop.xlane.xlu1 %3115 }
 0xf96   : > { %v3136_v4 = vmul.f32 0.025, %v3116_v14  ;;  %v3113_v23 = vpop.xlane.xlu0 %3112 }
 0xf97   : > { %v3135_v30 = vmul.f32 0.025, %v3113_v23 }
 0xf98   : > { %v11994_v53 = vsub.f32 %v11954_v9, %v3136_v4 }
 0xf99   : > { %v11997_v33 = vsub.f32 %v11957_v57, %v3135_v30 }
 0xf9a   : > { %v3152_v59 = vmul.f32 %v11994_v53, %v11994_v53 }
 0xf9b   : > { %v3151_v47 = vmul.f32 %v11997_v33, %v11997_v33 }
 0xf9c   : > { %v3162_v56 = vsel %vm498_vm2, %v3152_v59, 0.0 }
 0xf9d   : > { %3163 = vadd.xlane.f32.xlu1 %v3162_v56  ;;  %v3159_v16 = vsel %vm498_vm2, %v3151_v47, 0.0 }
 0xf9e   : > { %v3119_v31 = vpop.xlane.xlu0 %3118  ;;  %3160 = vadd.xlane.f32.xlu0 %v3159_v16  ;;  %v13918_v16 = vld [vmem:[#allocation10_spill] sm:$0xff] }
 0xf9f   : > { %v3137_v32 = vmul.f32 0.025, %v3119_v31  ;;  %v13877_v31 = vsub.s32 2, %v13918_v16 }
 0xfa1   : > { %v12006_v28 = vsub.f32 %v11967_v19, %v3137_v32 }
 0xfa2   : > { %v3122_v40 = vpop.xlane.xlu0 %3121 }
 0xfa3   : > { %v3138_v3 = vmul.f32 0.025, %v3122_v40  ;;  %v3153_v35 = vmul.f32 %v12006_v28, %v12006_v28 }
 0xfa5   : > { %v12011_v51 = vsub.f32 %v11964_v10, %v3138_v3  ;;  %v3128_v13 = vpop.xlane.xlu1 %3127  ;;  %v3165_v7 = vsel %vm498_vm2, %v3153_v35, 0.0  ;;  %v13876_v35 = vsub.s32 3, %v13918_v16 }
 0xfa6   : > { %v3140_v27 = vmul.f32 0.025, %v3128_v13  ;;  %v3125_v43 = vpop.xlane.xlu0 %3124  ;;  %3166 = vadd.xlane.f32.xlu0 %v3165_v7  ;;  %v10681_v13 = vld [vmem:[%s13840_s5] sm:$0xf] }
 0xfa7   : > { %v3139_v29 = vmul.f32 0.025, %v3125_v43  ;;  %v3154_v42 = vmul.f32 %v12011_v51, %v12011_v51  ;;  %v3218_v7 = vrot.slane %v10681_v13, %v13877_v31 }
 0xfa8   : > { %v12017_v15 = vsub.f32 %v11974_v39, %v3140_v27 }
 0xfa9   : > { %v12020_v12 = vsub.f32 %v11977_v49, %v3139_v29  ;;  %v3168_v46 = vsel %vm498_vm2, %v3154_v42, 0.0 }
 0xfaa   : > { %3169 = vadd.xlane.f32.xlu1 %v3168_v46  ;;  %v3156_v60 = vmul.f32 %v12017_v15, %v12017_v15 }
 0xfab   : > { %v3155_v52 = vmul.f32 %v12020_v12, %v12020_v12 }
 0xfac   : > { %v3174_v8 = vsel %vm498_vm2, %v3156_v60, 0.0 }
 0xfad   : > { %v3171_v61 = vsel %vm498_vm2, %v3155_v52, 0.0 }
 0xfae   : > { %3175 = vadd.xlane.f32.xlu1 %v3174_v8  ;;  %3172 = vadd.xlane.f32.xlu0 %v3171_v61  ;;  %v3230_v61 = vrot.slane %v10681_v13, %v13876_v35 }
 0xfc8   : > { %v3134_v24 = vpop.xlane.xlu1 %3133 }
 0xfc9   : > { %v3142_v63 = vmul.f32 0.025, %v3134_v24  ;;  %v3131_v62 = vpop.xlane.xlu0 %3130 }
 0xfca   : > { %v3141_v36 = vmul.f32 0.025, %v3131_v62 }
 0xfcb   : > { %v12045_v55 = vsub.f32 %v11984_v17, %v3142_v63 }
 0xfcc   : > { %v12048_v58 = vsub.f32 %v11987_v5, %v3141_v36 }
 0xfcd   : > { %v3158_v22 = vmul.f32 %v12045_v55, %v12045_v55 }
 0xfce   : > { %v3157_v20 = vmul.f32 %v12048_v58, %v12048_v58 }
 0xfcf   : > { %v3180_v41 = vsel %vm498_vm2, %v3158_v22, 0.0 }
 0xfd0   : > { %3181 = vadd.xlane.f32.xlu1 %v3180_v41  ;;  %v3177_v44 = vsel %vm498_vm2, %v3157_v20, 0.0 }
 0xfd1   : > { %3178 = vadd.xlane.f32.xlu0 %v3177_v44 }
0x102a   : > { %v3164_v14 = vpop.xlane.xlu1 %3163 }
0x102b   : > { %v3184_v4 = vmul.f32 0.025, %v3164_v14  ;;  %v3161_v23 = vpop.xlane.xlu0 %3160 }
0x102c   : > { %v3183_v30 = vmul.f32 0.025, %v3161_v23 }
0x102d   : > { %v3192_v59 = vadd.f32 1e-05, %v3184_v4 }
0x102e   : > { %v3191_v47 = vadd.f32 1e-05, %v3183_v30 }
0x102f   : > { %10385 = vrsqrt.f32 %v3192_v59 }
0x1030   : > { %10387 = vrsqrt.f32 %v3191_v47 }
0x1033   : > { %v3167_v56 = vpop.xlane.xlu0 %3166 }
0x1034   : > { %v3185_v32 = vmul.f32 0.025, %v3167_v56 }
0x1036   : > { %v3193_v40 = vadd.f32 1e-05, %v3185_v32 }
0x1037   : > { %v3170_v3 = vpop.xlane.xlu1 %3169 }
0x1038   : > { %10389 = vrsqrt.f32 %v3193_v40  ;;  %v3186_v27 = vmul.f32 0.025, %v3170_v3 }
0x1039   : > { %v10386_v43 = vpop.eup %10385 }
0x103a   : > { %v10388_v29 = vpop.eup %10387  ;;  %v3208_v42 = vmul.f32 %v10386_v43, %v11994_v53  ;;  %v3194_v46 = vadd.f32 1e-05, %v3186_v27 }
0x103b   : > { %v3176_v60 = vpop.xlane.xlu1 %3175  ;;  %v3173_v52 = vpop.xlane.xlu0 %3172  ;;  %v3207_v8 = vmul.f32 %v10388_v29, %v11997_v33 }
0x103c   : > { %v3220_v21 = vmul.f32 %v3218_v7, %v3208_v42  ;;  %10391 = vrsqrt.f32 %v3194_v46  ;;  %v3188_v1 = vmul.f32 0.025, %v3176_v60  ;;  %v3187_v11 = vmul.f32 0.025, %v3173_v52  ;;  %v3589_v52 = vld [vmem:[%s13842_s7] sm:$0xff] }
0x103d   : > { %v3219_v25 = vmul.f32 %v3218_v7, %v3207_v8  ;;  %v3590_v8 = vld [vmem:[%s13842_s7 + $0x8] sm:$0xff] }
0x103e   : > { %v3196_v54 = vadd.f32 1e-05, %v3188_v1  ;;  %v3195_v37 = vadd.f32 1e-05, %v3187_v11  ;;  %v3232_v24 = vadd.f32 %v3230_v61, %v3220_v21  ;;  %v9505_v21 = vpack.c.bf16 %v3590_v8, %v3589_v52  ;;  %v3594_v1 = vld [vmem:[%s13842_s7 + $0x28] sm:$0xff] }
0x103f   : > { %v3231_v50 = vadd.f32 %v3230_v61, %v3219_v25  ;;  %v3595_v25 = vld [vmem:[%s13842_s7 + $0x30] sm:$0xff] }
0x1040   : > { %10393 = vrsqrt.f32 %v3196_v54  ;;  %9506 = vmatprep.subr.bf16.mxu0 %v9505_v21  ;;  %v3596_v54 = vld [vmem:[%s13842_s7 + $0x38] sm:$0xff] }
0x1041   : > { %10395 = vrsqrt.f32 %v3195_v37  ;;  %8799 = vmatprep.mubr.msk.f32.mxu1 %vm498_vm2, %v3231_v50  ;;  %9508 = vmatpush3.bf16.msra.mxu0 %v9505_v21  ;;  %v9517_v37 = vpack.c.bf16 %v3596_v54, %v3595_v25 }
0x1042   : > { %v10390_v53 = vpop.eup %10389  ;;  %8800 = vmatmul.mubr.msk.f32.vlgmr.msra.gmra.mrb[56].mxu1 %vm498_vm2, %v3232_v24 }
0x1043   : > { %v3209_v33 = vmul.f32 %v10390_v53, %v12006_v28 }
0x1045   : > { %v3221_v63 = vmul.f32 %v3218_v7, %v3209_v33 }
0x1046   : > { %v10392_v62 = vpop.eup %10391 }
0x1047   : > { %v3233_v36 = vadd.f32 %v3230_v61, %v3221_v63  ;;  %v3210_v22 = vmul.f32 %v10392_v62, %v12011_v51 }
0x1049   : > { %8802 = vmatprep.mubr.msk.f32.mxu1 %vm498_vm2, %v3233_v36  ;;  %v3222_v20 = vmul.f32 %v3218_v7, %v3210_v22 }
0x104a   : > { %v10394_v41 = vpop.eup %10393 }
0x104b   : > { %v10396_v44 = vpop.eup %10395  ;;  %v3234_v14 = vadd.f32 %v3230_v61, %v3222_v20  ;;  %v3212_v4 = vmul.f32 %v10394_v41, %v12017_v15 }
0x104c   : > { %v3211_v23 = vmul.f32 %v10396_v44, %v12020_v12 }
0x104d   : > { %8803 = vmatmul.mubr.msk.f32.gmra.mrb[58].mxu1 %vm498_vm2, %v3234_v14  ;;  %v3224_v30 = vmul.f32 %v3218_v7, %v3212_v4 }
0x104e   : > { %v3223_v59 = vmul.f32 %v3218_v7, %v3211_v23 }
0x104f   : > { %v3236_v28 = vadd.f32 %v3230_v61, %v3224_v30 }
0x1050   : > { %v3235_v47 = vadd.f32 %v3230_v61, %v3223_v59 }
0x1052   : > { %8805 = vmatprep.mubr.msk.f32.mxu1 %vm498_vm2, %v3235_v47 }
0x1053   : > { %8806 = vmatmul.mubr.msk.f32.gmra.mrb[60].mxu1 %vm498_vm2, %v3236_v28 }
0x105d   : > { %v3182_v51 = vpop.xlane.xlu1 %3181 }
0x105e   : > { %v3190_v56 = vmul.f32 0.025, %v3182_v51  ;;  %v3179_v32 = vpop.xlane.xlu0 %3178 }
0x105f   : > { %v3189_v40 = vmul.f32 0.025, %v3179_v32 }
0x1060   : > { %v3198_v3 = vadd.f32 1e-05, %v3190_v56 }
0x1061   : > { %v3197_v13 = vadd.f32 1e-05, %v3189_v40 }
0x1062   : > { %10397 = vrsqrt.f32 %v3198_v3 }
0x1063   : > { %10399 = vrsqrt.f32 %v3197_v13 }
0x106c   : > { %v10398_v15 = vpop.eup %10397 }
0x106d   : > { %v10400_v12 = vpop.eup %10399  ;;  %v3214_v27 = vmul.f32 %v10398_v15, %v12045_v55  ;;  %v3591_v55 = vld [vmem:[%s13842_s7 + $0x10] sm:$0xff] }
0x106e   : > { %v3213_v43 = vmul.f32 %v10400_v12, %v12048_v58  ;;  %v3592_v58 = vld [vmem:[%s13842_s7 + $0x18] sm:$0xff] }
0x106f   : > { %v3226_v29 = vmul.f32 %v3218_v7, %v3214_v27 }
0x1070   : > { %v3225_v42 = vmul.f32 %v3218_v7, %v3213_v43  ;;  %v9509_v7 = vpack.c.bf16 %v3592_v58, %v3591_v55 }
0x1071   : > { %v3238_v60 = vadd.f32 %v3230_v61, %v3226_v29 }
0x1072   : > { %v3237_v46 = vadd.f32 %v3230_v61, %v3225_v42  ;;  %9510 = vmatprep.subr.bf16.mxu0 %v9509_v7  ;;  %v3593_v61 = vld [vmem:[%s13842_s7 + $0x20] sm:$0xff] }
0x1073   : > { %9512 = vmatpush3.bf16.msra.mxu0 %v9509_v7  ;;  %v9513_v11 = vpack.c.bf16 %v3594_v1, %v3593_v61 }
0x1074   : > { %8808 = vmatprep.mubr.msk.f32.mxu1 %vm498_vm2, %v3237_v46 }
0x1075   : > { %8809 = vmatmul.mubr.msk.f32.gmra.mrb[62].mxu1 %vm498_vm2, %v3238_v60  ;;  %9514 = vmatprep.subr.bf16.mxu0 %v9513_v11 }
0x1077   : > { %9516 = vmatpush3.bf16.msra.mxu0 %v9513_v11 }
0x1078   : > { %9518 = vmatprep.subr.bf16.mxu0 %v9517_v37 }
0x107b   : > { %9520 = vmatpush3.bf16.msra.mxu0 %v9517_v37 }
0x1115   : > { %v12105_v50 = vpop.f32.mrb[56].mxu1 }
0x1116   : > { %v12108_v24 = vmul.f32 0.70710677, %v12105_v50  ;;  %v12110_v53 = vpop.f32.mrb[57].mxu1 }
0x1117   : > { %v12113_v33 = vmul.f32 0.70710677, %v12110_v53 }
0x1118   : > { %v3406_v63 = vand.u32 2147483647, %v12108_v24  ;;  %vm3390_vm9 = vcmp.ge.f32.partialorder %v12108_v24, 0.0 }
0x1119   : > { %v3405_v62 = vand.u32 2147483647, %v12113_v33  ;;  %vm3389_vm10 = vcmp.ge.f32.partialorder %v12113_v33, 0.0  ;;  %v3373_v33 = vmul.f32 0.5, %v12110_v53 }
0x111a   : > { %v3414_v36 = vmul.f32 0.3275911, %v3406_v63  ;;  %v3518_v30 = vsub.f32 0.0, %v3406_v63 }
0x111b   : > { %v3413_v22 = vmul.f32 0.3275911, %v3405_v62  ;;  %v3517_v28 = vsub.f32 0.0, %v3405_v62 }
0x111c   : > { %v3422_v20 = vadd.f32 1.0, %v3414_v36  ;;  %v3526_v40 = vmul.f32 %v3518_v30, %v3406_v63 }
0x111d   : > { %v3421_v41 = vadd.f32 1.0, %v3413_v22  ;;  %v3525_v27 = vmul.f32 %v3517_v28, %v3405_v62 }
0x111e   : > { %10401 = vrcp.f32 %v3422_v20  ;;  %v3535_v8 = vmul.f32 1.442695, %v3526_v40 }
0x111f   : > { %10403 = vrcp.f32 %v3421_v41  ;;  %v3533_v58 = vmul.f32 1.442695, %v3525_v27 }
0x1120   : > { %v12117_v44 = vpop.f32.mrb[58].mxu1 }
0x1121   : > { %v12120_v14 = vmul.f32 0.70710677, %v12117_v44  ;;  %v12122_v4 = vpop.f32.mrb[59].mxu1 }
0x1122   : > { %v12125_v23 = vmul.f32 0.70710677, %v12122_v4 }
0x1123   : > { %v3408_v59 = vand.u32 2147483647, %v12120_v14  ;;  %vm3392_vm11 = vcmp.ge.f32.partialorder %v12120_v14, 0.0 }
0x1124   : > { %v3407_v47 = vand.u32 2147483647, %v12125_v23  ;;  %vm3391_vm12 = vcmp.ge.f32.partialorder %v12125_v23, 0.0 }
0x1125   : > { %v3416_v51 = vmul.f32 0.3275911, %v3408_v59  ;;  %v3520_v25 = vsub.f32 0.0, %v3408_v59 }
0x1126   : > { %v3415_v56 = vmul.f32 0.3275911, %v3407_v47  ;;  %v12129_v32 = vpop.f32.mrb[60].mxu1  ;;  %v3519_v54 = vsub.f32 0.0, %v3407_v47 }
0x1127   : > { %v3424_v3 = vadd.f32 1.0, %v3416_v51  ;;  %v12132_v13 = vmul.f32 0.70710677, %v12129_v32  ;;  %v12134_v15 = vpop.f32.mrb[61].mxu1  ;;  %v3528_v30 = vmul.f32 %v3520_v25, %v3408_v59 }
0x1128   : > { %v10402_v12 = vpop.eup %10401  ;;  %v3423_v43 = vadd.f32 1.0, %v3415_v56  ;;  %v12137_v29 = vmul.f32 0.70710677, %v12134_v15  ;;  %v3527_v28 = vmul.f32 %v3519_v54, %v3407_v47 }
0x1129   : > { %v10404_v42 = vpop.eup %10403  ;;  %v3446_v46 = vmul.f32 1.0614054, %v10402_v12  ;;  %10405 = vrcp.f32 %v3424_v3  ;;  %v3410_v21 = vand.u32 2147483647, %v12132_v13  ;;  %vm3394_vm13 = vcmp.ge.f32.partialorder %v12132_v13, 0.0 }
0x112a   : > { %v3445_v60 = vmul.f32 1.0614054, %v10404_v42  ;;  %10407 = vrcp.f32 %v3423_v43  ;;  %v3409_v7 = vand.u32 2147483647, %v12137_v29  ;;  %vm3393_vm14 = vcmp.ge.f32.partialorder %v12137_v29, 0.0 }
0x112b   : > { %v3454_v52 = vadd.f32 -1.4531521, %v3446_v46  ;;  %v3418_v1 = vmul.f32 0.3275911, %v3410_v21  ;;  %10409 = vpow2.f32 %v3535_v8  ;;  %v3539_v8 = vmul.f32 1.442695, %v3528_v30 }
0x112c   : > { %v3453_v55 = vadd.f32 -1.4531521, %v3445_v60  ;;  %v3417_v37 = vmul.f32 0.3275911, %v3409_v7  ;;  %10411 = vpow2.f32 %v3533_v58  ;;  %v3522_v59 = vsub.f32 0.0, %v3410_v21 }
0x112d   : > { %v3462_v61 = vmul.f32 %v10402_v12, %v3454_v52  ;;  %v3426_v62 = vadd.f32 1.0, %v3418_v1  ;;  %v3377_v29 = vmul.f32 0.5, %v12134_v15 }
0x112e   : > { %v3461_v11 = vmul.f32 %v10404_v42, %v3453_v55  ;;  %v3425_v22 = vadd.f32 1.0, %v3417_v37  ;;  %v3537_v55 = vmul.f32 1.442695, %v3527_v28  ;;  %v3530_v30 = vmul.f32 %v3522_v59, %v3410_v21 }
0x112f   : > { %v3470_v63 = vadd.f32 1.4214138, %v3462_v61  ;;  %10413 = vrcp.f32 %v3426_v62 }
0x1130   : > { %v3469_v36 = vadd.f32 1.4214138, %v3461_v11  ;;  %10415 = vrcp.f32 %v3425_v22  ;;  %v3521_v11 = vsub.f32 0.0, %v3409_v7 }
0x1131   : > { %v3478_v20 = vmul.f32 %v10402_v12, %v3470_v63  ;;  %10417 = vpow2.f32 %v3539_v8 }
0x1132   : > { %v3477_v41 = vmul.f32 %v10404_v42, %v3469_v36  ;;  %10419 = vpow2.f32 %v3537_v55 }
0x1133   : > { %v12141_v51 = vpop.eup %10405  ;;  %v3486_v56 = vadd.f32 -0.28449672, %v3478_v20 }
0x1134   : > { %v12143_v40 = vpop.eup %10407  ;;  %v3485_v3 = vadd.f32 -0.28449672, %v3477_v41  ;;  %v3448_v27 = vmul.f32 1.0614054, %v12141_v51 }
0x1135   : > { %v3494_v43 = vmul.f32 %v10402_v12, %v3486_v56  ;;  %v3447_v46 = vmul.f32 1.0614054, %v12143_v40  ;;  %v10410_v25 = vpop.eup %10409 }
0x1136   : > { %v3493_v60 = vmul.f32 %v10404_v42, %v3485_v3  ;;  %v3456_v52 = vadd.f32 -1.4531521, %v3448_v27  ;;  %v10412_v63 = vpop.eup %10411  ;;  %v3529_v27 = vmul.f32 %v3521_v11, %v3409_v7  ;;  %v3543_v7 = vmul.f32 1.442695, %v3530_v30 }
0x1137   : > { %v3502_v58 = vadd.f32 0.2548296, %v3494_v43  ;;  %v3455_v61 = vadd.f32 -1.4531521, %v3447_v46  ;;  %v13874_v43 = vmov -1.0  }
0x1138   : > { %v3501_v47 = vadd.f32 0.2548296, %v3493_v60  ;;  %v3464_v1 = vmul.f32 %v12141_v51, %v3456_v52  ;;  %v3397_v21 = vsel %vm3389_vm10, 1.0, %v13874_v43  ;;  %10421 = vpow2.f32 %v3543_v7 }
0x1139   : > { %v3510_v54 = vmul.f32 %v10402_v12, %v3502_v58  ;;  %v3463_v37 = vmul.f32 %v12143_v40, %v3455_v61  ;;  %v12151_v22 = vpop.eup %10413  ;;  %v3401_v13 = vsel %vm3393_vm14, 1.0, %v13874_v43 }
0x113a   : > { %v3509_v62 = vmul.f32 %v10404_v42, %v3501_v47  ;;  %v3472_v36 = vadd.f32 1.4214138, %v3464_v1  ;;  %v12153_v28 = vpop.eup %10415  ;;  %v3450_v12 = vmul.f32 1.0614054, %v12151_v22  ;;  %v3398_v42 = vsel %vm3390_vm9, 1.0, %v13874_v43 }
0x113b   : > { %v3550_v20 = vmul.f32 %v10410_v25, %v3510_v54  ;;  %v3471_v41 = vadd.f32 1.4214138, %v3463_v37  ;;  %v3449_v52 = vmul.f32 1.0614054, %v12153_v28  ;;  %v3541_v25 = vmul.f32 1.442695, %v3529_v27 }
0x113c   : > { %v3549_v56 = vmul.f32 %v10412_v63, %v3509_v62  ;;  %v3480_v3 = vmul.f32 %v12141_v51, %v3472_v36  ;;  %v3458_v58 = vadd.f32 -1.4531521, %v3450_v12 }
0x113d   : > { %v3558_v46 = vsub.f32 1.0, %v3550_v20  ;;  %v3479_v60 = vmul.f32 %v12143_v40, %v3471_v41  ;;  %v3457_v47 = vadd.f32 -1.4531521, %v3449_v52  ;;  %v3374_v41 = vmul.f32 0.5, %v12105_v50 }
0x113e   : > { %v3557_v8 = vsub.f32 1.0, %v3549_v56  ;;  %v3488_v55 = vadd.f32 -0.28449672, %v3480_v3  ;;  %v3466_v11 = vmul.f32 %v12151_v22, %v3458_v58  ;;  %v10418_v3 = vpop.eup %10417  ;;  %10423 = vpow2.f32 %v3541_v25 }
0x113f   : > { %v3566_v61 = vmul.f32 %v3558_v46, %v3398_v42  ;;  %v3487_v59 = vadd.f32 -0.28449672, %v3479_v60  ;;  %v3465_v63 = vmul.f32 %v12153_v28, %v3457_v47  ;;  %v10420_v46 = vpop.eup %10419 }
0x1140   : > { %v3565_v1 = vmul.f32 %v3557_v8, %v3397_v21  ;;  %v3496_v24 = vmul.f32 %v12141_v51, %v3488_v55  ;;  %v3474_v20 = vadd.f32 1.4214138, %v3466_v11 }
0x1141   : > { %v3574_v54 = vadd.f32 1.0, %v3566_v61  ;;  %v3495_v37 = vmul.f32 %v12143_v40, %v3487_v59  ;;  %v3473_v56 = vadd.f32 1.4214138, %v3465_v63 }
0x1142   : > { %v3573_v62 = vadd.f32 1.0, %v3565_v1  ;;  %v3504_v36 = vadd.f32 0.2548296, %v3496_v24  ;;  %v3482_v27 = vmul.f32 %v12151_v22, %v3474_v20  ;;  %v3399_v1 = vsel %vm3391_vm12, 1.0, %v13874_v43 }
0x1143   : > { %v3503_v30 = vadd.f32 0.2548296, %v3495_v37  ;;  %v3582_v60 = vmul.f32 %v3574_v54, %v3374_v41  ;;  %v3481_v53 = vmul.f32 %v12153_v28, %v3473_v56 }
0x1144   : > { %v3581_v12 = vmul.f32 %v3573_v62, %v3373_v33  ;;  %v3512_v42 = vmul.f32 %v12141_v51, %v3504_v36  ;;  %v3490_v50 = vadd.f32 -0.28449672, %v3482_v27  ;;  %v10422_v62 = vpop.eup %10421  ;;  %v3375_v36 = vmul.f32 0.5, %v12122_v4 }
0x1145   : > { %v3511_v52 = vmul.f32 %v12143_v40, %v3503_v30  ;;  %v3489_v55 = vadd.f32 -0.28449672, %v3481_v53  ;;  %v3400_v40 = vsel %vm3392_vm11, 1.0, %v13874_v43  ;;  %v3402_v53 = vsel %vm3394_vm13, 1.0, %v13874_v43 }
0x1146   : > { %v3552_v21 = vmul.f32 %v10418_v3, %v3512_v42  ;;  %8827 = vmatprep.mubr.msk.f32.mxu0 %vm924_vm5, %v3581_v12  ;;  %v3498_v58 = vmul.f32 %v12151_v22, %v3490_v50  ;;  %v3376_v3 = vmul.f32 0.5, %v12117_v44 }
0x1147   : > { %v3551_v8 = vmul.f32 %v10420_v46, %v3511_v52  ;;  %8828 = vmatmul.mubr.msk.f32.vlgmr.msra.gmra.mrb[48].mxu0 %vm924_vm5, %v3582_v60  ;;  %v3497_v14 = vmul.f32 %v12153_v28, %v3489_v55 }
0x1148   : > { %v3560_v51 = vsub.f32 1.0, %v3552_v21  ;;  %v12180_v61 = vpop.f32.mrb[62].mxu1  ;;  %v3506_v24 = vadd.f32 0.2548296, %v3498_v58  ;;  %v10424_v56 = vpop.eup %10423 }
0x1149   : > { %v3559_v59 = vsub.f32 1.0, %v3551_v8  ;;  %v12185_v7 = vmul.f32 0.70710677, %v12180_v61  ;;  %v12187_v47 = vpop.f32.mrb[63].mxu1  ;;  %v3505_v54 = vadd.f32 0.2548296, %v3497_v14 }
0x114a   : > { %v3568_v23 = vmul.f32 %v3560_v51, %v3400_v40  ;;  %v12191_v11 = vmul.f32 0.70710677, %v12187_v47  ;;  %v3514_v33 = vmul.f32 %v12151_v22, %v3506_v24  ;;  %v3378_v51 = vmul.f32 0.5, %v12129_v32 }
0x114b   : > { %v3567_v25 = vmul.f32 %v3559_v59, %v3399_v1  ;;  %v3412_v37 = vand.u32 2147483647, %v12185_v7  ;;  %v3513_v41 = vmul.f32 %v12153_v28, %v3505_v54  ;;  %vm3396_vm15 = vcmp.ge.f32.partialorder %v12185_v7, 0.0 }
0x114c   : > { %v3576_v63 = vadd.f32 1.0, %v3568_v23  ;;  %v3554_v12 = vmul.f32 %v10422_v62, %v3514_v33  ;;  %v3411_v42 = vand.u32 2147483647, %v12191_v11  ;;  %vm3395_vm0 = vcmp.ge.f32.partialorder %v12191_v11, 0.0 }
0x114d   : > { %v3575_v20 = vadd.f32 1.0, %v3567_v25  ;;  %v3420_v30 = vmul.f32 0.3275911, %v3412_v37  ;;  %v3553_v46 = vmul.f32 %v10424_v56, %v3513_v41  ;;  %v3524_v40 = vsub.f32 0.0, %v3412_v37 }
0x114e   : > { %v3584_v60 = vmul.f32 %v3576_v63, %v3376_v3  ;;  %v3562_v52 = vsub.f32 1.0, %v3554_v12  ;;  %v3419_v4 = vmul.f32 0.3275911, %v3411_v42  ;;  %v3523_v14 = vsub.f32 0.0, %v3411_v42 }
0x114f   : > { %v3583_v27 = vmul.f32 %v3575_v20, %v3375_v36  ;;  %v3428_v22 = vadd.f32 1.0, %v3420_v30  ;;  %v3561_v28 = vsub.f32 1.0, %v3553_v46  ;;  %v3532_v1 = vmul.f32 %v3524_v40, %v3412_v37 }
0x1150   : > { %v3570_v44 = vmul.f32 %v3562_v52, %v3402_v53  ;;  %v3427_v21 = vadd.f32 1.0, %v3419_v4  ;;  %v3531_v63 = vmul.f32 %v3523_v14, %v3411_v42  ;;  %v3380_v7 = vmul.f32 0.5, %v12180_v61 }
0x1151   : > { %10425 = vrcp.f32 %v3428_v22  ;;  %8830 = vmatprep.mubr.msk.f32.mxu0 %vm924_vm5, %v3583_v27  ;;  %v3569_v50 = vmul.f32 %v3561_v28, %v3401_v13  ;;  %v3547_v33 = vmul.f32 1.442695, %v3532_v1  ;;  %v3404_v13 = vsel %vm3396_vm15, 1.0, %v13874_v43 }
0x1152   : > { %8831 = vmatmul.mubr.msk.f32.gmra.mrb[50].mxu0 %vm924_vm5, %v3584_v60  ;;  %v3578_v8 = vadd.f32 1.0, %v3570_v44  ;;  %10427 = vrcp.f32 %v3427_v21  ;;  %v3545_v32 = vmul.f32 1.442695, %v3531_v63 }
0x1153   : > { %v3577_v55 = vadd.f32 1.0, %v3569_v50  ;;  %10429 = vpow2.f32 %v3547_v33 }
0x1154   : > { %v3586_v59 = vmul.f32 %v3578_v8, %v3378_v51  ;;  %10431 = vpow2.f32 %v3545_v32 }
0x1155   : > { %v3585_v58 = vmul.f32 %v3577_v55, %v3377_v29  ;;  %v3403_v29 = vsel %vm3395_vm0, 1.0, %v13874_v43 }
0x1157   : > { %8833 = vmatprep.mubr.msk.f32.mxu0 %vm924_vm5, %v3585_v58  ;;  %v3379_v58 = vmul.f32 0.5, %v12187_v47 }
0x1158   : > { %8834 = vmatmul.mubr.msk.f32.gmra.mrb[52].mxu0 %vm924_vm5, %v3586_v59 }
0x115b   : > { %v10426_v23 = vpop.eup %10425 }
0x115c   : > { %v3452_v24 = vmul.f32 1.0614054, %v10426_v23  ;;  %v10428_v25 = vpop.eup %10427 }
0x115d   : > { %v3451_v62 = vmul.f32 1.0614054, %v10428_v25  ;;  %v10430_v52 = vpop.eup %10429 }
0x115e   : > { %v3460_v54 = vadd.f32 -1.4531521, %v3452_v24  ;;  %v10432_v28 = vpop.eup %10431 }
0x115f   : > { %v3459_v36 = vadd.f32 -1.4531521, %v3451_v62 }
0x1160   : > { %v3468_v15 = vmul.f32 %v10426_v23, %v3460_v54 }
0x1161   : > { %v3467_v41 = vmul.f32 %v10428_v25, %v3459_v36 }
0x1162   : > { %v3476_v20 = vadd.f32 1.4214138, %v3468_v15 }
0x1163   : > { %v3475_v56 = vadd.f32 1.4214138, %v3467_v41 }
0x1164   : > { %v3484_v30 = vmul.f32 %v10426_v23, %v3476_v20 }
0x1165   : > { %v3483_v12 = vmul.f32 %v10428_v25, %v3475_v56 }
0x1166   : > { %v3492_v3 = vadd.f32 -0.28449672, %v3484_v30 }
0x1167   : > { %v3491_v46 = vadd.f32 -0.28449672, %v3483_v12 }
0x1168   : > { %v3500_v27 = vmul.f32 %v10426_v23, %v3492_v3 }
0x1169   : > { %v3499_v22 = vmul.f32 %v10428_v25, %v3491_v46 }
0x116a   : > { %v3508_v37 = vadd.f32 0.2548296, %v3500_v27 }
0x116b   : > { %v3507_v42 = vadd.f32 0.2548296, %v3499_v22 }
0x116c   : > { %v3516_v60 = vmul.f32 %v10426_v23, %v3508_v37 }
0x116d   : > { %v3515_v53 = vmul.f32 %v10428_v25, %v3507_v42 }
0x116e   : > { %v3556_v4 = vmul.f32 %v10430_v52, %v3516_v60 }
0x116f   : > { %v3555_v21 = vmul.f32 %v10432_v28, %v3515_v53 }
0x1170   : > { %v3564_v44 = vsub.f32 1.0, %v3556_v4 }
0x1171   : > { %v3563_v8 = vsub.f32 1.0, %v3555_v21 }
0x1172   : > { %v3572_v50 = vmul.f32 %v3564_v44, %v3404_v13 }
0x1173   : > { %v3571_v55 = vmul.f32 %v3563_v8, %v3403_v29 }
0x1174   : > { %v3580_v51 = vadd.f32 1.0, %v3572_v50 }
0x1175   : > { %v3579_v40 = vadd.f32 1.0, %v3571_v55 }
0x1176   : > { %v3588_v14 = vmul.f32 %v3580_v51, %v3380_v7 }
0x1177   : > { %v3587_v59 = vmul.f32 %v3579_v40, %v3379_v58 }
0x1179   : > { %8836 = vmatprep.mubr.msk.f32.mxu0 %vm924_vm5, %v3587_v59 }
0x117a   : > { %8837 = vmatmul.mubr.msk.f32.gmra.mrb[54].mxu0 %vm924_vm5, %v3588_v14 }
0x121a   : > { %v8829_v23 = vpop.f32.mrb[48].mxu0 }
0x121b   : > { %v12218_v11 = vadd.f32 %v8829_v23, %v11954_v9  ;;  %v3687_v1 = vpop.f32.mrb[49].mxu0 }
0x121c   : > { %v12221_v24 = vadd.f32 %v3687_v1, %v11957_v57 }
0x121d   : > { %13919 = vst [vmem:[#allocation12_spill] sm:$0xff] %v12218_v11  ;;  %v3737_v47 = vsel %vm498_vm2, %v12218_v11, 0.0 }
0x121e   : > { %13920 = vst [vmem:[#allocation11_spill] sm:$0xff] %v12221_v24  ;;  %3738 = vadd.xlane.f32.xlu1 %v3737_v47  ;;  %v3734_v61 = vsel %vm498_vm2, %v12221_v24, 0.0 }
0x121f   : > { %3735 = vadd.xlane.f32.xlu0 %v3734_v61  ;;  %v7754_v61 = vld [vmem:[%s13838_s3 + $0x28] sm:$0xff] }
0x1225   : > { %v8832_v25 = vpop.f32.mrb[50].mxu0 }
0x1226   : > { %v12228_v54 = vadd.f32 %v8832_v25, %v11964_v10  ;;  %v3697_v63 = vpop.f32.mrb[51].mxu0  ;;  %v7755_v25 = vld [vmem:[%s13838_s3 + $0x30] sm:$0xff] }
0x1227   : > { %v12231_v9 = vadd.f32 %v3697_v63, %v11967_v19  ;;  %v9521_v63 = vpack.c.bf16 %v7755_v25, %v7754_v61 }
0x1228   : > { %13921 = vst [vmem:[#allocation14_spill] sm:$0xff] %v12228_v54  ;;  %v3743_v57 = vsel %vm498_vm2, %v12228_v54, 0.0 }
0x1229   : > { %13922 = vst [vmem:[#allocation13_spill] sm:$0xff] %v12231_v9  ;;  %3744 = vadd.xlane.f32.xlu1 %v3743_v57  ;;  %v3740_v33 = vsel %vm498_vm2, %v12231_v9, 0.0  ;;  %9522 = vmatprep.subr.bf16.mxu1 %v9521_v63  ;;  %v7756_v57 = vld [vmem:[%s13838_s3 + $0x38] sm:$0xff] }
0x122a   : > { %3741 = vadd.xlane.f32.xlu0 %v3740_v33  ;;  %9524 = vmatpush3.bf16.msra.mxu1 %v9521_v63  ;;  %v7757_v33 = vld [vmem:[%s13838_s3 + $0x40] sm:$0xff] }
0x122b   : > { %v8835_v62 = vpop.f32.mrb[52].mxu0 }
0x122c   : > { %v12238_v15 = vadd.f32 %v8835_v62, %v11974_v39  ;;  %v3707_v36 = vpop.f32.mrb[53].mxu0  ;;  %v9525_v62 = vpack.c.bf16 %v7757_v33, %v7756_v57 }
0x122d   : > { %v12241_v10 = vadd.f32 %v3707_v36, %v11977_v49  ;;  %v7758_v36 = vld [vmem:[%s13838_s3 + $0x48] sm:$0xff] }
0x122e   : > { %13923 = vst [vmem:[#allocation16_spill] sm:$0xff] %v12238_v15  ;;  %v3749_v19 = vsel %vm498_vm2, %v12238_v15, 0.0  ;;  %9526 = vmatprep.subr.bf16.mxu1 %v9525_v62 }
0x122f   : > { %13924 = vst [vmem:[#allocation15_spill] sm:$0xff] %v12241_v10  ;;  %3750 = vadd.xlane.f32.xlu1 %v3749_v19  ;;  %v3746_v20 = vsel %vm498_vm2, %v12241_v10, 0.0  ;;  %9528 = vmatpush3.bf16.msra.mxu1 %v9525_v62 }
0x1230   : > { %3747 = vadd.xlane.f32.xlu0 %v3746_v20  ;;  %8847 = vmatprep.subr.mxu1 %v7758_v36 }
0x1233   : > { %8848 = vmatpush3.msra.mxu1 %v7758_v36 }
0x124d   : > { %v8838_v32 = vpop.f32.mrb[54].mxu0 }
0x124e   : > { %v12248_v41 = vadd.f32 %v8838_v32, %v11984_v17  ;;  %v3717_v30 = vpop.f32.mrb[55].mxu0 }
0x124f   : > { %v12251_v39 = vadd.f32 %v3717_v30, %v11987_v5 }
0x1250   : > { %13925 = vst [vmem:[#allocation17_spill] sm:$0xff] %v12248_v41  ;;  %v3755_v49 = vsel %vm498_vm2, %v12248_v41, 0.0 }
0x1251   : > { %13926 = vst [vmem:[#allocation18_spill] sm:$0xff] %v12251_v39  ;;  %3756 = vadd.xlane.f32.xlu1 %v3755_v49  ;;  %v3752_v56 = vsel %vm498_vm2, %v12251_v39, 0.0 }
0x1252   : > { %3753 = vadd.xlane.f32.xlu0 %v3752_v56 }
0x12ab   : > { %v3739_v3 = vpop.xlane.xlu1 %3738 }
0x12ac   : > { %v3759_v12 = vmul.f32 0.025, %v3739_v3  ;;  %v3736_v27 = vpop.xlane.xlu0 %3735 }
0x12ad   : > { %v3758_v46 = vmul.f32 0.025, %v3736_v27 }
0x12ae   : > { %v12258_v37 = vsub.f32 %v12218_v11, %v3759_v12 }
0x12af   : > { %v12261_v17 = vsub.f32 %v12221_v24, %v3758_v46 }
0x12b0   : > { %v3775_v5 = vmul.f32 %v12258_v37, %v12258_v37 }
0x12b1   : > { %v3774_v22 = vmul.f32 %v12261_v17, %v12261_v17 }
0x12b2   : > { %v3785_v60 = vsel %vm498_vm2, %v3775_v5, 0.0 }
0x12b3   : > { %3786 = vadd.xlane.f32.xlu1 %v3785_v60  ;;  %v3782_v52 = vsel %vm498_vm2, %v3774_v22, 0.0 }
0x12b4   : > { %3783 = vadd.xlane.f32.xlu0 %v3782_v52 }
0x12b6   : > { %v3745_v42 = vpop.xlane.xlu1 %3744 }
0x12b7   : > { %v3761_v4 = vmul.f32 0.025, %v3745_v42  ;;  %v3742_v53 = vpop.xlane.xlu0 %3741 }
0x12b8   : > { %v3760_v28 = vmul.f32 0.025, %v3742_v53  ;;  %v497_v53 = vld [vmem:[%s13840_s5 + $0x4] sm:$0xf] }
0x12b9   : > { %v12270_v44 = vsub.f32 %v12228_v54, %v3761_v4 }
0x12ba   : > { %v12273_v13 = vsub.f32 %v12231_v9, %v3760_v28 }
0x12bb   : > { %v3777_v21 = vmul.f32 %v12270_v44, %v12270_v44 }
0x12bc   : > { %v3776_v50 = vmul.f32 %v12273_v13, %v12273_v13  ;;  %v3751_v29 = vpop.xlane.xlu1 %3750 }
0x12bd   : > { %v3791_v8 = vsel %vm498_vm2, %v3777_v21, 0.0  ;;  %v3763_v51 = vmul.f32 0.025, %v3751_v29  ;;  %v3748_v58 = vpop.xlane.xlu0 %3747  ;;  %v13927_v29 = vsub.s32 0, %v13918_v16 }
0x12be   : > { %3792 = vadd.xlane.f32.xlu1 %v3791_v8  ;;  %v3788_v55 = vsel %vm498_vm2, %v3776_v50, 0.0  ;;  %v3762_v40 = vmul.f32 0.025, %v3748_v58 }
0x12bf   : > { %3789 = vadd.xlane.f32.xlu0 %v3788_v55  ;;  %v12282_v7 = vsub.f32 %v12238_v15, %v3763_v51  ;;  %v3841_v55 = vrot.slane %v497_v53, %v13927_v29 }
0x12c0   : > { %v12285_v59 = vsub.f32 %v12241_v10, %v3762_v40 }
0x12c1   : > { %v3779_v14 = vmul.f32 %v12282_v7, %v12282_v7 }
0x12c2   : > { %v3778_v23 = vmul.f32 %v12285_v59, %v12285_v59 }
0x12c3   : > { %v3797_v1 = vsel %vm498_vm2, %v3779_v14, 0.0 }
0x12c4   : > { %3798 = vadd.xlane.f32.xlu1 %v3797_v1  ;;  %v3794_v47 = vsel %vm498_vm2, %v3778_v23, 0.0  ;;  %v13928_v23 = vsub.s32 1, %v13918_v16 }
0x12c5   : > { %3795 = vadd.xlane.f32.xlu0 %v3794_v47 }
0x12c6   : > { %v3853_v1 = vrot.slane %v497_v53, %v13928_v23 }
0x12de   : > { %v3757_v19 = vpop.xlane.xlu1 %3756 }
0x12df   : > { %v3765_v20 = vmul.f32 0.025, %v3757_v19  ;;  %v3754_v32 = vpop.xlane.xlu0 %3753 }
0x12e0   : > { %v3764_v30 = vmul.f32 0.025, %v3754_v32 }
0x12e1   : > { %v12309_v49 = vsub.f32 %v12248_v41, %v3765_v20 }
0x12e2   : > { %v12312_v56 = vsub.f32 %v12251_v39, %v3764_v30 }
0x12e3   : > { %v3781_v3 = vmul.f32 %v12309_v49, %v12309_v49 }
0x12e4   : > { %v3780_v12 = vmul.f32 %v12312_v56, %v12312_v56 }
0x12e5   : > { %v3803_v27 = vsel %vm498_vm2, %v3781_v3, 0.0 }
0x12e6   : > { %3804 = vadd.xlane.f32.xlu1 %v3803_v27  ;;  %v3800_v46 = vsel %vm498_vm2, %v3780_v12, 0.0 }
0x12e7   : > { %3801 = vadd.xlane.f32.xlu0 %v3800_v46 }
0x1340   : > { %v3787_v5 = vpop.xlane.xlu1 %3786 }
0x1341   : > { %v3807_v22 = vmul.f32 0.025, %v3787_v5  ;;  %v3784_v60 = vpop.xlane.xlu0 %3783 }
0x1342   : > { %v3806_v52 = vmul.f32 0.025, %v3784_v60 }
0x1343   : > { %v3815_v42 = vadd.f32 1e-05, %v3807_v22 }
0x1344   : > { %v3814_v4 = vadd.f32 1e-05, %v3806_v52 }
0x1345   : > { %10433 = vrsqrt.f32 %v3815_v42 }
0x1346   : > { %10435 = vrsqrt.f32 %v3814_v4 }
0x134b   : > { %v3793_v28 = vpop.xlane.xlu1 %3792 }
0x134c   : > { %v3809_v21 = vmul.f32 0.025, %v3793_v28  ;;  %v3790_v50 = vpop.xlane.xlu0 %3789 }
0x134d   : > { %v3808_v8 = vmul.f32 0.025, %v3790_v50 }
0x134e   : > { %v3817_v51 = vadd.f32 1e-05, %v3809_v21 }
0x134f   : > { %v10434_v58 = vpop.eup %10433  ;;  %v3816_v40 = vadd.f32 1e-05, %v3808_v8 }
0x1350   : > { %v10436_v14 = vpop.eup %10435  ;;  %v3831_v47 = vmul.f32 %v10434_v58, %v12258_v37  ;;  %10437 = vrsqrt.f32 %v3817_v51 }
0x1351   : > { %10439 = vrsqrt.f32 %v3816_v40  ;;  %v3830_v61 = vmul.f32 %v10436_v14, %v12261_v17  ;;  %v3799_v63 = vpop.xlane.xlu1 %3798 }
0x1352   : > { %v3843_v25 = vmul.f32 %v3841_v55, %v3831_v47  ;;  %v3811_v33 = vmul.f32 0.025, %v3799_v63  ;;  %v3796_v62 = vpop.xlane.xlu0 %3795 }
0x1353   : > { %v3842_v57 = vmul.f32 %v3841_v55, %v3830_v61  ;;  %v3810_v19 = vmul.f32 0.025, %v3796_v62 }
0x1354   : > { %v3855_v36 = vadd.f32 %v3853_v1, %v3843_v25  ;;  %v3819_v32 = vadd.f32 1e-05, %v3811_v33 }
0x1355   : > { %v3854_v20 = vadd.f32 %v3853_v1, %v3842_v57  ;;  %v3818_v30 = vadd.f32 1e-05, %v3810_v19 }
0x1356   : > { %10441 = vrsqrt.f32 %v3819_v32 }
0x1357   : > { %8849 = vmatprep.mubr.msk.f32.mxu1 %vm498_vm2, %v3854_v20  ;;  %10443 = vrsqrt.f32 %v3818_v30 }
0x1358   : > { %8850 = vmatmul.mubr.msk.f32.vlgmr.msra.gmra.mrb[64].mxu1 %vm498_vm2, %v3855_v36 }
0x135a   : > { %v10438_v37 = vpop.eup %10437 }
0x135b   : > { %v10440_v3 = vpop.eup %10439  ;;  %v3833_v17 = vmul.f32 %v10438_v37, %v12270_v44 }
0x135c   : > { %v3832_v12 = vmul.f32 %v10440_v3, %v12273_v13 }
0x135d   : > { %v3845_v27 = vmul.f32 %v3841_v55, %v3833_v17 }
0x135e   : > { %v3844_v46 = vmul.f32 %v3841_v55, %v3832_v12 }
0x135f   : > { %v3857_v5 = vadd.f32 %v3853_v1, %v3845_v27 }
0x1360   : > { %v3856_v22 = vadd.f32 %v3853_v1, %v3844_v46  ;;  %v10442_v60 = vpop.eup %10441 }
0x1361   : > { %v10444_v52 = vpop.eup %10443  ;;  %v3835_v42 = vmul.f32 %v10442_v60, %v12282_v7 }
0x1362   : > { %8852 = vmatprep.mubr.msk.f32.mxu1 %vm498_vm2, %v3856_v22  ;;  %v3834_v4 = vmul.f32 %v10444_v52, %v12285_v59 }
0x1363   : > { %8853 = vmatmul.mubr.msk.f32.gmra.mrb[66].mxu1 %vm498_vm2, %v3857_v5  ;;  %v3847_v53 = vmul.f32 %v3841_v55, %v3835_v42 }
0x1364   : > { %v3846_v28 = vmul.f32 %v3841_v55, %v3834_v4 }
0x1365   : > { %v3859_v21 = vadd.f32 %v3853_v1, %v3847_v53 }
0x1366   : > { %v3858_v44 = vadd.f32 %v3853_v1, %v3846_v28 }
0x1368   : > { %8855 = vmatprep.mubr.msk.f32.mxu1 %vm498_vm2, %v3858_v44 }
0x1369   : > { %8856 = vmatmul.mubr.msk.f32.gmra.mrb[68].mxu1 %vm498_vm2, %v3859_v21 }
0x1373   : > { %v3805_v13 = vpop.xlane.xlu1 %3804 }
0x1374   : > { %v3813_v50 = vmul.f32 0.025, %v3805_v13  ;;  %v3802_v8 = vpop.xlane.xlu0 %3801  ;;  %v12418_v13 = vld [vmem:[%s13836_s1 + $0x8] sm:$0xff] }
0x1375   : > { %v3812_v29 = vmul.f32 0.025, %v3802_v8 }
0x1376   : > { %v3821_v51 = vadd.f32 1e-05, %v3813_v50 }
0x1377   : > { %v3820_v58 = vadd.f32 1e-05, %v3812_v29  ;;  %v12424_v29 = vld [vmem:[%s13836_s1] sm:$0xff] }
0x1378   : > { %10445 = vrsqrt.f32 %v3821_v51 }
0x1379   : > { %10447 = vrsqrt.f32 %v3820_v58 }
0x1382   : > { %v10446_v40 = vpop.eup %10445 }
0x1383   : > { %v10448_v7 = vpop.eup %10447  ;;  %v3837_v59 = vmul.f32 %v10446_v40, %v12309_v49 }
0x1384   : > { %v3836_v14 = vmul.f32 %v10448_v7, %v12312_v56 }
0x1385   : > { %v3849_v23 = vmul.f32 %v3841_v55, %v3837_v59  ;;  %v12432_v59 = vld [vmem:[%s13836_s1 + $0x18] sm:$0xff] }
0x1386   : > { %v3848_v47 = vmul.f32 %v3841_v55, %v3836_v14 }
0x1387   : > { %v3861_v61 = vadd.f32 %v3853_v1, %v3849_v23 }
0x1388   : > { %v3860_v25 = vadd.f32 %v3853_v1, %v3848_v47 }
0x138a   : > { %8858 = vmatprep.mubr.msk.f32.mxu1 %vm498_vm2, %v3860_v25 }
0x138b   : > { %8859 = vmatmul.mubr.msk.f32.gmra.mrb[70].mxu1 %vm498_vm2, %v3861_v61  ;;  %v12439_v61 = vld [vmem:[%s13836_s1 + $0x10] sm:$0xff] }
0x142b   : > { %v12343_v63 = vpop.f32.mrb[64].mxu1 }
0x142c   : > { %v12345_v57 = vpop.f32.mrb[65].mxu1 }
0x142d   : > { %8877 = vmatprep.mubr.msk.f32.mxu0 %vm786_vm3, %v12345_v57  ;;  %v12351_v49 = vpack.i.bf16 %v12343_v63, %v12345_v57 }
0x142f   : > { %10010 = vrot.lane.b32.xlu0 %v12351_v49, %s10707_s16 }
0x1436   : > { %v12355_v56 = vpop.f32.mrb[66].mxu1 }
0x1437   : > { %v12357_v55 = vpop.f32.mrb[67].mxu1 }
0x1438   : > { %v12361_v1 = vpack.i.bf16 %v12355_v56, %v12357_v55 }
0x143a   : > { %10015 = vrot.lane.b32.xlu1 %v12361_v1, %s10707_s16 }
0x143c   : > { %v12365_v33 = vpop.f32.mrb[68].mxu1 }
0x143d   : > { %v12367_v62 = vpop.f32.mrb[69].mxu1 }
0x143e   : > { %v12371_v36 = vpack.i.bf16 %v12365_v33, %v12367_v62 }
0x1440   : > { %10020 = vrot.lane.b32.xlu1 %v12371_v36, %s10707_s16 }
0x145e   : > { %v12375_v19 = vpop.f32.mrb[70].mxu1 }
0x145f   : > { %v12377_v20 = vpop.f32.mrb[71].mxu1 }
0x1460   : > { %v12381_v32 = vpack.i.bf16 %v12375_v19, %v12377_v20 }
0x1462   : > { %10025 = vrot.lane.b32.xlu1 %v12381_v32, %s10707_s16 }
0x14a1   : > { %v10011_v30 = vpop.permute.xlu0 %10010 }
0x14a2   : > { %v10013_v37 = vunpack.i.h.bf16 %v10011_v30  ;;  %v10012_v3 = vunpack.i.l.bf16 %v10011_v30 }
0x14a4   : > { %v9529_v17 = vpack.c.bf16 %v10013_v37, %v10012_v3  ;;  %v12445_v37 = vld [vmem:[%s13836_s1 + $0x28] sm:$0xff] }
0x14a6   : > { %9531 = vmatprep.subr.msk.bf16.mxu0 %vm11042_vm4, %v9529_v17 }
0x14a7   : > { %9534 = vmatpush3.bf16.xpose.msk.msra.mxu0 %vm11042_vm4, %v9529_v17 }
0x14ac   : > { %v10016_v12 = vpop.permute.xlu1 %10015 }
0x14ad   : > { %v10018_v27 = vunpack.i.h.bf16 %v10016_v12  ;;  %v10017_v46 = vunpack.i.l.bf16 %v10016_v12 }
0x14af   : > { %v9535_v5 = vpack.c.bf16 %v10018_v27, %v10017_v46  ;;  %v12452_v27 = vld [vmem:[%s13836_s1 + $0x20] sm:$0xff] }
0x14b1   : > { %9537 = vmatprep.subr.msk.bf16.mxu0 %vm11042_vm4, %v9535_v5 }
0x14b2   : > { %9540 = vmatpush3.bf16.xpose.msk.msra.mxu0 %vm11042_vm4, %v9535_v5  ;;  %v10021_v22 = vpop.permute.xlu1 %10020 }
0x14b3   : > { %v10023_v60 = vunpack.i.h.bf16 %v10021_v22  ;;  %v10022_v52 = vunpack.i.l.bf16 %v10021_v22 }
0x14b5   : > { %v9541_v42 = vpack.c.bf16 %v10023_v60, %v10022_v52  ;;  %v12459_v60 = vld [vmem:[%s13836_s1 + $0x38] sm:$0xff] }
0x14b7   : > { %9543 = vmatprep.subr.msk.bf16.mxu0 %vm11042_vm4, %v9541_v42 }
0x14ba   : > { %9546 = vmatpush3.bf16.xpose.msk.msra.mxu0 %vm11042_vm4, %v9541_v42 }
0x14d4   : > { %v10026_v4 = vpop.permute.xlu1 %10025 }
0x14d5   : > { %v10028_v53 = vunpack.i.h.bf16 %v10026_v4  ;;  %v10027_v28 = vunpack.i.l.bf16 %v10026_v4 }
0x14d7   : > { %v9547_v21 = vpack.c.bf16 %v10028_v53, %v10027_v28  ;;  %v12469_v53 = vld [vmem:[%s13836_s1 + $0x30] sm:$0xff] }
0x14d9   : > { %9549 = vmatprep.subr.msk.bf16.mxu0 %vm11042_vm4, %v9547_v21 }
0x14da   : > { %9552 = vmatpush3.bf16.xpose.msk.msra.mxu0 %vm11042_vm4, %v9547_v21 }
0x14e1   : > { %8878 = vmatmul.mubr.msk.f32.vlgmr.msra.gmra.mrb[56].mxu0 %vm786_vm3, %v12343_v63 }
0x14e2   : > { %8880 = vmatprep.mubr.msk.f32.mxu0 %vm786_vm3, %v12357_v55 }
0x14e5   : > { %8881 = vmatmul.mubr.msk.f32.gmra.mrb[58].mxu0 %vm786_vm3, %v12355_v56 }
0x14e6   : > { %8883 = vmatprep.mubr.msk.f32.mxu0 %vm786_vm3, %v12367_v62 }
0x14e9   : > { %8884 = vmatmul.mubr.msk.f32.gmra.mrb[60].mxu0 %vm786_vm3, %v12365_v33 }
0x14ea   : > { %8886 = vmatprep.mubr.msk.f32.mxu0 %vm786_vm3, %v12377_v20 }
0x14ed   : > { %8887 = vmatmul.mubr.msk.f32.gmra.mrb[62].mxu0 %vm786_vm3, %v12375_v19 }
0x15b4   : > { %v8879_v44 = vpop.f32.mrb[56].mxu0 }
0x15b5   : > { %v4125_v50 = vadd.f32 %v12418_v13, %v8879_v44  ;;  %v4119_v8 = vpop.f32.mrb[57].mxu0 }
0x15b6   : > { %v4120_v51 = vadd.f32 %v12424_v29, %v4119_v8 }
0x15b7   : > { %v4161_v58 = vsel %vm924_vm5, %v4125_v50, -inf }
0x15b8   : > { %4162 = vmax.xlane.f32.xlu1 %v4161_v58  ;;  %v8882_v40 = vpop.f32.mrb[58].mxu0  ;;  %v4158_v7 = vsel %vm924_vm5, %v4120_v51, -inf }
0x15b9   : > { %v4135_v14 = vadd.f32 %v12432_v59, %v8882_v40  ;;  %v4129_v23 = vpop.f32.mrb[59].mxu0  ;;  %4159 = vmax.xlane.f32.xlu0 %v4158_v7 }
0x15ba   : > { %v4130_v25 = vadd.f32 %v12439_v61, %v4129_v23 }
0x15bb   : > { %v4167_v47 = vsel %vm924_vm5, %v4135_v14, -inf }
0x15bc   : > { %v8885_v30 = vpop.f32.mrb[60].mxu0  ;;  %v4164_v22 = vsel %vm924_vm5, %v4130_v25, -inf }
0x15bd   : > { %v4145_v3 = vadd.f32 %v12445_v37, %v8885_v30  ;;  %v4139_v17 = vpop.f32.mrb[61].mxu0  ;;  %4168 = vmax.xlane.f32.xlu0 %v4167_v47 }
0x15be   : > { %v4140_v46 = vadd.f32 %v12452_v27, %v4139_v17 }
0x15bf   : > { %v4173_v12 = vsel %vm924_vm5, %v4145_v3, -inf }
0x15c0   : > { %4174 = vmax.xlane.f32.xlu1 %v4173_v12  ;;  %v8888_v5 = vpop.f32.mrb[62].mxu0  ;;  %v4170_v21 = vsel %vm924_vm5, %v4140_v46, -inf }
0x15c1   : > { %v12462_v52 = vadd.f32 %v12459_v60, %v8888_v5  ;;  %v4149_v42 = vpop.f32.mrb[63].mxu0  ;;  %4165 = vmax.xlane.f32.xlu0 %v4164_v22 }
0x15c2   : > { %v12472_v28 = vadd.f32 %v12469_v53, %v4149_v42 }
0x15c3   : > { %v4179_v4 = vsel %vm924_vm5, %v12462_v52, -inf }
0x15c4   : > { %4180 = vmax.xlane.f32.xlu1 %v4179_v4  ;;  %v4176_v44 = vsel %vm924_vm5, %v12472_v28, -inf }
0x15c5   : > { %4171 = vmax.xlane.f32.xlu0 %v4170_v21 }
0x15c9   : > { %4177 = vmax.xlane.f32.xlu0 %v4176_v44 }
0x15d5   : > { %10035 = vrot.lane.b32.xlu1 %v12361_v1, %s10710_s19 }
0x15d9   : > { %10040 = vrot.lane.b32.xlu1 %v12371_v36, %s10710_s19 }
0x15dd   : > { %10045 = vrot.lane.b32.xlu1 %v12381_v32, %s10710_s19 }
0x15df   : > { %10030 = vrot.lane.b32.xlu0 %v12351_v49, %s10710_s19 }
0x15e1   : > { %10055 = vrot.lane.b32.xlu1 %v12361_v1, %s10708_s17 }
0x15e3   : > { %10050 = vrot.lane.b32.xlu0 %v12351_v49, %s10708_s17 }
0x1645   : > { %v4163_v8 = vpop.xlane.xlu1 %4162 }
0x1646   : > { %v4183_v58 = vsub.f32 %v4125_v50, %v4163_v8  ;;  %v4160_v40 = vpop.xlane.xlu0 %4159 }
0x1647   : > { %v4182_v7 = vsub.f32 %v4120_v51, %v4160_v40 }
0x1648   : > { %v4192_v23 = vmul.f32 1.442695, %v4183_v58 }
0x1649   : > { %v4190_v47 = vmul.f32 1.442695, %v4182_v7 }
0x164a   : > { %10449 = vpow2.f32 %v4192_v23  ;;  %v4169_v30 = vpop.xlane.xlu0 %4168 }
0x164b   : > { %10451 = vpow2.f32 %v4190_v47  ;;  %v4185_v17 = vsub.f32 %v4135_v14, %v4169_v30 }
0x164d   : > { %v4196_v12 = vmul.f32 1.442695, %v4185_v17  ;;  %v4175_v5 = vpop.xlane.xlu1 %4174 }
0x164e   : > { %v4187_v22 = vsub.f32 %v4145_v3, %v4175_v5  ;;  %v4166_v42 = vpop.xlane.xlu0 %4165 }
0x164f   : > { %10453 = vpow2.f32 %v4196_v12  ;;  %v4184_v4 = vsub.f32 %v4130_v25, %v4166_v42 }
0x1650   : > { %v4200_v21 = vmul.f32 1.442695, %v4187_v22 }
0x1651   : > { %v4194_v44 = vmul.f32 1.442695, %v4184_v4  ;;  %v4181_v43 = vpop.xlane.xlu1 %4180 }
0x1652   : > { %v4172_v35 = vpop.xlane.xlu0 %4171 }
0x1653   : > { %10455 = vpow2.f32 %v4194_v44  ;;  %v4186_v50 = vsub.f32 %v4140_v46, %v4172_v35 }
0x1654   : > { %v12489_v8 = vpop.eup %10449  ;;  %10457 = vpow2.f32 %v4200_v21 }
0x1655   : > { %v12491_v51 = vpop.eup %10451  ;;  %v4198_v58 = vmul.f32 1.442695, %v4186_v50  ;;  %v10036_v40 = vpop.permute.xlu1 %10035  ;;  %v4209_v14 = vsel %vm924_vm5, %v12489_v8, 0.0 }
0x1656   : > { %4210 = vadd.xlane.f32.xlu1 %v4209_v14  ;;  %v4178_v3 = vpop.xlane.xlu0 %4177  ;;  %v4206_v25 = vsel %vm924_vm5, %v12491_v51, 0.0  ;;  %v10038_v47 = vunpack.i.h.bf16 %v10036_v40  ;;  %v10037_v30 = vunpack.i.l.bf16 %v10036_v40 }
0x1657   : > { %4207 = vadd.xlane.f32.xlu0 %v4206_v25  ;;  %10459 = vpow2.f32 %v4198_v58 }
0x1658   : > { %v9557_v50 = vpack.c.bf16 %v10038_v47, %v10037_v30 }
0x1659   : > { %v12497_v7 = vpop.eup %10453  ;;  %v10041_v35 = vpop.permute.xlu1 %10040 }
0x165a   : > { %v10031_v46 = vpop.permute.xlu0 %10030  ;;  %v4215_v23 = vsel %vm924_vm5, %v12497_v7, 0.0  ;;  %v10043_v21 = vunpack.i.h.bf16 %v10041_v35  ;;  %v10042_v44 = vunpack.i.l.bf16 %v10041_v35 }
0x165b   : > { %v10033_v17 = vunpack.i.h.bf16 %v10031_v46  ;;  %v10032_v12 = vunpack.i.l.bf16 %v10031_v46  ;;  %4216 = vadd.xlane.f32.xlu1 %v4215_v23 }
0x165c   : > { %v9561_v23 = vpack.c.bf16 %v10043_v21, %v10042_v44  ;;  %v4188_v44 = vsub.f32 %v12472_v28, %v4178_v3 }
0x165d   : > { %v12501_v5 = vpop.eup %10455  ;;  %v9553_v22 = vpack.c.bf16 %v10033_v17, %v10032_v12  ;;  %v10046_v58 = vpop.permute.xlu1 %10045 }
0x165e   : > { %v4212_v42 = vsel %vm924_vm5, %v12501_v5, 0.0  ;;  %v12505_v4 = vpop.eup %10457  ;;  %v10048_v25 = vunpack.i.h.bf16 %v10046_v58  ;;  %v10047_v46 = vunpack.i.l.bf16 %v10046_v58  ;;  %v10051_v17 = vpop.permute.xlu0 %10050 }
0x165f   : > { %4213 = vadd.xlane.f32.xlu0 %v4212_v42  ;;  %9554 = vmatprep.subr.bf16.mxu1 %v9553_v22  ;;  %v4221_v40 = vsel %vm924_vm5, %v12505_v4, 0.0  ;;  %v10053_v12 = vunpack.i.h.bf16 %v10051_v17  ;;  %v10052_v47 = vunpack.i.l.bf16 %v10051_v17  ;;  %v4189_v42 = vsub.f32 %v12462_v52, %v4181_v43 }
0x1660   : > { %9556 = vmatpush3.bf16.msra.mxu1 %v9553_v22  ;;  %v9565_v30 = vpack.c.bf16 %v10048_v25, %v10047_v46 }
0x1661   : > { %9558 = vmatprep.subr.bf16.mxu1 %v9557_v50  ;;  %v12509_v14 = vpop.eup %10459  ;;  %v9569_v22 = vpack.c.bf16 %v10053_v12, %v10052_v47  ;;  %v4204_v21 = vmul.f32 1.442695, %v4189_v42  ;;  %v10056_v3 = vpop.permute.xlu1 %10055 }
0x1662   : > { %v4218_v35 = vsel %vm924_vm5, %v12509_v14, 0.0  ;;  %v10058_v12 = vunpack.i.h.bf16 %v10056_v3  ;;  %v10057_v47 = vunpack.i.l.bf16 %v10056_v3 }
0x1663   : > { %4222 = vadd.xlane.f32.xlu0 %v4221_v40  ;;  %10461 = vpow2.f32 %v4204_v21 }
0x1664   : > { %9560 = vmatpush3.bf16.msra.mxu1 %v9557_v50  ;;  %v4202_v50 = vmul.f32 1.442695, %v4188_v44  ;;  %v9575_v44 = vpack.c.bf16 %v10058_v12, %v10057_v47 }
0x1665   : > { %9562 = vmatprep.subr.bf16.mxu1 %v9561_v23 }
0x1666   : > { %10463 = vpow2.f32 %v4202_v50 }
0x1667   : > { %4219 = vadd.xlane.f32.xlu0 %v4218_v35 }
0x1668   : > { %9564 = vmatpush3.bf16.msra.mxu1 %v9561_v23 }
0x1669   : > { %9566 = vmatprep.subr.bf16.mxu1 %v9565_v30 }
0x166c   : > { %10065 = vrot.lane.b32.xlu1 %v12381_v32, %s10708_s17  ;;  %9568 = vmatpush3.bf16.msra.mxu1 %v9565_v30 }
0x166d   : > { %9571 = vmatprep.subr.msk.bf16.mxu1 %vm11042_vm4, %v9569_v22  ;;  %v12527_v58 = vpop.eup %10461 }
0x166e   : > { %v4227_v43 = vsel %vm924_vm5, %v12527_v58, 0.0 }
0x1670   : > { %v12533_v52 = vpop.eup %10463 }
0x1671   : > { %v4224_v28 = vsel %vm924_vm5, %v12533_v52, 0.0 }
0x167d   : > { %10060 = vrot.lane.b32.xlu0 %v12371_v36, %s10708_s17  ;;  %s13935_s17 = smov 64  }
0x1681   : > { %4399 = vrot.lane.b32.xlu0 %v12345_v57, %s10709_s18 }
0x1685   : > { %4403 = vrot.lane.b32.xlu0 %v12357_v55, %s10709_s18 }
0x1689   : > { %4407 = vrot.lane.b32.xlu0 %v12367_v62, %s10709_s18 }
0x168d   : > { %4411 = vrot.lane.b32.xlu0 %v12377_v20, %s10709_s18 }
0x1690   : > { %4228 = vadd.xlane.f32.xlu1 %v4227_v43 }
0x1694   : > { %4225 = vadd.xlane.f32.xlu1 %v4224_v28 }
0x16a5   : > { %4401 = vrot.lane.b32.xlu1 %v12343_v63, %s10709_s18 }
0x16a9   : > { %4405 = vrot.lane.b32.xlu1 %v12355_v56, %s10709_s18 }
0x16ad   : > { %4409 = vrot.lane.b32.xlu1 %v12365_v33, %s10709_s18 }
0x16b1   : > { %4413 = vrot.lane.b32.xlu1 %v12375_v19, %s10709_s18  ;;  %s13936_s18 = smov 104  }
0x16e3   : > { %v4211_v40 = vpop.xlane.xlu1 %4210 }
0x16e4   : > { %10465 = vrcp.f32 %v4211_v40  ;;  %v4208_v25 = vpop.xlane.xlu0 %4207 }
0x16e5   : > { %10467 = vrcp.f32 %v4208_v25 }
0x16e8   : > { %v4217_v46 = vpop.xlane.xlu1 %4216 }
0x16e9   : > { %10469 = vrcp.f32 %v4217_v46 }
0x16ec   : > { %v4214_v23 = vpop.xlane.xlu0 %4213 }
0x16ed   : > { %10471 = vrcp.f32 %v4214_v23 }
0x16ee   : > { %v10466_v17 = vpop.eup %10465 }
0x16ef   : > { %v10468_v35 = vpop.eup %10467  ;;  %v4239_v21 = vmul.f32 %v10466_v17, %v12489_v8 }
0x16f0   : > { %v4223_v30 = vpop.xlane.xlu0 %4222  ;;  %v4238_v42 = vmul.f32 %v10468_v35, %v12491_v51 }
0x16f1   : > { %10473 = vrcp.f32 %v4223_v30 }
0x16f2   : > { %8905 = vmatprep.mubr.msk.f32.mxu1 %vm924_vm5, %v4238_v42 }
0x16f3   : > { %8906 = vmatmul.mubr.msk.f32.vlgmr.msra.gmra.mrb[72].mxu1 %vm924_vm5, %v4239_v21  ;;  %v10470_v43 = vpop.eup %10469 }
0x16f4   : > { %9574 = vmatpush3.bf16.xpose.msk.msra.mxu1 %vm11042_vm4, %v9569_v22  ;;  %v4220_v50 = vpop.xlane.xlu0 %4219  ;;  %v4241_v25 = vmul.f32 %v10470_v43, %v12497_v7  ;;  %v10066_v22 = vpop.permute.xlu1 %10065 }
0x16f5   : > { %10475 = vrcp.f32 %v4220_v50  ;;  %9577 = vmatprep.subr.msk.bf16.mxu1 %vm11042_vm4, %v9575_v44  ;;  %v10068_v35 = vunpack.i.h.bf16 %v10066_v22 }
0x16f7   : > { %v10472_v28 = vpop.eup %10471 }
0x16f8   : > { %v10061_v3 = vpop.permute.xlu0 %10060  ;;  %v4240_v51 = vmul.f32 %v10472_v28, %v12501_v5  ;;  %v10067_v5 = vunpack.i.l.bf16 %v10066_v22 }
0x16f9   : > { %v10063_v8 = vunpack.i.h.bf16 %v10061_v3  ;;  %v10062_v40 = vunpack.i.l.bf16 %v10061_v3 }
0x16fa   : > { %8908 = vmatprep.mubr.msk.f32.mxu1 %vm924_vm5, %v4240_v51  ;;  %v9587_v47 = vpack.c.bf16 %v10068_v35, %v10067_v5 }
0x16fb   : > { %v9581_v46 = vpack.c.bf16 %v10063_v8, %v10062_v40  ;;  %8909 = vmatmul.mubr.msk.f32.gmra.mrb[74].mxu1 %vm924_vm5, %v4241_v25  ;;  %v10474_v23 = vpop.eup %10473 }
0x16fc   : > { %9580 = vmatpush3.bf16.xpose.msk.msra.mxu1 %vm11042_vm4, %v9575_v44  ;;  %v4243_v7 = vmul.f32 %v10474_v23, %v12505_v4 }
0x16fd   : > { %9583 = vmatprep.subr.msk.bf16.mxu1 %vm11042_vm4, %v9581_v46 }
0x16ff   : > { %v10476_v17 = vpop.eup %10475 }
0x1700   : > { %v4242_v12 = vmul.f32 %v10476_v17, %v12509_v14  ;;  %v4400_v14 = vpop.permute.xlu0 %4399 }
0x1702   : > { %8911 = vmatprep.mubr.msk.f32.mxu1 %vm924_vm5, %v4242_v12 }
0x1703   : > { %8912 = vmatmul.mubr.msk.f32.gmra.mrb[76].mxu1 %vm924_vm5, %v4243_v7 }
0x1704   : > { %9586 = vmatpush3.bf16.xpose.msk.msra.mxu1 %vm11042_vm4, %v9581_v46  ;;  %v4404_v28 = vpop.permute.xlu0 %4403 }
0x1705   : > { %9589 = vmatprep.subr.msk.bf16.mxu1 %vm11042_vm4, %v9587_v47 }
0x1708   : > { %v4408_v51 = vpop.permute.xlu0 %4407 }
0x170c   : > { %9592 = vmatpush3.bf16.xpose.msk.msra.mxu1 %vm11042_vm4, %v9587_v47 }
0x171d   : > { %v4229_v30 = vpop.xlane.xlu1 %4228 }
0x171e   : > { %10477 = vrcp.f32 %v4229_v30 }
0x1721   : > { %v4226_v42 = vpop.xlane.xlu1 %4225 }
0x1722   : > { %10479 = vrcp.f32 %v4226_v42 }
0x1725   : > { %v4402_v44 = vpop.permute.xlu1 %4401 }
0x1728   : > { %v10478_v4 = vpop.eup %10477 }
0x1729   : > { %v4245_v43 = vmul.f32 %v10478_v4, %v12527_v58  ;;  %v4406_v3 = vpop.permute.xlu1 %4405 }
0x172c   : > { %v10480_v21 = vpop.eup %10479 }
0x172d   : > { %v4244_v50 = vmul.f32 %v10480_v21, %v12533_v52  ;;  %v4410_v8 = vpop.permute.xlu1 %4409  ;;  %v4412_v52 = vpop.permute.xlu0 %4411 }
0x172f   : > { %8914 = vmatprep.mubr.msk.f32.mxu1 %vm924_vm5, %v4244_v50 }
0x1730   : > { %8915 = vmatmul.mubr.msk.f32.gmra.mrb[78].mxu1 %vm924_vm5, %v4245_v43 }
0x1731   : > { %8933 = vmatprep.mubr.msk.f32.mxu1 %vm786_vm3, %v4400_v14  ;;  %v4414_v58 = vpop.permute.xlu1 %4413 }
0x1734   : > { %8934 = vmatmul.mubr.msk.f32.vlgmr.msra.gmra.mrb[80].mxu1 %vm786_vm3, %v4402_v44 }
0x1735   : > { %8936 = vmatprep.mubr.msk.f32.mxu1 %vm786_vm3, %v4404_v28 }
0x1738   : > { %8937 = vmatmul.mubr.msk.f32.gmra.mrb[82].mxu1 %vm786_vm3, %v4406_v3 }
0x1739   : > { %8939 = vmatprep.mubr.msk.f32.mxu1 %vm786_vm3, %v4408_v51 }
0x173c   : > { %8940 = vmatmul.mubr.msk.f32.gmra.mrb[84].mxu1 %vm786_vm3, %v4410_v8 }
0x173d   : > { %8942 = vmatprep.mubr.msk.f32.mxu1 %vm786_vm3, %v4412_v52 }
0x1740   : > { %8943 = vmatmul.mubr.msk.f32.gmra.mrb[86].mxu1 %vm786_vm3, %v4414_v58 }
0x17c6   : > { %v12583_v40 = vpop.f32.mrb[72].mxu1 }
0x17c7   : > { %v12585_v25 = vpop.f32.mrb[73].mxu1 }
0x17ce   : > { %v12587_v46 = vpop.f32.mrb[74].mxu1 }
0x17cf   : > { %13929 = vst [vmem:[#allocation19_spill] sm:$0xff] %v12587_v46  ;;  %v12589_v22 = vpop.f32.mrb[75].mxu1 }
0x17d0   : > { %13930 = vst [vmem:[#allocation20_spill] sm:$0xff] %v12589_v22 }
0x17d6   : > { %v12591_v23 = vpop.f32.mrb[76].mxu1 }
0x17d7   : > { %13931 = vst [vmem:[#allocation21_spill] sm:$0xff] %v12591_v23  ;;  %v12593_v17 = vpop.f32.mrb[77].mxu1 }
0x17d8   : > { %13932 = vst [vmem:[#allocation22_spill] sm:$0xff] %v12593_v17 }
0x1803   : > { %v12595_v35 = vpop.f32.mrb[78].mxu1 }
0x1804   : > { %13933 = vst [vmem:[#allocation23_spill] sm:$0xff] %v12595_v35  ;;  %v12597_v5 = vpop.f32.mrb[79].mxu1 }
0x1805   : > { %13934 = vst [vmem:[#allocation24_spill] sm:$0xff] %v12597_v5 }
0x1807   : > { %v8935_v12 = vpop.f32.mrb[80].mxu1 }
0x1808   : > { %v4535_v7 = vadd.f32 %v12418_v13, %v8935_v12  ;;  %v4529_v47 = vpop.f32.mrb[81].mxu1 }
0x1809   : > { %v4530_v30 = vadd.f32 %v12424_v29, %v4529_v47 }
0x180a   : > { %v4571_v42 = vsel %vm924_vm5, %v4535_v7, -inf }
0x180b   : > { %4572 = vmax.xlane.f32.xlu1 %v4571_v42  ;;  %v8938_v14 = vpop.f32.mrb[82].mxu1  ;;  %v4568_v4 = vsel %vm924_vm5, %v4530_v30, -inf }
0x180c   : > { %v4545_v21 = vadd.f32 %v12432_v59, %v8938_v14  ;;  %v4539_v44 = vpop.f32.mrb[83].mxu1  ;;  %4569 = vmax.xlane.f32.xlu0 %v4568_v4 }
0x180d   : > { %v4540_v43 = vadd.f32 %v12439_v61, %v4539_v44 }
0x180e   : > { %v4577_v50 = vsel %vm924_vm5, %v4545_v21, -inf }
0x180f   : > { %v8941_v28 = vpop.f32.mrb[84].mxu1  ;;  %v4574_v12 = vsel %vm924_vm5, %v4540_v43, -inf }
0x1810   : > { %v4555_v3 = vadd.f32 %v12445_v37, %v8941_v28  ;;  %v4549_v51 = vpop.f32.mrb[85].mxu1  ;;  %4578 = vmax.xlane.f32.xlu0 %v4577_v50 }
0x1811   : > { %v4550_v52 = vadd.f32 %v12452_v27, %v4549_v51 }
0x1812   : > { %v4583_v8 = vsel %vm924_vm5, %v4555_v3, -inf }
0x1813   : > { %4584 = vmax.xlane.f32.xlu1 %v4583_v8  ;;  %v8944_v58 = vpop.f32.mrb[86].mxu1  ;;  %v4580_v44 = vsel %vm924_vm5, %v4550_v52, -inf }
0x1814   : > { %v12611_v47 = vadd.f32 %v12459_v60, %v8944_v58  ;;  %v4559_v42 = vpop.f32.mrb[87].mxu1  ;;  %4575 = vmax.xlane.f32.xlu0 %v4574_v12 }
0x1815   : > { %v12616_v4 = vadd.f32 %v12469_v53, %v4559_v42 }
0x1816   : > { %v4589_v14 = vsel %vm924_vm5, %v12611_v47, -inf }
0x1817   : > { %4590 = vmax.xlane.f32.xlu1 %v4589_v14  ;;  %v4586_v50 = vsel %vm924_vm5, %v12616_v4, -inf }
0x1818   : > { %4581 = vmax.xlane.f32.xlu0 %v4580_v44 }
0x181c   : > { %4587 = vmax.xlane.f32.xlu0 %v4586_v50 }
0x1828   : > { %10075 = vrot.lane.b32.xlu1 %v12361_v1, %s10711_s22 }
0x182c   : > { %10080 = vrot.lane.b32.xlu1 %v12371_v36, %s10711_s22 }
0x1830   : > { %10085 = vrot.lane.b32.xlu1 %v12381_v32, %s10711_s22 }
0x1832   : > { %10070 = vrot.lane.b32.xlu0 %v12351_v49, %s10711_s22 }
0x1834   : > { %10095 = vrot.lane.b32.xlu1 %v12361_v1, %s10712_s24 }
0x1836   : > { %10090 = vrot.lane.b32.xlu0 %v12351_v49, %s10712_s24 }
0x1898   : > { %v4573_v28 = vpop.xlane.xlu1 %4572 }
0x1899   : > { %v4593_v51 = vsub.f32 %v4535_v7, %v4573_v28  ;;  %v4570_v8 = vpop.xlane.xlu0 %4569 }
0x189a   : > { %v4592_v58 = vsub.f32 %v4530_v30, %v4570_v8 }
0x189b   : > { %v4602_v12 = vmul.f32 1.442695, %v4593_v51 }
0x189c   : > { %v4600_v42 = vmul.f32 1.442695, %v4592_v58 }
0x189d   : > { %10481 = vpow2.f32 %v4602_v12  ;;  %v4579_v14 = vpop.xlane.xlu0 %4578 }
0x189e   : > { %10483 = vpow2.f32 %v4600_v42  ;;  %v4595_v44 = vsub.f32 %v4545_v21, %v4579_v14 }
0x18a0   : > { %v4606_v50 = vmul.f32 1.442695, %v4595_v44  ;;  %v4585_v31 = vpop.xlane.xlu1 %4584 }
0x18a1   : > { %v4597_v16 = vsub.f32 %v4555_v3, %v4585_v31  ;;  %v4576_v34 = vpop.xlane.xlu0 %4575 }
0x18a2   : > { %10485 = vpow2.f32 %v4606_v50  ;;  %v4594_v45 = vsub.f32 %v4540_v43, %v4576_v34 }
0x18a3   : > { %v4610_v2 = vmul.f32 1.442695, %v4597_v16 }
0x18a4   : > { %v4604_v6 = vmul.f32 1.442695, %v4594_v45  ;;  %v4591_v26 = vpop.xlane.xlu1 %4590 }
0x18a5   : > { %v4582_v48 = vpop.xlane.xlu0 %4581 }
0x18a6   : > { %10487 = vpow2.f32 %v4604_v6  ;;  %v4596_v7 = vsub.f32 %v4550_v52, %v4582_v48 }
0x18a7   : > { %v12633_v28 = vpop.eup %10481  ;;  %10489 = vpow2.f32 %v4610_v2 }
0x18a8   : > { %v12635_v30 = vpop.eup %10483  ;;  %v4608_v51 = vmul.f32 1.442695, %v4596_v7  ;;  %v10076_v8 = vpop.permute.xlu1 %10075  ;;  %v4619_v21 = vsel %vm924_vm5, %v12633_v28, 0.0 }
0x18a9   : > { %4620 = vadd.xlane.f32.xlu1 %v4619_v21  ;;  %v4588_v31 = vpop.xlane.xlu0 %4587  ;;  %v4616_v34 = vsel %vm924_vm5, %v12635_v30, 0.0  ;;  %v10078_v2 = vunpack.i.h.bf16 %v10076_v8  ;;  %v10077_v43 = vunpack.i.l.bf16 %v10076_v8 }
0x18aa   : > { %4617 = vadd.xlane.f32.xlu0 %v4616_v34  ;;  %10491 = vpow2.f32 %v4608_v51 }
0x18ab   : > { %v9597_v7 = vpack.c.bf16 %v10078_v2, %v10077_v43 }
0x18ac   : > { %v12641_v45 = vpop.eup %10485  ;;  %v10081_v48 = vpop.permute.xlu1 %10080 }
0x18ad   : > { %v10071_v6 = vpop.permute.xlu0 %10070  ;;  %v4625_v16 = vsel %vm924_vm5, %v12641_v45, 0.0  ;;  %v10083_v44 = vunpack.i.h.bf16 %v10081_v48  ;;  %v10082_v50 = vunpack.i.l.bf16 %v10081_v48 }
0x18ae   : > { %v10073_v3 = vunpack.i.h.bf16 %v10071_v6  ;;  %v10072_v52 = vunpack.i.l.bf16 %v10071_v6  ;;  %4626 = vadd.xlane.f32.xlu1 %v4625_v16 }
0x18af   : > { %v9601_v16 = vpack.c.bf16 %v10083_v44, %v10082_v50  ;;  %v4598_v50 = vsub.f32 %v12616_v4, %v4588_v31 }
0x18b0   : > { %v12645_v58 = vpop.eup %10487  ;;  %v9593_v12 = vpack.c.bf16 %v10073_v3, %v10072_v52  ;;  %v10086_v51 = vpop.permute.xlu1 %10085 }
0x18b1   : > { %v4622_v42 = vsel %vm924_vm5, %v12645_v58, 0.0  ;;  %v12649_v14 = vpop.eup %10489  ;;  %v10088_v34 = vunpack.i.h.bf16 %v10086_v51  ;;  %v10087_v6 = vunpack.i.l.bf16 %v10086_v51  ;;  %v10091_v3 = vpop.permute.xlu0 %10090 }
0x18b2   : > { %4623 = vadd.xlane.f32.xlu0 %v4622_v42  ;;  %9594 = vmatprep.subr.bf16.mxu0 %v9593_v12  ;;  %v4631_v8 = vsel %vm924_vm5, %v12649_v14, 0.0  ;;  %v10093_v52 = vunpack.i.h.bf16 %v10091_v3  ;;  %v10092_v2 = vunpack.i.l.bf16 %v10091_v3  ;;  %v4599_v42 = vsub.f32 %v12611_v47, %v4591_v26 }
0x18b3   : > { %9596 = vmatpush3.bf16.msra.mxu0 %v9593_v12  ;;  %v9605_v43 = vpack.c.bf16 %v10088_v34, %v10087_v6 }
0x18b4   : > { %9598 = vmatprep.subr.bf16.mxu0 %v9597_v7  ;;  %v12653_v21 = vpop.eup %10491  ;;  %v9609_v12 = vpack.c.bf16 %v10093_v52, %v10092_v2  ;;  %v4614_v44 = vmul.f32 1.442695, %v4599_v42  ;;  %v10096_v31 = vpop.permute.xlu1 %10095 }
0x18b5   : > { %v4628_v48 = vsel %vm924_vm5, %v12653_v21, 0.0  ;;  %v10098_v52 = vunpack.i.h.bf16 %v10096_v31  ;;  %v10097_v2 = vunpack.i.l.bf16 %v10096_v31 }
0x18b6   : > { %4632 = vadd.xlane.f32.xlu0 %v4631_v8  ;;  %10493 = vpow2.f32 %v4614_v44 }
0x18b7   : > { %9600 = vmatpush3.bf16.msra.mxu0 %v9597_v7  ;;  %v4612_v7 = vmul.f32 1.442695, %v4598_v50  ;;  %v9615_v50 = vpack.c.bf16 %v10098_v52, %v10097_v2 }
0x18b8   : > { %9602 = vmatprep.subr.bf16.mxu0 %v9601_v16 }
0x18b9   : > { %10495 = vpow2.f32 %v4612_v7 }
0x18ba   : > { %4629 = vadd.xlane.f32.xlu0 %v4628_v48 }
0x18bb   : > { %9604 = vmatpush3.bf16.msra.mxu0 %v9601_v16 }
0x18bc   : > { %9606 = vmatprep.subr.bf16.mxu0 %v9605_v43 }
0x18bf   : > { %10105 = vrot.lane.b32.xlu1 %v12381_v32, %s10712_s24  ;;  %9608 = vmatpush3.bf16.msra.mxu0 %v9605_v43 }
0x18c0   : > { %9611 = vmatprep.subr.msk.bf16.mxu0 %vm11042_vm4, %v9609_v12  ;;  %v12671_v51 = vpop.eup %10493 }
0x18c1   : > { %v4637_v26 = vsel %vm924_vm5, %v12671_v51, 0.0 }
0x18c3   : > { %v12677_v47 = vpop.eup %10495 }
0x18c4   : > { %v4634_v4 = vsel %vm924_vm5, %v12677_v47, 0.0 }
0x18d0   : > { %10100 = vrot.lane.b32.xlu0 %v12371_v36, %s10712_s24  ;;  %s13937_s24 = smov 56  }
0x18d4   : > { %4809 = vrot.lane.b32.xlu0 %v12345_v57, %s10713_s25 }
0x18d8   : > { %4813 = vrot.lane.b32.xlu0 %v12357_v55, %s10713_s25 }
0x18dc   : > { %4817 = vrot.lane.b32.xlu0 %v12367_v62, %s10713_s25 }
0x18e0   : > { %4821 = vrot.lane.b32.xlu0 %v12377_v20, %s10713_s25 }
0x18e3   : > { %4638 = vadd.xlane.f32.xlu1 %v4637_v26 }
0x18e7   : > { %4635 = vadd.xlane.f32.xlu1 %v4634_v4 }
0x18f8   : > { %4811 = vrot.lane.b32.xlu1 %v12343_v63, %s10713_s25 }
0x18fc   : > { %4815 = vrot.lane.b32.xlu1 %v12355_v56, %s10713_s25 }
0x1900   : > { %4819 = vrot.lane.b32.xlu1 %v12365_v33, %s10713_s25 }
0x1904   : > { %4823 = vrot.lane.b32.xlu1 %v12375_v19, %s10713_s25  ;;  %s13938_s25 = smov 96  }
0x1936   : > { %v4621_v8 = vpop.xlane.xlu1 %4620 }
0x1937   : > { %10497 = vrcp.f32 %v4621_v8  ;;  %v4618_v34 = vpop.xlane.xlu0 %4617 }
0x1938   : > { %10499 = vrcp.f32 %v4618_v34 }
0x193b   : > { %v4627_v6 = vpop.xlane.xlu1 %4626 }
0x193c   : > { %10501 = vrcp.f32 %v4627_v6 }
0x193f   : > { %v4624_v16 = vpop.xlane.xlu0 %4623 }
0x1940   : > { %10503 = vrcp.f32 %v4624_v16 }
0x1941   : > { %v10498_v3 = vpop.eup %10497 }
0x1942   : > { %v10500_v48 = vpop.eup %10499  ;;  %v4649_v44 = vmul.f32 %v10498_v3, %v12633_v28 }
0x1943   : > { %v4633_v43 = vpop.xlane.xlu0 %4632  ;;  %v4648_v42 = vmul.f32 %v10500_v48, %v12635_v30 }
0x1944   : > { %10505 = vrcp.f32 %v4633_v43 }
0x1945   : > { %8961 = vmatprep.mubr.msk.f32.mxu0 %vm924_vm5, %v4648_v42 }
0x1946   : > { %8962 = vmatmul.mubr.msk.f32.vlgmr.msra.gmra.mrb[64].mxu0 %vm924_vm5, %v4649_v44  ;;  %v10502_v26 = vpop.eup %10501 }
0x1947   : > { %9614 = vmatpush3.bf16.xpose.msk.msra.mxu0 %vm11042_vm4, %v9609_v12  ;;  %v4630_v7 = vpop.xlane.xlu0 %4629  ;;  %v4651_v34 = vmul.f32 %v10502_v26, %v12641_v45  ;;  %v10106_v12 = vpop.permute.xlu1 %10105 }
0x1948   : > { %10507 = vrcp.f32 %v4630_v7  ;;  %9617 = vmatprep.subr.msk.bf16.mxu0 %vm11042_vm4, %v9615_v50  ;;  %v10108_v48 = vunpack.i.h.bf16 %v10106_v12 }
0x194a   : > { %v10504_v4 = vpop.eup %10503 }
0x194b   : > { %v10101_v31 = vpop.permute.xlu0 %10100  ;;  %v4650_v30 = vmul.f32 %v10504_v4, %v12645_v58  ;;  %v10107_v58 = vunpack.i.l.bf16 %v10106_v12 }
0x194c   : > { %v10103_v28 = vunpack.i.h.bf16 %v10101_v31  ;;  %v10102_v8 = vunpack.i.l.bf16 %v10101_v31 }
0x194d   : > { %8964 = vmatprep.mubr.msk.f32.mxu0 %vm924_vm5, %v4650_v30  ;;  %v9627_v2 = vpack.c.bf16 %v10108_v48, %v10107_v58 }
0x194e   : > { %v9621_v6 = vpack.c.bf16 %v10103_v28, %v10102_v8  ;;  %8965 = vmatmul.mubr.msk.f32.gmra.mrb[66].mxu0 %vm924_vm5, %v4651_v34  ;;  %v10506_v16 = vpop.eup %10505 }
0x194f   : > { %9620 = vmatpush3.bf16.xpose.msk.msra.mxu0 %vm11042_vm4, %v9615_v50  ;;  %v4653_v45 = vmul.f32 %v10506_v16, %v12649_v14 }
0x1950   : > { %9623 = vmatprep.subr.msk.bf16.mxu0 %vm11042_vm4, %v9621_v6 }
0x1952   : > { %v10508_v3 = vpop.eup %10507 }
0x1953   : > { %v4652_v52 = vmul.f32 %v10508_v3, %v12653_v21  ;;  %v4810_v21 = vpop.permute.xlu0 %4809 }
0x1955   : > { %8967 = vmatprep.mubr.msk.f32.mxu0 %vm924_vm5, %v4652_v52 }
0x1956   : > { %8968 = vmatmul.mubr.msk.f32.gmra.mrb[68].mxu0 %vm924_vm5, %v4653_v45 }
0x1957   : > { %9626 = vmatpush3.bf16.xpose.msk.msra.mxu0 %vm11042_vm4, %v9621_v6  ;;  %v4814_v4 = vpop.permute.xlu0 %4813 }
0x1958   : > { %9629 = vmatprep.subr.msk.bf16.mxu0 %vm11042_vm4, %v9627_v2 }
0x195b   : > { %v4818_v30 = vpop.permute.xlu0 %4817 }
0x195f   : > { %9632 = vmatpush3.bf16.xpose.msk.msra.mxu0 %vm11042_vm4, %v9627_v2 }
0x1970   : > { %v4639_v43 = vpop.xlane.xlu1 %4638 }
0x1971   : > { %10509 = vrcp.f32 %v4639_v43 }
0x1974   : > { %v4636_v42 = vpop.xlane.xlu1 %4635 }
0x1975   : > { %10511 = vrcp.f32 %v4636_v42 }
0x1978   : > { %v4812_v50 = vpop.permute.xlu1 %4811 }
0x197b   : > { %v10510_v14 = vpop.eup %10509 }
0x197c   : > { %v4655_v26 = vmul.f32 %v10510_v14, %v12671_v51  ;;  %v4816_v31 = vpop.permute.xlu1 %4815 }
0x197f   : > { %v10512_v44 = vpop.eup %10511 }
0x1980   : > { %v4654_v7 = vmul.f32 %v10512_v44, %v12677_v47  ;;  %v4820_v28 = vpop.permute.xlu1 %4819  ;;  %v4822_v47 = vpop.permute.xlu0 %4821 }
0x1982   : > { %8970 = vmatprep.mubr.msk.f32.mxu0 %vm924_vm5, %v4654_v7 }
0x1983   : > { %8971 = vmatmul.mubr.msk.f32.gmra.mrb[70].mxu0 %vm924_vm5, %v4655_v26 }
0x1984   : > { %8989 = vmatprep.mubr.msk.f32.mxu0 %vm786_vm3, %v4810_v21  ;;  %v4824_v51 = vpop.permute.xlu1 %4823 }
0x1987   : > { %8990 = vmatmul.mubr.msk.f32.vlgmr.msra.gmra.mrb[72].mxu0 %vm786_vm3, %v4812_v50 }
0x1988   : > { %8992 = vmatprep.mubr.msk.f32.mxu0 %vm786_vm3, %v4814_v4 }
0x198b   : > { %8993 = vmatmul.mubr.msk.f32.gmra.mrb[74].mxu0 %vm786_vm3, %v4816_v31 }
0x198c   : > { %8995 = vmatprep.mubr.msk.f32.mxu0 %vm786_vm3, %v4818_v30 }
0x198f   : > { %8996 = vmatmul.mubr.msk.f32.gmra.mrb[76].mxu0 %vm786_vm3, %v4820_v28 }
0x1990   : > { %8998 = vmatprep.mubr.msk.f32.mxu0 %vm786_vm3, %v4822_v47 }
0x1993   : > { %8999 = vmatmul.mubr.msk.f32.gmra.mrb[78].mxu0 %vm786_vm3, %v4824_v51 }
0x1a19   : > { %v12727_v8 = vpop.f32.mrb[64].mxu0 }
0x1a1a   : > { %v12729_v34 = vpop.f32.mrb[65].mxu0 }
0x1a21   : > { %v12731_v6 = vpop.f32.mrb[66].mxu0 }
0x1a22   : > { %v12733_v12 = vpop.f32.mrb[67].mxu0 }
0x1a29   : > { %v12735_v16 = vpop.f32.mrb[68].mxu0 }
0x1a2a   : > { %v12737_v3 = vpop.f32.mrb[69].mxu0 }
0x1a56   : > { %v12739_v48 = vpop.f32.mrb[70].mxu0 }
0x1a57   : > { %v12741_v58 = vpop.f32.mrb[71].mxu0 }
0x1a5a   : > { %v8991_v52 = vpop.f32.mrb[72].mxu0 }
0x1a5b   : > { %v4945_v45 = vadd.f32 %v12418_v13, %v8991_v52  ;;  %v4939_v2 = vpop.f32.mrb[73].mxu0 }
0x1a5c   : > { %v4940_v43 = vadd.f32 %v12424_v29, %v4939_v2 }
0x1a5d   : > { %v4981_v42 = vsel %vm924_vm5, %v4945_v45, -inf }
0x1a5e   : > { %4982 = vmax.xlane.f32.xlu1 %v4981_v42  ;;  %v8994_v21 = vpop.f32.mrb[74].mxu0  ;;  %v4978_v14 = vsel %vm924_vm5, %v4940_v43, -inf }
0x1a5f   : > { %v4955_v44 = vadd.f32 %v12432_v59, %v8994_v21  ;;  %v4949_v50 = vpop.f32.mrb[75].mxu0  ;;  %4979 = vmax.xlane.f32.xlu0 %v4978_v14 }
0x1a60   : > { %v4950_v26 = vadd.f32 %v12439_v61, %v4949_v50 }
0x1a61   : > { %v4987_v7 = vsel %vm924_vm5, %v4955_v44, -inf }
0x1a62   : > { %v8997_v4 = vpop.f32.mrb[76].mxu0  ;;  %v4984_v47 = vsel %vm924_vm5, %v4950_v26, -inf }
0x1a63   : > { %v4965_v13 = vadd.f32 %v12445_v37, %v8997_v4  ;;  %v4959_v31 = vpop.f32.mrb[77].mxu0  ;;  %4988 = vmax.xlane.f32.xlu0 %v4987_v7 }
0x1a64   : > { %v4960_v30 = vadd.f32 %v12452_v27, %v4959_v31 }
0x1a65   : > { %v4993_v29 = vsel %vm924_vm5, %v4965_v13, -inf }
0x1a66   : > { %4994 = vmax.xlane.f32.xlu1 %v4993_v29  ;;  %v9000_v28 = vpop.f32.mrb[78].mxu0  ;;  %v4990_v52 = vsel %vm924_vm5, %v4960_v30, -inf }
0x1a67   : > { %v12755_v59 = vadd.f32 %v12459_v60, %v9000_v28  ;;  %v4969_v51 = vpop.f32.mrb[79].mxu0  ;;  %4985 = vmax.xlane.f32.xlu0 %v4984_v47 }
0x1a68   : > { %v12760_v37 = vadd.f32 %v12469_v53, %v4969_v51 }
0x1a69   : > { %v4999_v61 = vsel %vm924_vm5, %v12755_v59, -inf }
0x1a6a   : > { %5000 = vmax.xlane.f32.xlu1 %v4999_v61  ;;  %v4996_v27 = vsel %vm924_vm5, %v12760_v37, -inf }
0x1a6b   : > { %4991 = vmax.xlane.f32.xlu0 %v4990_v52 }
0x1a6f   : > { %4997 = vmax.xlane.f32.xlu0 %v4996_v27 }
0x1a7b   : > { %10115 = vrot.lane.b32.xlu1 %v12361_v1, %s10714_s26 }
0x1a7f   : > { %10120 = vrot.lane.b32.xlu1 %v12371_v36, %s10714_s26 }
0x1a83   : > { %10125 = vrot.lane.b32.xlu1 %v12381_v32, %s10714_s26 }
0x1a85   : > { %10110 = vrot.lane.b32.xlu0 %v12351_v49, %s10714_s26 }
0x1a87   : > { %10135 = vrot.lane.b32.xlu1 %v12361_v1, %s13935_s17 }
0x1a89   : > { %10130 = vrot.lane.b32.xlu0 %v12351_v49, %s13935_s17 }
0x1aeb   : > { %v4983_v60 = vpop.xlane.xlu1 %4982 }
0x1aec   : > { %v5003_v53 = vsub.f32 %v4945_v45, %v4983_v60  ;;  %v4980_v2 = vpop.xlane.xlu0 %4979 }
0x1aed   : > { %v5002_v42 = vsub.f32 %v4940_v43, %v4980_v2 }
0x1aee   : > { %v5012_v21 = vmul.f32 1.442695, %v5003_v53 }
0x1aef   : > { %v5010_v14 = vmul.f32 1.442695, %v5002_v42 }
0x1af0   : > { %10513 = vpow2.f32 %v5012_v21  ;;  %v4989_v50 = vpop.xlane.xlu0 %4988 }
0x1af1   : > { %10515 = vpow2.f32 %v5010_v14  ;;  %v5005_v7 = vsub.f32 %v4955_v44, %v4989_v50 }
0x1af3   : > { %v5016_v4 = vmul.f32 1.442695, %v5005_v7  ;;  %v4995_v31 = vpop.xlane.xlu1 %4994 }
0x1af4   : > { %v5007_v29 = vsub.f32 %v4965_v13, %v4995_v31  ;;  %v4986_v28 = vpop.xlane.xlu0 %4985 }
0x1af5   : > { %10517 = vpow2.f32 %v5016_v4  ;;  %v5004_v47 = vsub.f32 %v4950_v26, %v4986_v28 }
0x1af6   : > { %v5020_v51 = vmul.f32 1.442695, %v5007_v29 }
0x1af7   : > { %v5014_v61 = vmul.f32 1.442695, %v5004_v47  ;;  %v5001_v52 = vpop.xlane.xlu1 %5000 }
0x1af8   : > { %v4992_v27 = vpop.xlane.xlu0 %4991 }
0x1af9   : > { %10519 = vpow2.f32 %v5014_v61  ;;  %v5006_v45 = vsub.f32 %v4960_v30, %v4992_v27 }
0x1afa   : > { %v12777_v60 = vpop.eup %10513  ;;  %10521 = vpow2.f32 %v5020_v51 }
0x1afb   : > { %v12779_v43 = vpop.eup %10515  ;;  %v5018_v53 = vmul.f32 1.442695, %v5006_v45  ;;  %v10116_v2 = vpop.permute.xlu1 %10115  ;;  %v5029_v44 = vsel %vm924_vm5, %v12777_v60, 0.0 }
0x1afc   : > { %5030 = vadd.xlane.f32.xlu1 %v5029_v44  ;;  %v4998_v13 = vpop.xlane.xlu0 %4997  ;;  %v5026_v26 = vsel %vm924_vm5, %v12779_v43, 0.0  ;;  %v10118_v50 = vunpack.i.h.bf16 %v10116_v2  ;;  %v10117_v7 = vunpack.i.l.bf16 %v10116_v2 }
0x1afd   : > { %5027 = vadd.xlane.f32.xlu0 %v5026_v26  ;;  %10523 = vpow2.f32 %v5018_v53 }
0x1afe   : > { %v9637_v45 = vpack.c.bf16 %v10118_v50, %v10117_v7 }
0x1aff   : > { %v12785_v42 = vpop.eup %10517  ;;  %v10121_v30 = vpop.permute.xlu1 %10120 }
0x1b00   : > { %v10111_v21 = vpop.permute.xlu0 %10110  ;;  %v5035_v14 = vsel %vm924_vm5, %v12785_v42, 0.0  ;;  %v10123_v61 = vunpack.i.h.bf16 %v10121_v30  ;;  %v10122_v27 = vunpack.i.l.bf16 %v10121_v30 }
0x1b01   : > { %v10113_v4 = vunpack.i.h.bf16 %v10111_v21  ;;  %v10112_v31 = vunpack.i.l.bf16 %v10111_v21  ;;  %5036 = vadd.xlane.f32.xlu1 %v5035_v14 }
0x1b02   : > { %v9641_v14 = vpack.c.bf16 %v10123_v61, %v10122_v27  ;;  %v5008_v27 = vsub.f32 %v12760_v37, %v4998_v13 }
0x1b03   : > { %v12789_v29 = vpop.eup %10519  ;;  %v9633_v28 = vpack.c.bf16 %v10113_v4, %v10112_v31  ;;  %v10126_v53 = vpop.permute.xlu1 %10125 }
0x1b04   : > { %v5032_v47 = vsel %vm924_vm5, %v12789_v29, 0.0  ;;  %v12793_v51 = vpop.eup %10521  ;;  %v10128_v26 = vunpack.i.h.bf16 %v10126_v53  ;;  %v10127_v21 = vunpack.i.l.bf16 %v10126_v53  ;;  %v10131_v4 = vpop.permute.xlu0 %10130 }
0x1b05   : > { %5033 = vadd.xlane.f32.xlu0 %v5032_v47  ;;  %9634 = vmatprep.subr.bf16.mxu1 %v9633_v28  ;;  %v5041_v2 = vsel %vm924_vm5, %v12793_v51, 0.0  ;;  %v10133_v31 = vunpack.i.h.bf16 %v10131_v4  ;;  %v10132_v50 = vunpack.i.l.bf16 %v10131_v4  ;;  %v5009_v47 = vsub.f32 %v12755_v59, %v5001_v52 }
0x1b06   : > { %9636 = vmatpush3.bf16.msra.mxu1 %v9633_v28  ;;  %v9645_v7 = vpack.c.bf16 %v10128_v26, %v10127_v21 }
0x1b07   : > { %9638 = vmatprep.subr.bf16.mxu1 %v9637_v45  ;;  %v12797_v44 = vpop.eup %10523  ;;  %v9649_v28 = vpack.c.bf16 %v10133_v31, %v10132_v50  ;;  %v5024_v61 = vmul.f32 1.442695, %v5009_v47  ;;  %v10136_v13 = vpop.permute.xlu1 %10135 }
0x1b08   : > { %v5038_v30 = vsel %vm924_vm5, %v12797_v44, 0.0  ;;  %v10138_v31 = vunpack.i.h.bf16 %v10136_v13  ;;  %v10137_v50 = vunpack.i.l.bf16 %v10136_v13 }
0x1b09   : > { %5042 = vadd.xlane.f32.xlu0 %v5041_v2  ;;  %10525 = vpow2.f32 %v5024_v61 }
0x1b0a   : > { %9640 = vmatpush3.bf16.msra.mxu1 %v9637_v45  ;;  %v5022_v45 = vmul.f32 1.442695, %v5008_v27  ;;  %v9655_v27 = vpack.c.bf16 %v10138_v31, %v10137_v50 }
0x1b0b   : > { %9642 = vmatprep.subr.bf16.mxu1 %v9641_v14 }
0x1b0c   : > { %10527 = vpow2.f32 %v5022_v45 }
0x1b0d   : > { %5039 = vadd.xlane.f32.xlu0 %v5038_v30 }
0x1b0e   : > { %9644 = vmatpush3.bf16.msra.mxu1 %v9641_v14 }
0x1b0f   : > { %9646 = vmatprep.subr.bf16.mxu1 %v9645_v7 }
0x1b12   : > { %10145 = vrot.lane.b32.xlu1 %v12381_v32, %s13935_s17  ;;  %9648 = vmatpush3.bf16.msra.mxu1 %v9645_v7 }
0x1b13   : > { %9651 = vmatprep.subr.msk.bf16.mxu1 %vm11042_vm4, %v9649_v28  ;;  %v12815_v53 = vpop.eup %10525 }
0x1b14   : > { %v5047_v59 = vsel %vm924_vm5, %v12815_v53, 0.0 }
0x1b16   : > { %v12821_v37 = vpop.eup %10527 }
0x1b17   : > { %v5044_v52 = vsel %vm924_vm5, %v12821_v37, 0.0 }
0x1b23   : > { %10140 = vrot.lane.b32.xlu0 %v12371_v36, %s13935_s17 }
0x1b27   : > { %5219 = vrot.lane.b32.xlu0 %v12345_v57, %s13936_s18 }
0x1b2b   : > { %5223 = vrot.lane.b32.xlu0 %v12357_v55, %s13936_s18 }
0x1b2f   : > { %5227 = vrot.lane.b32.xlu0 %v12367_v62, %s13936_s18 }
0x1b33   : > { %5231 = vrot.lane.b32.xlu0 %v12377_v20, %s13936_s18 }
0x1b36   : > { %5048 = vadd.xlane.f32.xlu1 %v5047_v59 }
0x1b3a   : > { %5045 = vadd.xlane.f32.xlu1 %v5044_v52 }
0x1b4b   : > { %5221 = vrot.lane.b32.xlu1 %v12343_v63, %s13936_s18 }
0x1b4f   : > { %5225 = vrot.lane.b32.xlu1 %v12355_v56, %s13936_s18 }
0x1b53   : > { %5229 = vrot.lane.b32.xlu1 %v12365_v33, %s13936_s18 }
0x1b57   : > { %5233 = vrot.lane.b32.xlu1 %v12375_v19, %s13936_s18 }
0x1b89   : > { %v5031_v2 = vpop.xlane.xlu1 %5030 }
0x1b8a   : > { %10529 = vrcp.f32 %v5031_v2  ;;  %v5028_v26 = vpop.xlane.xlu0 %5027 }
0x1b8b   : > { %10531 = vrcp.f32 %v5028_v26 }
0x1b8e   : > { %v5037_v21 = vpop.xlane.xlu1 %5036 }
0x1b8f   : > { %10533 = vrcp.f32 %v5037_v21 }
0x1b92   : > { %v5034_v14 = vpop.xlane.xlu0 %5033 }
0x1b93   : > { %10535 = vrcp.f32 %v5034_v14 }
0x1b94   : > { %v10530_v4 = vpop.eup %10529 }
0x1b95   : > { %v10532_v30 = vpop.eup %10531  ;;  %v5059_v61 = vmul.f32 %v10530_v4, %v12777_v60 }
0x1b96   : > { %v5043_v7 = vpop.xlane.xlu0 %5042  ;;  %v5058_v47 = vmul.f32 %v10532_v30, %v12779_v43 }
0x1b97   : > { %10537 = vrcp.f32 %v5043_v7 }
0x1b98   : > { %9017 = vmatprep.mubr.msk.f32.mxu1 %vm924_vm5, %v5058_v47 }
0x1b99   : > { %9018 = vmatmul.mubr.msk.f32.vlgmr.msra.gmra.mrb[88].mxu1 %vm924_vm5, %v5059_v61  ;;  %v10534_v59 = vpop.eup %10533 }
0x1b9a   : > { %9654 = vmatpush3.bf16.xpose.msk.msra.mxu1 %vm11042_vm4, %v9649_v28  ;;  %v5040_v45 = vpop.xlane.xlu0 %5039  ;;  %v5061_v26 = vmul.f32 %v10534_v59, %v12785_v42  ;;  %v10146_v28 = vpop.permute.xlu1 %10145 }
0x1b9b   : > { %10539 = vrcp.f32 %v5040_v45  ;;  %9657 = vmatprep.subr.msk.bf16.mxu1 %vm11042_vm4, %v9655_v27  ;;  %v10148_v30 = vunpack.i.h.bf16 %v10146_v28 }
0x1b9d   : > { %v10536_v52 = vpop.eup %10535 }
0x1b9e   : > { %v10141_v13 = vpop.permute.xlu0 %10140  ;;  %v5060_v43 = vmul.f32 %v10536_v52, %v12789_v29  ;;  %v10147_v29 = vunpack.i.l.bf16 %v10146_v28 }
0x1b9f   : > { %v10143_v60 = vunpack.i.h.bf16 %v10141_v13  ;;  %v10142_v2 = vunpack.i.l.bf16 %v10141_v13 }
0x1ba0   : > { %9020 = vmatprep.mubr.msk.f32.mxu1 %vm924_vm5, %v5060_v43  ;;  %v9667_v50 = vpack.c.bf16 %v10148_v30, %v10147_v29 }
0x1ba1   : > { %v9661_v21 = vpack.c.bf16 %v10143_v60, %v10142_v2  ;;  %9021 = vmatmul.mubr.msk.f32.gmra.mrb[90].mxu1 %vm924_vm5, %v5061_v26  ;;  %v10538_v14 = vpop.eup %10537 }
0x1ba2   : > { %9660 = vmatpush3.bf16.xpose.msk.msra.mxu1 %vm11042_vm4, %v9655_v27  ;;  %v5063_v42 = vmul.f32 %v10538_v14, %v12793_v51 }
0x1ba3   : > { %9663 = vmatprep.subr.msk.bf16.mxu1 %vm11042_vm4, %v9661_v21 }
0x1ba5   : > { %v10540_v4 = vpop.eup %10539 }
0x1ba6   : > { %v5062_v31 = vmul.f32 %v10540_v4, %v12797_v44  ;;  %v5220_v44 = vpop.permute.xlu0 %5219 }
0x1ba8   : > { %9023 = vmatprep.mubr.msk.f32.mxu1 %vm924_vm5, %v5062_v31 }
0x1ba9   : > { %9024 = vmatmul.mubr.msk.f32.gmra.mrb[92].mxu1 %vm924_vm5, %v5063_v42  ;;  %v12890_v42 = vld [vmem:[%s13836_s1 + $0x8] sm:$0xff] }
0x1baa   : > { %9666 = vmatpush3.bf16.xpose.msk.msra.mxu1 %vm11042_vm4, %v9661_v21  ;;  %v5224_v52 = vpop.permute.xlu0 %5223 }
0x1bab   : > { %9669 = vmatprep.subr.msk.bf16.mxu1 %vm11042_vm4, %v9667_v50 }
0x1bae   : > { %v5228_v43 = vpop.permute.xlu0 %5227 }
0x1bb2   : > { %9672 = vmatpush3.bf16.xpose.msk.msra.mxu1 %vm11042_vm4, %v9667_v50 }
0x1bc3   : > { %v5049_v7 = vpop.xlane.xlu1 %5048 }
0x1bc4   : > { %10541 = vrcp.f32 %v5049_v7 }
0x1bc7   : > { %v5046_v47 = vpop.xlane.xlu1 %5045 }
0x1bc8   : > { %10543 = vrcp.f32 %v5046_v47  ;;  %v12896_v47 = vld [vmem:[%s13836_s1] sm:$0xff] }
0x1bcb   : > { %v5222_v27 = vpop.permute.xlu1 %5221 }
0x1bce   : > { %v10542_v51 = vpop.eup %10541 }
0x1bcf   : > { %v5065_v59 = vmul.f32 %v10542_v51, %v12815_v53  ;;  %v5226_v13 = vpop.permute.xlu1 %5225 }
0x1bd2   : > { %v10544_v61 = vpop.eup %10543 }
0x1bd3   : > { %v5064_v45 = vmul.f32 %v10544_v61, %v12821_v37  ;;  %v5230_v60 = vpop.permute.xlu1 %5229  ;;  %v5232_v37 = vpop.permute.xlu0 %5231 }
0x1bd5   : > { %9026 = vmatprep.mubr.msk.f32.mxu1 %vm924_vm5, %v5064_v45  ;;  %v12904_v45 = vld [vmem:[%s13836_s1 + $0x18] sm:$0xff] }
0x1bd6   : > { %9027 = vmatmul.mubr.msk.f32.gmra.mrb[94].mxu1 %vm924_vm5, %v5065_v59 }
0x1bd7   : > { %9045 = vmatprep.mubr.msk.f32.mxu1 %vm786_vm3, %v5220_v44  ;;  %v5234_v53 = vpop.permute.xlu1 %5233 }
0x1bda   : > { %9046 = vmatmul.mubr.msk.f32.vlgmr.msra.gmra.mrb[96].mxu1 %vm786_vm3, %v5222_v27 }
0x1bdb   : > { %9048 = vmatprep.mubr.msk.f32.mxu1 %vm786_vm3, %v5224_v52 }
0x1bde   : > { %9049 = vmatmul.mubr.msk.f32.gmra.mrb[98].mxu1 %vm786_vm3, %v5226_v13 }
0x1bdf   : > { %9051 = vmatprep.mubr.msk.f32.mxu1 %vm786_vm3, %v5228_v43  ;;  %v12911_v43 = vld [vmem:[%s13836_s1 + $0x10] sm:$0xff] }
0x1be2   : > { %9052 = vmatmul.mubr.msk.f32.gmra.mrb[100].mxu1 %vm786_vm3, %v5230_v60 }
0x1be3   : > { %9054 = vmatprep.mubr.msk.f32.mxu1 %vm786_vm3, %v5232_v37 }
0x1be6   : > { %9055 = vmatmul.mubr.msk.f32.gmra.mrb[102].mxu1 %vm786_vm3, %v5234_v53  ;;  %v12917_v53 = vld [vmem:[%s13836_s1 + $0x28] sm:$0xff] }
0x1c6c   : > { %v12871_v2 = vpop.f32.mrb[88].mxu1 }
0x1c6d   : > { %v12873_v26 = vpop.f32.mrb[89].mxu1 }
0x1c74   : > { %v12875_v21 = vpop.f32.mrb[90].mxu1 }
0x1c75   : > { %v12877_v28 = vpop.f32.mrb[91].mxu1 }
0x1c7c   : > { %v12879_v14 = vpop.f32.mrb[92].mxu1 }
0x1c7d   : > { %v12881_v4 = vpop.f32.mrb[93].mxu1 }
0x1ca9   : > { %v12883_v30 = vpop.f32.mrb[94].mxu1 }
0x1caa   : > { %v12885_v29 = vpop.f32.mrb[95].mxu1 }
0x1cad   : > { %v9047_v31 = vpop.f32.mrb[96].mxu1 }
0x1cae   : > { %v5355_v50 = vadd.f32 %v12890_v42, %v9047_v31  ;;  %v5349_v7 = vpop.f32.mrb[97].mxu1 }
0x1caf   : > { %v5350_v44 = vadd.f32 %v12896_v47, %v5349_v7 }
0x1cb0   : > { %v5391_v51 = vsel %vm924_vm5, %v5355_v50, -inf }
0x1cb1   : > { %5392 = vmax.xlane.f32.xlu1 %v5391_v51  ;;  %v9050_v61 = vpop.f32.mrb[98].mxu1  ;;  %v5388_v27 = vsel %vm924_vm5, %v5350_v44, -inf }
0x1cb2   : > { %v5365_v59 = vadd.f32 %v12904_v45, %v9050_v61  ;;  %v5359_v52 = vpop.f32.mrb[99].mxu1  ;;  %5389 = vmax.xlane.f32.xlu0 %v5388_v27  ;;  %v12924_v61 = vld [vmem:[%s13836_s1 + $0x20] sm:$0xff] }
0x1cb3   : > { %v5360_v60 = vadd.f32 %v12911_v43, %v5359_v52 }
0x1cb4   : > { %v5397_v13 = vsel %vm924_vm5, %v5365_v59, -inf }
0x1cb5   : > { %v9053_v37 = vpop.f32.mrb[100].mxu1  ;;  %v5394_v18 = vsel %vm924_vm5, %v5360_v60, -inf }
0x1cb6   : > { %v5375_v31 = vadd.f32 %v12917_v53, %v9053_v37  ;;  %v5369_v7 = vpop.f32.mrb[101].mxu1  ;;  %5398 = vmax.xlane.f32.xlu0 %v5397_v13 }
0x1cb7   : > { %v5370_v27 = vadd.f32 %v12924_v61, %v5369_v7  ;;  %v12941_v7 = vld [vmem:[%s13836_s1 + $0x30] sm:$0xff] }
0x1cb8   : > { %v5403_v51 = vsel %vm924_vm5, %v5375_v31, -inf }
0x1cb9   : > { %5404 = vmax.xlane.f32.xlu1 %v5403_v51  ;;  %v9056_v52 = vpop.f32.mrb[102].mxu1  ;;  %v5400_v41 = vsel %vm924_vm5, %v5370_v27, -inf }
0x1cba   : > { %v12934_v13 = vadd.f32 %v12931_v38, %v9056_v52  ;;  %v5379_v37 = vpop.f32.mrb[103].mxu1  ;;  %5395 = vmax.xlane.f32.xlu0 %v5394_v18 }
0x1cbb   : > { %v12944_v51 = vadd.f32 %v12941_v7, %v5379_v37 }
0x1cbc   : > { %v5409_v39 = vsel %vm924_vm5, %v12934_v13, -inf }
0x1cbd   : > { %5410 = vmax.xlane.f32.xlu1 %v5409_v39  ;;  %v5406_v52 = vsel %vm924_vm5, %v12944_v51, -inf }
0x1cbe   : > { %5401 = vmax.xlane.f32.xlu0 %v5400_v41 }
0x1cc2   : > { %5407 = vmax.xlane.f32.xlu0 %v5406_v52 }
0x1cce   : > { %10155 = vrot.lane.b32.xlu1 %v12361_v1, %s10717_s29 }
0x1cd2   : > { %10160 = vrot.lane.b32.xlu1 %v12371_v36, %s10717_s29 }
0x1cd6   : > { %10165 = vrot.lane.b32.xlu1 %v12381_v32, %s10717_s29 }
0x1cd8   : > { %10150 = vrot.lane.b32.xlu0 %v12351_v49, %s10717_s29 }
0x1cda   : > { %10175 = vrot.lane.b32.xlu1 %v12361_v1, %s13937_s24 }
0x1cdc   : > { %10170 = vrot.lane.b32.xlu0 %v12351_v49, %s13937_s24 }
0x1d3e   : > { %v5393_v18 = vpop.xlane.xlu1 %5392 }
0x1d3f   : > { %v5413_v41 = vsub.f32 %v5355_v50, %v5393_v18  ;;  %v5390_v39 = vpop.xlane.xlu0 %5389 }
0x1d40   : > { %v5412_v37 = vsub.f32 %v5350_v44, %v5390_v39 }
0x1d41   : > { %v5422_v52 = vmul.f32 1.442695, %v5413_v41 }
0x1d42   : > { %v5420_v10 = vmul.f32 1.442695, %v5412_v37 }
0x1d43   : > { %10545 = vpow2.f32 %v5422_v52  ;;  %v5399_v15 = vpop.xlane.xlu0 %5398 }
0x1d44   : > { %10547 = vpow2.f32 %v5420_v10  ;;  %v5415_v9 = vsub.f32 %v5365_v59, %v5399_v15 }
0x1d46   : > { %v5426_v54 = vmul.f32 1.442695, %v5415_v9  ;;  %v5405_v24 = vpop.xlane.xlu1 %5404 }
0x1d47   : > { %v5417_v11 = vsub.f32 %v5375_v31, %v5405_v24  ;;  %v5396_v35 = vpop.xlane.xlu0 %5395 }
0x1d48   : > { %10549 = vpow2.f32 %v5426_v54  ;;  %v5414_v23 = vsub.f32 %v5360_v60, %v5396_v35 }
0x1d49   : > { %v5430_v5 = vmul.f32 1.442695, %v5417_v11 }
0x1d4a   : > { %v5424_v17 = vmul.f32 1.442695, %v5414_v23  ;;  %v5411_v46 = vpop.xlane.xlu1 %5410 }
0x1d4b   : > { %v5402_v22 = vpop.xlane.xlu0 %5401 }
0x1d4c   : > { %10551 = vpow2.f32 %v5424_v17  ;;  %v5416_v50 = vsub.f32 %v5370_v27, %v5402_v22 }
0x1d4d   : > { %v12961_v18 = vpop.eup %10545  ;;  %10553 = vpow2.f32 %v5430_v5 }
0x1d4e   : > { %v12963_v44 = vpop.eup %10547  ;;  %v5428_v41 = vmul.f32 1.442695, %v5416_v50  ;;  %v10156_v10 = vpop.permute.xlu1 %10155  ;;  %v5439_v9 = vsel %vm924_vm5, %v12961_v18, 0.0 }
0x1d4f   : > { %5440 = vadd.xlane.f32.xlu1 %v5439_v9  ;;  %v5408_v24 = vpop.xlane.xlu0 %5407  ;;  %v5436_v11 = vsel %vm924_vm5, %v12963_v44, 0.0  ;;  %v10158_v17 = vunpack.i.h.bf16 %v10156_v10  ;;  %v10157_v35 = vunpack.i.l.bf16 %v10156_v10 }
0x1d50   : > { %5437 = vadd.xlane.f32.xlu0 %v5436_v11  ;;  %10555 = vpow2.f32 %v5428_v41 }
0x1d51   : > { %v9677_v50 = vpack.c.bf16 %v10158_v17, %v10157_v35 }
0x1d52   : > { %v12969_v54 = vpop.eup %10549  ;;  %v10161_v15 = vpop.permute.xlu1 %10160 }
0x1d53   : > { %v10151_v22 = vpop.permute.xlu0 %10150  ;;  %v5445_v23 = vsel %vm924_vm5, %v12969_v54, 0.0  ;;  %v10163_v37 = vunpack.i.h.bf16 %v10161_v15  ;;  %v10162_v52 = vunpack.i.l.bf16 %v10161_v15 }
0x1d54   : > { %v10153_v5 = vunpack.i.h.bf16 %v10151_v22  ;;  %v10152_v59 = vunpack.i.l.bf16 %v10151_v22  ;;  %5446 = vadd.xlane.f32.xlu1 %v5445_v23 }
0x1d55   : > { %v9681_v23 = vpack.c.bf16 %v10163_v37, %v10162_v52  ;;  %v5418_v52 = vsub.f32 %v12944_v51, %v5408_v24 }
0x1d56   : > { %v12973_v60 = vpop.eup %10551  ;;  %v9673_v31 = vpack.c.bf16 %v10153_v5, %v10152_v59  ;;  %v10166_v41 = vpop.permute.xlu1 %10165 }
0x1d57   : > { %v5442_v27 = vsel %vm924_vm5, %v12973_v60, 0.0  ;;  %v12977_v39 = vpop.eup %10553  ;;  %v10168_v11 = vunpack.i.h.bf16 %v10166_v41  ;;  %v10167_v22 = vunpack.i.l.bf16 %v10166_v41  ;;  %v10171_v5 = vpop.permute.xlu0 %10170 }
0x1d58   : > { %5443 = vadd.xlane.f32.xlu0 %v5442_v27  ;;  %9674 = vmatprep.subr.bf16.mxu0 %v9673_v31  ;;  %v5451_v10 = vsel %vm924_vm5, %v12977_v39, 0.0  ;;  %v10173_v59 = vunpack.i.h.bf16 %v10171_v5  ;;  %v10172_v17 = vunpack.i.l.bf16 %v10171_v5  ;;  %v5419_v27 = vsub.f32 %v12934_v13, %v5411_v46 }
0x1d59   : > { %9676 = vmatpush3.bf16.msra.mxu0 %v9673_v31  ;;  %v9685_v35 = vpack.c.bf16 %v10168_v11, %v10167_v22 }
0x1d5a   : > { %9678 = vmatprep.subr.bf16.mxu0 %v9677_v50  ;;  %v12981_v9 = vpop.eup %10555  ;;  %v9689_v31 = vpack.c.bf16 %v10173_v59, %v10172_v17  ;;  %v5434_v37 = vmul.f32 1.442695, %v5419_v27 }
0x1d5b   : > { %v5448_v15 = vsel %vm924_vm5, %v12981_v9, 0.0 }
0x1d5c   : > { %5452 = vadd.xlane.f32.xlu0 %v5451_v10  ;;  %10557 = vpow2.f32 %v5434_v37 }
0x1d5d   : > { %9680 = vmatpush3.bf16.msra.mxu0 %v9677_v50  ;;  %v5432_v50 = vmul.f32 1.442695, %v5418_v52 }
0x1d5e   : > { %9682 = vmatprep.subr.bf16.mxu0 %v9681_v23 }
0x1d5f   : > { %10559 = vpow2.f32 %v5432_v50 }
0x1d60   : > { %5449 = vadd.xlane.f32.xlu0 %v5448_v15 }
0x1d61   : > { %9684 = vmatpush3.bf16.msra.mxu0 %v9681_v23 }
0x1d62   : > { %9686 = vmatprep.subr.bf16.mxu0 %v9685_v35 }
0x1d65   : > { %10185 = vrot.lane.b32.xlu1 %v12381_v32, %s13937_s24  ;;  %9688 = vmatpush3.bf16.msra.mxu0 %v9685_v35 }
0x1d66   : > { %9691 = vmatprep.subr.msk.bf16.mxu0 %vm11042_vm4, %v9689_v31 }
0x1d69   : > { %5631 = vrot.lane.b32.xlu1 %v12343_v63, %s13938_s25  ;;  %v13003_v63 = vpop.eup %10557 }
0x1d6a   : > { %v13007_v46 = vpop.eup %10559 }
0x1d76   : > { %10180 = vrot.lane.b32.xlu0 %v12371_v36, %s13937_s24 }
0x1d7a   : > { %5629 = vrot.lane.b32.xlu0 %v12345_v57, %s13938_s25  ;;  %v5457_v57 = vsel %vm924_vm5, %v13003_v63, 0.0 }
0x1d7e   : > { %5633 = vrot.lane.b32.xlu0 %v12357_v55, %s13938_s25  ;;  %v5454_v55 = vsel %vm924_vm5, %v13007_v46, 0.0 }
0x1d82   : > { %5637 = vrot.lane.b32.xlu0 %v12367_v62, %s13938_s25  ;;  %v10176_v62 = vpop.permute.xlu1 %10175 }
0x1d83   : > { %v10178_v11 = vunpack.i.h.bf16 %v10176_v62  ;;  %v10177_v22 = vunpack.i.l.bf16 %v10176_v62 }
0x1d86   : > { %5641 = vrot.lane.b32.xlu0 %v12377_v20, %s13938_s25 }
0x1d8d   : > { %5458 = vadd.xlane.f32.xlu1 %v5457_v57 }
0x1d91   : > { %5455 = vadd.xlane.f32.xlu1 %v5454_v55 }
0x1da2   : > { %5635 = vrot.lane.b32.xlu1 %v12355_v56, %s13938_s25 }
0x1da6   : > { %5639 = vrot.lane.b32.xlu1 %v12365_v33, %s13938_s25 }
0x1daa   : > { %5643 = vrot.lane.b32.xlu1 %v12375_v19, %s13938_s25  ;;  %v9695_v19 = vpack.c.bf16 %v10178_v11, %v10177_v22 }
0x1ddc   : > { %v5441_v20 = vpop.xlane.xlu1 %5440 }
0x1ddd   : > { %10561 = vrcp.f32 %v5441_v20  ;;  %v5438_v13 = vpop.xlane.xlu0 %5437 }
0x1dde   : > { %10563 = vrcp.f32 %v5438_v13 }
0x1de1   : > { %v5447_v51 = vpop.xlane.xlu1 %5446 }
0x1de2   : > { %10565 = vrcp.f32 %v5447_v51 }
0x1de5   : > { %v5444_v24 = vpop.xlane.xlu0 %5443 }
0x1de6   : > { %10567 = vrcp.f32 %v5444_v24 }
0x1de7   : > { %v10562_v41 = vpop.eup %10561 }
0x1de8   : > { %v10564_v10 = vpop.eup %10563  ;;  %v5469_v33 = vmul.f32 %v10562_v41, %v12961_v18 }
0x1de9   : > { %v5453_v56 = vpop.xlane.xlu0 %5452  ;;  %v5468_v23 = vmul.f32 %v10564_v10, %v12963_v44 }
0x1dea   : > { %10569 = vrcp.f32 %v5453_v56 }
0x1deb   : > { %9073 = vmatprep.mubr.msk.f32.mxu0 %vm924_vm5, %v5468_v23 }
0x1dec   : > { %9074 = vmatmul.mubr.msk.f32.vlgmr.msra.gmra.mrb[80].mxu0 %vm924_vm5, %v5469_v33  ;;  %v10566_v15 = vpop.eup %10565 }
0x1ded   : > { %9694 = vmatpush3.bf16.xpose.msk.msra.mxu0 %vm11042_vm4, %v9689_v31  ;;  %v5450_v5 = vpop.xlane.xlu0 %5449  ;;  %v5471_v27 = vmul.f32 %v10566_v15, %v12969_v54  ;;  %v10186_v31 = vpop.permute.xlu1 %10185 }
0x1dee   : > { %10571 = vrcp.f32 %v5450_v5  ;;  %9697 = vmatprep.subr.msk.bf16.mxu0 %vm11042_vm4, %v9695_v19  ;;  %v10188_v57 = vunpack.i.h.bf16 %v10186_v31 }
0x1df0   : > { %v10568_v59 = vpop.eup %10567 }
0x1df1   : > { %v10181_v17 = vpop.permute.xlu0 %10180  ;;  %v5470_v44 = vmul.f32 %v10568_v59, %v12973_v60  ;;  %v10187_v60 = vunpack.i.l.bf16 %v10186_v31  ;;  %v5632_v20 = vpop.permute.xlu1 %5631 }
0x1df2   : > { %v10183_v18 = vunpack.i.h.bf16 %v10181_v17  ;;  %v10182_v35 = vunpack.i.l.bf16 %v10181_v17 }
0x1df3   : > { %9076 = vmatprep.mubr.msk.f32.mxu0 %vm924_vm5, %v5470_v44  ;;  %v9707_v62 = vpack.c.bf16 %v10188_v57, %v10187_v60 }
0x1df4   : > { %v9701_v37 = vpack.c.bf16 %v10183_v18, %v10182_v35  ;;  %9077 = vmatmul.mubr.msk.f32.gmra.mrb[82].mxu0 %vm924_vm5, %v5471_v27  ;;  %v10570_v52 = vpop.eup %10569 }
0x1df5   : > { %9700 = vmatpush3.bf16.xpose.msk.msra.mxu0 %vm11042_vm4, %v9695_v19  ;;  %v5473_v54 = vmul.f32 %v10570_v52, %v12977_v39  ;;  %v5630_v39 = vpop.permute.xlu0 %5629 }
0x1df6   : > { %9703 = vmatprep.subr.msk.bf16.mxu0 %vm11042_vm4, %v9701_v37 }
0x1df8   : > { %v10572_v50 = vpop.eup %10571 }
0x1df9   : > { %v5472_v55 = vmul.f32 %v10572_v50, %v12981_v9  ;;  %v5634_v11 = vpop.permute.xlu0 %5633 }
0x1dfb   : > { %9079 = vmatprep.mubr.msk.f32.mxu0 %vm924_vm5, %v5472_v55 }
0x1dfc   : > { %9080 = vmatmul.mubr.msk.f32.gmra.mrb[84].mxu0 %vm924_vm5, %v5473_v54 }
0x1dfd   : > { %9706 = vmatpush3.bf16.xpose.msk.msra.mxu0 %vm11042_vm4, %v9701_v37  ;;  %v5638_v22 = vpop.permute.xlu0 %5637 }
0x1dfe   : > { %9709 = vmatprep.subr.msk.bf16.mxu0 %vm11042_vm4, %v9707_v62 }
0x1e05   : > { %9712 = vmatpush3.bf16.xpose.msk.msra.mxu0 %vm11042_vm4, %v9707_v62 }
0x1e1a   : > { %v5459_v13 = vpop.xlane.xlu1 %5458 }
0x1e1b   : > { %10573 = vrcp.f32 %v5459_v13 }
0x1e1e   : > { %v5456_v9 = vpop.xlane.xlu1 %5455 }
0x1e1f   : > { %10575 = vrcp.f32 %v5456_v9 }
0x1e22   : > { %v5636_v0 = vpop.permute.xlu1 %5635 }
0x1e25   : > { %v10574_v51 = vpop.eup %10573 }
0x1e26   : > { %v5475_v10 = vmul.f32 %v10574_v51, %v13003_v63  ;;  %v5640_v56 = vpop.permute.xlu1 %5639 }
0x1e29   : > { %v10576_v24 = vpop.eup %10575 }
0x1e2a   : > { %v5474_v41 = vmul.f32 %v10576_v24, %v13007_v46  ;;  %v5642_v46 = vpop.permute.xlu0 %5641  ;;  %v5644_v63 = vpop.permute.xlu1 %5643 }
0x1e2c   : > { %9082 = vmatprep.mubr.msk.f32.mxu0 %vm924_vm5, %v5474_v41 }
0x1e2d   : > { %9083 = vmatmul.mubr.msk.f32.gmra.mrb[86].mxu0 %vm924_vm5, %v5475_v10 }
0x1e2e   : > { %9101 = vmatprep.mubr.msk.f32.mxu0 %vm786_vm3, %v5630_v39 }
0x1e31   : > { %9102 = vmatmul.mubr.msk.f32.vlgmr.msra.gmra.mrb[88].mxu0 %vm786_vm3, %v5632_v20 }
0x1e32   : > { %9104 = vmatprep.mubr.msk.f32.mxu0 %vm786_vm3, %v5634_v11 }
0x1e35   : > { %9105 = vmatmul.mubr.msk.f32.gmra.mrb[90].mxu0 %vm786_vm3, %v5636_v0 }
0x1e36   : > { %9107 = vmatprep.mubr.msk.f32.mxu0 %vm786_vm3, %v5638_v22 }
0x1e39   : > { %9108 = vmatmul.mubr.msk.f32.gmra.mrb[92].mxu0 %vm786_vm3, %v5640_v56 }
0x1e3a   : > { %9110 = vmatprep.mubr.msk.f32.mxu0 %vm786_vm3, %v5642_v46 }
0x1e3d   : > { %9111 = vmatmul.mubr.msk.f32.gmra.mrb[94].mxu0 %vm786_vm3, %v5644_v63 }
0x1ebf   : > { %v13055_v23 = vpop.f32.mrb[80].mxu0 }
0x1ec0   : > { %v13057_v33 = vpop.f32.mrb[81].mxu0 }
0x1ec7   : > { %v13059_v19 = vpop.f32.mrb[82].mxu0 }
0x1ec8   : > { %v13061_v5 = vpop.f32.mrb[83].mxu0 }
0x1ecf   : > { %v13063_v15 = vpop.f32.mrb[84].mxu0 }
0x1ed0   : > { %v13065_v59 = vpop.f32.mrb[85].mxu0 }
0x1f00   : > { %v13067_v17 = vpop.f32.mrb[86].mxu0 }
0x1f01   : > { %v13069_v44 = vpop.f32.mrb[87].mxu0 }
0x1f04   : > { %v9103_v18 = vpop.f32.mrb[88].mxu0 }
0x1f05   : > { %v5765_v35 = vadd.f32 %v12890_v42, %v9103_v18  ;;  %v5759_v27 = vpop.f32.mrb[89].mxu0 }
0x1f06   : > { %v5760_v37 = vadd.f32 %v12896_v47, %v5759_v27 }
0x1f07   : > { %v5801_v31 = vsel %vm924_vm5, %v5765_v35, -inf }
0x1f08   : > { %5802 = vmax.xlane.f32.xlu1 %v5801_v31  ;;  %v9106_v52 = vpop.f32.mrb[90].mxu0  ;;  %v5798_v50 = vsel %vm924_vm5, %v5760_v37, -inf }
0x1f09   : > { %v5775_v57 = vadd.f32 %v12904_v45, %v9106_v52  ;;  %v5769_v60 = vpop.f32.mrb[91].mxu0  ;;  %5799 = vmax.xlane.f32.xlu0 %v5798_v50 }
0x1f0a   : > { %v5770_v54 = vadd.f32 %v12911_v43, %v5769_v60 }
0x1f0b   : > { %v5807_v55 = vsel %vm924_vm5, %v5775_v57, -inf }
0x1f0c   : > { %v9109_v62 = vpop.f32.mrb[92].mxu0  ;;  %v5804_v39 = vsel %vm924_vm5, %v5770_v54, -inf }
0x1f0d   : > { %v5785_v42 = vadd.f32 %v12917_v53, %v9109_v62  ;;  %v5779_v20 = vpop.f32.mrb[93].mxu0  ;;  %5808 = vmax.xlane.f32.xlu0 %v5807_v55 }
0x1f0e   : > { %v5780_v13 = vadd.f32 %v12924_v61, %v5779_v20 }
0x1f0f   : > { %v5813_v47 = vsel %vm924_vm5, %v5785_v42, -inf }
0x1f10   : > { %5814 = vmax.xlane.f32.xlu1 %v5813_v47  ;;  %v9112_v9 = vpop.f32.mrb[94].mxu0  ;;  %v5810_v53 = vsel %vm924_vm5, %v5780_v13, -inf }
0x1f11   : > { %v5795_v45 = vadd.f32 %v12931_v38, %v9112_v9  ;;  %v5789_v51 = vpop.f32.mrb[95].mxu0  ;;  %5805 = vmax.xlane.f32.xlu0 %v5804_v39 }
0x1f12   : > { %v5790_v43 = vadd.f32 %v12941_v7, %v5789_v51 }
0x1f13   : > { %v5819_v24 = vsel %vm924_vm5, %v5795_v45, -inf }
0x1f14   : > { %5820 = vmax.xlane.f32.xlu1 %v5819_v24  ;;  %v5816_v41 = vsel %vm924_vm5, %v5790_v43, -inf }
0x1f15   : > { %5811 = vmax.xlane.f32.xlu0 %v5810_v53 }
0x1f19   : > { %5817 = vmax.xlane.f32.xlu0 %v5816_v41 }
0x1f25   : > { %10195 = vrot.lane.b32.xlu1 %v12361_v1, %s10720_s13 }
0x1f2f   : > { %10190 = vrot.lane.b32.xlu0 %v12351_v49, %s10720_s13 }
0x1f95   : > { %v5803_v38 = vpop.xlane.xlu1 %5802 }
0x1f96   : > { %v5823_v61 = vsub.f32 %v5765_v35, %v5803_v38  ;;  %v5800_v10 = vpop.xlane.xlu0 %5799 }
0x1f97   : > { %v5822_v11 = vsub.f32 %v5760_v37, %v5800_v10 }
0x1f98   : > { %v5832_v0 = vmul.f32 1.442695, %v5823_v61 }
0x1f99   : > { %v5830_v22 = vmul.f32 1.442695, %v5822_v11 }
0x1f9a   : > { %10577 = vpow2.f32 %v5832_v0  ;;  %v5809_v7 = vpop.xlane.xlu0 %5808 }
0x1f9b   : > { %10579 = vpow2.f32 %v5830_v22  ;;  %v5825_v56 = vsub.f32 %v5775_v57, %v5809_v7 }
0x1f9d   : > { %v5836_v46 = vmul.f32 1.442695, %v5825_v56  ;;  %v5815_v63 = vpop.xlane.xlu1 %5814 }
0x1f9e   : > { %v5827_v18 = vsub.f32 %v5785_v42, %v5815_v63  ;;  %v5806_v27 = vpop.xlane.xlu0 %5805 }
0x1f9f   : > { %10581 = vpow2.f32 %v5836_v46  ;;  %v5824_v31 = vsub.f32 %v5770_v54, %v5806_v27 }
0x1fa0   : > { %v5840_v1 = vmul.f32 1.442695, %v5827_v18 }
0x1fa1   : > { %v5834_v52 = vmul.f32 1.442695, %v5824_v31  ;;  %v5821_v50 = vpop.xlane.xlu1 %5820 }
0x1fa2   : > { %10583 = vpow2.f32 %v5840_v1  ;;  %v5829_v49 = vsub.f32 %v5795_v45, %v5821_v50  ;;  %v5812_v35 = vpop.xlane.xlu0 %5811 }
0x1fa3   : > { %10585 = vpow2.f32 %v5834_v52  ;;  %v5826_v37 = vsub.f32 %v5780_v13, %v5812_v35 }
0x1fa4   : > { %v13091_v60 = vpop.eup %10577  ;;  %v5844_v55 = vmul.f32 1.442695, %v5829_v49 }
0x1fa5   : > { %v13093_v62 = vpop.eup %10579  ;;  %v5838_v57 = vmul.f32 1.442695, %v5826_v37  ;;  %v5849_v42 = vsel %vm924_vm5, %v13091_v60, 0.0  ;;  %v10196_v13 = vpop.permute.xlu1 %10195  ;;  %v7887_v37 = vld [vmem:[%s13839_s4 + $0x28] sm:$0xff] }
0x1fa6   : > { %10587 = vpow2.f32 %v5844_v55  ;;  %5850 = vadd.xlane.f32.xlu1 %v5849_v42  ;;  %v5818_v54 = vpop.xlane.xlu0 %5817  ;;  %v5846_v20 = vsel %vm924_vm5, %v13093_v62, 0.0  ;;  %v10198_v38 = vunpack.i.h.bf16 %v10196_v13  ;;  %v10197_v61 = vunpack.i.l.bf16 %v10196_v13  ;;  %v7889_v55 = vld [vmem:[%s13839_s4 + $0x38] sm:$0xff] }
0x1fa7   : > { %10589 = vpow2.f32 %v5838_v57  ;;  %v5828_v47 = vsub.f32 %v5790_v43, %v5818_v54  ;;  %5847 = vadd.xlane.f32.xlu0 %v5846_v20  ;;  %v7890_v57 = vld [vmem:[%s13839_s4 + $0x40] sm:$0xff]  ;;  %v7891_v54 = vld [vmem:[%s13839_s4 + $0x48] sm:$0xff] }
0x1fa8   : > { %v9717_v7 = vpack.c.bf16 %v10198_v38, %v10197_v61  ;;  %v9733_v42 = vpack.c.bf16 %v7890_v57, %v7889_v55  ;;  %v13943_v55 = vld [vmem:[#allocation21_spill] sm:$0xff] }
0x1fa9   : > { %v13099_v9 = vpop.eup %10581  ;;  %v5842_v39 = vmul.f32 1.442695, %v5828_v47 }
0x1faa   : > { %v10191_v45 = vpop.permute.xlu0 %10190  ;;  %v5855_v51 = vsel %vm924_vm5, %v13099_v9, 0.0 }
0x1fab   : > { %10591 = vpow2.f32 %v5842_v39  ;;  %v10193_v24 = vunpack.i.h.bf16 %v10191_v45  ;;  %v10192_v53 = vunpack.i.l.bf16 %v10191_v45  ;;  %5856 = vadd.xlane.f32.xlu1 %v5855_v51 }
0x1fac   : > { %v13103_v41 = vpop.eup %10583 }
0x1fad   : > { %v13105_v10 = vpop.eup %10585  ;;  %v5861_v43 = vsel %vm924_vm5, %v13103_v41, 0.0  ;;  %v9713_v11 = vpack.c.bf16 %v10193_v24, %v10192_v53 }
0x1fae   : > { %v5852_v0 = vsel %vm924_vm5, %v13105_v10, 0.0 }
0x1faf   : > { %5862 = vadd.xlane.f32.xlu1 %v5861_v43  ;;  %5853 = vadd.xlane.f32.xlu0 %v5852_v0 }
0x1fb0   : > { %v13111_v22 = vpop.eup %10587  ;;  %9714 = vmatprep.subr.bf16.mxu1 %v9713_v11 }
0x1fb1   : > { %v13113_v56 = vpop.eup %10589  ;;  %9716 = vmatpush3.bf16.msra.mxu1 %v9713_v11  ;;  %v5867_v46 = vsel %vm924_vm5, %v13111_v22, 0.0 }
0x1fb2   : > { %9718 = vmatprep.subr.bf16.mxu1 %v9717_v7  ;;  %v5858_v63 = vsel %vm924_vm5, %v13113_v56, 0.0 }
0x1fb3   : > { %5868 = vadd.xlane.f32.xlu1 %v5867_v46  ;;  %5859 = vadd.xlane.f32.xlu0 %v5858_v63 }
0x1fb5   : > { %v13119_v18 = vpop.eup %10591  ;;  %9720 = vmatpush3.bf16.msra.mxu1 %v9717_v7 }
0x1fb6   : > { %v5864_v27 = vsel %vm924_vm5, %v13119_v18, 0.0 }
0x1fb7   : > { %5865 = vadd.xlane.f32.xlu1 %v5864_v27 }
0x1fc8   : > { %10205 = vrot.lane.b32.xlu1 %v12381_v32, %s10720_s13 }
0x1fc9   : > { %10200 = vrot.lane.b32.xlu0 %v12371_v36, %s10720_s13 }
0x1fcc   : > { %6049 = vrot.lane.b32.xlu1 %v12727_v8, %s10721_s14 }
0x1fcd   : > { %6047 = vrot.lane.b32.xlu0 %v12729_v34, %s10721_s14 }
0x1fd0   : > { %6081 = vrot.lane.b32.xlu1 %v12871_v2, %s10720_s13 }
0x1fd1   : > { %6079 = vrot.lane.b32.xlu0 %v12873_v26, %s10720_s13 }
0x1fd4   : > { %6113 = vrot.lane.b32.xlu1 %v13055_v23, %s10717_s29 }
0x1fd5   : > { %6111 = vrot.lane.b32.xlu0 %v13057_v33, %s10717_s29 }
0x1fd8   : > { %6051 = vrot.lane.b32.xlu1 %v12733_v12, %s10721_s14 }
0x1fd9   : > { %6083 = vrot.lane.b32.xlu0 %v12877_v28, %s10720_s13 }
0x1fdc   : > { %6053 = vrot.lane.b32.xlu1 %v12731_v6, %s10721_s14 }
0x1fdd   : > { %6115 = vrot.lane.b32.xlu0 %v13061_v5, %s10717_s29 }
0x1fe0   : > { %6085 = vrot.lane.b32.xlu1 %v12875_v21, %s10720_s13 }
0x1fe1   : > { %6087 = vrot.lane.b32.xlu0 %v12881_v4, %s10720_s13 }
0x1fe4   : > { %6117 = vrot.lane.b32.xlu1 %v13059_v19, %s10717_s29 }
0x1fe5   : > { %6119 = vrot.lane.b32.xlu0 %v13065_v59, %s10717_s29 }
0x1fe8   : > { %6055 = vrot.lane.b32.xlu1 %v12737_v3, %s10721_s14 }
0x1fe9   : > { %6091 = vrot.lane.b32.xlu0 %v12885_v29, %s10720_s13 }
0x1fec   : > { %6057 = vrot.lane.b32.xlu1 %v12735_v16, %s10721_s14 }
0x1fed   : > { %6123 = vrot.lane.b32.xlu0 %v13069_v44, %s10717_s29 }
0x1ff0   : > { %6089 = vrot.lane.b32.xlu1 %v12879_v14, %s10720_s13 }
0x1ff4   : > { %6121 = vrot.lane.b32.xlu1 %v13063_v15, %s10717_s29 }
0x1ff8   : > { %6059 = vrot.lane.b32.xlu1 %v12741_v58, %s10721_s14 }
0x1ffc   : > { %6061 = vrot.lane.b32.xlu1 %v12739_v48, %s10721_s14 }
0x2000   : > { %6093 = vrot.lane.b32.xlu1 %v12883_v30, %s10720_s13 }
0x2004   : > { %6125 = vrot.lane.b32.xlu1 %v13067_v17, %s10717_s29 }
0x2033   : > { %v5851_v36 = vpop.xlane.xlu1 %5850 }
0x2034   : > { %v5848_v32 = vpop.xlane.xlu0 %5847 }
0x2035   : > { %10593 = vrcp.f32 %v5848_v32 }
0x2036   : > { %10595 = vrcp.f32 %v5851_v36 }
0x2038   : > { %v5857_v8 = vpop.xlane.xlu1 %5856 }
0x203c   : > { %v5863_v34 = vpop.xlane.xlu1 %5862  ;;  %v5854_v6 = vpop.xlane.xlu0 %5853 }
0x203d   : > { %10597 = vrcp.f32 %v5854_v6 }
0x203e   : > { %10599 = vrcp.f32 %v5857_v8 }
0x203f   : > { %v10594_v12 = vpop.eup %10593 }
0x2040   : > { %v5869_v16 = vpop.xlane.xlu1 %5868  ;;  %v5860_v3 = vpop.xlane.xlu0 %5859  ;;  %v5878_v58 = vmul.f32 %v10594_v12, %v13093_v62 }
0x2041   : > { %10601 = vrcp.f32 %v5860_v3  ;;  %v10596_v23 = vpop.eup %10595 }
0x2042   : > { %9129 = vmatprep.mubr.msk.f32.mxu1 %vm924_vm5, %v5878_v58  ;;  %10603 = vrcp.f32 %v5863_v34  ;;  %v5879_v19 = vmul.f32 %v10596_v23, %v13091_v60  ;;  %v7888_v60 = vld [vmem:[%s13839_s4 + $0x30] sm:$0xff] }
0x2043   : > { %v9729_v62 = vpack.c.bf16 %v7888_v60, %v7887_v37  ;;  %v13942_v37 = vld [vmem:[#allocation24_spill] sm:$0xff] }
0x2044   : > { %v5866_v48 = vpop.xlane.xlu1 %5865  ;;  %v10201_v2 = vpop.permute.xlu0 %10200 }
0x2045   : > { %v10203_v26 = vunpack.i.h.bf16 %v10201_v2  ;;  %v10202_v21 = vunpack.i.l.bf16 %v10201_v2  ;;  %10605 = vrcp.f32 %v5866_v48 }
0x2046   : > { %10607 = vrcp.f32 %v5869_v16 }
0x2047   : > { %v9721_v28 = vpack.c.bf16 %v10203_v26, %v10202_v21  ;;  %v10598_v33 = vpop.eup %10597 }
0x2048   : > { %v10206_v14 = vpop.permute.xlu1 %10205  ;;  %v10600_v5 = vpop.eup %10599  ;;  %v5880_v15 = vmul.f32 %v10598_v33, %v13105_v10  ;;  %v13940_v33 = vld [vmem:[#allocation19_spill] sm:$0xff] }
0x2049   : > { %v10208_v4 = vunpack.i.h.bf16 %v10206_v14  ;;  %v10207_v30 = vunpack.i.l.bf16 %v10206_v14  ;;  %9722 = vmatprep.subr.bf16.mxu1 %v9721_v28  ;;  %v5881_v17 = vmul.f32 %v10600_v5, %v13099_v9  ;;  %v6048_v61 = vpop.permute.xlu0 %6047 }
0x204a   : > { %9724 = vmatpush3.bf16.msra.mxu1 %v9721_v28  ;;  %v6167_v3 = vsel %vm786_vm3, %v12585_v25, %v6048_v61 }
0x204b   : > { %v9725_v29 = vpack.c.bf16 %v10208_v4, %v10207_v30  ;;  %v10602_v59 = vpop.eup %10601  ;;  %v13939_v4 = vld [vmem:[#allocation20_spill] sm:$0xff] }
0x204c   : > { %v10604_v44 = vpop.eup %10603  ;;  %v5882_v31 = vmul.f32 %v10602_v59, %v13113_v56  ;;  %v6050_v53 = vpop.permute.xlu1 %6049 }
0x204d   : > { %9726 = vmatprep.subr.bf16.mxu1 %v9725_v29  ;;  %v5883_v52 = vmul.f32 %v10604_v44, %v13103_v41  ;;  %v6080_v43 = vpop.permute.xlu0 %6079  ;;  %v6168_v58 = vsel %vm786_vm3, %v12583_v40, %v6050_v53 }
0x204e   : > { %9728 = vmatpush3.bf16.msra.mxu1 %v9725_v29  ;;  %v6175_v48 = vsel %vm2942_vm6, %v6167_v3, %v6080_v43 }
0x204f   : > { %v10606_v1 = vpop.eup %10605  ;;  %9730 = vmatprep.subr.bf16.mxu1 %v9729_v62 }
0x2050   : > { %v10608_v50 = vpop.eup %10607  ;;  %v5884_v49 = vmul.f32 %v10606_v1, %v13119_v18  ;;  %v6082_v41 = vpop.permute.xlu1 %6081  ;;  %v13941_v1 = vld [vmem:[#allocation22_spill] sm:$0xff] }
0x2051   : > { %9130 = vmatmul.mubr.msk.f32.vlgmr.msra.gmra.mrb[104].mxu1 %vm924_vm5, %v5879_v19  ;;  %v5885_v35 = vmul.f32 %v10608_v50, %v13111_v22  ;;  %v6112_v0 = vpop.permute.xlu0 %6111  ;;  %v6176_v2 = vsel %vm2942_vm6, %v6168_v58, %v6082_v41  ;;  %v13949_v58 = vld [vmem:[#allocation16_spill] sm:$0xff] }
0x2052   : > { %9132 = vmatprep.mubr.msk.f32.mxu1 %vm924_vm5, %v5880_v15  ;;  %9732 = vmatpush3.bf16.msra.mxu1 %v9729_v62  ;;  %v6183_v26 = vsel %vm2951_vm7, %v6175_v48, %v6112_v0  ;;  %v13945_v0 = vld [vmem:[#allocation12_spill] sm:$0xff] }
0x2053   : > { %9734 = vmatprep.subr.bf16.mxu1 %v9733_v42 }
0x2054   : > { %v6114_v38 = vpop.permute.xlu1 %6113 }
0x2055   : > { %9133 = vmatmul.mubr.msk.f32.gmra.mrb[106].mxu1 %vm924_vm5, %v5881_v17  ;;  %v6084_v7 = vpop.permute.xlu0 %6083  ;;  %v6184_v28 = vsel %vm2951_vm7, %v6176_v2, %v6114_v38 }
0x2056   : > { %9135 = vmatprep.mubr.msk.f32.mxu1 %vm924_vm5, %v5882_v31  ;;  %9736 = vmatpush3.bf16.msra.mxu1 %v9733_v42 }
0x2057   : > { %9149 = vmatprep.subr.mxu1 %v7891_v54 }
0x2058   : > { %v6052_v10 = vpop.permute.xlu1 %6051 }
0x2059   : > { %9136 = vmatmul.mubr.msk.f32.gmra.mrb[108].mxu1 %vm924_vm5, %v5883_v52  ;;  %v6116_v46 = vpop.permute.xlu0 %6115  ;;  %v6169_v30 = vsel %vm786_vm3, %v13939_v4, %v6052_v10 }
0x205a   : > { %9138 = vmatprep.mubr.msk.f32.mxu1 %vm924_vm5, %v5884_v49  ;;  %9150 = vmatpush3.msra.mxu1 %v7891_v54  ;;  %v6177_v23 = vsel %vm2942_vm6, %v6169_v30, %v6084_v7  ;;  %v13951_v30 = vld [vmem:[#allocation17_spill] sm:$0xff] }
0x205b   : > { %v6185_v5 = vsel %vm2951_vm7, %v6177_v23, %v6116_v46 }
0x205c   : > { %v6054_v11 = vpop.permute.xlu1 %6053 }
0x205d   : > { %9139 = vmatmul.mubr.msk.f32.gmra.mrb[110].mxu1 %vm924_vm5, %v5885_v35  ;;  %v6088_v18 = vpop.permute.xlu0 %6087  ;;  %v6170_v19 = vsel %vm786_vm3, %v13940_v33, %v6054_v11 }
0x2060   : > { %v6086_v22 = vpop.permute.xlu1 %6085 }
0x2061   : > { %v6120_v36 = vpop.permute.xlu0 %6119  ;;  %v6178_v15 = vsel %vm2942_vm6, %v6170_v19, %v6086_v22 }
0x2064   : > { %v6118_v56 = vpop.permute.xlu1 %6117 }
0x2065   : > { %v6092_v8 = vpop.permute.xlu0 %6091  ;;  %v6186_v17 = vsel %vm2951_vm7, %v6178_v15, %v6118_v56  ;;  %v13946_v56 = vld [vmem:[#allocation11_spill] sm:$0xff] }
0x2068   : > { %v6056_v63 = vpop.permute.xlu1 %6055 }
0x2069   : > { %v6124_v6 = vpop.permute.xlu0 %6123  ;;  %v6171_v52 = vsel %vm786_vm3, %v13941_v1, %v6056_v63 }
0x206a   : > { %v6179_v35 = vsel %vm2942_vm6, %v6171_v52, %v6088_v18 }
0x206b   : > { %v6187_v54 = vsel %vm2951_vm7, %v6179_v35, %v6120_v36  ;;  %v13947_v36 = vld [vmem:[#allocation14_spill] sm:$0xff] }
0x206c   : > { %v6058_v27 = vpop.permute.xlu1 %6057 }
0x206d   : > { %v6172_v62 = vsel %vm786_vm3, %v13943_v55, %v6058_v27 }
0x2070   : > { %v6090_v32 = vpop.permute.xlu1 %6089 }
0x2071   : > { %v6180_v42 = vsel %vm2942_vm6, %v6172_v62, %v6090_v32 }
0x2074   : > { %v6122_v34 = vpop.permute.xlu1 %6121 }
0x2078   : > { %v6060_v16 = vpop.permute.xlu1 %6059 }
0x2079   : > { %v6173_v60 = vsel %vm786_vm3, %v13942_v37, %v6060_v16 }
0x207c   : > { %v6062_v25 = vpop.permute.xlu1 %6061 }
0x2080   : > { %v6094_v44 = vpop.permute.xlu1 %6093 }
0x2084   : > { %v6126_v57 = vpop.permute.xlu1 %6125 }
0x2124   : > { %v9131_v20 = vpop.f32.mrb[104].mxu1 }
0x2125   : > { %6145 = vrot.lane.b32.xlu0 %v9131_v20, %s10714_s26  ;;  %v6000_v47 = vpop.f32.mrb[105].mxu1 }
0x2128   : > { %v9134_v9 = vpop.f32.mrb[106].mxu1 }
0x2129   : > { %6143 = vrot.lane.b32.xlu0 %v6000_v47, %s10714_s26  ;;  %v6010_v13 = vpop.f32.mrb[107].mxu1  ;;  %v6188_v47 = vsel %vm2951_vm7, %v6180_v42, %v6122_v34  ;;  %v13948_v34 = vld [vmem:[#allocation13_spill] sm:$0xff] }
0x212c   : > { %v9137_v39 = vpop.f32.mrb[108].mxu1 }
0x212d   : > { %6149 = vrot.lane.b32.xlu0 %v9134_v9, %s10714_s26  ;;  %v6020_v45 = vpop.f32.mrb[109].mxu1  ;;  %v6181_v9 = vsel %vm2942_vm6, %v6173_v60, %v6092_v8 }
0x212e   : > { %v6189_v41 = vsel %vm2951_vm7, %v6181_v9, %v6124_v6 }
0x2130   : > { %v9140_v51 = vpop.f32.mrb[110].mxu1 }
0x2131   : > { %6147 = vrot.lane.b32.xlu0 %v6010_v13, %s10714_s26  ;;  %6157 = vrot.lane.b32.xlu1 %v9140_v51, %s10714_s26  ;;  %v6030_v24 = vpop.f32.mrb[111].mxu1 }
0x2135   : > { %6153 = vrot.lane.b32.xlu0 %v9137_v39, %s10714_s26 }
0x2139   : > { %6151 = vrot.lane.b32.xlu0 %v6020_v45, %s10714_s26  ;;  %v13944_v45 = vld [vmem:[#allocation23_spill] sm:$0xff] }
0x213a   : > { %v6174_v51 = vsel %vm786_vm3, %v13944_v45, %v6062_v25 }
0x213b   : > { %v6182_v53 = vsel %vm2942_vm6, %v6174_v51, %v6094_v44 }
0x213c   : > { %v6190_v61 = vsel %vm2951_vm7, %v6182_v53, %v6126_v57 }
0x213d   : > { %6155 = vrot.lane.b32.xlu0 %v6030_v24, %s10714_s26 }
0x2197   : > { %v6146_v12 = vpop.permute.xlu0 %6145 }
0x2198   : > { %v6192_v29 = vsel %vm2960_vm8, %v6184_v28, %v6146_v12 }
0x219b   : > { %v6144_v21 = vpop.permute.xlu0 %6143 }
0x219c   : > { %v6191_v14 = vsel %vm2960_vm8, %v6183_v26, %v6144_v21  ;;  %v13950_v26 = vld [vmem:[#allocation15_spill] sm:$0xff] }
0x219d   : > { %9151 = vmatprep.mubr.msk.f32.mxu1 %vm498_vm2, %v6191_v14 }
0x219e   : > { %9152 = vmatmul.mubr.msk.f32.vlgmr.msra.gmra.mrb[112].mxu1 %vm498_vm2, %v6192_v29 }
0x219f   : > { %v6150_v40 = vpop.permute.xlu0 %6149 }
0x21a0   : > { %v6194_v50 = vsel %vm2960_vm8, %v6186_v17, %v6150_v40  ;;  %v13952_v40 = vld [vmem:[#allocation18_spill] sm:$0xff] }
0x21a3   : > { %v6148_v59 = vpop.permute.xlu0 %6147  ;;  %v6158_v24 = vpop.permute.xlu1 %6157 }
0x21a4   : > { %v6193_v31 = vsel %vm2960_vm8, %v6185_v5, %v6148_v59  ;;  %v6198_v43 = vsel %vm2960_vm8, %v6190_v61, %v6158_v24 }
0x21a5   : > { %9154 = vmatprep.mubr.msk.f32.mxu1 %vm498_vm2, %v6193_v31 }
0x21a6   : > { %9155 = vmatmul.mubr.msk.f32.gmra.mrb[114].mxu1 %vm498_vm2, %v6194_v50 }
0x21a7   : > { %v6154_v49 = vpop.permute.xlu0 %6153 }
0x21a8   : > { %v6196_v39 = vsel %vm2960_vm8, %v6188_v47, %v6154_v49 }
0x21ab   : > { %v6152_v20 = vpop.permute.xlu0 %6151 }
0x21ac   : > { %v6195_v13 = vsel %vm2960_vm8, %v6187_v54, %v6152_v20 }
0x21ad   : > { %9157 = vmatprep.mubr.msk.f32.mxu1 %vm498_vm2, %v6195_v13 }
0x21ae   : > { %9158 = vmatmul.mubr.msk.f32.gmra.mrb[116].mxu1 %vm498_vm2, %v6196_v39 }
0x21af   : > { %v6156_v38 = vpop.permute.xlu0 %6155 }
0x21b0   : > { %v6197_v10 = vsel %vm2960_vm8, %v6189_v41, %v6156_v38 }
0x21b1   : > { %9160 = vmatprep.mubr.msk.f32.mxu1 %vm498_vm2, %v6197_v10 }
0x21b2   : > { %9161 = vmatmul.mubr.msk.f32.gmra.mrb[118].mxu1 %vm498_vm2, %v6198_v43 }
0x2271   : > { %v9153_v11 = vpop.f32.mrb[112].mxu1 }
0x2272   : > { %v13263_v22 = vadd.f32 %v9153_v11, %v13945_v0  ;;  %v6295_v7 = vpop.f32.mrb[113].mxu1 }
0x2273   : > { %v13266_v46 = vadd.f32 %v6295_v7, %v13946_v56 }
0x2274   : > { %v6345_v63 = vsel %vm498_vm2, %v13263_v22, 0.0 }
0x2275   : > { %6346 = vadd.xlane.f32.xlu1 %v6345_v63  ;;  %v6342_v18 = vsel %vm498_vm2, %v13266_v46, 0.0 }
0x2276   : > { %6343 = vadd.xlane.f32.xlu0 %v6342_v18 }
0x2279   : > { %v9156_v27 = vpop.f32.mrb[114].mxu1 }
0x227a   : > { %v13273_v32 = vadd.f32 %v9156_v27, %v13947_v36  ;;  %v6305_v8 = vpop.f32.mrb[115].mxu1 }
0x227b   : > { %v13276_v6 = vadd.f32 %v6305_v8, %v13948_v34  ;;  %v7900_v8 = vld [vmem:[%s13841_s6 + $0x28] sm:$0xff]  ;;  %v7901_v34 = vld [vmem:[%s13841_s6 + $0x30] sm:$0xff] }
0x227c   : > { %v6351_v12 = vsel %vm498_vm2, %v13273_v32, 0.0 }
0x227d   : > { %6352 = vadd.xlane.f32.xlu0 %v6351_v12  ;;  %v6348_v16 = vsel %vm498_vm2, %v13276_v6, 0.0  ;;  %v9737_v12 = vpack.c.bf16 %v7901_v34, %v7900_v8 }
0x227f   : > { %9738 = vmatprep.subr.bf16.mxu0 %v9737_v12 }
0x2280   : > { %9740 = vmatpush3.bf16.msra.mxu0 %v9737_v12 }
0x2281   : > { %6349 = vadd.xlane.f32.xlu0 %v6348_v16  ;;  %v9159_v3 = vpop.f32.mrb[116].mxu1  ;;  %v7902_v16 = vld [vmem:[%s13841_s6 + $0x38] sm:$0xff] }
0x2282   : > { %v13283_v48 = vadd.f32 %v9159_v3, %v13949_v58  ;;  %v6315_v2 = vpop.f32.mrb[117].mxu1  ;;  %v7903_v3 = vld [vmem:[%s13841_s6 + $0x40] sm:$0xff] }
0x2283   : > { %v13286_v21 = vadd.f32 %v6315_v2, %v13950_v26  ;;  %v9741_v58 = vpack.c.bf16 %v7903_v3, %v7902_v16  ;;  %v13953_v2 = vld [vmem:[#allocation2_spill] sm:$0xff]  ;;  %v7904_v26 = vld [vmem:[%s13841_s6 + $0x48] sm:$0xff] }
0x2284   : > { %v6357_v28 = vsel %vm498_vm2, %v13283_v48, 0.0 }
0x2285   : > { %6358 = vadd.xlane.f32.xlu1 %v6357_v28  ;;  %v9162_v14 = vpop.f32.mrb[118].mxu1  ;;  %v6354_v4 = vsel %vm498_vm2, %v13286_v21, 0.0  ;;  %9742 = vmatprep.subr.bf16.mxu0 %v9741_v58  ;;  %v13954_v28 = vld [vmem:[#allocation5_spill] sm:$0xff] }
0x2286   : > { %v13293_v29 = vadd.f32 %v9162_v14, %v13951_v30  ;;  %6355 = vadd.xlane.f32.xlu0 %v6354_v4  ;;  %v6325_v25 = vpop.f32.mrb[119].mxu1  ;;  %9744 = vmatpush3.bf16.msra.mxu0 %v9741_v58  ;;  %v13955_v14 = vld [vmem:[#allocation3_spill] sm:$0xff]  ;;  %v13956_v4 = vld [vmem:[#allocation4_spill] sm:$0xff] }
0x2287   : > { %v13296_v23 = vadd.f32 %v6325_v25, %v13952_v40  ;;  %9171 = vmatprep.subr.mxu0 %v7904_v26  ;;  %v13957_v30 = vld [vmem:[#allocation7_spill] sm:$0xff]  ;;  %v13958_v25 = vld [vmem:[#allocation6_spill] sm:$0xff]  ;;  %v13959_v40 = vld [vmem:[#allocation9_spill] sm:$0xff] }
0x2288   : > { %v6363_v33 = vsel %vm498_vm2, %v13293_v29, 0.0 }
0x2289   : > { %6364 = vadd.xlane.f32.xlu1 %v6363_v33  ;;  %v6360_v19 = vsel %vm498_vm2, %v13296_v23, 0.0  ;;  %v13960_v33 = vld [vmem:[#allocation8_spill] sm:$0xff] }
0x228a   : > { %6361 = vadd.xlane.f32.xlu0 %v6360_v19  ;;  %9172 = vmatpush3.msra.mxu0 %v7904_v26 }
0x2302   : > { %v6347_v5 = vpop.xlane.xlu1 %6346 }
0x2303   : > { %v6367_v15 = vmul.f32 0.025, %v6347_v5  ;;  %v6344_v59 = vpop.xlane.xlu0 %6343 }
0x2304   : > { %v6366_v17 = vmul.f32 0.025, %v6344_v59 }
0x2305   : > { %v13303_v44 = vsub.f32 %v13263_v22, %v6367_v15 }
0x2306   : > { %v13306_v31 = vsub.f32 %v13266_v46, %v6366_v17 }
0x2307   : > { %v6383_v1 = vmul.f32 %v13303_v44, %v13303_v44 }
0x2308   : > { %v6382_v52 = vmul.f32 %v13306_v31, %v13306_v31 }
0x2309   : > { %v6393_v50 = vsel %vm498_vm2, %v6383_v1, 0.0 }
0x230a   : > { %v6353_v49 = vpop.xlane.xlu0 %6352  ;;  %6394 = vadd.xlane.f32.xlu1 %v6393_v50  ;;  %v6390_v35 = vsel %vm498_vm2, %v6382_v52, 0.0 }
0x230b   : > { %v6369_v37 = vmul.f32 0.025, %v6353_v49  ;;  %6391 = vadd.xlane.f32.xlu0 %v6390_v35 }
0x230d   : > { %v13315_v60 = vsub.f32 %v13273_v32, %v6369_v37 }
0x230e   : > { %v6350_v55 = vpop.xlane.xlu0 %6349 }
0x230f   : > { %v6368_v62 = vmul.f32 0.025, %v6350_v55  ;;  %v6385_v57 = vmul.f32 %v13315_v60, %v13315_v60  ;;  %v10698_v55 = vld [vmem:[%s13840_s5 + $0x4] sm:$0xf] }
0x2311   : > { %v13320_v42 = vsub.f32 %v13276_v6, %v6368_v62  ;;  %v6399_v54 = vsel %vm498_vm2, %v6385_v57, 0.0  ;;  %v13961_v62 = vld [vmem:[#allocation10_spill] sm:$0xff] }
0x2312   : > { %v6359_v20 = vpop.xlane.xlu1 %6358  ;;  %6400 = vadd.xlane.f32.xlu1 %v6399_v54  ;;  %v13962_v57 = vsub.s32 2, %v13961_v62 }
0x2313   : > { %v6371_v47 = vmul.f32 0.025, %v6359_v20  ;;  %v6356_v9 = vpop.xlane.xlu0 %6355  ;;  %v6384_v13 = vmul.f32 %v13320_v42, %v13320_v42 }
0x2314   : > { %v6370_v39 = vmul.f32 0.025, %v6356_v9  ;;  %v13386_v54 = vrot.slane %v10698_v55, %v13962_v57 }
0x2315   : > { %v13326_v45 = vsub.f32 %v13283_v48, %v6371_v47  ;;  %v6396_v51 = vsel %vm498_vm2, %v6384_v13, 0.0 }
0x2316   : > { %v13330_v24 = vsub.f32 %v13286_v21, %v6370_v39  ;;  %v6365_v53 = vpop.xlane.xlu1 %6364  ;;  %6397 = vadd.xlane.f32.xlu0 %v6396_v51  ;;  %v13963_v51 = vsub.s32 3, %v13961_v62 }
0x2317   : > { %v6373_v41 = vmul.f32 0.025, %v6365_v53  ;;  %v6362_v38 = vpop.xlane.xlu0 %6361  ;;  %v6387_v61 = vmul.f32 %v13326_v45, %v13326_v45 }
0x2318   : > { %v6372_v10 = vmul.f32 0.025, %v6362_v38  ;;  %v6386_v43 = vmul.f32 %v13330_v24, %v13330_v24  ;;  %v13391_v53 = vrot.slane %v10698_v55, %v13963_v51 }
0x2319   : > { %v13337_v11 = vsub.f32 %v13293_v29, %v6373_v41  ;;  %v6405_v0 = vsel %vm498_vm2, %v6387_v61, 0.0 }
0x231a   : > { %v13341_v7 = vsub.f32 %v13296_v23, %v6372_v10  ;;  %6406 = vadd.xlane.f32.xlu1 %v6405_v0  ;;  %v6402_v56 = vsel %vm498_vm2, %v6386_v43, 0.0 }
0x231b   : > { %6403 = vadd.xlane.f32.xlu0 %v6402_v56  ;;  %v6389_v63 = vmul.f32 %v13337_v11, %v13337_v11 }
0x231c   : > { %v6388_v18 = vmul.f32 %v13341_v7, %v13341_v7 }
0x231d   : > { %v6411_v27 = vsel %vm498_vm2, %v6389_v63, 0.0 }
0x231e   : > { %6412 = vadd.xlane.f32.xlu1 %v6411_v27  ;;  %v6408_v36 = vsel %vm498_vm2, %v6388_v18, 0.0 }
0x231f   : > { %6409 = vadd.xlane.f32.xlu0 %v6408_v36 }
0x232f   : > { %7012 = vrot.lane.b32.xlu1 %v13953_v2, %s10707_s16 }
0x2333   : > { %7014 = vrot.lane.b32.xlu1 %v13954_v28, %s10707_s16 }
0x2335   : > { %7010 = vrot.lane.b32.xlu0 %v13955_v14, %s10707_s16 }
0x2337   : > { %7016 = vrot.lane.b32.xlu1 %v13956_v4, %s10707_s16 }
0x2339   : > { %7018 = vrot.lane.b32.xlu0 %v13957_v30, %s10707_s16 }
0x233b   : > { %7020 = vrot.lane.b32.xlu1 %v13958_v25, %s10707_s16 }
0x233d   : > { %7022 = vrot.lane.b32.xlu0 %v13959_v40, %s10707_s16 }
0x233f   : > { %7024 = vrot.lane.b32.xlu1 %v13960_v33, %s10707_s16 }
0x2397   : > { %v6395_v19 = vpop.xlane.xlu1 %6394 }
0x2398   : > { %v6415_v5 = vmul.f32 0.025, %v6395_v19  ;;  %v6392_v15 = vpop.xlane.xlu0 %6391 }
0x2399   : > { %v6414_v59 = vmul.f32 0.025, %v6392_v15 }
0x239a   : > { %v6423_v17 = vadd.f32 1e-05, %v6415_v5 }
0x239b   : > { %v6422_v1 = vadd.f32 1e-05, %v6414_v59 }
0x239c   : > { %10609 = vrsqrt.f32 %v6423_v17 }
0x239d   : > { %10611 = vrsqrt.f32 %v6422_v1 }
0x239f   : > { %v6401_v52 = vpop.xlane.xlu1 %6400 }
0x23a0   : > { %v6417_v50 = vmul.f32 0.025, %v6401_v52 }
0x23a2   : > { %v6425_v49 = vadd.f32 1e-05, %v6417_v50 }
0x23a3   : > { %v6398_v35 = vpop.xlane.xlu0 %6397 }
0x23a4   : > { %10613 = vrsqrt.f32 %v6425_v49  ;;  %v6416_v37 = vmul.f32 0.025, %v6398_v35 }
0x23a6   : > { %v10610_v20 = vpop.eup %10609  ;;  %v6424_v47 = vadd.f32 1e-05, %v6416_v37 }
0x23a7   : > { %v10612_v9 = vpop.eup %10611  ;;  %v6439_v13 = vmul.f32 %v10610_v20, %v13303_v44  ;;  %v6407_v39 = vpop.xlane.xlu1 %6406 }
0x23a8   : > { %10615 = vrsqrt.f32 %v6424_v47  ;;  %v6419_v41 = vmul.f32 0.025, %v6407_v39  ;;  %v6404_v38 = vpop.xlane.xlu0 %6403  ;;  %v6438_v61 = vmul.f32 %v10612_v9, %v13306_v31 }
0x23a9   : > { %v6451_v10 = vmul.f32 %v13386_v54, %v6439_v13  ;;  %v6418_v43 = vmul.f32 0.025, %v6404_v38 }
0x23aa   : > { %v6427_v0 = vadd.f32 1e-05, %v6419_v41  ;;  %v6450_v56 = vmul.f32 %v13386_v54, %v6438_v61 }
0x23ab   : > { %v6426_v63 = vadd.f32 1e-05, %v6418_v43  ;;  %v6413_v18 = vpop.xlane.xlu1 %6412  ;;  %v6463_v8 = vadd.f32 %v13391_v53, %v6451_v10 }
0x23ac   : > { %10617 = vrsqrt.f32 %v6427_v0  ;;  %v6421_v44 = vmul.f32 0.025, %v6413_v18  ;;  %v6410_v27 = vpop.xlane.xlu0 %6409  ;;  %v6462_v36 = vadd.f32 %v13391_v53, %v6450_v56 }
0x23ad   : > { %10619 = vrsqrt.f32 %v6426_v63  ;;  %v6420_v34 = vmul.f32 0.025, %v6410_v27 }
0x23ae   : > { %v10614_v12 = vpop.eup %10613  ;;  %v6429_v16 = vadd.f32 1e-05, %v6421_v44  ;;  %9173 = vmatprep.mubr.msk.f32.mxu0 %vm498_vm2, %v6462_v36  ;;  %v7913_v44 = vld [vmem:[%s13842_s7 + $0x40] sm:$0xff]  ;;  %v7915_v36 = vld [vmem:[%s13842_s7 + $0x50] sm:$0xff] }
0x23af   : > { %v6428_v31 = vadd.f32 1e-05, %v6420_v34  ;;  %v7013_v3 = vpop.permute.xlu1 %7012  ;;  %9174 = vmatmul.mubr.msk.f32.vlgmr.msra.gmra.mrb[96].mxu0 %vm498_vm2, %v6463_v8  ;;  %v6441_v19 = vmul.f32 %v10614_v12, %v13315_v60  ;;  %v7916_v8 = vld [vmem:[%s13842_s7 + $0x58] sm:$0xff]  ;;  %v7917_v12 = vld [vmem:[%s13842_s7 + $0x60] sm:$0xff] }
0x23b0   : > { %10621 = vrsqrt.f32 %v6429_v16  ;;  %v7037_v58 = vsel %vm498_vm2, %v7013_v3, 0.0  ;;  %v7011_v26 = vpop.permute.xlu0 %7010  ;;  %v9749_v34 = vpack.c.bf16 %v7916_v8, %v7915_v36  ;;  %v7918_v16 = vld [vmem:[%s13842_s7 + $0x68] sm:$0xff]  ;;  %v7919_v3 = vld [vmem:[%s13842_s7 + $0x70] sm:$0xff] }
0x23b1   : > { %10623 = vrsqrt.f32 %v6428_v31  ;;  %v7034_v5 = vsel %vm498_vm2, %v7011_v26, 0.0  ;;  %7038 = vadd.xlane.f32.xlu0 %v7037_v58  ;;  %v6453_v52 = vmul.f32 %v13386_v54, %v6441_v19  ;;  %v9753_v31 = vpack.c.bf16 %v7918_v16, %v7917_v12  ;;  %v7920_v58 = vld [vmem:[%s13842_s7 + $0x78] sm:$0xff] }
0x23b2   : > { %v10616_v15 = vpop.eup %10615  ;;  %7035 = vadd.xlane.f32.xlu1 %v7034_v5  ;;  %v9757_v26 = vpack.c.bf16 %v7920_v58, %v7919_v3 }
0x23b3   : > { %v7015_v59 = vpop.permute.xlu1 %7014  ;;  %v6440_v17 = vmul.f32 %v10616_v15, %v13320_v42  ;;  %v6465_v57 = vadd.f32 %v13391_v53, %v6453_v52 }
0x23b4   : > { %v7040_v1 = vsel %vm498_vm2, %v7015_v59, 0.0  ;;  %v7019_v9 = vpop.permute.xlu0 %7018 }
0x23b5   : > { %v6452_v50 = vmul.f32 %v13386_v54, %v6440_v17 }
0x23b6   : > { %v10618_v49 = vpop.eup %10617  ;;  %7041 = vadd.xlane.f32.xlu1 %v7040_v1 }
0x23b7   : > { %v10620_v35 = vpop.eup %10619  ;;  %v7017_v37 = vpop.permute.xlu1 %7016  ;;  %v6464_v60 = vadd.f32 %v13391_v53, %v6452_v50  ;;  %v6443_v55 = vmul.f32 %v10618_v49, %v13326_v45 }
0x23b8   : > { %v7043_v62 = vsel %vm498_vm2, %v7017_v37, 0.0  ;;  %v6442_v42 = vmul.f32 %v10620_v35, %v13330_v24  ;;  %v7046_v24 = vsel %vm498_vm2, %v7019_v9, 0.0  ;;  %v7023_v56 = vpop.permute.xlu0 %7022 }
0x23b9   : > { %9176 = vmatprep.mubr.msk.f32.mxu0 %vm498_vm2, %v6464_v60  ;;  %v6455_v20 = vmul.f32 %v13386_v54, %v6443_v55  ;;  %v7052_v63 = vsel %vm498_vm2, %v7023_v56, 0.0 }
0x23ba   : > { %v10622_v47 = vpop.eup %10621  ;;  %9177 = vmatmul.mubr.msk.f32.gmra.mrb[98].mxu0 %vm498_vm2, %v6465_v57  ;;  %7044 = vadd.xlane.f32.xlu1 %v7043_v62  ;;  %v6454_v13 = vmul.f32 %v13386_v54, %v6442_v42 }
0x23bb   : > { %v10624_v39 = vpop.eup %10623  ;;  %v6445_v45 = vmul.f32 %v10622_v47, %v13337_v11  ;;  %v6467_v38 = vadd.f32 %v13391_v53, %v6455_v20  ;;  %v7021_v10 = vpop.permute.xlu1 %7020 }
0x23bc   : > { %v6466_v51 = vadd.f32 %v13391_v53, %v6454_v13  ;;  %v6444_v41 = vmul.f32 %v10624_v39, %v13341_v7  ;;  %v7049_v0 = vsel %vm498_vm2, %v7021_v10, 0.0 }
0x23bd   : > { %v6457_v61 = vmul.f32 %v13386_v54, %v6445_v45 }
0x23be   : > { %9179 = vmatprep.mubr.msk.f32.mxu0 %vm498_vm2, %v6466_v51  ;;  %7047 = vadd.xlane.f32.xlu1 %v7046_v24  ;;  %v6456_v43 = vmul.f32 %v13386_v54, %v6444_v41 }
0x23bf   : > { %9180 = vmatmul.mubr.msk.f32.gmra.mrb[100].mxu0 %vm498_vm2, %v6467_v38  ;;  %v6469_v7 = vadd.f32 %v13391_v53, %v6457_v61  ;;  %v7025_v18 = vpop.permute.xlu1 %7024 }
0x23c0   : > { %v6468_v11 = vadd.f32 %v13391_v53, %v6456_v43  ;;  %v7055_v54 = vsel %vm498_vm2, %v7025_v18, 0.0  ;;  %v7914_v53 = vld [vmem:[%s13842_s7 + $0x48] sm:$0xff] }
0x23c1   : > { %v9745_v27 = vpack.c.bf16 %v7914_v53, %v7913_v44 }
0x23c2   : > { %9182 = vmatprep.mubr.msk.f32.mxu0 %vm498_vm2, %v6468_v11  ;;  %7050 = vadd.xlane.f32.xlu1 %v7049_v0 }
0x23c3   : > { %9183 = vmatmul.mubr.msk.f32.gmra.mrb[102].mxu0 %vm498_vm2, %v6469_v7  ;;  %9746 = vmatprep.subr.bf16.mxu1 %v9745_v27 }
0x23c4   : > { %9748 = vmatpush3.bf16.msra.mxu1 %v9745_v27 }
0x23c5   : > { %9750 = vmatprep.subr.bf16.mxu1 %v9749_v34 }
0x23c6   : > { %7053 = vadd.xlane.f32.xlu1 %v7052_v63 }
0x23c8   : > { %9752 = vmatpush3.bf16.msra.mxu1 %v9749_v34 }
0x23c9   : > { %9754 = vmatprep.subr.bf16.mxu1 %v9753_v31 }
0x23ca   : > { %7056 = vadd.xlane.f32.xlu1 %v7055_v54 }
0x23cc   : > { %9756 = vmatpush3.bf16.msra.mxu1 %v9753_v31 }
0x23cd   : > { %9758 = vmatprep.subr.bf16.mxu1 %v9757_v26 }
0x23d0   : > { %9760 = vmatpush3.bf16.msra.mxu1 %v9757_v26 }
0x2482   : > { %v9175_v19 = vpop.f32.mrb[96].mxu0 }
0x2483   : > { %v13456_v5 = vmul.f32 0.70710677, %v9175_v19  ;;  %v6566_v15 = vpop.f32.mrb[97].mxu0 }
0x2484   : > { %v13458_v59 = vmul.f32 0.70710677, %v6566_v15 }
0x2485   : > { %v6638_v17 = vand.u32 2147483647, %v13456_v5  ;;  %vm6622_vm1 = vcmp.ge.f32.partialorder %v13456_v5, 0.0 }
0x2486   : > { %v6637_v1 = vand.u32 2147483647, %v13458_v59  ;;  %vm6621_vm3 = vcmp.ge.f32.partialorder %v13458_v59, 0.0 }
0x2487   : > { %v6646_v52 = vmul.f32 0.3275911, %v6638_v17  ;;  %v6750_v57 = vsub.f32 0.0, %v6638_v17 }
0x2488   : > { %v6645_v50 = vmul.f32 0.3275911, %v6637_v1  ;;  %v6749_v47 = vsub.f32 0.0, %v6637_v1 }
0x2489   : > { %v6654_v49 = vadd.f32 1.0, %v6646_v52  ;;  %v6758_v51 = vmul.f32 %v6750_v57, %v6638_v17  ;;  %v13501_v17 = vmul.f32 0.5, %v9175_v19 }
0x248a   : > { %v6653_v35 = vadd.f32 1.0, %v6645_v50  ;;  %v6757_v0 = vmul.f32 %v6749_v47, %v6637_v1  ;;  %v13506_v47 = vmul.f32 0.5, %v6566_v15 }
0x248b   : > { %10625 = vrcp.f32 %v6654_v49  ;;  %v6767_v44 = vmul.f32 1.442695, %v6758_v51  ;;  %v13964_v51 = vmov -1.0  }
0x248c   : > { %10627 = vrcp.f32 %v6653_v35  ;;  %v6765_v12 = vmul.f32 1.442695, %v6757_v0 }
0x248d   : > { %v13462_v37 = vpop.f32.mrb[98].mxu0 }
0x248e   : > { %v13465_v60 = vmul.f32 0.70710677, %v13462_v37  ;;  %v13467_v55 = vpop.f32.mrb[99].mxu0 }
0x248f   : > { %v13470_v62 = vmul.f32 0.70710677, %v13467_v55 }
0x2490   : > { %v6640_v42 = vand.u32 2147483647, %v13465_v60  ;;  %vm6624_vm4 = vcmp.ge.f32.partialorder %v13465_v60, 0.0 }
0x2491   : > { %v6639_v20 = vand.u32 2147483647, %v13470_v62  ;;  %vm6623_vm6 = vcmp.ge.f32.partialorder %v13470_v62, 0.0 }
0x2492   : > { %v6648_v9 = vmul.f32 0.3275911, %v6640_v42  ;;  %v13474_v13 = vpop.f32.mrb[100].mxu0  ;;  %v6752_v63 = vsub.f32 0.0, %v6640_v42 }
0x2493   : > { %v6647_v39 = vmul.f32 0.3275911, %v6639_v20  ;;  %v13477_v45 = vmul.f32 0.70710677, %v13474_v13  ;;  %v13479_v24 = vpop.f32.mrb[101].mxu0  ;;  %v6751_v16 = vsub.f32 0.0, %v6639_v20 }
0x2494   : > { %v6656_v41 = vadd.f32 1.0, %v6648_v9  ;;  %v13493_v8 = vmul.f32 0.70710677, %v13479_v24  ;;  %v6760_v58 = vmul.f32 %v6752_v63, %v6640_v42 }
0x2495   : > { %v13481_v38 = vpop.eup %10625  ;;  %v6655_v61 = vadd.f32 1.0, %v6647_v39  ;;  %v6642_v10 = vand.u32 2147483647, %v13477_v45  ;;  %v6759_v35 = vmul.f32 %v6751_v16, %v6639_v20  ;;  %vm6626_vm7 = vcmp.ge.f32.partialorder %v13477_v45, 0.0 }
0x2496   : > { %v13484_v43 = vpop.eup %10627  ;;  %v6678_v11 = vmul.f32 1.0614054, %v13481_v38  ;;  %10629 = vrcp.f32 %v6656_v41  ;;  %v13487_v7 = vpop.f32.mrb[102].mxu0  ;;  %v6641_v26 = vand.u32 2147483647, %v13493_v8  ;;  %v6630_v41 = vsel %vm6622_vm1, 1.0, %v13964_v51 }
0x2497   : > { %v6677_v56 = vmul.f32 1.0614054, %v13484_v43  ;;  %10631 = vrcp.f32 %v6655_v61  ;;  %v6650_v18 = vmul.f32 0.3275911, %v6642_v10  ;;  %v13490_v53 = vpop.f32.mrb[103].mxu0  ;;  %v6754_v61 = vsub.f32 0.0, %v6642_v10 }
0x2498   : > { %v6686_v54 = vadd.f32 -1.4531521, %v6678_v11  ;;  %v13497_v31 = vmul.f32 0.70710677, %v13487_v7  ;;  %v6649_v50 = vmul.f32 0.3275911, %v6641_v26 }
0x2499   : > { %v6685_v27 = vadd.f32 -1.4531521, %v6677_v56  ;;  %v6658_v36 = vadd.f32 1.0, %v6650_v18  ;;  %v6771_v9 = vmul.f32 1.442695, %v6760_v58  ;;  %v6762_v16 = vmul.f32 %v6754_v61, %v6642_v10 }
0x249a   : > { %v6694_v34 = vmul.f32 %v13481_v38, %v6686_v54  ;;  %v6644_v57 = vand.u32 2147483647, %v13497_v31  ;;  %v6657_v39 = vadd.f32 1.0, %v6649_v50  ;;  %v13516_v15 = vmul.f32 0.70710677, %v13490_v53 }
0x249b   : > { %v6693_v3 = vmul.f32 %v13484_v43, %v6685_v27  ;;  %10633 = vrcp.f32 %v6658_v36  ;;  %v6769_v54 = vmul.f32 1.442695, %v6759_v35  ;;  %vm6625_vm8 = vcmp.ge.f32.partialorder %v13493_v8, 0.0 }
0x249c   : > { %v6702_v1 = vadd.f32 1.4214138, %v6694_v34  ;;  %10635 = vpow2.f32 %v6767_v44  ;;  %v6652_v11 = vmul.f32 0.3275911, %v6644_v57  ;;  %v13526_v50 = vand.u32 2147483647, %v13516_v15 }
0x249d   : > { %v6701_v52 = vadd.f32 1.4214138, %v6693_v3  ;;  %10637 = vpow2.f32 %v6765_v12  ;;  %v6609_v8 = vmul.f32 0.5, %v13479_v24  ;;  %vm6628_vm9 = vcmp.ge.f32.partialorder %v13497_v31, 0.0 }
0x249e   : > { %v6710_v49 = vmul.f32 %v13481_v38, %v6702_v1  ;;  %10639 = vrcp.f32 %v6657_v39  ;;  %v6660_v44 = vadd.f32 1.0, %v6652_v11  ;;  %v6651_v61 = vmul.f32 0.3275911, %v13526_v50 }
0x249f   : > { %v6709_v42 = vmul.f32 %v13484_v43, %v6701_v52  ;;  %10641 = vpow2.f32 %v6771_v9  ;;  %v6753_v52 = vsub.f32 0.0, %v6641_v26  ;;  %vm6627_vm10 = vcmp.ge.f32.partialorder %v13516_v15, 0.0 }
0x24a0   : > { %v13509_v19 = vpop.eup %10629  ;;  %v6718_v5 = vadd.f32 -0.28449672, %v6710_v49  ;;  %10643 = vrcp.f32 %v6660_v44 }
0x24a1   : > { %v13512_v0 = vpop.eup %10631  ;;  %v6717_v56 = vadd.f32 -0.28449672, %v6709_v42  ;;  %v6680_v20 = vmul.f32 1.0614054, %v13509_v19  ;;  %10645 = vpow2.f32 %v6769_v54 }
0x24a2   : > { %v6726_v63 = vmul.f32 %v13481_v38, %v6718_v5  ;;  %v6679_v18 = vmul.f32 1.0614054, %v13512_v0  ;;  %v6756_v5 = vsub.f32 0.0, %v6644_v57 }
0x24a3   : > { %v6725_v27 = vmul.f32 %v13484_v43, %v6717_v56  ;;  %v6688_v36 = vadd.f32 -1.4531521, %v6680_v20 }
0x24a4   : > { %v6734_v34 = vadd.f32 0.2548296, %v6726_v63  ;;  %v6687_v12 = vadd.f32 -1.4531521, %v6679_v18  ;;  %v6775_v18 = vmul.f32 1.442695, %v6762_v16 }
0x24a5   : > { %v13522_v3 = vpop.eup %10633  ;;  %v6733_v58 = vadd.f32 0.2548296, %v6725_v27  ;;  %v6696_v1 = vmul.f32 %v13509_v19, %v6688_v36  ;;  %v6761_v27 = vmul.f32 %v6753_v52, %v6641_v26  ;;  %v6659_v36 = vadd.f32 1.0, %v6651_v61 }
0x24a6   : > { %v6742_v49 = vmul.f32 %v13481_v38, %v6734_v34  ;;  %v6695_v35 = vmul.f32 %v13512_v0, %v6687_v12  ;;  %v6682_v42 = vmul.f32 1.0614054, %v13522_v3  ;;  %v10636_v9 = vpop.eup %10635  ;;  %v6629_v34 = vsel %vm6621_vm3, 1.0, %v13964_v51 }
0x24a7   : > { %v6741_v10 = vmul.f32 %v13484_v43, %v6733_v58  ;;  %v6704_v39 = vadd.f32 1.4214138, %v6696_v1  ;;  %v10638_v11 = vpop.eup %10637  ;;  %10647 = vrcp.f32 %v6659_v36 }
0x24a8   : > { %v6782_v56 = vmul.f32 %v10636_v9, %v6742_v49  ;;  %v6703_v20 = vadd.f32 1.4214138, %v6695_v35  ;;  %v6690_v63 = vadd.f32 -1.4531521, %v6682_v42  ;;  %v13539_v58 = vpop.eup %10639  ;;  %v6764_v35 = vmul.f32 %v6756_v5, %v6644_v57 }
0x24a9   : > { %v6781_v44 = vmul.f32 %v10638_v11, %v6741_v10  ;;  %v6712_v38 = vmul.f32 %v13509_v19, %v6704_v39  ;;  %v6681_v26 = vmul.f32 1.0614054, %v13539_v58  ;;  %v10642_v52 = vpop.eup %10641  ;;  %10649 = vpow2.f32 %v6775_v18 }
0x24aa   : > { %v6790_v54 = vsub.f32 1.0, %v6782_v56  ;;  %v6711_v43 = vmul.f32 %v13512_v0, %v6703_v20  ;;  %v6698_v12 = vmul.f32 %v13522_v3, %v6690_v63  ;;  %v6773_v39 = vmul.f32 1.442695, %v6761_v27  ;;  %v13543_v61 = vpop.eup %10643 }
0x24ab   : > { %v6789_v1 = vsub.f32 1.0, %v6781_v44  ;;  %v6720_v49 = vadd.f32 -0.28449672, %v6712_v38  ;;  %v6689_v57 = vadd.f32 -1.4531521, %v6681_v26  ;;  %v10646_v44 = vpop.eup %10645 }
0x24ac   : > { %v6798_v16 = vmul.f32 %v6790_v54, %v6630_v41  ;;  %v6719_v42 = vadd.f32 -0.28449672, %v6711_v43  ;;  %v6706_v9 = vadd.f32 1.4214138, %v6698_v12  ;;  %v6684_v63 = vmul.f32 1.0614054, %v13543_v61 }
0x24ad   : > { %v6797_v10 = vmul.f32 %v6789_v1, %v6629_v34  ;;  %v6728_v59 = vmul.f32 %v13509_v19, %v6720_v49  ;;  %v6697_v18 = vmul.f32 %v13539_v58, %v6689_v57  ;;  %v6779_v27 = vmul.f32 1.442695, %v6764_v35 }
0x24ae   : > { %v6806_v11 = vadd.f32 1.0, %v6798_v16  ;;  %v6727_v56 = vmul.f32 %v13512_v0, %v6719_v42  ;;  %v6714_v20 = vmul.f32 %v13522_v3, %v6706_v9  ;;  %v6692_v43 = vadd.f32 -1.4531521, %v6684_v63 }
0x24af   : > { %v6805_v5 = vadd.f32 1.0, %v6797_v10  ;;  %v6736_v41 = vadd.f32 0.2548296, %v6728_v59  ;;  %v6755_v12 = vsub.f32 0.0, %v13526_v50  ;;  %v6705_v42 = vadd.f32 1.4214138, %v6697_v18 }
0x24b0   : > { %v6735_v38 = vadd.f32 0.2548296, %v6727_v56  ;;  %v6722_v36 = vadd.f32 -0.28449672, %v6714_v20  ;;  %v6814_v1 = vmul.f32 %v6806_v11, %v13501_v17  ;;  %v6632_v9 = vsel %vm6624_vm4, 1.0, %v13964_v51 }
0x24b1   : > { %v6813_v54 = vmul.f32 %v6805_v5, %v13506_v47  ;;  %v6744_v34 = vmul.f32 %v13509_v19, %v6736_v41  ;;  %10651 = vpow2.f32 %v6773_v39  ;;  %v6700_v47 = vmul.f32 %v13543_v61, %v6692_v43 }
0x24b2   : > { %v6743_v49 = vmul.f32 %v13512_v0, %v6735_v38  ;;  %v6730_v16 = vmul.f32 %v13522_v3, %v6722_v36  ;;  %v6713_v17 = vmul.f32 %v13539_v58, %v6705_v42  ;;  %v10648_v0 = vpop.eup %10647  ;;  %10653 = vpow2.f32 %v6779_v27 }
0x24b3   : > { %v6784_v26 = vmul.f32 %v10642_v52, %v6744_v34  ;;  %9201 = vmatprep.mubr.msk.f32.mxu1 %vm924_vm5, %v6813_v54  ;;  %v6708_v59 = vadd.f32 1.4214138, %v6700_v47  ;;  %v6763_v60 = vmul.f32 %v6755_v12, %v13526_v50  ;;  %v6683_v56 = vmul.f32 1.0614054, %v10648_v0  ;;  %v10650_v20 = vpop.eup %10649 }
0x24b4   : > { %v6783_v19 = vmul.f32 %v10646_v44, %v6743_v49  ;;  %v6738_v35 = vadd.f32 0.2548296, %v6730_v16  ;;  %9202 = vmatmul.mubr.msk.f32.vlgmr.msra.gmra.mrb[120].mxu1 %vm924_vm5, %v6814_v1  ;;  %v6721_v11 = vadd.f32 -0.28449672, %v6713_v17  ;;  %v6631_v5 = vsel %vm6623_vm6, 1.0, %v13964_v51 }
0x24b5   : > { %v6792_v10 = vsub.f32 1.0, %v6784_v26  ;;  %v6716_v41 = vmul.f32 %v13543_v61, %v6708_v59  ;;  %v6691_v36 = vadd.f32 -1.4531521, %v6683_v56  ;;  %v6777_v27 = vmul.f32 1.442695, %v6763_v60 }
0x24b6   : > { %v6791_v52 = vsub.f32 1.0, %v6783_v19  ;;  %v6746_v39 = vmul.f32 %v13522_v3, %v6738_v35  ;;  %v6729_v38 = vmul.f32 %v13539_v58, %v6721_v11  ;;  %v6607_v3 = vmul.f32 0.5, %v13467_v55 }
0x24b7   : > { %v6800_v57 = vmul.f32 %v6792_v10, %v6632_v9  ;;  %v6724_v50 = vadd.f32 -0.28449672, %v6716_v41  ;;  %v6699_v43 = vmul.f32 %v10648_v0, %v6691_v36  ;;  %v6608_v12 = vmul.f32 0.5, %v13462_v37 }
0x24b8   : > { %v6799_v63 = vmul.f32 %v6791_v52, %v6631_v5  ;;  %v6786_v44 = vmul.f32 %v10650_v20, %v6746_v39  ;;  %v6737_v34 = vadd.f32 0.2548296, %v6729_v38  ;;  %10655 = vpow2.f32 %v6777_v27 }
0x24b9   : > { %v6808_v18 = vadd.f32 1.0, %v6800_v57  ;;  %v6732_v1 = vmul.f32 %v13543_v61, %v6724_v50  ;;  %v6707_v42 = vadd.f32 1.4214138, %v6699_v43  ;;  %v6634_v55 = vsel %vm6626_vm7, 1.0, %v13964_v51 }
0x24ba   : > { %v6807_v54 = vadd.f32 1.0, %v6799_v63  ;;  %v6794_v62 = vsub.f32 1.0, %v6786_v44  ;;  %v6745_v16 = vmul.f32 %v13539_v58, %v6737_v34  ;;  %v6633_v59 = vsel %vm6625_vm8, 1.0, %v13964_v51 }
0x24bb   : > { %v10652_v9 = vpop.eup %10651  ;;  %v6816_v26 = vmul.f32 %v6808_v18, %v6608_v12  ;;  %v6740_v47 = vadd.f32 0.2548296, %v6732_v1  ;;  %v6715_v35 = vmul.f32 %v10648_v0, %v6707_v42  ;;  %v6610_v57 = vmul.f32 0.5, %v13474_v13 }
0x24bc   : > { %v6815_v49 = vmul.f32 %v6807_v54, %v6607_v3  ;;  %v6785_v19 = vmul.f32 %v10652_v9, %v6745_v16  ;;  %v10654_v37 = vpop.eup %10653  ;;  %v6802_v45 = vmul.f32 %v6794_v62, %v6634_v55  ;;  %v6636_v38 = vsel %vm6628_vm9, 1.0, %v13964_v51 }
0x24bd   : > { %v6748_v17 = vmul.f32 %v13543_v61, %v6740_v47  ;;  %v6723_v10 = vadd.f32 -0.28449672, %v6715_v35  ;;  %v6635_v13 = vsel %vm6627_vm10, 1.0, %v13964_v51  ;;  %v6611_v27 = vmul.f32 0.5, %v13490_v53 }
0x24be   : > { %9204 = vmatprep.mubr.msk.f32.mxu1 %vm924_vm5, %v6815_v49  ;;  %v6793_v58 = vsub.f32 1.0, %v6785_v19  ;;  %v6810_v11 = vadd.f32 1.0, %v6802_v45  ;;  %v6612_v3 = vmul.f32 0.5, %v13487_v7  ;;  %v7039_v45 = vpop.xlane.xlu0 %7038 }
0x24bf   : > { %9205 = vmatmul.mubr.msk.f32.gmra.mrb[122].mxu1 %vm924_vm5, %v6816_v26  ;;  %v6788_v60 = vmul.f32 %v10654_v37, %v6748_v17  ;;  %v6731_v39 = vmul.f32 %v10648_v0, %v6723_v10  ;;  %v7036_v17 = vpop.xlane.xlu1 %7035 }
0x24c0   : > { %v6801_v52 = vmul.f32 %v6793_v58, %v6633_v59  ;;  %v6818_v44 = vmul.f32 %v6810_v11, %v6610_v57 }
0x24c1   : > { %v6739_v20 = vadd.f32 0.2548296, %v6731_v39  ;;  %v6796_v5 = vsub.f32 1.0, %v6788_v60 }
0x24c2   : > { %v6809_v56 = vadd.f32 1.0, %v6801_v52  ;;  %v10656_v63 = vpop.eup %10655 }
0x24c3   : > { %v6747_v41 = vmul.f32 %v10648_v0, %v6739_v20  ;;  %v6804_v18 = vmul.f32 %v6796_v5, %v6636_v38  ;;  %v7042_v59 = vpop.xlane.xlu1 %7041 }
0x24c4   : > { %v6817_v61 = vmul.f32 %v6809_v56, %v6609_v8 }
0x24c5   : > { %v6787_v36 = vmul.f32 %v10656_v63, %v6747_v41  ;;  %v6812_v31 = vadd.f32 1.0, %v6804_v18 }
0x24c6   : > { %9207 = vmatprep.mubr.msk.f32.mxu1 %vm924_vm5, %v6817_v61 }
0x24c7   : > { %9208 = vmatmul.mubr.msk.f32.gmra.mrb[124].mxu1 %vm924_vm5, %v6818_v44  ;;  %v6795_v24 = vsub.f32 1.0, %v6787_v36  ;;  %v6820_v34 = vmul.f32 %v6812_v31, %v6612_v3  ;;  %v7045_v8 = vpop.xlane.xlu1 %7044 }
0x24c9   : > { %v6803_v50 = vmul.f32 %v6795_v24, %v6635_v13 }
0x24cb   : > { %v6811_v0 = vadd.f32 1.0, %v6803_v50 }
0x24cd   : > { %v6819_v54 = vmul.f32 %v6811_v0, %v6611_v27 }
0x24cf   : > { %9210 = vmatprep.mubr.msk.f32.mxu1 %vm924_vm5, %v6819_v54 }
0x24d0   : > { %9211 = vmatmul.mubr.msk.f32.gmra.mrb[126].mxu1 %vm924_vm5, %v6820_v34  ;;  %vm7520_vm5 = vcmask 113664  }
0x2587   : > { %v9203_v15 = vpop.f32.mrb[120].mxu1 }
0x2588   : > { %v13595_v43 = vadd.f32 %v9203_v15, %v13263_v22  ;;  %v6920_v12 = vpop.f32.mrb[121].mxu1 }
0x2589   : > { %v13598_v51 = vadd.f32 %v6920_v12, %v13266_v46 }
0x258a   : > { %v6981_v53 = vsel %vm498_vm2, %v13595_v43, 0.0 }
0x258b   : > { %6982 = vadd.xlane.f32.xlu0 %v6981_v53  ;;  %v6978_v7 = vsel %vm498_vm2, %v13598_v51, 0.0 }
0x258f   : > { %6979 = vadd.xlane.f32.xlu0 %v6978_v7 }
0x2592   : > { %v9206_v62 = vpop.f32.mrb[122].mxu1 }
0x2593   : > { %v13605_v1 = vadd.f32 %v9206_v62, %v13273_v32  ;;  %v6930_v49 = vpop.f32.mrb[123].mxu1 }
0x2594   : > { %v13608_v22 = vadd.f32 %v6930_v49, %v13276_v6 }
0x2595   : > { %v6987_v46 = vsel %vm498_vm2, %v13605_v1, 0.0 }
0x2596   : > { %6988 = vadd.xlane.f32.xlu0 %v6987_v46  ;;  %v6984_v16 = vsel %vm498_vm2, %v13608_v22, 0.0 }
0x259a   : > { %6985 = vadd.xlane.f32.xlu0 %v6984_v16  ;;  %v9209_v42 = vpop.f32.mrb[124].mxu1 }
0x259b   : > { %v13615_v9 = vadd.f32 %v9209_v42, %v13283_v48  ;;  %v6940_v26 = vpop.f32.mrb[125].mxu1 }
0x259c   : > { %v13618_v32 = vadd.f32 %v6940_v26, %v13286_v21 }
0x259d   : > { %v6993_v6 = vsel %vm498_vm2, %v13615_v9, 0.0 }
0x259e   : > { %6994 = vadd.xlane.f32.xlu0 %v6993_v6  ;;  %v6990_v47 = vsel %vm498_vm2, %v13618_v32, 0.0 }
0x25a2   : > { %6991 = vadd.xlane.f32.xlu0 %v6990_v47 }
0x25a3   : > { %v9212_v55 = vpop.f32.mrb[126].mxu1 }
0x25a4   : > { %v6950_v19 = vpop.f32.mrb[127].mxu1  ;;  %v13628_v48 = vadd.f32 %v9212_v55, %v13293_v29 }
0x25a5   : > { %v13625_v35 = vadd.f32 %v6950_v19, %v13296_v23 }
0x25a6   : > { %v6999_v37 = vsel %vm498_vm2, %v13628_v48, 0.0 }
0x25a7   : > { %v6996_v21 = vsel %vm498_vm2, %v13625_v35, 0.0 }
0x25a8   : > { %6997 = vadd.xlane.f32.xlu0 %v6996_v21 }
0x25ac   : > { %7000 = vadd.xlane.f32.xlu0 %v6999_v37 }
0x2618   : > { %v6983_v58 = vpop.xlane.xlu0 %6982 }
0x2619   : > { %v7059_v10 = vadd.f32 %v7039_v45, %v6983_v58 }
0x261b   : > { %v7067_v60 = vmul.f32 0.0125, %v7059_v10 }
0x261c   : > { %v6980_v52 = vpop.xlane.xlu0 %6979 }
0x261d   : > { %v13635_v23 = vsub.f32 %v13953_v2, %v7067_v60  ;;  %v7058_v29 = vadd.f32 %v7036_v17, %v6980_v52  ;;  %v7048_v2 = vpop.xlane.xlu1 %7047 }
0x261f   : > { %v7123_v39 = vmul.f32 %v13635_v23, %v13635_v23  ;;  %v7066_v11 = vmul.f32 0.0125, %v7058_v29 }
0x2621   : > { %v13640_v56 = vsub.f32 %v13955_v14, %v7066_v11  ;;  %7140 = vrot.lane.b32.xlu1 %v7123_v39, %s10707_s16  ;;  %v7051_v36 = vpop.xlane.xlu1 %7050  ;;  %v13683_v6 = vsub.f32 %v13598_v51, %v7066_v11 }
0x2623   : > { %v7122_v20 = vmul.f32 %v13640_v56, %v13640_v56  ;;  %v6989_v57 = vpop.xlane.xlu0 %6988  ;;  %v7090_v47 = vmul.f32 %v13683_v6, %v13683_v6 }
0x2624   : > { %v7061_v5 = vadd.f32 %v7045_v8, %v6989_v57 }
0x2625   : > { %7138 = vrot.lane.b32.xlu0 %v7122_v20, %s10707_s16 }
0x2626   : > { %v7069_v63 = vmul.f32 0.0125, %v7061_v5 }
0x2627   : > { %v6986_v61 = vpop.xlane.xlu0 %6985 }
0x2628   : > { %v7060_v41 = vadd.f32 %v7042_v59, %v6986_v61  ;;  %v13650_v18 = vsub.f32 %v13956_v4, %v7069_v63  ;;  %v7054_v4 = vpop.xlane.xlu1 %7053  ;;  %v13697_v21 = vsub.f32 %v13605_v1, %v7069_v63 }
0x262a   : > { %v7068_v44 = vmul.f32 0.0125, %v7060_v41  ;;  %v7125_v27 = vmul.f32 %v13650_v18, %v13650_v18  ;;  %v7093_v45 = vmul.f32 %v13697_v21, %v13697_v21 }
0x262b   : > { %v6995_v14 = vpop.xlane.xlu0 %6994 }
0x262c   : > { %v13647_v38 = vsub.f32 %v13954_v28, %v7068_v44  ;;  %v7063_v13 = vadd.f32 %v7051_v36, %v6995_v14  ;;  %v7057_v7 = vpop.xlane.xlu1 %7056  ;;  %v13691_v55 = vsub.f32 %v13608_v22, %v7068_v44  ;;  %v7107_v17 = vsel %vm498_vm2, %v7093_v45, 0.0 }
0x262e   : > { %v7124_v24 = vmul.f32 %v13647_v38, %v13647_v38  ;;  %v7071_v50 = vmul.f32 0.0125, %v7063_v13 }
0x262f   : > { %v6992_v31 = vpop.xlane.xlu0 %6991 }
0x2630   : > { %7142 = vrot.lane.b32.xlu1 %v7124_v24, %s10707_s16  ;;  %v13658_v0 = vsub.f32 %v13958_v25, %v7071_v50  ;;  %v7062_v28 = vadd.f32 %v7048_v2, %v6992_v31  ;;  %v13713_v10 = vsub.f32 %v13615_v9, %v7071_v50  ;;  %v6972_v31 = vld [vmem:[%s13843_s8 + $0x28] sm:$0xff] }
0x2632   : > { %v7070_v3 = vmul.f32 0.0125, %v7062_v28  ;;  %v7127_v54 = vmul.f32 %v13658_v0, %v13658_v0  ;;  %v7095_v52 = vmul.f32 %v13713_v10, %v13713_v10  ;;  %v6974_v28 = vld [vmem:[%s13843_s8 + $0x38] sm:$0xff] }
0x2634   : > { %7144 = vrot.lane.b32.xlu1 %v7125_v27, %s10707_s16  ;;  %v13664_v34 = vsub.f32 %v13957_v30, %v7070_v3  ;;  %v13703_v37 = vsub.f32 %v13618_v32, %v7070_v3  ;;  %v7113_v8 = vsel %vm498_vm2, %v7095_v52, 0.0  ;;  %v6973_v27 = vld [vmem:[%s13843_s8 + $0x30] sm:$0xff] }
0x2635   : > { %v6998_v12 = vpop.xlane.xlu0 %6997  ;;  %v9761_v3 = vpack.c.bf16 %v6973_v27, %v6972_v31 }
0x2636   : > { %v7126_v15 = vmul.f32 %v13664_v34, %v13664_v34  ;;  %v7064_v53 = vadd.f32 %v7054_v4, %v6998_v12  ;;  %v7094_v1 = vmul.f32 %v13703_v37, %v13703_v37  ;;  %v6975_v4 = vld [vmem:[%s13843_s8 + $0x40] sm:$0xff] }
0x2637   : > { %9762 = vmatprep.subr.bf16.mxu0 %v9761_v3 }
0x2638   : > { %7148 = vrot.lane.b32.xlu1 %v7127_v54, %s10707_s16  ;;  %7146 = vrot.lane.b32.xlu0 %v7126_v15, %s10707_s16  ;;  %v7072_v25 = vmul.f32 0.0125, %v7064_v53  ;;  %v7110_v58 = vsel %vm498_vm2, %v7094_v1, 0.0  ;;  %v9765_v54 = vpack.c.bf16 %v6975_v4, %v6974_v28 }
0x2639   : > { %v7001_v62 = vpop.xlane.xlu0 %7000  ;;  %9764 = vmatpush3.bf16.msra.mxu0 %v9761_v3 }
0x263a   : > { %v13671_v49 = vsub.f32 %v13959_v40, %v7072_v25  ;;  %v7065_v46 = vadd.f32 %v7057_v7, %v7001_v62  ;;  %v13686_v40 = vsub.f32 %v13595_v43, %v7067_v60  ;;  %v7092_v43 = vmul.f32 %v13691_v55, %v13691_v55  ;;  %9766 = vmatprep.subr.bf16.mxu0 %v9765_v54 }
0x263b   : > { %v13716_v59 = vsub.f32 %v13625_v35, %v7072_v25 }
0x263c   : > { %v7128_v30 = vmul.f32 %v13671_v49, %v13671_v49  ;;  %v7073_v16 = vmul.f32 0.0125, %v7065_v46  ;;  %v7091_v19 = vmul.f32 %v13686_v40, %v13686_v40  ;;  %v7104_v22 = vsel %vm498_vm2, %v7092_v43, 0.0 }
0x263d   : > { %v7096_v9 = vmul.f32 %v13716_v59, %v13716_v59  ;;  %9768 = vmatpush3.bf16.msra.mxu0 %v9765_v54 }
0x263e   : > { %v13676_v42 = vsub.f32 %v13960_v33, %v7073_v16  ;;  %7150 = vrot.lane.b32.xlu0 %v7128_v30, %s10707_s16  ;;  %v7098_v33 = vsel %vm498_vm2, %v7090_v47, 0.0  ;;  %v7101_v51 = vsel %vm498_vm2, %v7091_v19, 0.0  ;;  %v13722_v39 = vsub.f32 %v13628_v48, %v7073_v16 }
0x263f   : > { %v7116_v35 = vsel %vm498_vm2, %v7096_v9, 0.0 }
0x2640   : > { %v7129_v26 = vmul.f32 %v13676_v42, %v13676_v42  ;;  %v7097_v20 = vmul.f32 %v13722_v39, %v13722_v39 }
0x2642   : > { %7152 = vrot.lane.b32.xlu1 %v7129_v26, %s10707_s16  ;;  %v7119_v57 = vsel %vm498_vm2, %v7097_v20, 0.0 }
0x265d   : > { %7099 = vadd.xlane.f32.xlu0 %v7098_v33  ;;  %v6976_v33 = vld [vmem:[%s13843_s8 + $0x48] sm:$0xff] }
0x265e   : > { %9221 = vmatprep.subr.mxu0 %v6976_v33 }
0x265f   : > { %9222 = vmatpush3.msra.mxu0 %v6976_v33 }
0x2661   : > { %7102 = vadd.xlane.f32.xlu0 %v7101_v51 }
0x2665   : > { %7105 = vadd.xlane.f32.xlu0 %v7104_v22 }
0x2669   : > { %7108 = vadd.xlane.f32.xlu0 %v7107_v17 }
0x266d   : > { %7111 = vadd.xlane.f32.xlu0 %v7110_v58 }
0x2693   : > { %v7141_v32 = vpop.permute.xlu1 %7140 }
0x2694   : > { %v7165_v60 = vsel %vm498_vm2, %v7141_v32, 0.0 }
0x2695   : > { %7166 = vadd.xlane.f32.xlu0 %v7165_v60 }
0x2697   : > { %v7139_v29 = vpop.permute.xlu0 %7138 }
0x2698   : > { %v7162_v11 = vsel %vm498_vm2, %v7139_v29, 0.0 }
0x2699   : > { %7114 = vadd.xlane.f32.xlu0 %v7113_v8  ;;  %7163 = vadd.xlane.f32.xlu1 %v7162_v11 }
0x269d   : > { %7117 = vadd.xlane.f32.xlu0 %v7116_v35 }
0x26a1   : > { %7120 = vadd.xlane.f32.xlu0 %v7119_v57 }
0x26a2   : > { %v7143_v48 = vpop.permute.xlu1 %7142 }
0x26a3   : > { %v7168_v61 = vsel %vm498_vm2, %v7143_v48, 0.0 }
0x26a6   : > { %v7145_v5 = vpop.permute.xlu1 %7144 }
0x26a7   : > { %v7171_v2 = vsel %vm498_vm2, %v7145_v5, 0.0 }
0x26a8   : > { %7172 = vadd.xlane.f32.xlu1 %v7171_v2 }
0x26aa   : > { %v7149_v41 = vpop.permute.xlu1 %7148  ;;  %v7147_v63 = vpop.permute.xlu0 %7146 }
0x26ab   : > { %v7177_v44 = vsel %vm498_vm2, %v7149_v41, 0.0  ;;  %v7174_v36 = vsel %vm498_vm2, %v7147_v63, 0.0  ;;  %v6968_v41 = vld [vmem:[%s13843_s8 + $0x8] sm:$0xff] }
0x26ac   : > { %7169 = vadd.xlane.f32.xlu1 %v7168_v61 }
0x26b0   : > { %7178 = vadd.xlane.f32.xlu1 %v7177_v44  ;;  %v7151_v14 = vpop.permute.xlu0 %7150 }
0x26b1   : > { %v7180_v24 = vsel %vm498_vm2, %v7151_v14, 0.0 }
0x26b4   : > { %7175 = vadd.xlane.f32.xlu1 %v7174_v36  ;;  %v7153_v13 = vpop.permute.xlu1 %7152 }
0x26b5   : > { %v7183_v50 = vsel %vm498_vm2, %v7153_v13, 0.0 }
0x26b8   : > { %7181 = vadd.xlane.f32.xlu1 %v7180_v24 }
0x26bc   : > { %7184 = vadd.xlane.f32.xlu1 %v7183_v50 }
0x26ea   : > { %v7100_v15 = vpop.xlane.xlu0 %7099 }
0x26ee   : > { %v7103_v12 = vpop.xlane.xlu0 %7102 }
0x26f2   : > { %v7106_v53 = vpop.xlane.xlu0 %7105 }
0x26f6   : > { %v7109_v25 = vpop.xlane.xlu0 %7108 }
0x26fa   : > { %v7112_v7 = vpop.xlane.xlu0 %7111 }
0x2722   : > { %v7167_v62 = vpop.xlane.xlu0 %7166 }
0x2723   : > { %v7187_v46 = vadd.f32 %v7167_v62, %v7103_v12 }
0x2725   : > { %v7195_v30 = vmul.f32 0.0125, %v7187_v46 }
0x2726   : > { %v7164_v16 = vpop.xlane.xlu1 %7163  ;;  %v7115_v11 = vpop.xlane.xlu0 %7114 }
0x2727   : > { %v7203_v26 = vadd.f32 1e-05, %v7195_v30  ;;  %v7186_v47 = vadd.f32 %v7164_v16, %v7100_v15 }
0x2729   : > { %10657 = vrsqrt.f32 %v7203_v26  ;;  %v7194_v19 = vmul.f32 0.0125, %v7186_v47 }
0x272a   : > { %v7118_v2 = vpop.xlane.xlu0 %7117 }
0x272b   : > { %v7202_v51 = vadd.f32 1e-05, %v7194_v19 }
0x272d   : > { %10659 = vrsqrt.f32 %v7202_v51 }
0x272e   : > { %v7121_v13 = vpop.xlane.xlu0 %7120 }
0x2733   : > { %v13753_v43 = vpop.eup %10657 }
0x2734   : > { %v7227_v22 = vmul.f32 %v13753_v43, %v13635_v23 }
0x2735   : > { %v7173_v45 = vpop.xlane.xlu1 %7172 }
0x2736   : > { %v7189_v17 = vadd.f32 %v7173_v45, %v7109_v25  ;;  %7244 = vrot.lane.b32.xlu1 %v7227_v22, %s10707_s16 }
0x2737   : > { %v13758_v1 = vpop.eup %10659 }
0x2738   : > { %v7226_v58 = vmul.f32 %v13758_v1, %v13640_v56  ;;  %v7197_v60 = vmul.f32 0.0125, %v7189_v17  ;;  %v6967_v56 = vld [vmem:[%s13843_s8] sm:$0xff]  ;;  %v7218_v17 = vmul.f32 %v13758_v1, %v13683_v6 }
0x2739   : > { %v7170_v32 = vpop.xlane.xlu1 %7169  ;;  %v9769_v44 = vpack.c.bf16 %v6968_v41, %v6967_v56 }
0x273a   : > { %v7188_v52 = vadd.f32 %v7170_v32, %v7106_v53  ;;  %7242 = vrot.lane.b32.xlu0 %v7226_v58, %s10707_s16  ;;  %v7205_v9 = vadd.f32 1e-05, %v7197_v60  ;;  %v7219_v58 = vmul.f32 %v13753_v43, %v13686_v40 }
0x273b   : > { %9770 = vmatprep.subr.bf16.mxu0 %v9769_v44 }
0x273c   : > { %v7196_v29 = vmul.f32 0.0125, %v7188_v52 }
0x273d   : > { %v7179_v8 = vpop.xlane.xlu1 %7178 }
0x273e   : > { %v7204_v35 = vadd.f32 1e-05, %v7196_v29  ;;  %v7191_v23 = vadd.f32 %v7179_v8, %v7115_v11 }
0x2740   : > { %10661 = vrsqrt.f32 %v7204_v35  ;;  %v7199_v20 = vmul.f32 0.0125, %v7191_v23 }
0x2741   : > { %v7176_v57 = vpop.xlane.xlu1 %7175  ;;  %10663 = vrsqrt.f32 %v7205_v9 }
0x2742   : > { %v7207_v48 = vadd.f32 1e-05, %v7199_v20  ;;  %v7190_v5 = vadd.f32 %v7176_v57, %v7112_v7 }
0x2744   : > { %v7198_v61 = vmul.f32 0.0125, %v7190_v5  ;;  %10665 = vrsqrt.f32 %v7207_v48 }
0x2745   : > { %v7182_v63 = vpop.xlane.xlu1 %7181 }
0x2746   : > { %v7206_v36 = vadd.f32 1e-05, %v7198_v61  ;;  %v7192_v14 = vadd.f32 %v7182_v63, %v7118_v2 }
0x2748   : > { %10667 = vrsqrt.f32 %v7206_v36  ;;  %v7200_v24 = vmul.f32 0.0125, %v7192_v14 }
0x2749   : > { %v7185_v50 = vpop.xlane.xlu1 %7184 }
0x274a   : > { %v10662_v31 = vpop.eup %10661  ;;  %v7208_v27 = vadd.f32 1e-05, %v7200_v24  ;;  %v7193_v28 = vadd.f32 %v7185_v50, %v7121_v13 }
0x274b   : > { %v7228_v3 = vmul.f32 %v10662_v31, %v13647_v38  ;;  %v10664_v4 = vpop.eup %10663  ;;  %v7220_v32 = vmul.f32 %v10662_v31, %v13691_v55  ;;  %v7945_v55 = vld [vmem:[%s13843_s8 + $0x50] ss:$0 sm:$0xff] }
0x274c   : > { %10669 = vrsqrt.f32 %v7208_v27  ;;  %v7201_v54 = vmul.f32 0.0125, %v7193_v28  ;;  %v7229_v12 = vmul.f32 %v10664_v4, %v13650_v18  ;;  %v7221_v60 = vmul.f32 %v10664_v4, %v13697_v21 }
0x274d   : > { %7246 = vrot.lane.b32.xlu1 %v7228_v3, %s10707_s16 }
0x274e   : > { %v7209_v15 = vadd.f32 1e-05, %v7201_v54  ;;  %v10666_v53 = vpop.eup %10665 }
0x274f   : > { %v7231_v62 = vmul.f32 %v10666_v53, %v13658_v0  ;;  %v6970_v0 = vld [vmem:[%s13843_s8 + $0x18] sm:$0xff]  ;;  %v7223_v6 = vmul.f32 %v10666_v53, %v13713_v10 }
0x2750   : > { %10671 = vrsqrt.f32 %v7209_v15 }
0x2751   : > { %7248 = vrot.lane.b32.xlu1 %v7229_v12, %s10707_s16 }
0x2752   : > { %v10668_v25 = vpop.eup %10667 }
0x2753   : > { %v7230_v7 = vmul.f32 %v10668_v25, %v13664_v34  ;;  %v6969_v34 = vld [vmem:[%s13843_s8 + $0x10] sm:$0xff]  ;;  %v7222_v52 = vmul.f32 %v10668_v25, %v13703_v37 }
0x2754   : > { %v9773_v26 = vpack.c.bf16 %v6970_v0, %v6969_v34 }
0x2755   : > { %7250 = vrot.lane.b32.xlu0 %v7230_v7, %s10707_s16  ;;  %7252 = vrot.lane.b32.xlu1 %v7231_v62, %s10707_s16 }
0x2756   : > { %v10670_v38 = vpop.eup %10669 }
0x2757   : > { %v7232_v46 = vmul.f32 %v10670_v38, %v13671_v49  ;;  %v6971_v49 = vld [vmem:[%s13843_s8 + $0x20] sm:$0xff]  ;;  %v7224_v1 = vmul.f32 %v10670_v38, %v13716_v59 }
0x2759   : > { %7254 = vrot.lane.b32.xlu0 %v7232_v46, %s10707_s16 }
0x275a   : > { %v10672_v30 = vpop.eup %10671 }
0x275b   : > { %v7233_v18 = vmul.f32 %v10672_v30, %v13676_v42  ;;  %v7225_v40 = vmul.f32 %v10672_v30, %v13722_v39 }
0x275d   : > { %7256 = vrot.lane.b32.xlu1 %v7233_v18, %s10707_s16 }
0x27a8   : > { %v7245_v47 = vpop.permute.xlu1 %7244 }
0x27ac   : > { %v7243_v16 = vpop.permute.xlu0 %7242 }
0x27ad   : > { %9223 = vmatprep.mubr.msk.f32.mxu0 %vm498_vm2, %v7243_v16 }
0x27ae   : > { %9224 = vmatmul.mubr.msk.f32.vlgmr.msra.gmra.mrb[104].mxu0 %vm498_vm2, %v7245_v47 }
0x27af   : > { %9772 = vmatpush3.bf16.msra.mxu0 %v9769_v44 }
0x27b0   : > { %9774 = vmatprep.subr.bf16.mxu0 %v9773_v26 }
0x27b3   : > { %9776 = vmatpush3.bf16.msra.mxu0 %v9773_v26 }
0x27b4   : > { %9243 = vmatprep.subr.mxu0 %v6971_v49 }
0x27b7   : > { %9244 = vmatpush3.msra.mxu0 %v6971_v49 }
0x27bf   : > { %v7247_v42 = vpop.permute.xlu1 %7246 }
0x27c0   : > { %9226 = vmatprep.mubr.msk.f32.mxu0 %vm498_vm2, %v7247_v42 }
0x27c3   : > { %v7249_v33 = vpop.permute.xlu1 %7248 }
0x27c4   : > { %9227 = vmatmul.mubr.msk.f32.gmra.mrb[106].mxu0 %vm498_vm2, %v7249_v33 }
0x27c7   : > { %v7253_v19 = vpop.permute.xlu1 %7252  ;;  %v7251_v51 = vpop.permute.xlu0 %7250 }
0x27c8   : > { %9229 = vmatprep.mubr.msk.f32.mxu0 %vm498_vm2, %v7251_v51 }
0x27c9   : > { %9230 = vmatmul.mubr.msk.f32.gmra.mrb[108].mxu0 %vm498_vm2, %v7253_v19 }
0x27cb   : > { %v7255_v22 = vpop.permute.xlu0 %7254 }
0x27cc   : > { %9232 = vmatprep.mubr.msk.f32.mxu0 %vm498_vm2, %v7255_v22 }
0x27cf   : > { %v7257_v45 = vpop.permute.xlu1 %7256 }
0x27d0   : > { %9233 = vmatmul.mubr.msk.f32.gmra.mrb[110].mxu0 %vm498_vm2, %v7257_v45 }
0x27d1   : > { %9245 = vmatprep.mubr.msk.f32.mxu0 %vm498_vm2, %v7218_v17 }
0x27d4   : > { %9246 = vmatmul.mubr.msk.f32.vlgmr.msra.gmra.mrb[104].mxu0 %vm498_vm2, %v7219_v58 }
0x27d5   : > { %9248 = vmatprep.mubr.msk.f32.mxu0 %vm498_vm2, %v7220_v32 }
0x27d8   : > { %9249 = vmatmul.mubr.msk.f32.gmra.mrb[106].mxu0 %vm498_vm2, %v7221_v60 }
0x27d9   : > { %9251 = vmatprep.mubr.msk.f32.mxu0 %vm498_vm2, %v7222_v52 }
0x27dc   : > { %9252 = vmatmul.mubr.msk.f32.gmra.mrb[108].mxu0 %vm498_vm2, %v7223_v6 }
0x27dd   : > { %9254 = vmatprep.mubr.msk.f32.mxu0 %vm498_vm2, %v7224_v1 }
0x27e0   : > { %9255 = vmatmul.mubr.msk.f32.gmra.mrb[110].mxu0 %vm498_vm2, %v7225_v40 }
0x28a7   : > { %v9247_v21 = vpop.f32.mrb[104].mxu0 }
0x28a8   : > { %v7513_v37 = vadd.f32 %v9247_v21, %v7945_v55  ;;  %v7469_v10 = vpop.f32.mrb[105].mxu0 }
0x28a9   : > { %v7512_v59 = vadd.f32 %v7945_v55, %v7469_v10 }
0x28aa   : > { %7522 = vst.msk [vmem:[%s332_s21 + $0x8] sm:$0xff] %vm7520_vm5, %v7513_v37 }
0x28ab   : > { %7521 = vst.msk [vmem:[%s332_s21] sm:$0xff] %vm7520_vm5, %v7512_v59  ;;  %v9250_v39 = vpop.f32.mrb[106].mxu0 }
0x28ac   : > { %v7515_v43 = vadd.f32 %v9250_v39, %v7945_v55  ;;  %v7479_v29 = vpop.f32.mrb[107].mxu0 }
0x28ad   : > { %v7514_v11 = vadd.f32 %v7945_v55, %v7479_v29 }
0x28ae   : > { %7524 = vst.msk [vmem:[%s332_s21 + $0x18] sm:$0xff] %vm7520_vm5, %v7515_v43 }
0x28af   : > { %7523 = vst.msk [vmem:[%s332_s21 + $0x10] sm:$0xff] %vm7520_vm5, %v7514_v11  ;;  %v9253_v8 = vpop.f32.mrb[108].mxu0 }
0x28b0   : > { %v7517_v9 = vadd.f32 %v9253_v8, %v7945_v55  ;;  %v7489_v35 = vpop.f32.mrb[109].mxu0 }
0x28b1   : > { %v7516_v23 = vadd.f32 %v7945_v55, %v7489_v35 }
0x28b2   : > { %7526 = vst.msk [vmem:[%s332_s21 + $0x28] sm:$0xff] %vm7520_vm5, %v7517_v9 }
0x28b3   : > { %7525 = vst.msk [vmem:[%s332_s21 + $0x20] sm:$0xff] %vm7520_vm5, %v7516_v23  ;;  %v9256_v20 = vpop.f32.mrb[110].mxu0 }
0x28b4   : > { %v7519_v57 = vadd.f32 %v9256_v20, %v7945_v55  ;;  %v7499_v48 = vpop.f32.mrb[111].mxu0 }
0x28b5   : > { %v7518_v5 = vadd.f32 %v7945_v55, %v7499_v48 }
0x28b6   : > { %7528 = vst.msk [vmem:[%s332_s21 + $0x38] sm:$0xff] %vm7520_vm5, %v7519_v57 }
0x28b7   : > { %7527 = vst.msk [vmem:[%s332_s21 + $0x30] sm:$0xff] %vm7520_vm5, %v7518_v5 }
0x28b8 PF: > { %s19_s30 = sadd.s32 1, %s10705_s30  }
0x28b9   : > { %p16_p4 = scmp.ge.s32.totalorder %s19_s30, 6  }
0x28bb   :  { %18 = sbr.rel (!%p16_p4) target bundleno = 1 (0x1), region = 90 }

</bundles_post_ra>
